<compile_context>
chip_gen: v5e
topology: v5e:2x2
jax: 0.10.0
libtpu: 0.0.40
codegen_flags: <defaults>
</compile_context>

<pallas_src>
import functools
import itertools

import jax
import jax.numpy as jnp
from jax.experimental import pallas as pl
from jax.experimental.pallas import tpu as pltpu


def _round_up(x, m):
    return ((x + m - 1) // m) * m


def _vmem_limit_bytes():
    # Generation-aware VMEM budget: ~48 MiB on v7x (64 MiB physical per TC),
    # ~96 MiB on v5e/v6e (128 MiB physical).  Fallback is safe everywhere.
    try:
        cap = int(pltpu.get_tpu_info().vmem_capacity_bytes)
    except Exception:
        cap = 64 * 1024 * 1024
    return min((cap * 3) // 4, 96 * 1024 * 1024)


_VMEM_LIMIT = _vmem_limit_bytes()
_DT = jnp.bfloat16  # activation / weight dtype fed to the MXU


# --------------------------- conv geometry -----------------------------------
#
# For a conv with kernel (kh, kw), stride s, padding p:
#   output (OH, OW); per tap (ki, kj) the input pixels used form a stride-s
#   grid of the padded input starting at (ki, kj).  Phase P_{a,b} = xp[a::s,
#   b::s] turns that into a *stride-1* shifted window: tap (ki, kj) reads
#   phase (ki%s, kj%s) at offset (ki//s, kj//s).
# We flatten each phase row-major over a common (PH, PW) grid with
#   PW = OW + (kw-1)//s,  PH = OH + (kh-1)//s,
# and compute the conv on the widened flat index m = oh*PW + ow' (ow' < PW).
# Then tap (ki, kj) is the contiguous flat row range
#   [di*PW + dj, di*PW + dj + OH*PW)   with di = ki//s, dj = kj//s.
# Columns ow' >= OW of the result are garbage and cropped afterwards.

def _conv_geometry(H, W, kh, kw, stride, pad):
    OH = (H + 2 * pad - kh) // stride + 1
    OW = (W + 2 * pad - kw) // stride + 1
    dh = (kh - 1) // stride
    dw = (kw - 1) // stride
    PH, PW = OH + dh, OW + dw
    l_in = PH * PW + dw          # extra rows so the last tap's slice stays in-bounds
    l_out = OH * PW
    phases = sorted({(ki % stride, kj % stride)
                     for ki in range(kh) for kj in range(kw)})
    slot = {ab: i for i, ab in enumerate(phases)}
    taps = [(slot[(ki % stride, kj % stride)],
             (ki // stride) * PW + (kj // stride))
            for ki, kj in itertools.product(range(kh), range(kw))]
    return OH, OW, PH, PW, l_in, l_out, phases, taps


def _build_phases(x, stride, pad, PH, PW, l_in, phases, pad_value):
    """x: (N,H,W,C) -> (P, N, l_in, C) flattened stride-phases of padded x."""
    N, H, W, C = x.shape
    xp = jnp.pad(x, ((0, 0), (pad, pad), (pad, pad), (0, 0)),
                 constant_values=pad_value)
    outs = []
    for (a, b) in phases:
        sub = xp[:, a::stride, b::stride, :]
        sub = sub[:, :PH, :PW, :]
        ph_pad = PH - sub.shape[1]
        pw_pad = PW - sub.shape[2]
        if ph_pad or pw_pad:
            sub = jnp.pad(sub, ((0, 0), (0, ph_pad), (0, pw_pad), (0, 0)),
                          constant_values=pad_value)
        outs.append(sub.reshape(N, PH * PW, C))
    stacked = jnp.stack(outs, axis=0)            # (P, N, PH*PW, C)
    extra = l_in - PH * PW
    if extra:
        stacked = jnp.pad(stacked, ((0, 0), (0, 0), (0, extra), (0, 0)),
                          constant_values=pad_value)
    return stacked


# --------------------------- Pallas kernels ----------------------------------

def _conv_bn_kernel(x_ref, w_ref, s_ref, b_ref, o_ref, acc_ref,
                    *, taps, l_out, relu):
    # x_ref: (P, l_in, Cin) bf16, w_ref: (KK, Cin, Cout) bf16
    for t, (p, off) in enumerate(taps):
        contrib = jnp.dot(x_ref[p, off:off + l_out, :], w_ref[t],
                          preferred_element_type=jnp.float32)
        if t == 0:
            acc_ref[...] = contrib
        else:
            acc_ref[...] += contrib
    y = acc_ref[...] * s_ref[...] + b_ref[...]
    if relu:
        y = jnp.maximum(y, 0.0)
    o_ref[...] = y.astype(o_ref.dtype)


def _conv_bn_res_kernel(x_ref, w_ref, s_ref, b_ref, r_ref, o_ref, acc_ref,
                        *, taps, l_out, relu):
    for t, (p, off) in enumerate(taps):
        contrib = jnp.dot(x_ref[p, off:off + l_out, :], w_ref[t],
                          preferred_element_type=jnp.float32)
        if t == 0:
            acc_ref[...] = contrib
        else:
            acc_ref[...] += contrib
    y = acc_ref[...] * s_ref[...] + b_ref[...] + r_ref[...].astype(jnp.float32)
    if relu:
        y = jnp.maximum(y, 0.0)
    o_ref[...] = y.astype(o_ref.dtype)


def _maxpool_kernel(x_ref, o_ref, *, taps, l_out):
    p0, off0 = taps[0]
    acc = x_ref[p0, off0:off0 + l_out, :]
    for (p, off) in taps[1:]:
        acc = jnp.maximum(acc, x_ref[p, off:off + l_out, :])
    o_ref[...] = acc


def _head_kernel(x_ref, w_ref, b_ref, o_ref):
    # global average pool (f32) fused with the final FC (bf16 MXU, f32 acc)
    pooled = jnp.mean(x_ref[...].astype(jnp.float32), axis=1)
    y = jnp.dot(pooled.astype(jnp.bfloat16), w_ref[...],
                preferred_element_type=jnp.float32)
    o_ref[...] = y + b_ref[...]


# --------------------------- kernel wrappers ----------------------------------

def conv_bn(x, w, scale, bias, kh, kw, stride, pad, relu=True, residual=None):
    """[relu]( BN(conv2d(x, bias=False)) [+ residual] ), NHWC bf16 activations.

    x: (N,H,W,Cin) bf16; w: (kh*kw, Cin, Cout) bf16; scale/bias: (1,Cout) f32;
    residual: (N,OH,OW,Cout) bf16 or None.  Returns (N,OH,OW,Cout) bf16.
    """
    N, H, W, Cin = x.shape
    Cout = w.shape[-1]
    OH, OW, PH, PW, l_in, l_out, phases, taps = _conv_geometry(
        H, W, kh, kw, stride, pad)
    xph = _build_phases(x, stride, pad, PH, PW, l_in, phases, 0.0)
    P = len(phases)

    in_specs = [
        pl.BlockSpec((P, None, l_in, Cin), lambda n: (0, n, 0, 0)),
        pl.BlockSpec((kh * kw, Cin, Cout), lambda n: (0, 0, 0)),
        pl.BlockSpec((1, Cout), lambda n: (0, 0)),
        pl.BlockSpec((1, Cout), lambda n: (0, 0)),
    ]
    args = [xph, w, scale, bias]
    if residual is not None:
        res = residual
        if PW != OW:  # put the residual on the same widened-width flat grid
            res = jnp.pad(res, ((0, 0), (0, 0), (0, PW - OW), (0, 0)))
        res = res.reshape(N, l_out, Cout)
        in_specs.append(pl.BlockSpec((None, l_out, Cout), lambda n: (n, 0, 0)))
        args.append(res)
        kernel = functools.partial(_conv_bn_res_kernel, taps=taps,
                                   l_out=l_out, relu=relu)
    else:
        kernel = functools.partial(_conv_bn_kernel, taps=taps,
                                   l_out=l_out, relu=relu)

    out = pl.pallas_call(
        kernel,
        out_shape=jax.ShapeDtypeStruct((N, l_out, Cout), _DT),
        grid=(N,),
        in_specs=in_specs,
        out_specs=pl.BlockSpec((None, l_out, Cout), lambda n: (n, 0, 0)),
        scratch_shapes=[pltpu.VMEM((l_out, Cout), jnp.float32)],
        compiler_params=pltpu.CompilerParams(
            dimension_semantics=("parallel",),
            vmem_limit_bytes=_VMEM_LIMIT),
    )(*args)
    # free reshape + cheap crop of the garbage columns of the widened grid
    return out.reshape(N, OH, PW, Cout)[:, :, :OW, :]


def maxpool2d(x, k=3, stride=2, pad=1):
    N, H, W, C = x.shape
    OH, OW, PH, PW, l_in, l_out, phases, taps = _conv_geometry(
        H, W, k, k, stride, pad)
    xph = _build_phases(x, stride, pad, PH, PW, l_in, phases, -jnp.inf)
    P = len(phases)
    out = pl.pallas_call(
        functools.partial(_maxpool_kernel, taps=taps, l_out=l_out),
        out_shape=jax.ShapeDtypeStruct((N, l_out, C), _DT),
        grid=(N,),
        in_specs=[pl.BlockSpec((P, None, l_in, C), lambda n: (0, n, 0, 0))],
        out_specs=pl.BlockSpec((None, l_out, C), lambda n: (n, 0, 0)),
        compiler_params=pltpu.CompilerParams(
            dimension_semantics=("parallel",),
            vmem_limit_bytes=_VMEM_LIMIT),
    )(xph)
    return out.reshape(N, OH, PW, C)[:, :, :OW, :]


def avgpool_fc(x, fc_w, fc_b):
    """AdaptiveAvgPool2d(1) + flatten + Linear fused into one kernel."""
    N, H, W, C = x.shape
    xf = x.reshape(N, H * W, C)
    n_out = fc_w.shape[1]               # already padded to a multiple of 128
    return pl.pallas_call(
        _head_kernel,
        out_shape=jax.ShapeDtypeStruct((N, n_out), jnp.float32),
        grid=(1,),
        in_specs=[pl.BlockSpec((N, H * W, C), lambda i: (0, 0, 0)),
                  pl.BlockSpec((C, n_out), lambda i: (0, 0)),
                  pl.BlockSpec((1, n_out), lambda i: (0, 0))],
        out_specs=pl.BlockSpec((N, n_out), lambda i: (0, 0)),
        compiler_params=pltpu.CompilerParams(
            dimension_semantics=("arbitrary",),
            vmem_limit_bytes=_VMEM_LIMIT),
    )(xf, fc_w, fc_b)


# --------------------------- parameters ---------------------------------------

def _conv_weight(key, kh, kw, cin, cout):
    w = jax.random.normal(key, (kh, kw, cin, cout), jnp.float32)
    w = w * (2.0 / (kh * kw * cin)) ** 0.5
    # tap-major layout (ki, kj) matching itertools.product in _conv_geometry
    return w.reshape(kh * kw, cin, cout).astype(_DT)


def _bn_params(key, c, eps=1e-5):
    k1, k2, k3, k4 = jax.random.split(key, 4)
    gamma = 1.0 + 0.1 * jax.random.normal(k1, (c,), jnp.float32)
    beta = 0.1 * jax.random.normal(k2, (c,), jnp.float32)
    mean = 0.1 * jax.random.normal(k3, (c,), jnp.float32)
    var = 1.0 + 0.1 * jax.random.uniform(k4, (c,), jnp.float32)
    scale = gamma / jnp.sqrt(var + eps)
    bias = beta - mean * scale
    return scale.reshape(1, c), bias.reshape(1, c)


def init_params(key, num_classes=1000):
    keys = iter(jax.random.split(key, 256))
    p = {}
    p["conv1_w"] = _conv_weight(next(keys), 7, 7, 3, 64)
    p["bn1"] = _bn_params(next(keys), 64)
    layer_cfg = [(64, 64, 3, 1), (64, 128, 4, 2),
                 (128, 256, 6, 2), (256, 512, 3, 2)]
    p["layers"] = []
    for in_planes, planes, num_blocks, stride in layer_cfg:
        blocks = []
        strides = [stride] + [1] * (num_blocks - 1)
        cin = in_planes
        for s in strides:
            blk = {
                "stride": s,
                "conv1_w": _conv_weight(next(keys), 3, 3, cin, planes),
                "bn1": _bn_params(next(keys), planes),
                "conv2_w": _conv_weight(next(keys), 3, 3, planes, planes),
                "bn2": _bn_params(next(keys), planes),
            }
            if s != 1 or cin != planes:
                # PyTorch module hardcodes stride=2 for the 1x1 downsample conv
                blk["down_w"] = _conv_weight(next(keys), 1, 1, cin, planes)
                blk["down_bn"] = _bn_params(next(keys), planes)
            blocks.append(blk)
            cin = planes
        p["layers"].append(blocks)
    n_pad = _round_up(num_classes, 128)   # lane-dense FC output (1000 -> 1024)
    fc_w = 0.05 * jax.random.normal(next(keys), (512, num_classes), jnp.float32)
    fc_b = 0.01 * jax.random.normal(next(keys), (num_classes,), jnp.float32)
    p["fc_w"] = jnp.pad(fc_w, ((0, 0), (0, n_pad - num_classes))).astype(_DT)
    p["fc_b"] = jnp.pad(fc_b, (0, n_pad - num_classes)).reshape(1, n_pad)
    p["num_classes"] = num_classes
    return p


# --------------------------- model forward ------------------------------------

def basic_block(x, blk):
    s = blk["stride"]
    s1, b1 = blk["bn1"]
    out = conv_bn(x, blk["conv1_w"], s1, b1, 3, 3, s, 1, relu=True)
    if "down_w" in blk:
        ds, db = blk["down_bn"]
        identity = conv_bn(x, blk["down_w"], ds, db, 1, 1, 2, 0, relu=False)
    else:
        identity = x
    s2, b2 = blk["bn2"]
    # bn2(conv2(out)) + identity, then relu — fused in one kernel call
    out = conv_bn(out, blk["conv2_w"], s2, b2, 3, 3, 1, 1, relu=True,
                  residual=identity)
    return out


def resnet34_forward(params, x_nchw):
    x = jnp.transpose(x_nchw, (0, 2, 3, 1)).astype(_DT)  # NCHW -> NHWC, bf16
    s, b = params["bn1"]
    # Reference forward is maxpool(bn(conv1(x))) — no ReLU at the stem.
    x = conv_bn(x, params["conv1_w"], s, b, 7, 7, 2, 3, relu=False)
    x = maxpool2d(x, 3, 2, 1)
    for blocks in params["layers"]:
        for blk in blocks:
            x = basic_block(x, blk)
    logits = avgpool_fc(x, params["fc_w"], params["fc_b"])
    return logits[:, :params["num_classes"]]


# --------------------------- main ----------------------------------------------

if __name__ == "__main__":
    key = jax.random.PRNGKey(0)
    pkey, xkey = jax.random.split(key)
    params = init_params(pkey, num_classes=1000)
    # small deterministic input, NCHW like the PyTorch module expects
    x = jax.random.normal(xkey, (2, 3, 16, 16), jnp.float32)
    out = resnet34_forward(params, x)
    out = jax.block_until_ready(out)
    assert out.shape == (2, 1000), out.shape
    assert bool(jnp.all(jnp.isfinite(out)))
    print("KERNEL_OK")
</pallas_src>

<mosaic_0001>
module attributes {stable_mosaic.version = 11 : i64} {
  func.func @_conv_bn_kernel(%arg0: i32, %arg1: memref<4x1x124x3xbf16, #tpu.memory_space<vmem>>, %arg2: memref<49x3x64xbf16, #tpu.memory_space<vmem>>, %arg3: memref<1x64xf32, #tpu.memory_space<vmem>>, %arg4: memref<1x64xf32, #tpu.memory_space<vmem>>, %arg5: memref<1x88x64xbf16, #tpu.memory_space<vmem>>, %arg6: memref<88x64xf32, #tpu.memory_space<vmem>>) attributes {dimension_semantics = [#tpu.dimension_semantics<parallel>], iteration_bounds = array<i64: 2>, scalar_prefetch = 0 : i64, scratch_operands = 1 : i64, tpu.core_type = #tpu.core_type<tc>, window_params = [{transform_indices = @transform_0, window_bounds = array<i64: 4, 1, 124, 3>}, {pipeline_mode = #tpu.pipeline_mode<synchronous>, transform_indices = @transform_1, window_bounds = array<i64: 49, 3, 64>}, {pipeline_mode = #tpu.pipeline_mode<synchronous>, transform_indices = @transform_2, window_bounds = array<i64: 1, 64>}, {pipeline_mode = #tpu.pipeline_mode<synchronous>, transform_indices = @transform_3, window_bounds = array<i64: 1, 64>}, {transform_indices = @transform_4, window_bounds = array<i64: 1, 88, 64>}]} {
    %c0 = arith.constant 0 : index
    %c0_0 = arith.constant 0 : index
    %c0_1 = arith.constant 0 : index
    %c0_2 = arith.constant 0 : index
    %0 = vector.load %arg1[%c0, %c0_0, %c0_1, %c0_2] : memref<4x1x124x3xbf16, #tpu.memory_space<vmem>>, vector<1x1x88x3xbf16>
    %1 = vector.shape_cast %0 : vector<1x1x88x3xbf16> to vector<88x3xbf16>
    %c0_3 = arith.constant 0 : index
    %c0_4 = arith.constant 0 : index
    %c0_5 = arith.constant 0 : index
    %2 = vector.load %arg2[%c0_3, %c0_4, %c0_5] : memref<49x3x64xbf16, #tpu.memory_space<vmem>>, vector<1x3x64xbf16>
    %3 = vector.shape_cast %2 : vector<1x3x64xbf16> to vector<3x64xbf16>
    %cst = arith.constant dense<0.000000e+00> : vector<88x64xf32>
    %4 = tpu.matmul %1, %3, %cst {dimension_numbers = #tpu.dot_dimension_numbers<[1], [0], [0], [1], [0, 0, 1, 1], [], []>} : vector<88x3xbf16>, vector<3x64xbf16>, vector<88x64xf32> -> vector<88x64xf32>
    %c0_6 = arith.constant 0 : index
    %c0_7 = arith.constant 0 : index
    %5 = vector.load %arg6[%c0_6, %c0_7] : memref<88x64xf32, #tpu.memory_space<vmem>>, vector<88x64xf32>
    tpu.vector_store %arg6[%c0_6, %c0_7], %4 {strides = array<i32>} : memref<88x64xf32, #tpu.memory_space<vmem>>, vector<88x64xf32>,
    %c1 = arith.constant 1 : index
    %c0_8 = arith.constant 0 : index
    %c0_9 = arith.constant 0 : index
    %c0_10 = arith.constant 0 : index
    %6 = vector.load %arg1[%c1, %c0_8, %c0_9, %c0_10] : memref<4x1x124x3xbf16, #tpu.memory_space<vmem>>, vector<1x1x88x3xbf16>
    %7 = vector.shape_cast %6 : vector<1x1x88x3xbf16> to vector<88x3xbf16>
    %c1_11 = arith.constant 1 : index
    %c0_12 = arith.constant 0 : index
    %c0_13 = arith.constant 0 : index
    %8 = vector.load %arg2[%c1_11, %c0_12, %c0_13] : memref<49x3x64xbf16, #tpu.memory_space<vmem>>, vector<1x3x64xbf16>
    %9 = vector.shape_cast %8 : vector<1x3x64xbf16> to vector<3x64xbf16>
    %cst_14 = arith.constant dense<0.000000e+00> : vector<88x64xf32>
    %10 = tpu.matmul %7, %9, %cst_14 {dimension_numbers = #tpu.dot_dimension_numbers<[1], [0], [0], [1], [0, 0, 1, 1], [], []>} : vector<88x3xbf16>, vector<3x64xbf16>, vector<88x64xf32> -> vector<88x64xf32>
    %c0_15 = arith.constant 0 : index
    %c0_16 = arith.constant 0 : index
    %11 = vector.load %arg6[%c0_15, %c0_16] : memref<88x64xf32, #tpu.memory_space<vmem>>, vector<88x64xf32>
    %12 = arith.addf %11, %10 : vector<88x64xf32>
    %c0_17 = arith.constant 0 : index
    %c0_18 = arith.constant 0 : index
    %13 = vector.load %arg6[%c0_17, %c0_18] : memref<88x64xf32, #tpu.memory_space<vmem>>, vector<88x64xf32>
    tpu.vector_store %arg6[%c0_17, %c0_18], %12 {strides = array<i32>} : memref<88x64xf32, #tpu.memory_space<vmem>>, vector<88x64xf32>,
    %c0_19 = arith.constant 0 : index
    %c0_20 = arith.constant 0 : index
    %c1_21 = arith.constant 1 : index
    %c0_22 = arith.constant 0 : index
    %14 = vector.load %arg1[%c0_19, %c0_20, %c1_21, %c0_22] : memref<4x1x124x3xbf16, #tpu.memory_space<vmem>>, vector<1x1x88x3xbf16>
    %15 = vector.shape_cast %14 : vector<1x1x88x3xbf16> to vector<88x3xbf16>
    %c2 = arith.constant 2 : index
    %c0_23 = arith.constant 0 : index
    %c0_24 = arith.constant 0 : index
    %16 = vector.load %arg2[%c2, %c0_23, %c0_24] : memref<49x3x64xbf16, #tpu.memory_space<vmem>>, vector<1x3x64xbf16>
    %17 = vector.shape_cast %16 : vector<1x3x64xbf16> to vector<3x64xbf16>
    %cst_25 = arith.constant dense<0.000000e+00> : vector<88x64xf32>
    %18 = tpu.matmul %15, %17, %cst_25 {dimension_numbers = #tpu.dot_dimension_numbers<[1], [0], [0], [1], [0, 0, 1, 1], [], []>} : vector<88x3xbf16>, vector<3x64xbf16>, vector<88x64xf32> -> vector<88x64xf32>
    %c0_26 = arith.constant 0 : index
    %c0_27 = arith.constant 0 : index
    %19 = vector.load %arg6[%c0_26, %c0_27] : memref<88x64xf32, #tpu.memory_space<vmem>>, vector<88x64xf32>
    %20 = arith.addf %19, %18 : vector<88x64xf32>
    %c0_28 = arith.constant 0 : index
    %c0_29 = arith.constant 0 : index
    %21 = vector.load %arg6[%c0_28, %c0_29] : memref<88x64xf32, #tpu.memory_space<vmem>>, vector<88x64xf32>
    tpu.vector_store %arg6[%c0_28, %c0_29], %20 {strides = array<i32>} : memref<88x64xf32, #tpu.memory_space<vmem>>, vector<88x64xf32>,
    %c1_30 = arith.constant 1 : index
    %c0_31 = arith.constant 0 : index
    %c1_32 = arith.constant 1 : index
    %c0_33 = arith.constant 0 : index
    %22 = vector.load %arg1[%c1_30, %c0_31, %c1_32, %c0_33] : memref<4x1x124x3xbf16, #tpu.memory_space<vmem>>, vector<1x1x88x3xbf16>
    %23 = vector.shape_cast %22 : vector<1x1x88x3xbf16> to vector<88x3xbf16>
    %c3 = arith.constant 3 : index
    %c0_34 = arith.constant 0 : index
    %c0_35 = arith.constant 0 : index
    %24 = vector.load %arg2[%c3, %c0_34, %c0_35] : memref<49x3x64xbf16, #tpu.memory_space<vmem>>, vector<1x3x64xbf16>
    %25 = vector.shape_cast %24 : vector<1x3x64xbf16> to vector<3x64xbf16>
    %cst_36 = arith.constant dense<0.000000e+00> : vector<88x64xf32>
    %26 = tpu.matmul %23, %25, %cst_36 {dimension_numbers = #tpu.dot_dimension_numbers<[1], [0], [0], [1], [0, 0, 1, 1], [], []>} : vector<88x3xbf16>, vector<3x64xbf16>, vector<88x64xf32> -> vector<88x64xf32>
    %c0_37 = arith.constant 0 : index
    %c0_38 = arith.constant 0 : index
    %27 = vector.load %arg6[%c0_37, %c0_38] : memref<88x64xf32, #tpu.memory_space<vmem>>, vector<88x64xf32>
    %28 = arith.addf %27, %26 : vector<88x64xf32>
    %c0_39 = arith.constant 0 : index
    %c0_40 = arith.constant 0 : index
    %29 = vector.load %arg6[%c0_39, %c0_40] : memref<88x64xf32, #tpu.memory_space<vmem>>, vector<88x64xf32>
    tpu.vector_store %arg6[%c0_39, %c0_40], %28 {strides = array<i32>} : memref<88x64xf32, #tpu.memory_space<vmem>>, vector<88x64xf32>,
    %c0_41 = arith.constant 0 : index
    %c0_42 = arith.constant 0 : index
    %c2_43 = arith.constant 2 : index
    %c0_44 = arith.constant 0 : index
    %30 = vector.load %arg1[%c0_41, %c0_42, %c2_43, %c0_44] : memref<4x1x124x3xbf16, #tpu.memory_space<vmem>>, vector<1x1x88x3xbf16>
    %31 = vector.shape_cast %30 : vector<1x1x88x3xbf16> to vector<88x3xbf16>
    %c4 = arith.constant 4 : index
    %c0_45 = arith.constant 0 : index
    %c0_46 = arith.constant 0 : index
    %32 = vector.load %arg2[%c4, %c0_45, %c0_46] : memref<49x3x64xbf16, #tpu.memory_space<vmem>>, vector<1x3x64xbf16>
    %33 = vector.shape_cast %32 : vector<1x3x64xbf16> to vector<3x64xbf16>
    %cst_47 = arith.constant dense<0.000000e+00> : vector<88x64xf32>
    %34 = tpu.matmul %31, %33, %cst_47 {dimension_numbers = #tpu.dot_dimension_numbers<[1], [0], [0], [1], [0, 0, 1, 1], [], []>} : vector<88x3xbf16>, vector<3x64xbf16>, vector<88x64xf32> -> vector<88x64xf32>
    %c0_48 = arith.constant 0 : index
    %c0_49 = arith.constant 0 : index
    %35 = vector.load %arg6[%c0_48, %c0_49] : memref<88x64xf32, #tpu.memory_space<vmem>>, vector<88x64xf32>
    %36 = arith.addf %35, %34 : vector<88x64xf32>
    %c0_50 = arith.constant 0 : index
    %c0_51 = arith.constant 0 : index
    %37 = vector.load %arg6[%c0_50, %c0_51] : memref<88x64xf32, #tpu.memory_space<vmem>>, vector<88x64xf32>
    tpu.vector_store %arg6[%c0_50, %c0_51], %36 {strides = array<i32>} : memref<88x64xf32, #tpu.memory_space<vmem>>, vector<88x64xf32>,
    %c1_52 = arith.constant 1 : index
    %c0_53 = arith.constant 0 : index
    %c2_54 = arith.constant 2 : index
    %c0_55 = arith.constant 0 : index
    %38 = vector.load %arg1[%c1_52, %c0_53, %c2_54, %c0_55] : memref<4x1x124x3xbf16, #tpu.memory_space<vmem>>, vector<1x1x88x3xbf16>
    %39 = vector.shape_cast %38 : vector<1x1x88x3xbf16> to vector<88x3xbf16>
    %c5 = arith.constant 5 : index
    %c0_56 = arith.constant 0 : index
    %c0_57 = arith.constant 0 : index
    %40 = vector.load %arg2[%c5, %c0_56, %c0_57] : memref<49x3x64xbf16, #tpu.memory_space<vmem>>, vector<1x3x64xbf16>
    %41 = vector.shape_cast %40 : vector<1x3x64xbf16> to vector<3x64xbf16>
    %cst_58 = arith.constant dense<0.000000e+00> : vector<88x64xf32>
    %42 = tpu.matmul %39, %41, %cst_58 {dimension_numbers = #tpu.dot_dimension_numbers<[1], [0], [0], [1], [0, 0, 1, 1], [], []>} : vector<88x3xbf16>, vector<3x64xbf16>, vector<88x64xf32> -> vector<88x64xf32>
    %c0_59 = arith.constant 0 : index
    %c0_60 = arith.constant 0 : index
    %43 = vector.load %arg6[%c0_59, %c0_60] : memref<88x64xf32, #tpu.memory_space<vmem>>, vector<88x64xf32>
    %44 = arith.addf %43, %42 : vector<88x64xf32>
    %c0_61 = arith.constant 0 : index
    %c0_62 = arith.constant 0 : index
    %45 = vector.load %arg6[%c0_61, %c0_62] : memref<88x64xf32, #tpu.memory_space<vmem>>, vector<88x64xf32>
    tpu.vector_store %arg6[%c0_61, %c0_62], %44 {strides = array<i32>} : memref<88x64xf32, #tpu.memory_space<vmem>>, vector<88x64xf32>,
    %c0_63 = arith.constant 0 : index
    %c0_64 = arith.constant 0 : index
    %c3_65 = arith.constant 3 : index
    %c0_66 = arith.constant 0 : index
    %46 = vector.load %arg1[%c0_63, %c0_64, %c3_65, %c0_66] : memref<4x1x124x3xbf16, #tpu.memory_space<vmem>>, vector<1x1x88x3xbf16>
    %47 = vector.shape_cast %46 : vector<1x1x88x3xbf16> to vector<88x3xbf16>
    %c6 = arith.constant 6 : index
    %c0_67 = arith.constant 0 : index
    %c0_68 = arith.constant 0 : index
    %48 = vector.load %arg2[%c6, %c0_67, %c0_68] : memref<49x3x64xbf16, #tpu.memory_space<vmem>>, vector<1x3x64xbf16>
    %49 = vector.shape_cast %48 : vector<1x3x64xbf16> to vector<3x64xbf16>
    %cst_69 = arith.constant dense<0.000000e+00> : vector<88x64xf32>
    %50 = tpu.matmul %47, %49, %cst_69 {dimension_numbers = #tpu.dot_dimension_numbers<[1], [0], [0], [1], [0, 0, 1, 1], [], []>} : vector<88x3xbf16>, vector<3x64xbf16>, vector<88x64xf32> -> vector<88x64xf32>
    %c0_70 = arith.constant 0 : index
    %c0_71 = arith.constant 0 : index
    %51 = vector.load %arg6[%c0_70, %c0_71] : memref<88x64xf32, #tpu.memory_space<vmem>>, vector<88x64xf32>
    %52 = arith.addf %51, %50 : vector<88x64xf32>
    %c0_72 = arith.constant 0 : index
    %c0_73 = arith.constant 0 : index
    %53 = vector.load %arg6[%c0_72, %c0_73] : memref<88x64xf32, #tpu.memory_space<vmem>>, vector<88x64xf32>
    tpu.vector_store %arg6[%c0_72, %c0_73], %52 {strides = array<i32>} : memref<88x64xf32, #tpu.memory_space<vmem>>, vector<88x64xf32>,
    %c2_74 = arith.constant 2 : index
    %c0_75 = arith.constant 0 : index
    %c0_76 = arith.constant 0 : index
    %c0_77 = arith.constant 0 : index
    %54 = vector.load %arg1[%c2_74, %c0_75, %c0_76, %c0_77] : memref<4x1x124x3xbf16, #tpu.memory_space<vmem>>, vector<1x1x88x3xbf16>
    %55 = vector.shape_cast %54 : vector<1x1x88x3xbf16> to vector<88x3xbf16>
    %c7 = arith.constant 7 : index
    %c0_78 = arith.constant 0 : index
    %c0_79 = arith.constant 0 : index
    %56 = vector.load %arg2[%c7, %c0_78, %c0_79] : memref<49x3x64xbf16, #tpu.memory_space<vmem>>, vector<1x3x64xbf16>
    %57 = vector.shape_cast %56 : vector<1x3x64xbf16> to vector<3x64xbf16>
    %cst_80 = arith.constant dense<0.000000e+00> : vector<88x64xf32>
    %58 = tpu.matmul %55, %57, %cst_80 {dimension_numbers = #tpu.dot_dimension_numbers<[1], [0], [0], [1], [0, 0, 1, 1], [], []>} : vector<88x3xbf16>, vector<3x64xbf16>, vector<88x64xf32> -> vector<88x64xf32>
    %c0_81 = arith.constant 0 : index
    %c0_82 = arith.constant 0 : index
    %59 = vector.load %arg6[%c0_81, %c0_82] : memref<88x64xf32, #tpu.memory_space<vmem>>, vector<88x64xf32>
    %60 = arith.addf %59, %58 : vector<88x64xf32>
    %c0_83 = arith.constant 0 : index
    %c0_84 = arith.constant 0 : index
    %61 = vector.load %arg6[%c0_83, %c0_84] : memref<88x64xf32, #tpu.memory_space<vmem>>, vector<88x64xf32>
    tpu.vector_store %arg6[%c0_83, %c0_84], %60 {strides = array<i32>} : memref<88x64xf32, #tpu.memory_space<vmem>>, vector<88x64xf32>,
    %c3_85 = arith.constant 3 : index
    %c0_86 = arith.constant 0 : index
    %c0_87 = arith.constant 0 : index
    %c0_88 = arith.constant 0 : index
    %62 = vector.load %arg1[%c3_85, %c0_86, %c0_87, %c0_88] : memref<4x1x124x3xbf16, #tpu.memory_space<vmem>>, vector<1x1x88x3xbf16>
    %63 = vector.shape_cast %62 : vector<1x1x88x3xbf16> to vector<88x3xbf16>
    %c8 = arith.constant 8 : index
    %c0_89 = arith.constant 0 : index
    %c0_90 = arith.constant 0 : index
    %64 = vector.load %arg2[%c8, %c0_89, %c0_90] : memref<49x3x64xbf16, #tpu.memory_space<vmem>>, vector<1x3x64xbf16>
    %65 = vector.shape_cast %64 : vector<1x3x64xbf16> to vector<3x64xbf16>
    %cst_91 = arith.constant dense<0.000000e+00> : vector<88x64xf32>
    %66 = tpu.matmul %63, %65, %cst_91 {dimension_numbers = #tpu.dot_dimension_numbers<[1], [0], [0], [1], [0, 0, 1, 1], [], []>} : vector<88x3xbf16>, vector<3x64xbf16>, vector<88x64xf32> -> vector<88x64xf32>
    %c0_92 = arith.constant 0 : index
    %c0_93 = arith.constant 0 : index
    %67 = vector.load %arg6[%c0_92, %c0_93] : memref<88x64xf32, #tpu.memory_space<vmem>>, vector<88x64xf32>
    %68 = arith.addf %67, %66 : vector<88x64xf32>
    %c0_94 = arith.constant 0 : index
    %c0_95 = arith.constant 0 : index
    %69 = vector.load %arg6[%c0_94, %c0_95] : memref<88x64xf32, #tpu.memory_space<vmem>>, vector<88x64xf32>
    tpu.vector_store %arg6[%c0_94, %c0_95], %68 {strides = array<i32>} : memref<88x64xf32, #tpu.memory_space<vmem>>, vector<88x64xf32>,
    %c2_96 = arith.constant 2 : index
    %c0_97 = arith.constant 0 : index
    %c1_98 = arith.constant 1 : index
    %c0_99 = arith.constant 0 : index
    %70 = vector.load %arg1[%c2_96, %c0_97, %c1_98, %c0_99] : memref<4x1x124x3xbf16, #tpu.memory_space<vmem>>, vector<1x1x88x3xbf16>
    %71 = vector.shape_cast %70 : vector<1x1x88x3xbf16> to vector<88x3xbf16>
    %c9 = arith.constant 9 : index
    %c0_100 = arith.constant 0 : index
    %c0_101 = arith.constant 0 : index
    %72 = vector.load %arg2[%c9, %c0_100, %c0_101] : memref<49x3x64xbf16, #tpu.memory_space<vmem>>, vector<1x3x64xbf16>
    %73 = vector.shape_cast %72 : vector<1x3x64xbf16> to vector<3x64xbf16>
    %cst_102 = arith.constant dense<0.000000e+00> : vector<88x64xf32>
    %74 = tpu.matmul %71, %73, %cst_102 {dimension_numbers = #tpu.dot_dimension_numbers<[1], [0], [0], [1], [0, 0, 1, 1], [], []>} : vector<88x3xbf16>, vector<3x64xbf16>, vector<88x64xf32> -> vector<88x64xf32>
    %c0_103 = arith.constant 0 : index
    %c0_104 = arith.constant 0 : index
    %75 = vector.load %arg6[%c0_103, %c0_104] : memref<88x64xf32, #tpu.memory_space<vmem>>, vector<88x64xf32>
    %76 = arith.addf %75, %74 : vector<88x64xf32>
    %c0_105 = arith.constant 0 : index
    %c0_106 = arith.constant 0 : index
    %77 = vector.load %arg6[%c0_105, %c0_106] : memref<88x64xf32, #tpu.memory_space<vmem>>, vector<88x64xf32>
    tpu.vector_store %arg6[%c0_105, %c0_106], %76 {strides = array<i32>} : memref<88x64xf32, #tpu.memory_space<vmem>>, vector<88x64xf32>,
    %c3_107 = arith.constant 3 : index
    %c0_108 = arith.constant 0 : index
    %c1_109 = arith.constant 1 : index
    %c0_110 = arith.constant 0 : index
    %78 = vector.load %arg1[%c3_107, %c0_108, %c1_109, %c0_110] : memref<4x1x124x3xbf16, #tpu.memory_space<vmem>>, vector<1x1x88x3xbf16>
    %79 = vector.shape_cast %78 : vector<1x1x88x3xbf16> to vector<88x3xbf16>
    %c10 = arith.constant 10 : index
    %c0_111 = arith.constant 0 : index
    %c0_112 = arith.constant 0 : index
    %80 = vector.load %arg2[%c10, %c0_111, %c0_112] : memref<49x3x64xbf16, #tpu.memory_space<vmem>>, vector<1x3x64xbf16>
    %81 = vector.shape_cast %80 : vector<1x3x64xbf16> to vector<3x64xbf16>
    %cst_113 = arith.constant dense<0.000000e+00> : vector<88x64xf32>
    %82 = tpu.matmul %79, %81, %cst_113 {dimension_numbers = #tpu.dot_dimension_numbers<[1], [0], [0], [1], [0, 0, 1, 1], [], []>} : vector<88x3xbf16>, vector<3x64xbf16>, vector<88x64xf32> -> vector<88x64xf32>
    %c0_114 = arith.constant 0 : index
    %c0_115 = arith.constant 0 : index
    %83 = vector.load %arg6[%c0_114, %c0_115] : memref<88x64xf32, #tpu.memory_space<vmem>>, vector<88x64xf32>
    %84 = arith.addf %83, %82 : vector<88x64xf32>
    %c0_116 = arith.constant 0 : index
    %c0_117 = arith.constant 0 : index
    %85 = vector.load %arg6[%c0_116, %c0_117] : memref<88x64xf32, #tpu.memory_space<vmem>>, vector<88x64xf32>
    tpu.vector_store %arg6[%c0_116, %c0_117], %84 {strides = array<i32>} : memref<88x64xf32, #tpu.memory_space<vmem>>, vector<88x64xf32>,
    %c2_118 = arith.constant 2 : index
    %c0_119 = arith.constant 0 : index
    %c2_120 = arith.constant 2 : index
    %c0_121 = arith.constant 0 : index
    %86 = vector.load %arg1[%c2_118, %c0_119, %c2_120, %c0_121] : memref<4x1x124x3xbf16, #tpu.memory_space<vmem>>, vector<1x1x88x3xbf16>
    %87 = vector.shape_cast %86 : vector<1x1x88x3xbf16> to vector<88x3xbf16>
    %c11 = arith.constant 11 : index
    %c0_122 = arith.constant 0 : index
    %c0_123 = arith.constant 0 : index
    %88 = vector.load %arg2[%c11, %c0_122, %c0_123] : memref<49x3x64xbf16, #tpu.memory_space<vmem>>, vector<1x3x64xbf16>
    %89 = vector.shape_cast %88 : vector<1x3x64xbf16> to vector<3x64xbf16>
    %cst_124 = arith.constant dense<0.000000e+00> : vector<88x64xf32>
    %90 = tpu.matmul %87, %89, %cst_124 {dimension_numbers = #tpu.dot_dimension_numbers<[1], [0], [0], [1], [0, 0, 1, 1], [], []>} : vector<88x3xbf16>, vector<3x64xbf16>, vector<88x64xf32> -> vector<88x64xf32>
    %c0_125 = arith.constant 0 : index
    %c0_126 = arith.constant 0 : index
    %91 = vector.load %arg6[%c0_125, %c0_126] : memref<88x64xf32, #tpu.memory_space<vmem>>, vector<88x64xf32>
    %92 = arith.addf %91, %90 : vector<88x64xf32>
    %c0_127 = arith.constant 0 : index
    %c0_128 = arith.constant 0 : index
    %93 = vector.load %arg6[%c0_127, %c0_128] : memref<88x64xf32, #tpu.memory_space<vmem>>, vector<88x64xf32>
    tpu.vector_store %arg6[%c0_127, %c0_128], %92 {strides = array<i32>} : memref<88x64xf32, #tpu.memory_space<vmem>>, vector<88x64xf32>,
    %c3_129 = arith.constant 3 : index
    %c0_130 = arith.constant 0 : index
    %c2_131 = arith.constant 2 : index
    %c0_132 = arith.constant 0 : index
    %94 = vector.load %arg1[%c3_129, %c0_130, %c2_131, %c0_132] : memref<4x1x124x3xbf16, #tpu.memory_space<vmem>>, vector<1x1x88x3xbf16>
    %95 = vector.shape_cast %94 : vector<1x1x88x3xbf16> to vector<88x3xbf16>
    %c12 = arith.constant 12 : index
    %c0_133 = arith.constant 0 : index
    %c0_134 = arith.constant 0 : index
    %96 = vector.load %arg2[%c12, %c0_133, %c0_134] : memref<49x3x64xbf16, #tpu.memory_space<vmem>>, vector<1x3x64xbf16>
    %97 = vector.shape_cast %96 : vector<1x3x64xbf16> to vector<3x64xbf16>
    %cst_135 = arith.constant dense<0.000000e+00> : vector<88x64xf32>
    %98 = tpu.matmul %95, %97, %cst_135 {dimension_numbers = #tpu.dot_dimension_numbers<[1], [0], [0], [1], [0, 0, 1, 1], [], []>} : vector<88x3xbf16>, vector<3x64xbf16>, vector<88x64xf32> -> vector<88x64xf32>
    %c0_136 = arith.constant 0 : index
    %c0_137 = arith.constant 0 : index
    %99 = vector.load %arg6[%c0_136, %c0_137] : memref<88x64xf32, #tpu.memory_space<vmem>>, vector<88x64xf32>
    %100 = arith.addf %99, %98 : vector<88x64xf32>
    %c0_138 = arith.constant 0 : index
    %c0_139 = arith.constant 0 : index
    %101 = vector.load %arg6[%c0_138, %c0_139] : memref<88x64xf32, #tpu.memory_space<vmem>>, vector<88x64xf32>
    tpu.vector_store %arg6[%c0_138, %c0_139], %100 {strides = array<i32>} : memref<88x64xf32, #tpu.memory_space<vmem>>, vector<88x64xf32>,
    %c2_140 = arith.constant 2 : index
    %c0_141 = arith.constant 0 : index
    %c3_142 = arith.constant 3 : index
    %c0_143 = arith.constant 0 : index
    %102 = vector.load %arg1[%c2_140, %c0_141, %c3_142, %c0_143] : memref<4x1x124x3xbf16, #tpu.memory_space<vmem>>, vector<1x1x88x3xbf16>
    %103 = vector.shape_cast %102 : vector<1x1x88x3xbf16> to vector<88x3xbf16>
    %c13 = arith.constant 13 : index
    %c0_144 = arith.constant 0 : index
    %c0_145 = arith.constant 0 : index
    %104 = vector.load %arg2[%c13, %c0_144, %c0_145] : memref<49x3x64xbf16, #tpu.memory_space<vmem>>, vector<1x3x64xbf16>
    %105 = vector.shape_cast %104 : vector<1x3x64xbf16> to vector<3x64xbf16>
    %cst_146 = arith.constant dense<0.000000e+00> : vector<88x64xf32>
    %106 = tpu.matmul %103, %105, %cst_146 {dimension_numbers = #tpu.dot_dimension_numbers<[1], [0], [0], [1], [0, 0, 1, 1], [], []>} : vector<88x3xbf16>, vector<3x64xbf16>, vector<88x64xf32> -> vector<88x64xf32>
    %c0_147 = arith.constant 0 : index
    %c0_148 = arith.constant 0 : index
    %107 = vector.load %arg6[%c0_147, %c0_148] : memref<88x64xf32, #tpu.memory_space<vmem>>, vector<88x64xf32>
    %108 = arith.addf %107, %106 : vector<88x64xf32>
    %c0_149 = arith.constant 0 : index
    %c0_150 = arith.constant 0 : index
    %109 = vector.load %arg6[%c0_149, %c0_150] : memref<88x64xf32, #tpu.memory_space<vmem>>, vector<88x64xf32>
    tpu.vector_store %arg6[%c0_149, %c0_150], %108 {strides = array<i32>} : memref<88x64xf32, #tpu.memory_space<vmem>>, vector<88x64xf32>,
    %c0_151 = arith.constant 0 : index
    %c0_152 = arith.constant 0 : index
    %c11_153 = arith.constant 11 : index
    %c0_154 = arith.constant 0 : index
    %110 = vector.load %arg1[%c0_151, %c0_152, %c11_153, %c0_154] : memref<4x1x124x3xbf16, #tpu.memory_space<vmem>>, vector<1x1x88x3xbf16>
    %111 = vector.shape_cast %110 : vector<1x1x88x3xbf16> to vector<88x3xbf16>
    %c14 = arith.constant 14 : index
    %c0_155 = arith.constant 0 : index
    %c0_156 = arith.constant 0 : index
    %112 = vector.load %arg2[%c14, %c0_155, %c0_156] : memref<49x3x64xbf16, #tpu.memory_space<vmem>>, vector<1x3x64xbf16>
    %113 = vector.shape_cast %112 : vector<1x3x64xbf16> to vector<3x64xbf16>
    %cst_157 = arith.constant dense<0.000000e+00> : vector<88x64xf32>
    %114 = tpu.matmul %111, %113, %cst_157 {dimension_numbers = #tpu.dot_dimension_numbers<[1], [0], [0], [1], [0, 0, 1, 1], [], []>} : vector<88x3xbf16>, vector<3x64xbf16>, vector<88x64xf32> -> vector<88x64xf32>
    %c0_158 = arith.constant 0 : index
    %c0_159 = arith.constant 0 : index
    %115 = vector.load %arg6[%c0_158, %c0_159] : memref<88x64xf32, #tpu.memory_space<vmem>>, vector<88x64xf32>
    %116 = arith.addf %115, %114 : vector<88x64xf32>
    %c0_160 = arith.constant 0 : index
    %c0_161 = arith.constant 0 : index
    %117 = vector.load %arg6[%c0_160, %c0_161] : memref<88x64xf32, #tpu.memory_space<vmem>>, vector<88x64xf32>
    tpu.vector_store %arg6[%c0_160, %c0_161], %116 {strides = array<i32>} : memref<88x64xf32, #tpu.memory_space<vmem>>, vector<88x64xf32>,
    %c1_162 = arith.constant 1 : index
    %c0_163 = arith.constant 0 : index
    %c11_164 = arith.constant 11 : index
    %c0_165 = arith.constant 0 : index
    %118 = vector.load %arg1[%c1_162, %c0_163, %c11_164, %c0_165] : memref<4x1x124x3xbf16, #tpu.memory_space<vmem>>, vector<1x1x88x3xbf16>
    %119 = vector.shape_cast %118 : vector<1x1x88x3xbf16> to vector<88x3xbf16>
    %c15 = arith.constant 15 : index
    %c0_166 = arith.constant 0 : index
    %c0_167 = arith.constant 0 : index
    %120 = vector.load %arg2[%c15, %c0_166, %c0_167] : memref<49x3x64xbf16, #tpu.memory_space<vmem>>, vector<1x3x64xbf16>
    %121 = vector.shape_cast %120 : vector<1x3x64xbf16> to vector<3x64xbf16>
    %cst_168 = arith.constant dense<0.000000e+00> : vector<88x64xf32>
    %122 = tpu.matmul %119, %121, %cst_168 {dimension_numbers = #tpu.dot_dimension_numbers<[1], [0], [0], [1], [0, 0, 1, 1], [], []>} : vector<88x3xbf16>, vector<3x64xbf16>, vector<88x64xf32> -> vector<88x64xf32>
    %c0_169 = arith.constant 0 : index
    %c0_170 = arith.constant 0 : index
    %123 = vector.load %arg6[%c0_169, %c0_170] : memref<88x64xf32, #tpu.memory_space<vmem>>, vector<88x64xf32>
    %124 = arith.addf %123, %122 : vector<88x64xf32>
    %c0_171 = arith.constant 0 : index
    %c0_172 = arith.constant 0 : index
    %125 = vector.load %arg6[%c0_171, %c0_172] : memref<88x64xf32, #tpu.memory_space<vmem>>, vector<88x64xf32>
    tpu.vector_store %arg6[%c0_171, %c0_172], %124 {strides = array<i32>} : memref<88x64xf32, #tpu.memory_space<vmem>>, vector<88x64xf32>,
    %c0_173 = arith.constant 0 : index
    %c0_174 = arith.constant 0 : index
    %c12_175 = arith.constant 12 : index
    %c0_176 = arith.constant 0 : index
    %126 = vector.load %arg1[%c0_173, %c0_174, %c12_175, %c0_176] : memref<4x1x124x3xbf16, #tpu.memory_space<vmem>>, vector<1x1x88x3xbf16>
    %127 = vector.shape_cast %126 : vector<1x1x88x3xbf16> to vector<88x3xbf16>
    %c16 = arith.constant 16 : index
    %c0_177 = arith.constant 0 : index
    %c0_178 = arith.constant 0 : index
    %128 = vector.load %arg2[%c16, %c0_177, %c0_178] : memref<49x3x64xbf16, #tpu.memory_space<vmem>>, vector<1x3x64xbf16>
    %129 = vector.shape_cast %128 : vector<1x3x64xbf16> to vector<3x64xbf16>
    %cst_179 = arith.constant dense<0.000000e+00> : vector<88x64xf32>
    %130 = tpu.matmul %127, %129, %cst_179 {dimension_numbers = #tpu.dot_dimension_numbers<[1], [0], [0], [1], [0, 0, 1, 1], [], []>} : vector<88x3xbf16>, vector<3x64xbf16>, vector<88x64xf32> -> vector<88x64xf32>
    %c0_180 = arith.constant 0 : index
    %c0_181 = arith.constant 0 : index
    %131 = vector.load %arg6[%c0_180, %c0_181] : memref<88x64xf32, #tpu.memory_space<vmem>>, vector<88x64xf32>
    %132 = arith.addf %131, %130 : vector<88x64xf32>
    %c0_182 = arith.constant 0 : index
    %c0_183 = arith.constant 0 : index
    %133 = vector.load %arg6[%c0_182, %c0_183] : memref<88x64xf32, #tpu.memory_space<vmem>>, vector<88x64xf32>
    tpu.vector_store %arg6[%c0_182, %c0_183], %132 {strides = array<i32>} : memref<88x64xf32, #tpu.memory_space<vmem>>, vector<88x64xf32>,
    %c1_184 = arith.constant 1 : index
    %c0_185 = arith.constant 0 : index
    %c12_186 = arith.constant 12 : index
    %c0_187 = arith.constant 0 : index
    %134 = vector.load %arg1[%c1_184, %c0_185, %c12_186, %c0_187] : memref<4x1x124x3xbf16, #tpu.memory_space<vmem>>, vector<1x1x88x3xbf16>
    %135 = vector.shape_cast %134 : vector<1x1x88x3xbf16> to vector<88x3xbf16>
    %c17 = arith.constant 17 : index
    %c0_188 = arith.constant 0 : index
    %c0_189 = arith.constant 0 : index
    %136 = vector.load %arg2[%c17, %c0_188, %c0_189] : memref<49x3x64xbf16, #tpu.memory_space<vmem>>, vector<1x3x64xbf16>
    %137 = vector.shape_cast %136 : vector<1x3x64xbf16> to vector<3x64xbf16>
    %cst_190 = arith.constant dense<0.000000e+00> : vector<88x64xf32>
    %138 = tpu.matmul %135, %137, %cst_190 {dimension_numbers = #tpu.dot_dimension_numbers<[1], [0], [0], [1], [0, 0, 1, 1], [], []>} : vector<88x3xbf16>, vector<3x64xbf16>, vector<88x64xf32> -> vector<88x64xf32>
    %c0_191 = arith.constant 0 : index
    %c0_192 = arith.constant 0 : index
    %139 = vector.load %arg6[%c0_191, %c0_192] : memref<88x64xf32, #tpu.memory_space<vmem>>, vector<88x64xf32>
    %140 = arith.addf %139, %138 : vector<88x64xf32>
    %c0_193 = arith.constant 0 : index
    %c0_194 = arith.constant 0 : index
    %141 = vector.load %arg6[%c0_193, %c0_194] : memref<88x64xf32, #tpu.memory_space<vmem>>, vector<88x64xf32>
    tpu.vector_store %arg6[%c0_193, %c0_194], %140 {strides = array<i32>} : memref<88x64xf32, #tpu.memory_space<vmem>>, vector<88x64xf32>,
    %c0_195 = arith.constant 0 : index
    %c0_196 = arith.constant 0 : index
    %c13_197 = arith.constant 13 : index
    %c0_198 = arith.constant 0 : index
    %142 = vector.load %arg1[%c0_195, %c0_196, %c13_197, %c0_198] : memref<4x1x124x3xbf16, #tpu.memory_space<vmem>>, vector<1x1x88x3xbf16>
    %143 = vector.shape_cast %142 : vector<1x1x88x3xbf16> to vector<88x3xbf16>
    %c18 = arith.constant 18 : index
    %c0_199 = arith.constant 0 : index
    %c0_200 = arith.constant 0 : index
    %144 = vector.load %arg2[%c18, %c0_199, %c0_200] : memref<49x3x64xbf16, #tpu.memory_space<vmem>>, vector<1x3x64xbf16>
    %145 = vector.shape_cast %144 : vector<1x3x64xbf16> to vector<3x64xbf16>
    %cst_201 = arith.constant dense<0.000000e+00> : vector<88x64xf32>
    %146 = tpu.matmul %143, %145, %cst_201 {dimension_numbers = #tpu.dot_dimension_numbers<[1], [0], [0], [1], [0, 0, 1, 1], [], []>} : vector<88x3xbf16>, vector<3x64xbf16>, vector<88x64xf32> -> vector<88x64xf32>
    %c0_202 = arith.constant 0 : index
    %c0_203 = arith.constant 0 : index
    %147 = vector.load %arg6[%c0_202, %c0_203] : memref<88x64xf32, #tpu.memory_space<vmem>>, vector<88x64xf32>
    %148 = arith.addf %147, %146 : vector<88x64xf32>
    %c0_204 = arith.constant 0 : index
    %c0_205 = arith.constant 0 : index
    %149 = vector.load %arg6[%c0_204, %c0_205] : memref<88x64xf32, #tpu.memory_space<vmem>>, vector<88x64xf32>
    tpu.vector_store %arg6[%c0_204, %c0_205], %148 {strides = array<i32>} : memref<88x64xf32, #tpu.memory_space<vmem>>, vector<88x64xf32>,
    %c1_206 = arith.constant 1 : index
    %c0_207 = arith.constant 0 : index
    %c13_208 = arith.constant 13 : index
    %c0_209 = arith.constant 0 : index
    %150 = vector.load %arg1[%c1_206, %c0_207, %c13_208, %c0_209] : memref<4x1x124x3xbf16, #tpu.memory_space<vmem>>, vector<1x1x88x3xbf16>
    %151 = vector.shape_cast %150 : vector<1x1x88x3xbf16> to vector<88x3xbf16>
    %c19 = arith.constant 19 : index
    %c0_210 = arith.constant 0 : index
    %c0_211 = arith.constant 0 : index
    %152 = vector.load %arg2[%c19, %c0_210, %c0_211] : memref<49x3x64xbf16, #tpu.memory_space<vmem>>, vector<1x3x64xbf16>
    %153 = vector.shape_cast %152 : vector<1x3x64xbf16> to vector<3x64xbf16>
    %cst_212 = arith.constant dense<0.000000e+00> : vector<88x64xf32>
    %154 = tpu.matmul %151, %153, %cst_212 {dimension_numbers = #tpu.dot_dimension_numbers<[1], [0], [0], [1], [0, 0, 1, 1], [], []>} : vector<88x3xbf16>, vector<3x64xbf16>, vector<88x64xf32> -> vector<88x64xf32>
    %c0_213 = arith.constant 0 : index
    %c0_214 = arith.constant 0 : index
    %155 = vector.load %arg6[%c0_213, %c0_214] : memref<88x64xf32, #tpu.memory_space<vmem>>, vector<88x64xf32>
    %156 = arith.addf %155, %154 : vector<88x64xf32>
    %c0_215 = arith.constant 0 : index
    %c0_216 = arith.constant 0 : index
    %157 = vector.load %arg6[%c0_215, %c0_216] : memref<88x64xf32, #tpu.memory_space<vmem>>, vector<88x64xf32>
    tpu.vector_store %arg6[%c0_215, %c0_216], %156 {strides = array<i32>} : memref<88x64xf32, #tpu.memory_space<vmem>>, vector<88x64xf32>,
    %c0_217 = arith.constant 0 : index
    %c0_218 = arith.constant 0 : index
    %c14_219 = arith.constant 14 : index
    %c0_220 = arith.constant 0 : index
    %158 = vector.load %arg1[%c0_217, %c0_218, %c14_219, %c0_220] : memref<4x1x124x3xbf16, #tpu.memory_space<vmem>>, vector<1x1x88x3xbf16>
    %159 = vector.shape_cast %158 : vector<1x1x88x3xbf16> to vector<88x3xbf16>
    %c20 = arith.constant 20 : index
    %c0_221 = arith.constant 0 : index
    %c0_222 = arith.constant 0 : index
    %160 = vector.load %arg2[%c20, %c0_221, %c0_222] : memref<49x3x64xbf16, #tpu.memory_space<vmem>>, vector<1x3x64xbf16>
    %161 = vector.shape_cast %160 : vector<1x3x64xbf16> to vector<3x64xbf16>
    %cst_223 = arith.constant dense<0.000000e+00> : vector<88x64xf32>
    %162 = tpu.matmul %159, %161, %cst_223 {dimension_numbers = #tpu.dot_dimension_numbers<[1], [0], [0], [1], [0, 0, 1, 1], [], []>} : vector<88x3xbf16>, vector<3x64xbf16>, vector<88x64xf32> -> vector<88x64xf32>
    %c0_224 = arith.constant 0 : index
    %c0_225 = arith.constant 0 : index
    %163 = vector.load %arg6[%c0_224, %c0_225] : memref<88x64xf32, #tpu.memory_space<vmem>>, vector<88x64xf32>
    %164 = arith.addf %163, %162 : vector<88x64xf32>
    %c0_226 = arith.constant 0 : index
    %c0_227 = arith.constant 0 : index
    %165 = vector.load %arg6[%c0_226, %c0_227] : memref<88x64xf32, #tpu.memory_space<vmem>>, vector<88x64xf32>
    tpu.vector_store %arg6[%c0_226, %c0_227], %164 {strides = array<i32>} : memref<88x64xf32, #tpu.memory_space<vmem>>, vector<88x64xf32>,
    %c2_228 = arith.constant 2 : index
    %c0_229 = arith.constant 0 : index
    %c11_230 = arith.constant 11 : index
    %c0_231 = arith.constant 0 : index
    %166 = vector.load %arg1[%c2_228, %c0_229, %c11_230, %c0_231] : memref<4x1x124x3xbf16, #tpu.memory_space<vmem>>, vector<1x1x88x3xbf16>
    %167 = vector.shape_cast %166 : vector<1x1x88x3xbf16> to vector<88x3xbf16>
    %c21 = arith.constant 21 : index
    %c0_232 = arith.constant 0 : index
    %c0_233 = arith.constant 0 : index
    %168 = vector.load %arg2[%c21, %c0_232, %c0_233] : memref<49x3x64xbf16, #tpu.memory_space<vmem>>, vector<1x3x64xbf16>
    %169 = vector.shape_cast %168 : vector<1x3x64xbf16> to vector<3x64xbf16>
    %cst_234 = arith.constant dense<0.000000e+00> : vector<88x64xf32>
    %170 = tpu.matmul %167, %169, %cst_234 {dimension_numbers = #tpu.dot_dimension_numbers<[1], [0], [0], [1], [0, 0, 1, 1], [], []>} : vector<88x3xbf16>, vector<3x64xbf16>, vector<88x64xf32> -> vector<88x64xf32>
    %c0_235 = arith.constant 0 : index
    %c0_236 = arith.constant 0 : index
    %171 = vector.load %arg6[%c0_235, %c0_236] : memref<88x64xf32, #tpu.memory_space<vmem>>, vector<88x64xf32>
    %172 = arith.addf %171, %170 : vector<88x64xf32>
    %c0_237 = arith.constant 0 : index
    %c0_238 = arith.constant 0 : index
    %173 = vector.load %arg6[%c0_237, %c0_238] : memref<88x64xf32, #tpu.memory_space<vmem>>, vector<88x64xf32>
    tpu.vector_store %arg6[%c0_237, %c0_238], %172 {strides = array<i32>} : memref<88x64xf32, #tpu.memory_space<vmem>>, vector<88x64xf32>,
    %c3_239 = arith.constant 3 : index
    %c0_240 = arith.constant 0 : index
    %c11_241 = arith.constant 11 : index
    %c0_242 = arith.constant 0 : index
    %174 = vector.load %arg1[%c3_239, %c0_240, %c11_241, %c0_242] : memref<4x1x124x3xbf16, #tpu.memory_space<vmem>>, vector<1x1x88x3xbf16>
    %175 = vector.shape_cast %174 : vector<1x1x88x3xbf16> to vector<88x3xbf16>
    %c22 = arith.constant 22 : index
    %c0_243 = arith.constant 0 : index
    %c0_244 = arith.constant 0 : index
    %176 = vector.load %arg2[%c22, %c0_243, %c0_244] : memref<49x3x64xbf16, #tpu.memory_space<vmem>>, vector<1x3x64xbf16>
    %177 = vector.shape_cast %176 : vector<1x3x64xbf16> to vector<3x64xbf16>
    %cst_245 = arith.constant dense<0.000000e+00> : vector<88x64xf32>
    %178 = tpu.matmul %175, %177, %cst_245 {dimension_numbers = #tpu.dot_dimension_numbers<[1], [0], [0], [1], [0, 0, 1, 1], [], []>} : vector<88x3xbf16>, vector<3x64xbf16>, vector<88x64xf32> -> vector<88x64xf32>
    %c0_246 = arith.constant 0 : index
    %c0_247 = arith.constant 0 : index
    %179 = vector.load %arg6[%c0_246, %c0_247] : memref<88x64xf32, #tpu.memory_space<vmem>>, vector<88x64xf32>
    %180 = arith.addf %179, %178 : vector<88x64xf32>
    %c0_248 = arith.constant 0 : index
    %c0_249 = arith.constant 0 : index
    %181 = vector.load %arg6[%c0_248, %c0_249] : memref<88x64xf32, #tpu.memory_space<vmem>>, vector<88x64xf32>
    tpu.vector_store %arg6[%c0_248, %c0_249], %180 {strides = array<i32>} : memref<88x64xf32, #tpu.memory_space<vmem>>, vector<88x64xf32>,
    %c2_250 = arith.constant 2 : index
    %c0_251 = arith.constant 0 : index
    %c12_252 = arith.constant 12 : index
    %c0_253 = arith.constant 0 : index
    %182 = vector.load %arg1[%c2_250, %c0_251, %c12_252, %c0_253] : memref<4x1x124x3xbf16, #tpu.memory_space<vmem>>, vector<1x1x88x3xbf16>
    %183 = vector.shape_cast %182 : vector<1x1x88x3xbf16> to vector<88x3xbf16>
    %c23 = arith.constant 23 : index
    %c0_254 = arith.constant 0 : index
    %c0_255 = arith.constant 0 : index
    %184 = vector.load %arg2[%c23, %c0_254, %c0_255] : memref<49x3x64xbf16, #tpu.memory_space<vmem>>, vector<1x3x64xbf16>
    %185 = vector.shape_cast %184 : vector<1x3x64xbf16> to vector<3x64xbf16>
    %cst_256 = arith.constant dense<0.000000e+00> : vector<88x64xf32>
    %186 = tpu.matmul %183, %185, %cst_256 {dimension_numbers = #tpu.dot_dimension_numbers<[1], [0], [0], [1], [0, 0, 1, 1], [], []>} : vector<88x3xbf16>, vector<3x64xbf16>, vector<88x64xf32> -> vector<88x64xf32>
    %c0_257 = arith.constant 0 : index
    %c0_258 = arith.constant 0 : index
    %187 = vector.load %arg6[%c0_257, %c0_258] : memref<88x64xf32, #tpu.memory_space<vmem>>, vector<88x64xf32>
    %188 = arith.addf %187, %186 : vector<88x64xf32>
    %c0_259 = arith.constant 0 : index
    %c0_260 = arith.constant 0 : index
    %189 = vector.load %arg6[%c0_259, %c0_260] : memref<88x64xf32, #tpu.memory_space<vmem>>, vector<88x64xf32>
    tpu.vector_store %arg6[%c0_259, %c0_260], %188 {strides = array<i32>} : memref<88x64xf32, #tpu.memory_space<vmem>>, vector<88x64xf32>,
    %c3_261 = arith.constant 3 : index
    %c0_262 = arith.constant 0 : index
    %c12_263 = arith.constant 12 : index
    %c0_264 = arith.constant 0 : index
    %190 = vector.load %arg1[%c3_261, %c0_262, %c12_263, %c0_264] : memref<4x1x124x3xbf16, #tpu.memory_space<vmem>>, vector<1x1x88x3xbf16>
    %191 = vector.shape_cast %190 : vector<1x1x88x3xbf16> to vector<88x3xbf16>
    %c24 = arith.constant 24 : index
    %c0_265 = arith.constant 0 : index
    %c0_266 = arith.constant 0 : index
    %192 = vector.load %arg2[%c24, %c0_265, %c0_266] : memref<49x3x64xbf16, #tpu.memory_space<vmem>>, vector<1x3x64xbf16>
    %193 = vector.shape_cast %192 : vector<1x3x64xbf16> to vector<3x64xbf16>
    %cst_267 = arith.constant dense<0.000000e+00> : vector<88x64xf32>
    %194 = tpu.matmul %191, %193, %cst_267 {dimension_numbers = #tpu.dot_dimension_numbers<[1], [0], [0], [1], [0, 0, 1, 1], [], []>} : vector<88x3xbf16>, vector<3x64xbf16>, vector<88x64xf32> -> vector<88x64xf32>
    %c0_268 = arith.constant 0 : index
    %c0_269 = arith.constant 0 : index
    %195 = vector.load %arg6[%c0_268, %c0_269] : memref<88x64xf32, #tpu.memory_space<vmem>>, vector<88x64xf32>
    %196 = arith.addf %195, %194 : vector<88x64xf32>
    %c0_270 = arith.constant 0 : index
    %c0_271 = arith.constant 0 : index
    %197 = vector.load %arg6[%c0_270, %c0_271] : memref<88x64xf32, #tpu.memory_space<vmem>>, vector<88x64xf32>
    tpu.vector_store %arg6[%c0_270, %c0_271], %196 {strides = array<i32>} : memref<88x64xf32, #tpu.memory_space<vmem>>, vector<88x64xf32>,
    %c2_272 = arith.constant 2 : index
    %c0_273 = arith.constant 0 : index
    %c13_274 = arith.constant 13 : index
    %c0_275 = arith.constant 0 : index
    %198 = vector.load %arg1[%c2_272, %c0_273, %c13_274, %c0_275] : memref<4x1x124x3xbf16, #tpu.memory_space<vmem>>, vector<1x1x88x3xbf16>
    %199 = vector.shape_cast %198 : vector<1x1x88x3xbf16> to vector<88x3xbf16>
    %c25 = arith.constant 25 : index
    %c0_276 = arith.constant 0 : index
    %c0_277 = arith.constant 0 : index
    %200 = vector.load %arg2[%c25, %c0_276, %c0_277] : memref<49x3x64xbf16, #tpu.memory_space<vmem>>, vector<1x3x64xbf16>
    %201 = vector.shape_cast %200 : vector<1x3x64xbf16> to vector<3x64xbf16>
    %cst_278 = arith.constant dense<0.000000e+00> : vector<88x64xf32>
    %202 = tpu.matmul %199, %201, %cst_278 {dimension_numbers = #tpu.dot_dimension_numbers<[1], [0], [0], [1], [0, 0, 1, 1], [], []>} : vector<88x3xbf16>, vector<3x64xbf16>, vector<88x64xf32> -> vector<88x64xf32>
    %c0_279 = arith.constant 0 : index
    %c0_280 = arith.constant 0 : index
    %203 = vector.load %arg6[%c0_279, %c0_280] : memref<88x64xf32, #tpu.memory_space<vmem>>, vector<88x64xf32>
    %204 = arith.addf %203, %202 : vector<88x64xf32>
    %c0_281 = arith.constant 0 : index
    %c0_282 = arith.constant 0 : index
    %205 = vector.load %arg6[%c0_281, %c0_282] : memref<88x64xf32, #tpu.memory_space<vmem>>, vector<88x64xf32>
    tpu.vector_store %arg6[%c0_281, %c0_282], %204 {strides = array<i32>} : memref<88x64xf32, #tpu.memory_space<vmem>>, vector<88x64xf32>,
    %c3_283 = arith.constant 3 : index
    %c0_284 = arith.constant 0 : index
    %c13_285 = arith.constant 13 : index
    %c0_286 = arith.constant 0 : index
    %206 = vector.load %arg1[%c3_283, %c0_284, %c13_285, %c0_286] : memref<4x1x124x3xbf16, #tpu.memory_space<vmem>>, vector<1x1x88x3xbf16>
    %207 = vector.shape_cast %206 : vector<1x1x88x3xbf16> to vector<88x3xbf16>
    %c26 = arith.constant 26 : index
    %c0_287 = arith.constant 0 : index
    %c0_288 = arith.constant 0 : index
    %208 = vector.load %arg2[%c26, %c0_287, %c0_288] : memref<49x3x64xbf16, #tpu.memory_space<vmem>>, vector<1x3x64xbf16>
    %209 = vector.shape_cast %208 : vector<1x3x64xbf16> to vector<3x64xbf16>
    %cst_289 = arith.constant dense<0.000000e+00> : vector<88x64xf32>
    %210 = tpu.matmul %207, %209, %cst_289 {dimension_numbers = #tpu.dot_dimension_numbers<[1], [0], [0], [1], [0, 0, 1, 1], [], []>} : vector<88x3xbf16>, vector<3x64xbf16>, vector<88x64xf32> -> vector<88x64xf32>
    %c0_290 = arith.constant 0 : index
    %c0_291 = arith.constant 0 : index
    %211 = vector.load %arg6[%c0_290, %c0_291] : memref<88x64xf32, #tpu.memory_space<vmem>>, vector<88x64xf32>
    %212 = arith.addf %211, %210 : vector<88x64xf32>
    %c0_292 = arith.constant 0 : index
    %c0_293 = arith.constant 0 : index
    %213 = vector.load %arg6[%c0_292, %c0_293] : memref<88x64xf32, #tpu.memory_space<vmem>>, vector<88x64xf32>
    tpu.vector_store %arg6[%c0_292, %c0_293], %212 {strides = array<i32>} : memref<88x64xf32, #tpu.memory_space<vmem>>, vector<88x64xf32>,
    %c2_294 = arith.constant 2 : index
    %c0_295 = arith.constant 0 : index
    %c14_296 = arith.constant 14 : index
    %c0_297 = arith.constant 0 : index
    %214 = vector.load %arg1[%c2_294, %c0_295, %c14_296, %c0_297] : memref<4x1x124x3xbf16, #tpu.memory_space<vmem>>, vector<1x1x88x3xbf16>
    %215 = vector.shape_cast %214 : vector<1x1x88x3xbf16> to vector<88x3xbf16>
    %c27 = arith.constant 27 : index
    %c0_298 = arith.constant 0 : index
    %c0_299 = arith.constant 0 : index
    %216 = vector.load %arg2[%c27, %c0_298, %c0_299] : memref<49x3x64xbf16, #tpu.memory_space<vmem>>, vector<1x3x64xbf16>
    %217 = vector.shape_cast %216 : vector<1x3x64xbf16> to vector<3x64xbf16>
    %cst_300 = arith.constant dense<0.000000e+00> : vector<88x64xf32>
    %218 = tpu.matmul %215, %217, %cst_300 {dimension_numbers = #tpu.dot_dimension_numbers<[1], [0], [0], [1], [0, 0, 1, 1], [], []>} : vector<88x3xbf16>, vector<3x64xbf16>, vector<88x64xf32> -> vector<88x64xf32>
    %c0_301 = arith.constant 0 : index
    %c0_302 = arith.constant 0 : index
    %219 = vector.load %arg6[%c0_301, %c0_302] : memref<88x64xf32, #tpu.memory_space<vmem>>, vector<88x64xf32>
    %220 = arith.addf %219, %218 : vector<88x64xf32>
    %c0_303 = arith.constant 0 : index
    %c0_304 = arith.constant 0 : index
    %221 = vector.load %arg6[%c0_303, %c0_304] : memref<88x64xf32, #tpu.memory_space<vmem>>, vector<88x64xf32>
    tpu.vector_store %arg6[%c0_303, %c0_304], %220 {strides = array<i32>} : memref<88x64xf32, #tpu.memory_space<vmem>>, vector<88x64xf32>,
    %c0_305 = arith.constant 0 : index
    %c0_306 = arith.constant 0 : index
    %c22_307 = arith.constant 22 : index
    %c0_308 = arith.constant 0 : index
    %222 = vector.load %arg1[%c0_305, %c0_306, %c22_307, %c0_308] : memref<4x1x124x3xbf16, #tpu.memory_space<vmem>>, vector<1x1x88x3xbf16>
    %223 = vector.shape_cast %222 : vector<1x1x88x3xbf16> to vector<88x3xbf16>
    %c28 = arith.constant 28 : index
    %c0_309 = arith.constant 0 : index
    %c0_310 = arith.constant 0 : index
    %224 = vector.load %arg2[%c28, %c0_309, %c0_310] : memref<49x3x64xbf16, #tpu.memory_space<vmem>>, vector<1x3x64xbf16>
    %225 = vector.shape_cast %224 : vector<1x3x64xbf16> to vector<3x64xbf16>
    %cst_311 = arith.constant dense<0.000000e+00> : vector<88x64xf32>
    %226 = tpu.matmul %223, %225, %cst_311 {dimension_numbers = #tpu.dot_dimension_numbers<[1], [0], [0], [1], [0, 0, 1, 1], [], []>} : vector<88x3xbf16>, vector<3x64xbf16>, vector<88x64xf32> -> vector<88x64xf32>
    %c0_312 = arith.constant 0 : index
    %c0_313 = arith.constant 0 : index
    %227 = vector.load %arg6[%c0_312, %c0_313] : memref<88x64xf32, #tpu.memory_space<vmem>>, vector<88x64xf32>
    %228 = arith.addf %227, %226 : vector<88x64xf32>
    %c0_314 = arith.constant 0 : index
    %c0_315 = arith.constant 0 : index
    %229 = vector.load %arg6[%c0_314, %c0_315] : memref<88x64xf32, #tpu.memory_space<vmem>>, vector<88x64xf32>
    tpu.vector_store %arg6[%c0_314, %c0_315], %228 {strides = array<i32>} : memref<88x64xf32, #tpu.memory_space<vmem>>, vector<88x64xf32>,
    %c1_316 = arith.constant 1 : index
    %c0_317 = arith.constant 0 : index
    %c22_318 = arith.constant 22 : index
    %c0_319 = arith.constant 0 : index
    %230 = vector.load %arg1[%c1_316, %c0_317, %c22_318, %c0_319] : memref<4x1x124x3xbf16, #tpu.memory_space<vmem>>, vector<1x1x88x3xbf16>
    %231 = vector.shape_cast %230 : vector<1x1x88x3xbf16> to vector<88x3xbf16>
    %c29 = arith.constant 29 : index
    %c0_320 = arith.constant 0 : index
    %c0_321 = arith.constant 0 : index
    %232 = vector.load %arg2[%c29, %c0_320, %c0_321] : memref<49x3x64xbf16, #tpu.memory_space<vmem>>, vector<1x3x64xbf16>
    %233 = vector.shape_cast %232 : vector<1x3x64xbf16> to vector<3x64xbf16>
    %cst_322 = arith.constant dense<0.000000e+00> : vector<88x64xf32>
    %234 = tpu.matmul %231, %233, %cst_322 {dimension_numbers = #tpu.dot_dimension_numbers<[1], [0], [0], [1], [0, 0, 1, 1], [], []>} : vector<88x3xbf16>, vector<3x64xbf16>, vector<88x64xf32> -> vector<88x64xf32>
    %c0_323 = arith.constant 0 : index
    %c0_324 = arith.constant 0 : index
    %235 = vector.load %arg6[%c0_323, %c0_324] : memref<88x64xf32, #tpu.memory_space<vmem>>, vector<88x64xf32>
    %236 = arith.addf %235, %234 : vector<88x64xf32>
    %c0_325 = arith.constant 0 : index
    %c0_326 = arith.constant 0 : index
    %237 = vector.load %arg6[%c0_325, %c0_326] : memref<88x64xf32, #tpu.memory_space<vmem>>, vector<88x64xf32>
    tpu.vector_store %arg6[%c0_325, %c0_326], %236 {strides = array<i32>} : memref<88x64xf32, #tpu.memory_space<vmem>>, vector<88x64xf32>,
    %c0_327 = arith.constant 0 : index
    %c0_328 = arith.constant 0 : index
    %c23_329 = arith.constant 23 : index
    %c0_330 = arith.constant 0 : index
    %238 = vector.load %arg1[%c0_327, %c0_328, %c23_329, %c0_330] : memref<4x1x124x3xbf16, #tpu.memory_space<vmem>>, vector<1x1x88x3xbf16>
    %239 = vector.shape_cast %238 : vector<1x1x88x3xbf16> to vector<88x3xbf16>
    %c30 = arith.constant 30 : index
    %c0_331 = arith.constant 0 : index
    %c0_332 = arith.constant 0 : index
    %240 = vector.load %arg2[%c30, %c0_331, %c0_332] : memref<49x3x64xbf16, #tpu.memory_space<vmem>>, vector<1x3x64xbf16>
    %241 = vector.shape_cast %240 : vector<1x3x64xbf16> to vector<3x64xbf16>
    %cst_333 = arith.constant dense<0.000000e+00> : vector<88x64xf32>
    %242 = tpu.matmul %239, %241, %cst_333 {dimension_numbers = #tpu.dot_dimension_numbers<[1], [0], [0], [1], [0, 0, 1, 1], [], []>} : vector<88x3xbf16>, vector<3x64xbf16>, vector<88x64xf32> -> vector<88x64xf32>
    %c0_334 = arith.constant 0 : index
    %c0_335 = arith.constant 0 : index
    %243 = vector.load %arg6[%c0_334, %c0_335] : memref<88x64xf32, #tpu.memory_space<vmem>>, vector<88x64xf32>
    %244 = arith.addf %243, %242 : vector<88x64xf32>
    %c0_336 = arith.constant 0 : index
    %c0_337 = arith.constant 0 : index
    %245 = vector.load %arg6[%c0_336, %c0_337] : memref<88x64xf32, #tpu.memory_space<vmem>>, vector<88x64xf32>
    tpu.vector_store %arg6[%c0_336, %c0_337], %244 {strides = array<i32>} : memref<88x64xf32, #tpu.memory_space<vmem>>, vector<88x64xf32>,
    %c1_338 = arith.constant 1 : index
    %c0_339 = arith.constant 0 : index
    %c23_340 = arith.constant 23 : index
    %c0_341 = arith.constant 0 : index
    %246 = vector.load %arg1[%c1_338, %c0_339, %c23_340, %c0_341] : memref<4x1x124x3xbf16, #tpu.memory_space<vmem>>, vector<1x1x88x3xbf16>
    %247 = vector.shape_cast %246 : vector<1x1x88x3xbf16> to vector<88x3xbf16>
    %c31 = arith.constant 31 : index
    %c0_342 = arith.constant 0 : index
    %c0_343 = arith.constant 0 : index
    %248 = vector.load %arg2[%c31, %c0_342, %c0_343] : memref<49x3x64xbf16, #tpu.memory_space<vmem>>, vector<1x3x64xbf16>
    %249 = vector.shape_cast %248 : vector<1x3x64xbf16> to vector<3x64xbf16>
    %cst_344 = arith.constant dense<0.000000e+00> : vector<88x64xf32>
    %250 = tpu.matmul %247, %249, %cst_344 {dimension_numbers = #tpu.dot_dimension_numbers<[1], [0], [0], [1], [0, 0, 1, 1], [], []>} : vector<88x3xbf16>, vector<3x64xbf16>, vector<88x64xf32> -> vector<88x64xf32>
    %c0_345 = arith.constant 0 : index
    %c0_346 = arith.constant 0 : index
    %251 = vector.load %arg6[%c0_345, %c0_346] : memref<88x64xf32, #tpu.memory_space<vmem>>, vector<88x64xf32>
    %252 = arith.addf %251, %250 : vector<88x64xf32>
    %c0_347 = arith.constant 0 : index
    %c0_348 = arith.constant 0 : index
    %253 = vector.load %arg6[%c0_347, %c0_348] : memref<88x64xf32, #tpu.memory_space<vmem>>, vector<88x64xf32>
    tpu.vector_store %arg6[%c0_347, %c0_348], %252 {strides = array<i32>} : memref<88x64xf32, #tpu.memory_space<vmem>>, vector<88x64xf32>,
    %c0_349 = arith.constant 0 : index
    %c0_350 = arith.constant 0 : index
    %c24_351 = arith.constant 24 : index
    %c0_352 = arith.constant 0 : index
    %254 = vector.load %arg1[%c0_349, %c0_350, %c24_351, %c0_352] : memref<4x1x124x3xbf16, #tpu.memory_space<vmem>>, vector<1x1x88x3xbf16>
    %255 = vector.shape_cast %254 : vector<1x1x88x3xbf16> to vector<88x3xbf16>
    %c32 = arith.constant 32 : index
    %c0_353 = arith.constant 0 : index
    %c0_354 = arith.constant 0 : index
    %256 = vector.load %arg2[%c32, %c0_353, %c0_354] : memref<49x3x64xbf16, #tpu.memory_space<vmem>>, vector<1x3x64xbf16>
    %257 = vector.shape_cast %256 : vector<1x3x64xbf16> to vector<3x64xbf16>
    %cst_355 = arith.constant dense<0.000000e+00> : vector<88x64xf32>
    %258 = tpu.matmul %255, %257, %cst_355 {dimension_numbers = #tpu.dot_dimension_numbers<[1], [0], [0], [1], [0, 0, 1, 1], [], []>} : vector<88x3xbf16>, vector<3x64xbf16>, vector<88x64xf32> -> vector<88x64xf32>
    %c0_356 = arith.constant 0 : index
    %c0_357 = arith.constant 0 : index
    %259 = vector.load %arg6[%c0_356, %c0_357] : memref<88x64xf32, #tpu.memory_space<vmem>>, vector<88x64xf32>
    %260 = arith.addf %259, %258 : vector<88x64xf32>
    %c0_358 = arith.constant 0 : index
    %c0_359 = arith.constant 0 : index
    %261 = vector.load %arg6[%c0_358, %c0_359] : memref<88x64xf32, #tpu.memory_space<vmem>>, vector<88x64xf32>
    tpu.vector_store %arg6[%c0_358, %c0_359], %260 {strides = array<i32>} : memref<88x64xf32, #tpu.memory_space<vmem>>, vector<88x64xf32>,
    %c1_360 = arith.constant 1 : index
    %c0_361 = arith.constant 0 : index
    %c24_362 = arith.constant 24 : index
    %c0_363 = arith.constant 0 : index
    %262 = vector.load %arg1[%c1_360, %c0_361, %c24_362, %c0_363] : memref<4x1x124x3xbf16, #tpu.memory_space<vmem>>, vector<1x1x88x3xbf16>
    %263 = vector.shape_cast %262 : vector<1x1x88x3xbf16> to vector<88x3xbf16>
    %c33 = arith.constant 33 : index
    %c0_364 = arith.constant 0 : index
    %c0_365 = arith.constant 0 : index
    %264 = vector.load %arg2[%c33, %c0_364, %c0_365] : memref<49x3x64xbf16, #tpu.memory_space<vmem>>, vector<1x3x64xbf16>
    %265 = vector.shape_cast %264 : vector<1x3x64xbf16> to vector<3x64xbf16>
    %cst_366 = arith.constant dense<0.000000e+00> : vector<88x64xf32>
    %266 = tpu.matmul %263, %265, %cst_366 {dimension_numbers = #tpu.dot_dimension_numbers<[1], [0], [0], [1], [0, 0, 1, 1], [], []>} : vector<88x3xbf16>, vector<3x64xbf16>, vector<88x64xf32> -> vector<88x64xf32>
    %c0_367 = arith.constant 0 : index
    %c0_368 = arith.constant 0 : index
    %267 = vector.load %arg6[%c0_367, %c0_368] : memref<88x64xf32, #tpu.memory_space<vmem>>, vector<88x64xf32>
    %268 = arith.addf %267, %266 : vector<88x64xf32>
    %c0_369 = arith.constant 0 : index
    %c0_370 = arith.constant 0 : index
    %269 = vector.load %arg6[%c0_369, %c0_370] : memref<88x64xf32, #tpu.memory_space<vmem>>, vector<88x64xf32>
    tpu.vector_store %arg6[%c0_369, %c0_370], %268 {strides = array<i32>} : memref<88x64xf32, #tpu.memory_space<vmem>>, vector<88x64xf32>,
    %c0_371 = arith.constant 0 : index
    %c0_372 = arith.constant 0 : index
    %c25_373 = arith.constant 25 : index
    %c0_374 = arith.constant 0 : index
    %270 = vector.load %arg1[%c0_371, %c0_372, %c25_373, %c0_374] : memref<4x1x124x3xbf16, #tpu.memory_space<vmem>>, vector<1x1x88x3xbf16>
    %271 = vector.shape_cast %270 : vector<1x1x88x3xbf16> to vector<88x3xbf16>
    %c34 = arith.constant 34 : index
    %c0_375 = arith.constant 0 : index
    %c0_376 = arith.constant 0 : index
    %272 = vector.load %arg2[%c34, %c0_375, %c0_376] : memref<49x3x64xbf16, #tpu.memory_space<vmem>>, vector<1x3x64xbf16>
    %273 = vector.shape_cast %272 : vector<1x3x64xbf16> to vector<3x64xbf16>
    %cst_377 = arith.constant dense<0.000000e+00> : vector<88x64xf32>
    %274 = tpu.matmul %271, %273, %cst_377 {dimension_numbers = #tpu.dot_dimension_numbers<[1], [0], [0], [1], [0, 0, 1, 1], [], []>} : vector<88x3xbf16>, vector<3x64xbf16>, vector<88x64xf32> -> vector<88x64xf32>
    %c0_378 = arith.constant 0 : index
    %c0_379 = arith.constant 0 : index
    %275 = vector.load %arg6[%c0_378, %c0_379] : memref<88x64xf32, #tpu.memory_space<vmem>>, vector<88x64xf32>
    %276 = arith.addf %275, %274 : vector<88x64xf32>
    %c0_380 = arith.constant 0 : index
    %c0_381 = arith.constant 0 : index
    %277 = vector.load %arg6[%c0_380, %c0_381] : memref<88x64xf32, #tpu.memory_space<vmem>>, vector<88x64xf32>
    tpu.vector_store %arg6[%c0_380, %c0_381], %276 {strides = array<i32>} : memref<88x64xf32, #tpu.memory_space<vmem>>, vector<88x64xf32>,
    %c2_382 = arith.constant 2 : index
    %c0_383 = arith.constant 0 : index
    %c22_384 = arith.constant 22 : index
    %c0_385 = arith.constant 0 : index
    %278 = vector.load %arg1[%c2_382, %c0_383, %c22_384, %c0_385] : memref<4x1x124x3xbf16, #tpu.memory_space<vmem>>, vector<1x1x88x3xbf16>
    %279 = vector.shape_cast %278 : vector<1x1x88x3xbf16> to vector<88x3xbf16>
    %c35 = arith.constant 35 : index
    %c0_386 = arith.constant 0 : index
    %c0_387 = arith.constant 0 : index
    %280 = vector.load %arg2[%c35, %c0_386, %c0_387] : memref<49x3x64xbf16, #tpu.memory_space<vmem>>, vector<1x3x64xbf16>
    %281 = vector.shape_cast %280 : vector<1x3x64xbf16> to vector<3x64xbf16>
    %cst_388 = arith.constant dense<0.000000e+00> : vector<88x64xf32>
    %282 = tpu.matmul %279, %281, %cst_388 {dimension_numbers = #tpu.dot_dimension_numbers<[1], [0], [0], [1], [0, 0, 1, 1], [], []>} : vector<88x3xbf16>, vector<3x64xbf16>, vector<88x64xf32> -> vector<88x64xf32>
    %c0_389 = arith.constant 0 : index
    %c0_390 = arith.constant 0 : index
    %283 = vector.load %arg6[%c0_389, %c0_390] : memref<88x64xf32, #tpu.memory_space<vmem>>, vector<88x64xf32>
    %284 = arith.addf %283, %282 : vector<88x64xf32>
    %c0_391 = arith.constant 0 : index
    %c0_392 = arith.constant 0 : index
    %285 = vector.load %arg6[%c0_391, %c0_392] : memref<88x64xf32, #tpu.memory_space<vmem>>, vector<88x64xf32>
    tpu.vector_store %arg6[%c0_391, %c0_392], %284 {strides = array<i32>} : memref<88x64xf32, #tpu.memory_space<vmem>>, vector<88x64xf32>,
    %c3_393 = arith.constant 3 : index
    %c0_394 = arith.constant 0 : index
    %c22_395 = arith.constant 22 : index
    %c0_396 = arith.constant 0 : index
    %286 = vector.load %arg1[%c3_393, %c0_394, %c22_395, %c0_396] : memref<4x1x124x3xbf16, #tpu.memory_space<vmem>>, vector<1x1x88x3xbf16>
    %287 = vector.shape_cast %286 : vector<1x1x88x3xbf16> to vector<88x3xbf16>
    %c36 = arith.constant 36 : index
    %c0_397 = arith.constant 0 : index
    %c0_398 = arith.constant 0 : index
    %288 = vector.load %arg2[%c36, %c0_397, %c0_398] : memref<49x3x64xbf16, #tpu.memory_space<vmem>>, vector<1x3x64xbf16>
    %289 = vector.shape_cast %288 : vector<1x3x64xbf16> to vector<3x64xbf16>
    %cst_399 = arith.constant dense<0.000000e+00> : vector<88x64xf32>
    %290 = tpu.matmul %287, %289, %cst_399 {dimension_numbers = #tpu.dot_dimension_numbers<[1], [0], [0], [1], [0, 0, 1, 1], [], []>} : vector<88x3xbf16>, vector<3x64xbf16>, vector<88x64xf32> -> vector<88x64xf32>
    %c0_400 = arith.constant 0 : index
    %c0_401 = arith.constant 0 : index
    %291 = vector.load %arg6[%c0_400, %c0_401] : memref<88x64xf32, #tpu.memory_space<vmem>>, vector<88x64xf32>
    %292 = arith.addf %291, %290 : vector<88x64xf32>
    %c0_402 = arith.constant 0 : index
    %c0_403 = arith.constant 0 : index
    %293 = vector.load %arg6[%c0_402, %c0_403] : memref<88x64xf32, #tpu.memory_space<vmem>>, vector<88x64xf32>
    tpu.vector_store %arg6[%c0_402, %c0_403], %292 {strides = array<i32>} : memref<88x64xf32, #tpu.memory_space<vmem>>, vector<88x64xf32>,
    %c2_404 = arith.constant 2 : index
    %c0_405 = arith.constant 0 : index
    %c23_406 = arith.constant 23 : index
    %c0_407 = arith.constant 0 : index
    %294 = vector.load %arg1[%c2_404, %c0_405, %c23_406, %c0_407] : memref<4x1x124x3xbf16, #tpu.memory_space<vmem>>, vector<1x1x88x3xbf16>
    %295 = vector.shape_cast %294 : vector<1x1x88x3xbf16> to vector<88x3xbf16>
    %c37 = arith.constant 37 : index
    %c0_408 = arith.constant 0 : index
    %c0_409 = arith.constant 0 : index
    %296 = vector.load %arg2[%c37, %c0_408, %c0_409] : memref<49x3x64xbf16, #tpu.memory_space<vmem>>, vector<1x3x64xbf16>
    %297 = vector.shape_cast %296 : vector<1x3x64xbf16> to vector<3x64xbf16>
    %cst_410 = arith.constant dense<0.000000e+00> : vector<88x64xf32>
    %298 = tpu.matmul %295, %297, %cst_410 {dimension_numbers = #tpu.dot_dimension_numbers<[1], [0], [0], [1], [0, 0, 1, 1], [], []>} : vector<88x3xbf16>, vector<3x64xbf16>, vector<88x64xf32> -> vector<88x64xf32>
    %c0_411 = arith.constant 0 : index
    %c0_412 = arith.constant 0 : index
    %299 = vector.load %arg6[%c0_411, %c0_412] : memref<88x64xf32, #tpu.memory_space<vmem>>, vector<88x64xf32>
    %300 = arith.addf %299, %298 : vector<88x64xf32>
    %c0_413 = arith.constant 0 : index
    %c0_414 = arith.constant 0 : index
    %301 = vector.load %arg6[%c0_413, %c0_414] : memref<88x64xf32, #tpu.memory_space<vmem>>, vector<88x64xf32>
    tpu.vector_store %arg6[%c0_413, %c0_414], %300 {strides = array<i32>} : memref<88x64xf32, #tpu.memory_space<vmem>>, vector<88x64xf32>,
    %c3_415 = arith.constant 3 : index
    %c0_416 = arith.constant 0 : index
    %c23_417 = arith.constant 23 : index
    %c0_418 = arith.constant 0 : index
    %302 = vector.load %arg1[%c3_415, %c0_416, %c23_417, %c0_418] : memref<4x1x124x3xbf16, #tpu.memory_space<vmem>>, vector<1x1x88x3xbf16>
    %303 = vector.shape_cast %302 : vector<1x1x88x3xbf16> to vector<88x3xbf16>
    %c38 = arith.constant 38 : index
    %c0_419 = arith.constant 0 : index
    %c0_420 = arith.constant 0 : index
    %304 = vector.load %arg2[%c38, %c0_419, %c0_420] : memref<49x3x64xbf16, #tpu.memory_space<vmem>>, vector<1x3x64xbf16>
    %305 = vector.shape_cast %304 : vector<1x3x64xbf16> to vector<3x64xbf16>
    %cst_421 = arith.constant dense<0.000000e+00> : vector<88x64xf32>
    %306 = tpu.matmul %303, %305, %cst_421 {dimension_numbers = #tpu.dot_dimension_numbers<[1], [0], [0], [1], [0, 0, 1, 1], [], []>} : vector<88x3xbf16>, vector<3x64xbf16>, vector<88x64xf32> -> vector<88x64xf32>
    %c0_422 = arith.constant 0 : index
    %c0_423 = arith.constant 0 : index
    %307 = vector.load %arg6[%c0_422, %c0_423] : memref<88x64xf32, #tpu.memory_space<vmem>>, vector<88x64xf32>
    %308 = arith.addf %307, %306 : vector<88x64xf32>
    %c0_424 = arith.constant 0 : index
    %c0_425 = arith.constant 0 : index
    %309 = vector.load %arg6[%c0_424, %c0_425] : memref<88x64xf32, #tpu.memory_space<vmem>>, vector<88x64xf32>
    tpu.vector_store %arg6[%c0_424, %c0_425], %308 {strides = array<i32>} : memref<88x64xf32, #tpu.memory_space<vmem>>, vector<88x64xf32>,
    %c2_426 = arith.constant 2 : index
    %c0_427 = arith.constant 0 : index
    %c24_428 = arith.constant 24 : index
    %c0_429 = arith.constant 0 : index
    %310 = vector.load %arg1[%c2_426, %c0_427, %c24_428, %c0_429] : memref<4x1x124x3xbf16, #tpu.memory_space<vmem>>, vector<1x1x88x3xbf16>
    %311 = vector.shape_cast %310 : vector<1x1x88x3xbf16> to vector<88x3xbf16>
    %c39 = arith.constant 39 : index
    %c0_430 = arith.constant 0 : index
    %c0_431 = arith.constant 0 : index
    %312 = vector.load %arg2[%c39, %c0_430, %c0_431] : memref<49x3x64xbf16, #tpu.memory_space<vmem>>, vector<1x3x64xbf16>
    %313 = vector.shape_cast %312 : vector<1x3x64xbf16> to vector<3x64xbf16>
    %cst_432 = arith.constant dense<0.000000e+00> : vector<88x64xf32>
    %314 = tpu.matmul %311, %313, %cst_432 {dimension_numbers = #tpu.dot_dimension_numbers<[1], [0], [0], [1], [0, 0, 1, 1], [], []>} : vector<88x3xbf16>, vector<3x64xbf16>, vector<88x64xf32> -> vector<88x64xf32>
    %c0_433 = arith.constant 0 : index
    %c0_434 = arith.constant 0 : index
    %315 = vector.load %arg6[%c0_433, %c0_434] : memref<88x64xf32, #tpu.memory_space<vmem>>, vector<88x64xf32>
    %316 = arith.addf %315, %314 : vector<88x64xf32>
    %c0_435 = arith.constant 0 : index
    %c0_436 = arith.constant 0 : index
    %317 = vector.load %arg6[%c0_435, %c0_436] : memref<88x64xf32, #tpu.memory_space<vmem>>, vector<88x64xf32>
    tpu.vector_store %arg6[%c0_435, %c0_436], %316 {strides = array<i32>} : memref<88x64xf32, #tpu.memory_space<vmem>>, vector<88x64xf32>,
    %c3_437 = arith.constant 3 : index
    %c0_438 = arith.constant 0 : index
    %c24_439 = arith.constant 24 : index
    %c0_440 = arith.constant 0 : index
    %318 = vector.load %arg1[%c3_437, %c0_438, %c24_439, %c0_440] : memref<4x1x124x3xbf16, #tpu.memory_space<vmem>>, vector<1x1x88x3xbf16>
    %319 = vector.shape_cast %318 : vector<1x1x88x3xbf16> to vector<88x3xbf16>
    %c40 = arith.constant 40 : index
    %c0_441 = arith.constant 0 : index
    %c0_442 = arith.constant 0 : index
    %320 = vector.load %arg2[%c40, %c0_441, %c0_442] : memref<49x3x64xbf16, #tpu.memory_space<vmem>>, vector<1x3x64xbf16>
    %321 = vector.shape_cast %320 : vector<1x3x64xbf16> to vector<3x64xbf16>
    %cst_443 = arith.constant dense<0.000000e+00> : vector<88x64xf32>
    %322 = tpu.matmul %319, %321, %cst_443 {dimension_numbers = #tpu.dot_dimension_numbers<[1], [0], [0], [1], [0, 0, 1, 1], [], []>} : vector<88x3xbf16>, vector<3x64xbf16>, vector<88x64xf32> -> vector<88x64xf32>
    %c0_444 = arith.constant 0 : index
    %c0_445 = arith.constant 0 : index
    %323 = vector.load %arg6[%c0_444, %c0_445] : memref<88x64xf32, #tpu.memory_space<vmem>>, vector<88x64xf32>
    %324 = arith.addf %323, %322 : vector<88x64xf32>
    %c0_446 = arith.constant 0 : index
    %c0_447 = arith.constant 0 : index
    %325 = vector.load %arg6[%c0_446, %c0_447] : memref<88x64xf32, #tpu.memory_space<vmem>>, vector<88x64xf32>
    tpu.vector_store %arg6[%c0_446, %c0_447], %324 {strides = array<i32>} : memref<88x64xf32, #tpu.memory_space<vmem>>, vector<88x64xf32>,
    %c2_448 = arith.constant 2 : index
    %c0_449 = arith.constant 0 : index
    %c25_450 = arith.constant 25 : index
    %c0_451 = arith.constant 0 : index
    %326 = vector.load %arg1[%c2_448, %c0_449, %c25_450, %c0_451] : memref<4x1x124x3xbf16, #tpu.memory_space<vmem>>, vector<1x1x88x3xbf16>
    %327 = vector.shape_cast %326 : vector<1x1x88x3xbf16> to vector<88x3xbf16>
    %c41 = arith.constant 41 : index
    %c0_452 = arith.constant 0 : index
    %c0_453 = arith.constant 0 : index
    %328 = vector.load %arg2[%c41, %c0_452, %c0_453] : memref<49x3x64xbf16, #tpu.memory_space<vmem>>, vector<1x3x64xbf16>
    %329 = vector.shape_cast %328 : vector<1x3x64xbf16> to vector<3x64xbf16>
    %cst_454 = arith.constant dense<0.000000e+00> : vector<88x64xf32>
    %330 = tpu.matmul %327, %329, %cst_454 {dimension_numbers = #tpu.dot_dimension_numbers<[1], [0], [0], [1], [0, 0, 1, 1], [], []>} : vector<88x3xbf16>, vector<3x64xbf16>, vector<88x64xf32> -> vector<88x64xf32>
    %c0_455 = arith.constant 0 : index
    %c0_456 = arith.constant 0 : index
    %331 = vector.load %arg6[%c0_455, %c0_456] : memref<88x64xf32, #tpu.memory_space<vmem>>, vector<88x64xf32>
    %332 = arith.addf %331, %330 : vector<88x64xf32>
    %c0_457 = arith.constant 0 : index
    %c0_458 = arith.constant 0 : index
    %333 = vector.load %arg6[%c0_457, %c0_458] : memref<88x64xf32, #tpu.memory_space<vmem>>, vector<88x64xf32>
    tpu.vector_store %arg6[%c0_457, %c0_458], %332 {strides = array<i32>} : memref<88x64xf32, #tpu.memory_space<vmem>>, vector<88x64xf32>,
    %c0_459 = arith.constant 0 : index
    %c0_460 = arith.constant 0 : index
    %c33_461 = arith.constant 33 : index
    %c0_462 = arith.constant 0 : index
    %334 = vector.load %arg1[%c0_459, %c0_460, %c33_461, %c0_462] : memref<4x1x124x3xbf16, #tpu.memory_space<vmem>>, vector<1x1x88x3xbf16>
    %335 = vector.shape_cast %334 : vector<1x1x88x3xbf16> to vector<88x3xbf16>
    %c42 = arith.constant 42 : index
    %c0_463 = arith.constant 0 : index
    %c0_464 = arith.constant 0 : index
    %336 = vector.load %arg2[%c42, %c0_463, %c0_464] : memref<49x3x64xbf16, #tpu.memory_space<vmem>>, vector<1x3x64xbf16>
    %337 = vector.shape_cast %336 : vector<1x3x64xbf16> to vector<3x64xbf16>
    %cst_465 = arith.constant dense<0.000000e+00> : vector<88x64xf32>
    %338 = tpu.matmul %335, %337, %cst_465 {dimension_numbers = #tpu.dot_dimension_numbers<[1], [0], [0], [1], [0, 0, 1, 1], [], []>} : vector<88x3xbf16>, vector<3x64xbf16>, vector<88x64xf32> -> vector<88x64xf32>
    %c0_466 = arith.constant 0 : index
    %c0_467 = arith.constant 0 : index
    %339 = vector.load %arg6[%c0_466, %c0_467] : memref<88x64xf32, #tpu.memory_space<vmem>>, vector<88x64xf32>
    %340 = arith.addf %339, %338 : vector<88x64xf32>
    %c0_468 = arith.constant 0 : index
    %c0_469 = arith.constant 0 : index
    %341 = vector.load %arg6[%c0_468, %c0_469] : memref<88x64xf32, #tpu.memory_space<vmem>>, vector<88x64xf32>
    tpu.vector_store %arg6[%c0_468, %c0_469], %340 {strides = array<i32>} : memref<88x64xf32, #tpu.memory_space<vmem>>, vector<88x64xf32>,
    %c1_470 = arith.constant 1 : index
    %c0_471 = arith.constant 0 : index
    %c33_472 = arith.constant 33 : index
    %c0_473 = arith.constant 0 : index
    %342 = vector.load %arg1[%c1_470, %c0_471, %c33_472, %c0_473] : memref<4x1x124x3xbf16, #tpu.memory_space<vmem>>, vector<1x1x88x3xbf16>
    %343 = vector.shape_cast %342 : vector<1x1x88x3xbf16> to vector<88x3xbf16>
    %c43 = arith.constant 43 : index
    %c0_474 = arith.constant 0 : index
    %c0_475 = arith.constant 0 : index
    %344 = vector.load %arg2[%c43, %c0_474, %c0_475] : memref<49x3x64xbf16, #tpu.memory_space<vmem>>, vector<1x3x64xbf16>
    %345 = vector.shape_cast %344 : vector<1x3x64xbf16> to vector<3x64xbf16>
    %cst_476 = arith.constant dense<0.000000e+00> : vector<88x64xf32>
    %346 = tpu.matmul %343, %345, %cst_476 {dimension_numbers = #tpu.dot_dimension_numbers<[1], [0], [0], [1], [0, 0, 1, 1], [], []>} : vector<88x3xbf16>, vector<3x64xbf16>, vector<88x64xf32> -> vector<88x64xf32>
    %c0_477 = arith.constant 0 : index
    %c0_478 = arith.constant 0 : index
    %347 = vector.load %arg6[%c0_477, %c0_478] : memref<88x64xf32, #tpu.memory_space<vmem>>, vector<88x64xf32>
    %348 = arith.addf %347, %346 : vector<88x64xf32>
    %c0_479 = arith.constant 0 : index
    %c0_480 = arith.constant 0 : index
    %349 = vector.load %arg6[%c0_479, %c0_480] : memref<88x64xf32, #tpu.memory_space<vmem>>, vector<88x64xf32>
    tpu.vector_store %arg6[%c0_479, %c0_480], %348 {strides = array<i32>} : memref<88x64xf32, #tpu.memory_space<vmem>>, vector<88x64xf32>,
    %c0_481 = arith.constant 0 : index
    %c0_482 = arith.constant 0 : index
    %c34_483 = arith.constant 34 : index
    %c0_484 = arith.constant 0 : index
    %350 = vector.load %arg1[%c0_481, %c0_482, %c34_483, %c0_484] : memref<4x1x124x3xbf16, #tpu.memory_space<vmem>>, vector<1x1x88x3xbf16>
    %351 = vector.shape_cast %350 : vector<1x1x88x3xbf16> to vector<88x3xbf16>
    %c44 = arith.constant 44 : index
    %c0_485 = arith.constant 0 : index
    %c0_486 = arith.constant 0 : index
    %352 = vector.load %arg2[%c44, %c0_485, %c0_486] : memref<49x3x64xbf16, #tpu.memory_space<vmem>>, vector<1x3x64xbf16>
    %353 = vector.shape_cast %352 : vector<1x3x64xbf16> to vector<3x64xbf16>
    %cst_487 = arith.constant dense<0.000000e+00> : vector<88x64xf32>
    %354 = tpu.matmul %351, %353, %cst_487 {dimension_numbers = #tpu.dot_dimension_numbers<[1], [0], [0], [1], [0, 0, 1, 1], [], []>} : vector<88x3xbf16>, vector<3x64xbf16>, vector<88x64xf32> -> vector<88x64xf32>
    %c0_488 = arith.constant 0 : index
    %c0_489 = arith.constant 0 : index
    %355 = vector.load %arg6[%c0_488, %c0_489] : memref<88x64xf32, #tpu.memory_space<vmem>>, vector<88x64xf32>
    %356 = arith.addf %355, %354 : vector<88x64xf32>
    %c0_490 = arith.constant 0 : index
    %c0_491 = arith.constant 0 : index
    %357 = vector.load %arg6[%c0_490, %c0_491] : memref<88x64xf32, #tpu.memory_space<vmem>>, vector<88x64xf32>
    tpu.vector_store %arg6[%c0_490, %c0_491], %356 {strides = array<i32>} : memref<88x64xf32, #tpu.memory_space<vmem>>, vector<88x64xf32>,
    %c1_492 = arith.constant 1 : index
    %c0_493 = arith.constant 0 : index
    %c34_494 = arith.constant 34 : index
    %c0_495 = arith.constant 0 : index
    %358 = vector.load %arg1[%c1_492, %c0_493, %c34_494, %c0_495] : memref<4x1x124x3xbf16, #tpu.memory_space<vmem>>, vector<1x1x88x3xbf16>
    %359 = vector.shape_cast %358 : vector<1x1x88x3xbf16> to vector<88x3xbf16>
    %c45 = arith.constant 45 : index
    %c0_496 = arith.constant 0 : index
    %c0_497 = arith.constant 0 : index
    %360 = vector.load %arg2[%c45, %c0_496, %c0_497] : memref<49x3x64xbf16, #tpu.memory_space<vmem>>, vector<1x3x64xbf16>
    %361 = vector.shape_cast %360 : vector<1x3x64xbf16> to vector<3x64xbf16>
    %cst_498 = arith.constant dense<0.000000e+00> : vector<88x64xf32>
    %362 = tpu.matmul %359, %361, %cst_498 {dimension_numbers = #tpu.dot_dimension_numbers<[1], [0], [0], [1], [0, 0, 1, 1], [], []>} : vector<88x3xbf16>, vector<3x64xbf16>, vector<88x64xf32> -> vector<88x64xf32>
    %c0_499 = arith.constant 0 : index
    %c0_500 = arith.constant 0 : index
    %363 = vector.load %arg6[%c0_499, %c0_500] : memref<88x64xf32, #tpu.memory_space<vmem>>, vector<88x64xf32>
    %364 = arith.addf %363, %362 : vector<88x64xf32>
    %c0_501 = arith.constant 0 : index
    %c0_502 = arith.constant 0 : index
    %365 = vector.load %arg6[%c0_501, %c0_502] : memref<88x64xf32, #tpu.memory_space<vmem>>, vector<88x64xf32>
    tpu.vector_store %arg6[%c0_501, %c0_502], %364 {strides = array<i32>} : memref<88x64xf32, #tpu.memory_space<vmem>>, vector<88x64xf32>,
    %c0_503 = arith.constant 0 : index
    %c0_504 = arith.constant 0 : index
    %c35_505 = arith.constant 35 : index
    %c0_506 = arith.constant 0 : index
    %366 = vector.load %arg1[%c0_503, %c0_504, %c35_505, %c0_506] : memref<4x1x124x3xbf16, #tpu.memory_space<vmem>>, vector<1x1x88x3xbf16>
    %367 = vector.shape_cast %366 : vector<1x1x88x3xbf16> to vector<88x3xbf16>
    %c46 = arith.constant 46 : index
    %c0_507 = arith.constant 0 : index
    %c0_508 = arith.constant 0 : index
    %368 = vector.load %arg2[%c46, %c0_507, %c0_508] : memref<49x3x64xbf16, #tpu.memory_space<vmem>>, vector<1x3x64xbf16>
    %369 = vector.shape_cast %368 : vector<1x3x64xbf16> to vector<3x64xbf16>
    %cst_509 = arith.constant dense<0.000000e+00> : vector<88x64xf32>
    %370 = tpu.matmul %367, %369, %cst_509 {dimension_numbers = #tpu.dot_dimension_numbers<[1], [0], [0], [1], [0, 0, 1, 1], [], []>} : vector<88x3xbf16>, vector<3x64xbf16>, vector<88x64xf32> -> vector<88x64xf32>
    %c0_510 = arith.constant 0 : index
    %c0_511 = arith.constant 0 : index
    %371 = vector.load %arg6[%c0_510, %c0_511] : memref<88x64xf32, #tpu.memory_space<vmem>>, vector<88x64xf32>
    %372 = arith.addf %371, %370 : vector<88x64xf32>
    %c0_512 = arith.constant 0 : index
    %c0_513 = arith.constant 0 : index
    %373 = vector.load %arg6[%c0_512, %c0_513] : memref<88x64xf32, #tpu.memory_space<vmem>>, vector<88x64xf32>
    tpu.vector_store %arg6[%c0_512, %c0_513], %372 {strides = array<i32>} : memref<88x64xf32, #tpu.memory_space<vmem>>, vector<88x64xf32>,
    %c1_514 = arith.constant 1 : index
    %c0_515 = arith.constant 0 : index
    %c35_516 = arith.constant 35 : index
    %c0_517 = arith.constant 0 : index
    %374 = vector.load %arg1[%c1_514, %c0_515, %c35_516, %c0_517] : memref<4x1x124x3xbf16, #tpu.memory_space<vmem>>, vector<1x1x88x3xbf16>
    %375 = vector.shape_cast %374 : vector<1x1x88x3xbf16> to vector<88x3xbf16>
    %c47 = arith.constant 47 : index
    %c0_518 = arith.constant 0 : index
    %c0_519 = arith.constant 0 : index
    %376 = vector.load %arg2[%c47, %c0_518, %c0_519] : memref<49x3x64xbf16, #tpu.memory_space<vmem>>, vector<1x3x64xbf16>
    %377 = vector.shape_cast %376 : vector<1x3x64xbf16> to vector<3x64xbf16>
    %cst_520 = arith.constant dense<0.000000e+00> : vector<88x64xf32>
    %378 = tpu.matmul %375, %377, %cst_520 {dimension_numbers = #tpu.dot_dimension_numbers<[1], [0], [0], [1], [0, 0, 1, 1], [], []>} : vector<88x3xbf16>, vector<3x64xbf16>, vector<88x64xf32> -> vector<88x64xf32>
    %c0_521 = arith.constant 0 : index
    %c0_522 = arith.constant 0 : index
    %379 = vector.load %arg6[%c0_521, %c0_522] : memref<88x64xf32, #tpu.memory_space<vmem>>, vector<88x64xf32>
    %380 = arith.addf %379, %378 : vector<88x64xf32>
    %c0_523 = arith.constant 0 : index
    %c0_524 = arith.constant 0 : index
    %381 = vector.load %arg6[%c0_523, %c0_524] : memref<88x64xf32, #tpu.memory_space<vmem>>, vector<88x64xf32>
    tpu.vector_store %arg6[%c0_523, %c0_524], %380 {strides = array<i32>} : memref<88x64xf32, #tpu.memory_space<vmem>>, vector<88x64xf32>,
    %c0_525 = arith.constant 0 : index
    %c0_526 = arith.constant 0 : index
    %c36_527 = arith.constant 36 : index
    %c0_528 = arith.constant 0 : index
    %382 = vector.load %arg1[%c0_525, %c0_526, %c36_527, %c0_528] : memref<4x1x124x3xbf16, #tpu.memory_space<vmem>>, vector<1x1x88x3xbf16>
    %383 = vector.shape_cast %382 : vector<1x1x88x3xbf16> to vector<88x3xbf16>
    %c48 = arith.constant 48 : index
    %c0_529 = arith.constant 0 : index
    %c0_530 = arith.constant 0 : index
    %384 = vector.load %arg2[%c48, %c0_529, %c0_530] : memref<49x3x64xbf16, #tpu.memory_space<vmem>>, vector<1x3x64xbf16>
    %385 = vector.shape_cast %384 : vector<1x3x64xbf16> to vector<3x64xbf16>
    %cst_531 = arith.constant dense<0.000000e+00> : vector<88x64xf32>
    %386 = tpu.matmul %383, %385, %cst_531 {dimension_numbers = #tpu.dot_dimension_numbers<[1], [0], [0], [1], [0, 0, 1, 1], [], []>} : vector<88x3xbf16>, vector<3x64xbf16>, vector<88x64xf32> -> vector<88x64xf32>
    %c0_532 = arith.constant 0 : index
    %c0_533 = arith.constant 0 : index
    %387 = vector.load %arg6[%c0_532, %c0_533] : memref<88x64xf32, #tpu.memory_space<vmem>>, vector<88x64xf32>
    %388 = arith.addf %387, %386 : vector<88x64xf32>
    %c0_534 = arith.constant 0 : index
    %c0_535 = arith.constant 0 : index
    %389 = vector.load %arg6[%c0_534, %c0_535] : memref<88x64xf32, #tpu.memory_space<vmem>>, vector<88x64xf32>
    tpu.vector_store %arg6[%c0_534, %c0_535], %388 {strides = array<i32>} : memref<88x64xf32, #tpu.memory_space<vmem>>, vector<88x64xf32>,
    %c0_536 = arith.constant 0 : index
    %c0_537 = arith.constant 0 : index
    %390 = vector.load %arg6[%c0_536, %c0_537] : memref<88x64xf32, #tpu.memory_space<vmem>>, vector<88x64xf32>
    %c0_538 = arith.constant 0 : index
    %c0_539 = arith.constant 0 : index
    %391 = vector.load %arg3[%c0_538, %c0_539] : memref<1x64xf32, #tpu.memory_space<vmem>>, vector<1x64xf32>
    %392 = vector.broadcast %391 : vector<1x64xf32> to vector<88x64xf32>
    %393 = arith.mulf %390, %392 : vector<88x64xf32>
    %c0_540 = arith.constant 0 : index
    %c0_541 = arith.constant 0 : index
    %394 = vector.load %arg4[%c0_540, %c0_541] : memref<1x64xf32, #tpu.memory_space<vmem>>, vector<1x64xf32>
    %395 = vector.broadcast %394 : vector<1x64xf32> to vector<88x64xf32>
    %396 = arith.addf %393, %395 : vector<88x64xf32>
    %397 = arith.truncf %396 : vector<88x64xf32> to vector<88x64xbf16>
    %c0_542 = arith.constant 0 : index
    %c0_543 = arith.constant 0 : index
    %c0_544 = arith.constant 0 : index
    %398 = vector.load %arg5[%c0_542, %c0_543, %c0_544] : memref<1x88x64xbf16, #tpu.memory_space<vmem>>, vector<1x88x64xbf16>
    %399 = vector.shape_cast %398 : vector<1x88x64xbf16> to vector<88x64xbf16>
    %400 = vector.shape_cast %397 : vector<88x64xbf16> to vector<1x88x64xbf16>
    tpu.vector_store %arg5[%c0_542, %c0_543, %c0_544], %400 {strides = array<i32>} : memref<1x88x64xbf16, #tpu.memory_space<vmem>>, vector<1x88x64xbf16>,
    return
  }
  func.func @transform_0(%arg0: i32) -> (i32, i32, i32, i32) {
    %c0_i32 = arith.constant 0 : i32
    %c0_i32_0 = arith.constant 0 : i32
    %c0_i32_1 = arith.constant 0 : i32
    %c0_i32_2 = arith.constant 0 : i32
    return %c0_i32, %arg0, %c0_i32_0, %c0_i32_1 : i32, i32, i32, i32
  }
  func.func @transform_1(%arg0: i32) -> (i32, i32, i32) {
    %c0_i32 = arith.constant 0 : i32
    %c0_i32_0 = arith.constant 0 : i32
    %c0_i32_1 = arith.constant 0 : i32
    %c0_i32_2 = arith.constant 0 : i32
    return %c0_i32, %c0_i32_0, %c0_i32_1 : i32, i32, i32
  }
  func.func @transform_2(%arg0: i32) -> (i32, i32) {
    %c0_i32 = arith.constant 0 : i32
    %c0_i32_0 = arith.constant 0 : i32
    %c0_i32_1 = arith.constant 0 : i32
    return %c0_i32, %c0_i32_0 : i32, i32
  }
  func.func @transform_3(%arg0: i32) -> (i32, i32) {
    %c0_i32 = arith.constant 0 : i32
    %c0_i32_0 = arith.constant 0 : i32
    %c0_i32_1 = arith.constant 0 : i32
    return %c0_i32, %c0_i32_0 : i32, i32
  }
  func.func @transform_4(%arg0: i32) -> (i32, i32, i32) {
    %c0_i32 = arith.constant 0 : i32
    %c0_i32_0 = arith.constant 0 : i32
    %c0_i32_1 = arith.constant 0 : i32
    return %arg0, %c0_i32, %c0_i32_0 : i32, i32, i32
  }
}

</mosaic_0001>

<bundles_post_ra>
// kernel: tpu_custom_call.1
= control target key start
LH: loop header
LB: loop body
LE: loop exit
PB: predicated region body
PF: predicated region fallthrough
CT: control target
= control target key end

     0   :  { %s10920_s15 = smov 0   ;;  %s10922_s16 = smov 0   ;;  %s14279_s0 = inlined_call_operand.vmem [shape: bf16[4,2,124,3], index: 0, kind: input, shape index: {}]   ;;  %s14280_s1 = inlined_call_operand.vmem [shape: bf16[49,3,64], index: 1, kind: input, shape index: {}]   ;;  %s14281_s2 = inlined_call_operand.vmem [shape: f32[1,64], index: 2, kind: input, shape index: {}]   ;;  %s14282_s3 = inlined_call_operand.vmem [shape: f32[1,64], index: 3, kind: input, shape index: {}]   ;;  %s14283_s4 = inlined_call_operand.vmem [shape: bf16[2,88,64], index: 4, kind: output, shape index: {}]  }
   0x1   :  { %s10924_s17 = smov 0  }
   0x2 LB: > { %s8664_s18 = sadd.s32 4294967295, %s10892_s17   ;;  %s10937_s19 = sadd.s32 1, %s10892_s17   ;;  %s10892_s17 = sphi %s10924_s17, %s14286_s17   ;;  %s10888_s16 = sphi %s10922_s16, %s14285_s16   ;;  %s10884_s15 = sphi %s10920_s15, %s14284_s15  }
   0x3   : > { %s18_s20 = ssub.s32 %s10892_s17, %s10937_s19  ;;  %s21_s21 = sadd.s32 1, %s10888_s16 }
   0x4   : > { %p19_p0 = scmp.eq.s32.totalorder %s18_s20, 0  ;;  %p28_p1 = scmp.ne.s32.totalorder %s10888_s16, %s10884_s15 }
   0x5   : > { %p29_p2 = scmp.eq.s32.totalorder %s10892_s17, 0  ;;  %p8667_p4 = scmp.ge.s32.totalorder %s10892_s17, 2 }
   0x6   : > { %s10946_s22 = scalar_select %p19_p0, %s10888_s16, %s21_s21  }
   0x7   : > { %p30_p3 = por %p29_p2, %p28_p1  ;;  %152 = sbr.rel (%p8667_p4) target bundleno = 48 (0x30), region = 28 }
   0xc   : > { %155 = sbr.rel (!%p30_p3) target bundleno = 48 (0x30), region = 32  ;;  %s157_s23 = sand.u32 (%p30_p3), 1, %s10888_s16  }
   0xd   : > { %s10552_s24 = sshll.u32 (%p30_p3), %s10892_s17, 6  ;;  %s8668_s25 = sshll.u32 (%p30_p3), %s157_s23, 8 }
   0xe   : > { %s10954_s28 = scalar_lea.vmem (%p30_p3), %s14279_s0, %s10552_s24  ;;  %s10959_s29 = scalar_lea.vmem (%p30_p3), [#allocation3], %s8668_s25 }
   0xf   : > { %v179_v0 = vld [vmem:[%s10954_s28] sm:$0xff] (%p30_p3)   ;;  %v183_v1 = vld [vmem:[%s10954_s28 + $0x8] sm:$0xff] (%p30_p3)   ;;  %v187_v2 = vld [vmem:[%s10954_s28 + $0x10] sm:$0xff] (%p30_p3)  }
  0x10   : > { %180 = vst [vmem:[%s10959_s29] sm:$0xff] (%p30_p3), %v179_v0   ;;  %v191_v3 = vld [vmem:[%s10954_s28 + $0x18] sm:$0xff] (%p30_p3)   ;;  %v195_v4 = vld [vmem:[%s10954_s28 + $0x20] sm:$0xff] (%p30_p3)   ;;  %v199_v5 = vld [vmem:[%s10954_s28 + $0x28] sm:$0xff] (%p30_p3)  }
  0x11   : > { %184 = vst [vmem:[%s10959_s29 + $0x8] sm:$0xff] %v183_v1   ;;  %v203_v6 = vld [vmem:[%s10954_s28 + $0x30] sm:$0xff]   ;;  %v207_v7 = vld [vmem:[%s10954_s28 + $0x38] sm:$0xff]   ;;  %v211_v8 = vld [vmem:[%s10954_s28 + $0x80] sm:$0xff]  }
  0x12   : > { %188 = vst [vmem:[%s10959_s29 + $0x10] sm:$0xff] %v187_v2   ;;  %v215_v9 = vld [vmem:[%s10954_s28 + $0x88] sm:$0xff]   ;;  %v219_v10 = vld [vmem:[%s10954_s28 + $0x90] sm:$0xff]   ;;  %v223_v11 = vld [vmem:[%s10954_s28 + $0x98] sm:$0xff]  }
  0x13   : > { %192 = vst [vmem:[%s10959_s29 + $0x18] sm:$0xff] %v191_v3   ;;  %v227_v12 = vld [vmem:[%s10954_s28 + $0xa0] sm:$0xff]   ;;  %v231_v13 = vld [vmem:[%s10954_s28 + $0xa8] sm:$0xff]   ;;  %v235_v14 = vld [vmem:[%s10954_s28 + $0xb0] sm:$0xff]  }
  0x14   : > { %196 = vst [vmem:[%s10959_s29 + $0x20] sm:$0xff] %v195_v4   ;;  %v239_v15 = vld [vmem:[%s10954_s28 + $0xb8] sm:$0xff]   ;;  %v243_v16 = vld [vmem:[%s10954_s28 + $0x100] sm:$0xff]   ;;  %v247_v17 = vld [vmem:[%s10954_s28 + $0x108] sm:$0xff]  }
  0x15   : > { %200 = vst [vmem:[%s10959_s29 + $0x28] sm:$0xff] %v199_v5   ;;  %v251_v18 = vld [vmem:[%s10954_s28 + $0x110] sm:$0xff]   ;;  %v255_v19 = vld [vmem:[%s10954_s28 + $0x118] sm:$0xff]   ;;  %v259_v20 = vld [vmem:[%s10954_s28 + $0x120] sm:$0xff]  }
  0x16   : > { %204 = vst [vmem:[%s10959_s29 + $0x30] sm:$0xff] %v203_v6   ;;  %v263_v21 = vld [vmem:[%s10954_s28 + $0x128] sm:$0xff]   ;;  %v267_v22 = vld [vmem:[%s10954_s28 + $0x130] sm:$0xff]   ;;  %v271_v23 = vld [vmem:[%s10954_s28 + $0x138] sm:$0xff]  }
  0x17   : > { %208 = vst [vmem:[%s10959_s29 + $0x38] sm:$0xff] %v207_v7   ;;  %v275_v24 = vld [vmem:[%s10954_s28 + $0x180] sm:$0xff]   ;;  %v279_v25 = vld [vmem:[%s10954_s28 + $0x188] sm:$0xff]   ;;  %v283_v26 = vld [vmem:[%s10954_s28 + $0x190] sm:$0xff]  }
  0x18   : > { %212 = vst [vmem:[%s10959_s29 + $0x40] sm:$0xff] %v211_v8   ;;  %v287_v27 = vld [vmem:[%s10954_s28 + $0x198] sm:$0xff]   ;;  %v291_v28 = vld [vmem:[%s10954_s28 + $0x1a0] sm:$0xff]   ;;  %v295_v29 = vld [vmem:[%s10954_s28 + $0x1a8] sm:$0xff]  }
  0x19   : > { %216 = vst [vmem:[%s10959_s29 + $0x48] sm:$0xff] %v215_v9   ;;  %v299_v30 = vld [vmem:[%s10954_s28 + $0x1b0] sm:$0xff]   ;;  %v303_v31 = vld [vmem:[%s10954_s28 + $0x1b8] sm:$0xff]  }
  0x1a   : > { %220 = vst [vmem:[%s10959_s29 + $0x50] sm:$0xff] %v219_v10  }
  0x1b   : > { %224 = vst [vmem:[%s10959_s29 + $0x58] sm:$0xff] %v223_v11  }
  0x1c   : > { %228 = vst [vmem:[%s10959_s29 + $0x60] sm:$0xff] %v227_v12  }
  0x1d   : > { %232 = vst [vmem:[%s10959_s29 + $0x68] sm:$0xff] %v231_v13  }
  0x1e   : > { %236 = vst [vmem:[%s10959_s29 + $0x70] sm:$0xff] %v235_v14  }
  0x1f   : > { %240 = vst [vmem:[%s10959_s29 + $0x78] sm:$0xff] %v239_v15  }
  0x20   : > { %244 = vst [vmem:[%s10959_s29 + $0x80] sm:$0xff] %v243_v16  }
  0x21   : > { %248 = vst [vmem:[%s10959_s29 + $0x88] sm:$0xff] %v247_v17  }
  0x22   : > { %252 = vst [vmem:[%s10959_s29 + $0x90] sm:$0xff] %v251_v18  }
  0x23   : > { %256 = vst [vmem:[%s10959_s29 + $0x98] sm:$0xff] %v255_v19  }
  0x24   : > { %260 = vst [vmem:[%s10959_s29 + $0xa0] sm:$0xff] %v259_v20  }
  0x25   : > { %264 = vst [vmem:[%s10959_s29 + $0xa8] sm:$0xff] %v263_v21  }
  0x26   : > { %268 = vst [vmem:[%s10959_s29 + $0xb0] sm:$0xff] %v267_v22  }
  0x27   : > { %272 = vst [vmem:[%s10959_s29 + $0xb8] sm:$0xff] %v271_v23  }
  0x28   : > { %276 = vst [vmem:[%s10959_s29 + $0xc0] sm:$0xff] %v275_v24  }
  0x29   : > { %280 = vst [vmem:[%s10959_s29 + $0xc8] sm:$0xff] %v279_v25  }
  0x2a   : > { %284 = vst [vmem:[%s10959_s29 + $0xd0] sm:$0xff] %v283_v26  }
  0x2b   : > { %288 = vst [vmem:[%s10959_s29 + $0xd8] sm:$0xff] %v287_v27  }
  0x2c   : > { %292 = vst [vmem:[%s10959_s29 + $0xe0] sm:$0xff] %v291_v28  }
  0x2d   : > { %296 = vst [vmem:[%s10959_s29 + $0xe8] sm:$0xff] %v295_v29  }
  0x2e   : > { %300 = vst [vmem:[%s10959_s29 + $0xf0] sm:$0xff] %v299_v30  }
  0x2f   : > { %304 = vst [vmem:[%s10959_s29 + $0xf8] sm:$0xff] %v303_v31  }
  0x30 PF: > { %p8671_p5 = scmp.ge.s32.totalorder %s10892_s17, 1  ;;  %p457_p6 = scmp.lt.s32.totalorder %s10892_s17, 3 }
  0x32   : > { %p458_p7 = pnand %p8671_p5, %p457_p6 }
  0x33   : > { %s464_s6 = sand.u32 (!%p458_p7), 1, %s10884_s15   ;;  %p489_p8 = scmp.lt.s32.totalorder (!%p458_p7), %s8664_s18, 1 }
  0x34   : > { %461 = sbr.rel (%p458_p7) target bundleno = 1407 (0x57f), region = 73  ;;  %s8672_s7 = sshll.u32 (!%p458_p7), %s464_s6, 8 }
  0x35   : > { %s11042_s14 = scalar_lea.vmem (!%p458_p7), [#allocation3], %s8672_s7 }
  0x39   : > { %v506_v32 = vld [vmem:[%s14280_s1] sm:$0x3]  ;;  %vm554_vm0 = vcmask 1040384   ;;  %vm555_vm1 = vcmask 1041408   ;;  %v10894_v33 = vmov 65535   ;;  %v10556_v43 = vld [vmem:[%s11042_s14 + $0x18] sm:$0xff] }
  0x3a   : > { %v556_v34 = vsel %vm554_vm0, 4294967295, %v10894_v33  ;;  %v8711_v35 = vld [vmem:[%s14280_s1 + $0x2] sm:$0x3]  ;;  %v8738_v37 = vld [vmem:[%s14280_s1 + $0x4] sm:$0x3]  ;;  %vm535_vm2 = vcmask 23552  }
  0x3b   : > { %v11031_v36 = vsel %vm555_vm1, %v556_v34, 0  ;;  %v8781_v38 = vld [vmem:[%s14280_s1 + $0x6] sm:$0x3]  ;;  %v505_v44 = vld [vmem:[%s11042_s14 + $0x28] sm:$0xf]  ;;  %v10553_v47 = vld [vmem:[%s11042_s14] sm:$0xff] }
  0x3c   : > { %v559_v39 = vand.u32 %v11031_v36, %v506_v32  ;;  %v672_v40 = vand.u32 %v8711_v35, %v11031_v36  ;;  %v856_v41 = vand.u32 %v8738_v37, %v11031_v36  ;;  %v10554_v42 = vld [vmem:[%s11042_s14 + $0x8] sm:$0xff]  ;;  %v528_v45 = vunpack.c.l.b16 %v505_v44  ;;  %v10569_v49 = vld [vmem:[%s11042_s14 + $0x40] sm:$0xff]  ;;  %v8855_v50 = vld [vmem:[%s14280_s1 + $0xa] sm:$0x3]  ;;  %s14288_s18 = smov (!%p489_p8, %s8664_s18), 1 }
  0x3d   : > { %v1039_v46 = vand.u32 %v8781_v38, %v11031_v36  ;;  %v8886_v51 = vld [vmem:[%s14280_s1 + $0xc] sm:$0x3]  ;;  %v1334_v52 = vand.u32 %v8855_v50, %v11031_v36  ;;  %v8812_v54 = vld [vmem:[%s14280_s1 + $0x8] sm:$0x3]  ;;  %v8928_v55 = vld [vmem:[%s14280_s1 + $0xe] sm:$0x3] }
  0x3e   : > { %10839 = vmatpush.bf16.msra.mxu1 %v559_v39  ;;  %10840 = vmatpush.bf16.msra.mxu2 %v559_v39  ;;  %v534_v48 = vpack.c.b16 %v528_v45, %v528_v45  ;;  %v1524_v53 = vand.u32 %v8886_v51, %v11031_v36  ;;  %v1187_v56 = vand.u32 %v8812_v54, %v11031_v36  ;;  %v10570_v58 = vld [vmem:[%s11042_s14 + $0x48] sm:$0xff]  ;;  %v976_v59 = vshll.u32 %v10569_v49, 16  ;;  %v10555_v1 = vld [vmem:[%s11042_s14 + $0x10] sm:$0xff]  ;;  %v10557_v2 = vld [vmem:[%s11042_s14 + $0x20] sm:$0xff]  ;;  %s10842_s17 = smul.u32 44, %s14288_s18 }
  0x3f   : > { %10841 = vmatpush.bf16.msra.mxu3 %v559_v39  ;;  %568 = vmatpush.bf16.msra.mxu0 %v559_v39  ;;  %v1658_v57 = vand.u32 %v8928_v55, %v11031_v36  ;;  %v974_v60 = vshrl.u32 %v10569_v49, 16  ;;  %v981_v62 = vshll.u32 %v10570_v58, 16  ;;  %v10563_v3 = vld [vmem:[%s11042_s14] sm:$0xff]  ;;  %vm789_vm3 = vsmask.f32 7424  ;;  %v10576_v7 = vld [vmem:[%s11042_s14 + $0x8] sm:$0xff] }
  0x40   : > { %v978_v61 = vrot.slane %v976_v59, 1  ;;  %v8815_v5 = vld [vmem:[%s11042_s14] sm:$0xe]  ;;  %v10575_v6 = vld [vmem:[%s11042_s14] sm:$0xf0]  ;;  %v10564_v8 = vld [vmem:[%s11042_s14 + $0x8] sm:$0xff]  ;;  %s14166_s18 = scalar_lea.vmem %s14283_s4, %s10842_s17 }
  0x41   : > { %8695 = vmatmul.msk.bf16.vlgmr.msra.gmra.mxu1 %vm535_vm2, %v10554_v42  ;;  %8697 = vmatmul.msk.bf16.vlgmr.msra.gmra.mxu2 %vm535_vm2, %v10556_v43  ;;  %v983_v0 = vrot.slane %v981_v62, 1  ;;  %v793_v9 = vshll.u32 %v10563_v3, 16  ;;  %v8816_v10 = vor.u32 %v10575_v6, %v8815_v5  ;;  %v8966_v11 = vld [vmem:[%s14280_s1 + $0x10] sm:$0x3]  ;;  %vm1156_vm4 = vcmask 1046528   ;;  %v10571_v14 = vld [vmem:[%s11042_s14 + $0x50] sm:$0xff] }
  0x42   : > { %681 = vmatpush.bf16.msrb.mxu1 %v672_v40  ;;  %865 = vmatpush.bf16.msrb.mxu2 %v856_v41  ;;  %v979_v63 = vor.u32 %v978_v61, %v974_v60  ;;  %v1158_v12 = vrot.slane %v10576_v7, 1  ;;  %v1792_v13 = vand.u32 %v8966_v11, %v11031_v36  ;;  %v791_v16 = vshrl.u32 %v10563_v3, 16  ;;  %v10558_v26 = vld [vmem:[%s11042_s14 + $0x40] sm:$0xff]  ;;  %v10577_v29 = vld [vmem:[%s11042_s14 + $0x10] sm:$0xff]  ;;  %v10572_v32 = vld [vmem:[%s11042_s14 + $0x58] sm:$0xff] }
  0x43   : > { %1048 = vmatpush.bf16.msrb.mxu3 %v1039_v46  ;;  %8694 = vmatmul.msk.bf16.vlgmr.msra.gmra.mxu0 %vm535_vm2, %v10553_v47  ;;  %v1157_v15 = vrot.slane %v8816_v10, 1  ;;  %v795_v17 = vrot.slane %v793_v9, 1  ;;  %v798_v18 = vshll.u32 %v10564_v8, 16  ;;  %v985_v20 = vshrl.u32 %v10570_v58, 16  ;;  %v10565_v30 = vld [vmem:[%s11042_s14 + $0x10] sm:$0xff]  ;;  %v10559_v43 = vld [vmem:[%s11042_s14 + $0x48] sm:$0xff] }
  0x44   : > { %8699 = vmatmul.msk.bf16.vlgmr.msra.gmra.mxu3 %vm535_vm2, %v534_v48  ;;  %1196 = vmatpush.bf16.msrb.mxu0 %v1187_v56  ;;  %v984_v4 = vsel %vm789_vm3, %v979_v63, %v983_v0  ;;  %v989_v21 = vshll.u32 %v10571_v14, 16  ;;  %v1160_v31 = vrot.slane %v10577_v29, 1  ;;  %v802_v34 = vshrl.u32 %v10564_v8, 16  ;;  %v10578_v46 = vld [vmem:[%s11042_s14 + $0x18] sm:$0xff]  ;;  %v10573_v49 = vld [vmem:[%s11042_s14 + $0x60] sm:$0xff]  ;;  %v10560_v59 = vld [vmem:[%s11042_s14 + $0x50] sm:$0xff] }
  0x45   : > { %v1159_v19 = vsel %vm1156_vm4, %v1157_v15, %v1158_v12  ;;  %v796_v22 = vor.u32 %v795_v17, %v791_v16  ;;  %v800_v23 = vrot.slane %v798_v18, 1  ;;  %v987_v24 = vor.u32 %v985_v20, %v983_v0  ;;  %v10566_v47 = vld [vmem:[%s11042_s14 + $0x18] sm:$0xff]  ;;  %v8804_v62 = vld [vmem:[%s11042_s14 + $0x68] sm:$0xf]  ;;  %v10574_v63 = vld [vmem:[%s11042_s14 + $0x68] sm:$0x10] }
  0x46   : > { %1343 = vmatpush.bf16.msra.mxu1 %v1334_v52  ;;  %1533 = vmatpush.bf16.msra.mxu2 %v1524_v53  ;;  %v991_v25 = vrot.slane %v989_v21, 1  ;;  %v1161_v33 = vsel %vm1156_vm4, %v1158_v12, %v1160_v31  ;;  %v806_v35 = vshll.u32 %v10565_v30, 16  ;;  %v993_v37 = vshrl.u32 %v10571_v14, 16  ;;  %v10579_v0 = vld [vmem:[%s11042_s14 + $0x20] sm:$0xff]  ;;  %v8761_v15 = vld [vmem:[%s11042_s14 + $0x28] sm:$0xf] }
  0x47   : > { %1667 = vmatpush.bf16.msra.mxu3 %v1658_v57  ;;  %v801_v27 = vsel %vm789_vm3, %v796_v22, %v800_v23  ;;  %v997_v38 = vshll.u32 %v10572_v32, 16  ;;  %v804_v39 = vor.u32 %v802_v34, %v800_v23  ;;  %v1162_v48 = vrot.slane %v10578_v46, 1  ;;  %v10568_v16 = vld [vmem:[%s11042_s14 + $0x28] sm:$0x10]  ;;  %v8835_v18 = vld [vmem:[%s11042_s14 + $0x28] sm:$0xf] }
  0x48   : > { %1801 = vmatpush.bf16.msra.mxu0 %v1792_v13  ;;  %v992_v28 = vsel %vm789_vm3, %v987_v24, %v991_v25  ;;  %v808_v40 = vrot.slane %v806_v35, 1  ;;  %v995_v41 = vor.u32 %v993_v37, %v991_v25  ;;  %v810_v51 = vshrl.u32 %v10565_v30, 16  ;;  %v10561_v13 = vld [vmem:[%s11042_s14 + $0x58] sm:$0xff]  ;;  %v10562_v29 = vld [vmem:[%s11042_s14 + $0x60] sm:$0xff]  ;;  %v8710_v35 = vld [vmem:[%s11042_s14 + $0x68] sm:$0xf] }
  0x49   : > { %v999_v42 = vrot.slane %v997_v38, 1  ;;  %v1163_v50 = vsel %vm1156_vm4, %v1160_v31, %v1162_v48  ;;  %v814_v52 = vshll.u32 %v10566_v47, 16  ;;  %v1001_v53 = vshrl.u32 %v10572_v32, 16  ;;  %v9005_v32 = vld [vmem:[%s14280_s1 + $0x12] sm:$0x3]  ;;  %v10593_v46 = vld [vmem:[%s11042_s14 + $0x80] sm:$0xff] }
  0x4a   : > { %v809_v44 = vsel %vm789_vm3, %v804_v39, %v808_v40  ;;  %v1005_v54 = vshll.u32 %v10573_v49, 16  ;;  %v812_v55 = vor.u32 %v810_v51, %v808_v40  ;;  %v8805_v3 = vor.u32 %v10574_v63, %v8804_v62  ;;  %v9048_v34 = vld [vmem:[%s14280_s1 + $0x14] sm:$0x3]  ;;  %v8889_v40 = vld [vmem:[%s11042_s14] sm:$0xe] }
  0x4b   : > { %v1000_v45 = vsel %vm789_vm3, %v995_v41, %v999_v42  ;;  %v816_v56 = vrot.slane %v814_v52, 1  ;;  %v1003_v57 = vor.u32 %v1001_v53, %v999_v42  ;;  %v818_v5 = vshrl.u32 %v10566_v47, 16  ;;  %v10587_v41 = vld [vmem:[%s11042_s14] sm:$0xf0]  ;;  %v9091_v47 = vld [vmem:[%s14280_s1 + $0x16] sm:$0x3] }
  0x4c   : > { %v1007_v58 = vrot.slane %v1005_v54, 1  ;;  %v1009_v7 = vshrl.u32 %v10573_v49, 16  ;;  %v1013_v8 = vshll.u32 %v8805_v3, 16  ;;  %v8762_v20 = vor.u32 %v10568_v16, %v8761_v15  ;;  %v8858_v51 = vld [vmem:[%s11042_s14 + $0x40] sm:$0xe]  ;;  %v10583_v15 = vld [vmem:[%s11042_s14 + $0x50] sm:$0xff] }
  0x4d   : > { %v817_v60 = vsel %vm789_vm3, %v812_v55, %v816_v56  ;;  %v820_v9 = vor.u32 %v818_v5, %v816_v56  ;;  %v2158_v37 = vand.u32 %v9048_v34, %v11031_v36  ;;  %v646_v38 = vunpack.c.l.b16 %v8710_v35  ;;  %v10581_v52 = vld [vmem:[%s11042_s14 + $0x40] sm:$0xf0]  ;;  %v10589_v5 = vld [vmem:[%s11042_s14 + $0x10] sm:$0xff]  ;;  %v10584_v35 = vld [vmem:[%s11042_s14 + $0x58] sm:$0xff] }
  0x4e   : > { %v1008_v61 = vsel %vm789_vm3, %v1003_v57, %v1007_v58  ;;  %v1011_v11 = vor.u32 %v1009_v7, %v1007_v58  ;;  %v1015_v12 = vrot.slane %v1013_v8, 1  ;;  %v830_v24 = vshll.u32 %v8762_v20, 16  ;;  %v10598_v56 = vld [vmem:[%s11042_s14 + $0xc0] sm:$0xff]  ;;  %v10582_v57 = vld [vmem:[%s11042_s14 + $0x48] sm:$0xff] }
  0x4f   : > { %v834_v39 = vshrl.u32 %v8762_v20, 16  ;;  %v652_v42 = vpack.c.b16 %v646_v38, %v646_v38  ;;  %v8859_v55 = vor.u32 %v10581_v52, %v8858_v51  ;;  %v1305_v63 = vrot.slane %v10582_v57, 1  ;;  %v9134_v8 = vld [vmem:[%s14280_s1 + $0x18] sm:$0x3]  ;;  %v10596_v51 = vld [vmem:[%s11042_s14 + $0x98] sm:$0xff] }
  0x50   : > { %v1016_v17 = vsel %vm789_vm3, %v1011_v11, %v1015_v12  ;;  %vm1451_vm5 = vsmask.f32 6400  ;;  %vm599_vm6 = vcmask 523264   ;;  %v2452_v11 = vand.u32 %v9134_v8, %v11031_v36  ;;  %v10601_v57 = vld [vmem:[%s11042_s14 + $0xd8] sm:$0xff] }
  0x51   : > { %8696 = vmatmul.msk.bf16.gmra.mxu1 %vm535_vm2, %v10555_v1  ;;  %8698 = vmatmul.msk.bf16.gmra.mxu2 %vm535_vm2, %v10557_v2  ;;  %v10567_v1 = vld [vmem:[%s11042_s14 + $0x20] sm:$0xff]  ;;  %v1164_v2 = vrot.slane %v10579_v0, 1  ;;  %v1304_v62 = vrot.slane %v8859_v55, 1  ;;  %v1307_v20 = vrot.slane %v10583_v15, 1  ;;  %vm3136_vm7 = vcmask 1045504  }
  0x52   : > { %v822_v6 = vshll.u32 %v10567_v1, 16  ;;  %v826_v23 = vshrl.u32 %v10567_v1, 16  ;;  %v10597_v15 = vld [vmem:[%s11042_s14 + $0xa0] sm:$0xff]  ;;  %vm3431_vm8 = vsmask.f32 5376  ;;  %vm3810_vm9 = vcmask 1044480  }
  0x53   : > { %8837 = vmatmul.msk.bf16.vlgmr.msrb.gmra.mxu0 %vm535_vm2, %v1159_v19  ;;  %v10580_v19 = vld [vmem:[%s11042_s14 + $0x28] sm:$0x10]  ;;  %vm5449_vm10 = vsmask.f32 4352  ;;  %vm8591_vm11 = vcmask 519168  }
  0x54   : > { %8806 = vmatmul.msk.bf16.vlgmr.msrb.gmra.mxu3 %vm535_vm2, %v984_v4  ;;  %v1165_v4 = vsel %vm1156_vm4, %v1162_v48, %v1164_v2  ;;  %v824_v10 = vrot.slane %v822_v6, 1  ;;  %v8836_v21 = vor.u32 %v10580_v19, %v8835_v18  ;;  %v2305_v48 = vand.u32 %v9091_v47, %v11031_v36  ;;  %v10594_v6 = vld [vmem:[%s11042_s14 + $0x88] sm:$0xff]  ;;  %2461 = vmatpush.bf16.msrb.mxu0 %v2452_v11 }
  0x56   : > { %v825_v14 = vsel %vm789_vm3, %v820_v9, %v824_v10  ;;  %v1166_v22 = vrot.slane %v8836_v21, 1  ;;  %2314 = vmatpush.bf16.msrb.mxu3 %v2305_v48  ;;  %v1470_v9 = vshrl.u32 %v10589_v5, 16  ;;  %v10591_v48 = vld [vmem:[%s11042_s14 + $0x20] sm:$0xff] }
  0x57   : > { %v1488_v52 = vshrl.u32 %v10591_v48, 16 }
  0x58   : > { %v1167_v25 = vsel %vm1156_vm4, %v1164_v2, %v1166_v22  ;;  %v1472_v16 = vrot.slane %v1470_v9, 1 }
  0x61   : > { %8732 = vmatmul.msk.bf16.vlgmr.msrb.gmra.mxu1 %vm535_vm2, %v10558_v26  ;;  %8763 = vmatmul.msk.bf16.vlgmr.msrb.gmra.mxu2 %vm535_vm2, %v801_v27  ;;  %v828_v26 = vor.u32 %v826_v23, %v824_v10  ;;  %v832_v27 = vrot.slane %v830_v24, 1  ;;  %v1473_v10 = vshll.u32 %v10589_v5, 16  ;;  %v1308_v24 = vsel %vm1156_vm4, %v1305_v63, %v1307_v20  ;;  %v10592_v5 = vld [vmem:[%s11042_s14 + $0x28] sm:$0x30] }
  0x62   : > { %2167 = vmatpush.bf16.msrb.mxu2 %v2158_v37 }
  0x63   : > { %8838 = vmatmul.msk.bf16.gmra.mxu0 %vm535_vm2, %v1161_v33  ;;  %v833_v30 = vsel %vm789_vm3, %v828_v26, %v832_v27  ;;  %v1975_v33 = vand.u32 %v9005_v32, %v11031_v36  ;;  %v10590_v26 = vld [vmem:[%s11042_s14 + $0x18] sm:$0xff] }
  0x64   : > { %8807 = vmatmul.msk.bf16.gmra.mxu3 %vm535_vm2, %v992_v28  ;;  %v1017_v28 = vshrl.u32 %v8805_v3, 16  ;;  %v1306_v3 = vsel %vm1156_vm4, %v1304_v62, %v1305_v63 }
  0x65   : > { %1984 = vmatpush.bf16.msrb.mxu1 %v1975_v33  ;;  %v10600_v33 = vld [vmem:[%s11042_s14 + $0xd0] sm:$0xff] }
  0x66   : > { %v1019_v31 = vor.u32 %v1017_v28, %v1015_v12  ;;  %v10595_v28 = vld [vmem:[%s11042_s14 + $0x90] sm:$0xff] }
  0x71   : > { %8733 = vmatmul.msk.bf16.gmra.mxu1 %vm535_vm2, %v10559_v43  ;;  %8764 = vmatmul.msk.bf16.gmra.mxu2 %vm535_vm2, %v809_v44  ;;  %v836_v43 = vor.u32 %v834_v39, %v832_v27  ;;  %v8890_v44 = vor.u32 %v10587_v41, %v8889_v40  ;;  %v1309_v40 = vrot.slane %v10584_v35, 1 }
  0x73   : > { %8839 = vmatmul.msk.bf16.gmra.mxu0 %vm535_vm2, %v1163_v50  ;;  %v1453_v49 = vshrl.u32 %v8890_v44, 16  ;;  %v1456_v50 = vshll.u32 %v8890_v44, 16 }
  0x74   : > { %8808 = vmatmul.msk.bf16.gmra.mxu3 %vm535_vm2, %v1000_v45  ;;  %v10588_v45 = vld [vmem:[%s11042_s14 + $0x8] sm:$0xff] }
  0x75   : > { %v1461_v53 = vshrl.u32 %v10588_v45, 16  ;;  %v1464_v54 = vshll.u32 %v10588_v45, 16  ;;  %v1455_v58 = vrot.slane %v1453_v49, 1 }
  0x81   : > { %8734 = vmatmul.msk.bf16.gmra.mxu1 %vm535_vm2, %v10560_v59  ;;  %8765 = vmatmul.msk.bf16.gmra.mxu2 %vm535_vm2, %v817_v60  ;;  %v1458_v59 = vrot.slane %v1456_v50, 2  ;;  %v1463_v60 = vrot.slane %v1461_v53, 1  ;;  %v1491_v53 = vshll.u32 %v10591_v48, 16 }
  0x83   : > { %8840 = vmatmul.msk.bf16.gmra.mxu0 %vm535_vm2, %v1165_v4  ;;  %v1459_v0 = vor.u32 %v1458_v59, %v1455_v58  ;;  %v11219_v59 = vld [vmem:[%s11042_s14 + $0x60] sm:$0xff] }
  0x84   : > { %8809 = vmatmul.msk.bf16.gmra.mxu3 %vm535_vm2, %v1008_v61  ;;  %v1466_v61 = vrot.slane %v1464_v54, 2 }
  0x86   : > { %v1467_v1 = vor.u32 %v1466_v61, %v1463_v60  ;;  %v1490_v60 = vrot.slane %v1488_v52, 1  ;;  %v1493_v61 = vrot.slane %v1491_v53, 2 }
  0x88   : > { %v1468_v4 = vsel %vm1451_vm5, %v1459_v0, %v1467_v1 }
  0x91   : > { %8735 = vmatmul.msk.bf16.gmra.mxu1 %vm535_vm2, %v10561_v13  ;;  %8766 = vmatmul.msk.bf16.gmra.mxu2 %vm535_vm2, %v825_v14  ;;  %v10599_v13 = vld [vmem:[%s11042_s14 + $0xc8] sm:$0xff] }
  0x93   : > { %8841 = vmatmul.msk.bf16.gmra.mxu0 %vm535_vm2, %v1167_v25 }
  0x94   : > { %8810 = vmatmul.msk.bf16.gmra.mxu3 %vm535_vm2, %v1016_v17  ;;  %v1475_v17 = vrot.slane %v1473_v10, 2 }
  0x96   : > { %v1476_v21 = vor.u32 %v1475_v17, %v1472_v16 }
  0x98   : > { %v1477_v25 = vsel %vm1451_vm5, %v1467_v1, %v1476_v21 }
  0xa1   : > { %8736 = vmatmul.msk.bf16.gmra.mxu1 %vm535_vm2, %v10562_v29  ;;  %8767 = vmatmul.msk.bf16.gmra.mxu2 %vm535_vm2, %v833_v30  ;;  %v1479_v29 = vshrl.u32 %v10590_v26, 16  ;;  %v1482_v30 = vshll.u32 %v10590_v26, 16  ;;  %v10602_v26 = vld [vmem:[%s11042_s14 + $0xe0] sm:$0xff] }
  0xa3   : > { %8842 = vmatmul.msk.bf16.gmra.mxu0 %vm535_vm2, %v1166_v22  ;;  %v1481_v37 = vrot.slane %v1479_v29, 1  ;;  %v1484_v38 = vrot.slane %v1482_v30, 2 }
  0xa4   : > { %8811 = vmatmul.msk.bf16.gmra.mxu3 %vm535_vm2, %v1019_v31 }
  0xa5   : > { %v1485_v41 = vor.u32 %v1484_v38, %v1481_v37  ;;  %v8927_v37 = vld [vmem:[%s11042_s14 + $0xa8] sm:$0xf] }
  0xa7   : > { %v1486_v47 = vsel %vm1451_vm5, %v1476_v21, %v1485_v41 }
  0xb1   : > { %8737 = vmatmul.msk.bf16.gmra.mxu1 %vm535_vm2, %v652_v42  ;;  %8768 = vmatmul.msk.bf16.gmra.mxu2 %vm535_vm2, %v836_v43 }
  0xb3   : > { %8987 = vmatmul.msk.bf16.vlgmr.msra.gmra.mxu0 %vm535_vm2, %v10598_v56 }
  0xb4   : > { %8949 = vmatmul.msk.bf16.vlgmr.msra.gmra.mxu3 %vm535_vm2, %v10593_v46  ;;  %v1310_v46 = vsel %vm1156_vm4, %v1307_v20, %v1309_v40 }
  0xbe   : > { %v575_v2 = vpop.f32.mrf.mxu1 }
  0xbf   : > { %602 = vst.msk [vmem:[#allocation2 + $0x10] sm:$0xff] %vm599_vm6, %v575_v2  ;;  %v1311_v2 = vrot.slane %v11219_v59, 1  ;;  %v8965_v59 = vld [vmem:[%s11042_s14 + $0xe8] sm:$0xf] }
  0xc0   : > { %v570_v7 = vpop.f32.mrf.mxu0 }
  0xc1   : > { %8880 = vmatmul.msk.bf16.vlgmr.msra.gmra.mxu1 %vm535_vm2, %v1306_v3  ;;  %8911 = vmatmul.msk.bf16.vlgmr.msra.gmra.mxu2 %vm535_vm2, %v1468_v4  ;;  %600 = vst.msk [vmem:[#allocation2] sm:$0xff] %vm599_vm6, %v570_v7  ;;  %v1494_v3 = vor.u32 %v1493_v61, %v1490_v60  ;;  %v8909_v4 = vld [vmem:[%s11042_s14 + $0x28] sm:$0xf]  ;;  %v1312_v10 = vsel %vm1156_vm4, %v1309_v40, %v1311_v2  ;;  %v1766_v61 = vunpack.c.l.b16 %v8965_v59 }
  0xc3   : > { %8988 = vmatmul.msk.bf16.gmra.mxu0 %vm535_vm2, %v10599_v13  ;;  %v1495_v11 = vsel %vm1451_vm5, %v1485_v41, %v1494_v3 }
  0xc4   : > { %8950 = vmatmul.msk.bf16.gmra.mxu3 %vm535_vm2, %v10594_v6  ;;  %v585_v12 = vpop.f32.mrf.mxu2 }
  0xc5   : > { %606 = vst.msk [vmem:[#allocation2 + $0x30] sm:$0xff] %vm599_vm6, %v585_v12  ;;  %v8910_v12 = vor.u32 %v10592_v5, %v8909_v4  ;;  %v9094_v4 = vld [vmem:[%s11042_s14 + $0x80] sm:$0xe]  ;;  %v10615_v5 = vld [vmem:[%s11042_s14 + $0x80] sm:$0xf0] }
  0xc6   : > { %v577_v14 = vpop.f32.mrf.mxu1  ;;  %v714_v9 = vld [vmem:[#allocation2 + $0x10] sm:$0xff] }
  0xc7   : > { %v595_v18 = vpop.f32.mrf.mxu3  ;;  %603 = vst.msk [vmem:[#allocation2 + $0x18] sm:$0xff] %vm599_vm6, %v577_v14  ;;  %v1500_v20 = vshll.u32 %v8910_v12, 16 }
  0xc8   : > { %610 = vst.msk [vmem:[#allocation2 + $0x50] sm:$0xff] %vm599_vm6, %v595_v18  ;;  %v572_v19 = vpop.f32.mrf.mxu0  ;;  %v712_v43 = vld [vmem:[#allocation2] sm:$0xff] }
  0xc9   : > { %601 = vst.msk [vmem:[#allocation2 + $0x8] sm:$0xff] %vm599_vm6, %v572_v19  ;;  %v1497_v19 = vshrl.u32 %v8910_v12, 16 }
  0xcb   : > { %v1499_v30 = vrot.slane %v1497_v19, 1 }
  0xcc   : > { %v587_v22 = vpop.f32.mrf.mxu2 }
  0xcd   : > { %607 = vst.msk [vmem:[#allocation2 + $0x38] sm:$0xff] %vm599_vm6, %v587_v22  ;;  %v8878_v22 = vld [vmem:[%s11042_s14 + $0x68] sm:$0xf] }
  0xce   : > { %v580_v23 = vpop.f32.mrf.mxu1 }
  0xcf   : > { %v597_v27 = vpop.f32.mrf.mxu3  ;;  %604 = vst.msk [vmem:[#allocation2 + $0x20] sm:$0xff] %vm599_vm6, %v580_v23  ;;  %v10586_v23 = vld [vmem:[%s11042_s14 + $0x68] sm:$0x10] }
  0xd0   : > { %v11195_v32 = vpop.f32.mrf.mxu0  ;;  %v713_v55 = vld [vmem:[#allocation2 + $0x8] sm:$0xff]  ;;  %v8879_v29 = vor.u32 %v10586_v23, %v8878_v22 }
  0xd1   : > { %8881 = vmatmul.msk.bf16.gmra.mxu1 %vm535_vm2, %v1308_v24  ;;  %8912 = vmatmul.msk.bf16.gmra.mxu2 %vm535_vm2, %v1477_v25 }
  0xd2   : > { %v11252_v40 = vrot.slane %v8879_v29, 1 }
  0xd3   : > { %8989 = vmatmul.msk.bf16.gmra.mxu0 %vm535_vm2, %v10600_v33 }
  0xd4   : > { %8951 = vmatmul.msk.bf16.gmra.mxu3 %vm535_vm2, %v10595_v28  ;;  %v590_v31 = vpop.f32.mrf.mxu2  ;;  %v715_v28 = vld [vmem:[#allocation2 + $0x18] sm:$0xff]  ;;  %v1314_v52 = vsel %vm1156_vm4, %v1311_v2, %v11252_v40 }
  0xd5   : > { %608 = vst.msk [vmem:[#allocation2 + $0x40] sm:$0xff] %vm599_vm6, %v590_v31  ;;  %v1502_v31 = vrot.slane %v1500_v20, 2  ;;  %v719_v59 = vld [vmem:[#allocation2 + $0x38] sm:$0xff] }
  0xd6   : > { %v582_v34 = vpop.f32.mrf.mxu1 }
  0xd7   : > { %v1050_v39 = vpop.f32.mrf.mxu3  ;;  %605 = vst.msk [vmem:[#allocation2 + $0x28] sm:$0xff] %vm599_vm6, %v582_v34  ;;  %v11254_v41 = vor.u32 %v1502_v31, %v1499_v30  ;;  %v9208_v30 = vld [vmem:[%s14280_s1 + $0x1c] sm:$0x3] }
  0xd8   : > { %v11202_v44 = vpop.f32.mrf.mxu0 }
  0xdc   : > { %v592_v42 = vpop.f32.mrf.mxu2 }
  0xdd   : > { %609 = vst.msk [vmem:[#allocation2 + $0x48] sm:$0xff] %vm599_vm6, %v592_v42 }
  0xde   : > { %v683_v45 = vpop.f32.mrf.mxu1 }
  0xdf   : > { %v11208_v49 = vpop.f32.mrf.mxu3  ;;  %v723_v50 = vadd.f32 %v712_v43, %v683_v45  ;;  %v1632_v43 = vunpack.c.l.b16 %v8927_v37 }
  0xe0   : > { %v11215_v56 = vpop.f32.mrf.mxu0 }
  0xe1   : > { %734 = vst.msk [vmem:[#allocation2] sm:$0xff] %vm599_vm6, %v723_v50  ;;  %8882 = vmatmul.msk.bf16.gmra.mxu1 %vm535_vm2, %v1310_v46  ;;  %8913 = vmatmul.msk.bf16.gmra.mxu2 %vm535_vm2, %v1486_v47 }
  0xe3   : > { %8990 = vmatmul.msk.bf16.gmra.mxu0 %vm535_vm2, %v10601_v57 }
  0xe4   : > { %8952 = vmatmul.msk.bf16.gmra.mxu3 %vm535_vm2, %v10596_v51  ;;  %v867_v54 = vpop.f32.mrf.mxu2  ;;  %v716_v51 = vld [vmem:[#allocation2 + $0x20] sm:$0xff] }
  0xe6   : > { %v685_v58 = vpop.f32.mrf.mxu1 }
  0xe7   : > { %v11221_v62 = vpop.f32.mrf.mxu3  ;;  %v724_v63 = vadd.f32 %v713_v55, %v685_v58  ;;  %v1638_v55 = vpack.c.b16 %v1632_v43, %v1632_v43 }
  0xe8   : > { %v896_v0 = vld [vmem:[#allocation2] sm:$0xff]  ;;  %v11229_v7 = vpop.f32.mrf.mxu0 }
  0xe9   : > { %v907_v1 = vadd.f32 %v896_v0, %v867_v54  ;;  %735 = vst.msk [vmem:[#allocation2 + $0x8] sm:$0xff] %vm599_vm6, %v724_v63 }
  0xeb   : > { %918 = vst.msk [vmem:[#allocation2] sm:$0xff] %vm599_vm6, %v907_v1 }
  0xec   : > { %v869_v6 = vpop.f32.mrf.mxu2 }
  0xee   : > { %v688_v8 = vpop.f32.mrf.mxu1 }
  0xef   : > { %v11233_v13 = vpop.f32.mrf.mxu3  ;;  %v725_v14 = vadd.f32 %v714_v9, %v688_v8  ;;  %v717_v8 = vld [vmem:[#allocation2 + $0x28] sm:$0xff] }
  0xf0   : > { %v897_v16 = vld [vmem:[#allocation2 + $0x8] sm:$0xff]  ;;  %v11243_v25 = vpop.f32.mrf.mxu0 }
  0xf1   : > { %v908_v17 = vadd.f32 %v897_v16, %v869_v6  ;;  %736 = vst.msk [vmem:[#allocation2 + $0x10] sm:$0xff] %vm599_vm6, %v725_v14  ;;  %8883 = vmatmul.msk.bf16.gmra.mxu1 %vm535_vm2, %v1312_v10  ;;  %8914 = vmatmul.msk.bf16.gmra.mxu2 %vm535_vm2, %v1495_v11  ;;  %v9177_v10 = vld [vmem:[%s14280_s1 + $0x1a] sm:$0x3]  ;;  %v9095_v14 = vor.u32 %v10615_v5, %v9094_v4 }
  0xf2   : > { %v1079_v18 = vld [vmem:[#allocation2] sm:$0xff]  ;;  %v2641_v12 = vand.u32 %v9177_v10, %v11031_v36 }
  0xf3   : > { %v1090_v21 = vadd.f32 %v1079_v18, %v1050_v39  ;;  %919 = vst.msk [vmem:[#allocation2 + $0x8] sm:$0xff] %vm599_vm6, %v908_v17  ;;  %8991 = vmatmul.msk.bf16.gmra.mxu0 %vm535_vm2, %v10602_v26  ;;  %v2275_v20 = vrot.slane %v9095_v14, 1 }
  0xf4   : > { %8953 = vmatmul.msk.bf16.gmra.mxu3 %vm535_vm2, %v10597_v15  ;;  %v872_v24 = vpop.f32.mrf.mxu2  ;;  %2650 = vmatpush.bf16.msra.mxu1 %v2641_v12 }
  0xf5   : > { %1101 = vst.msk [vmem:[#allocation2] sm:$0xff] %vm599_vm6, %v1090_v21 }
  0xf6   : > { %v690_v27 = vpop.f32.mrf.mxu1 }
  0xf7   : > { %v11247_v33 = vpop.f32.mrf.mxu3  ;;  %v726_v34 = vadd.f32 %v715_v28, %v690_v27  ;;  %v718_v27 = vld [vmem:[#allocation2 + $0x30] sm:$0xff] }
  0xf8   : > { %v898_v35 = vld [vmem:[#allocation2 + $0x10] sm:$0xff]  ;;  %v11258_v47 = vpop.f32.mrf.mxu0 }
  0xf9   : > { %v909_v38 = vadd.f32 %v898_v35, %v872_v24  ;;  %737 = vst.msk [vmem:[#allocation2 + $0x18] sm:$0xff] %vm599_vm6, %v726_v34  ;;  %v10603_v24 = vld [vmem:[%s11042_s14 + $0x80] sm:$0xff]  ;;  %v11310_v34 = vld [vmem:[%s11042_s14 + $0x88] sm:$0xff] }
  0xfa   : > { %v1080_v39 = vld [vmem:[#allocation2 + $0x8] sm:$0xff] }
  0xfb   : > { %v1091_v42 = vadd.f32 %v1080_v39, %v11208_v49  ;;  %920 = vst.msk [vmem:[#allocation2 + $0x10] sm:$0xff] %vm599_vm6, %v909_v38  ;;  %v1504_v49 = vsel %vm1451_vm5, %v1494_v3, %v11254_v41  ;;  %v1772_v3 = vpack.c.b16 %v1766_v61, %v1766_v61  ;;  %v1912_v38 = vshll.u32 %v10603_v24, 16  ;;  %v9137_v39 = vld [vmem:[%s11042_s14 + $0xc0] sm:$0xe] }
  0xfc   : > { %v1227_v45 = vld [vmem:[#allocation2] sm:$0xff]  ;;  %v874_v46 = vpop.f32.mrf.mxu2 }
  0xfd   : > { %1102 = vst.msk [vmem:[#allocation2 + $0x8] sm:$0xff] %vm599_vm6, %v1091_v42  ;;  %v1238_v48 = vadd.f32 %v1227_v45, %v11195_v32  ;;  %v10621_v42 = vld [vmem:[%s11042_s14 + $0xc0] sm:$0xf0]  ;;  %v11324_v45 = vld [vmem:[%s11042_s14 + $0xc8] sm:$0xff] }
  0xfe   : > { %v693_v50 = vpop.f32.mrf.mxu1 }
  0xff   : > { %v11266_v53 = vpop.f32.mrf.mxu3  ;;  %1249 = vst.msk [vmem:[#allocation2] sm:$0xff] %vm599_vm6, %v1238_v48  ;;  %v727_v54 = vadd.f32 %v716_v51, %v693_v50  ;;  %v11327_v48 = vld [vmem:[%s11042_s14 + $0xc8] sm:$0xff]  ;;  %v9138_v50 = vor.u32 %v10621_v42, %v9137_v39 }
 0x100   : > { %v899_v57 = vld [vmem:[#allocation2 + $0x18] sm:$0xff]  ;;  %v11276_v1 = vpop.f32.mrf.mxu0 }
 0x101   : > { %v910_v58 = vadd.f32 %v899_v57, %v874_v46  ;;  %738 = vst.msk [vmem:[#allocation2 + $0x20] sm:$0xff] %vm599_vm6, %v727_v54  ;;  %8884 = vmatmul.msk.bf16.gmra.mxu1 %vm535_vm2, %v1314_v52  ;;  %8915 = vmatmul.msk.bf16.gmra.mxu2 %vm535_vm2, %v1504_v49  ;;  %v2422_v49 = vrot.slane %v9138_v50, 1  ;;  %v2423_v54 = vrot.slane %v11327_v48, 1  ;;  %v1910_v57 = vshrl.u32 %v10603_v24, 16  ;;  %v720_v24 = vld [vmem:[#allocation2 + $0x40] sm:$0xff] }
 0x102   : > { %v1081_v32 = vld [vmem:[#allocation2 + $0x10] sm:$0xff] }
 0x103   : > { %v1092_v60 = vadd.f32 %v1081_v32, %v11221_v62  ;;  %921 = vst.msk [vmem:[#allocation2 + $0x18] sm:$0xff] %vm599_vm6, %v910_v58  ;;  %8992 = vmatmul.msk.bf16.gmra.mxu0 %vm535_vm2, %v1772_v3  ;;  %v1914_v58 = vrot.slane %v1912_v38, 1  ;;  %v9251_v3 = vld [vmem:[%s14280_s1 + $0x1e] sm:$0x3] }
 0x104   : > { %8954 = vmatmul.msk.bf16.gmra.mxu3 %vm535_vm2, %v1638_v55  ;;  %v1228_v63 = vld [vmem:[#allocation2 + $0x8] sm:$0xff]  ;;  %v877_v0 = vpop.f32.mrf.mxu2  ;;  %v3019_v5 = vand.u32 %v9251_v3, %v11031_v36 }
 0x105   : > { %1103 = vst.msk [vmem:[#allocation2 + $0x10] sm:$0xff] %vm599_vm6, %v1092_v60  ;;  %v1239_v2 = vadd.f32 %v1228_v63, %v11202_v44  ;;  %v11291_v44 = vld [vmem:[%s11042_s14 + $0x88] sm:$0xff]  ;;  %v2100_v63 = vshll.u32 %v11324_v45, 16  ;;  %v1915_v10 = vor.u32 %v1914_v58, %v1910_v57  ;;  %v11409_v58 = vld [vmem:[%s11042_s14 + $0x98] sm:$0xff] }
 0x106   : > { %v695_v6 = vpop.f32.mrf.mxu1  ;;  %v2276_v21 = vrot.slane %v11291_v44, 1  ;;  %3028 = vmatpush.bf16.msra.mxu3 %v3019_v5 }
 0x107   : > { %v11282_v62 = vpop.f32.mrf.mxu3  ;;  %1250 = vst.msk [vmem:[#allocation2 + $0x8] sm:$0xff] %vm599_vm6, %v1239_v2  ;;  %v728_v9 = vadd.f32 %v717_v8, %v695_v6  ;;  %v2424_v2 = vsel %vm1156_vm4, %v2422_v49, %v2423_v54  ;;  %v11351_v6 = vld [vmem:[%s11042_s14 + $0x90] sm:$0xff]  ;;  %v2102_v14 = vrot.slane %v2100_v63, 1 }
 0x108   : > { %v900_v11 = vld [vmem:[#allocation2 + $0x20] sm:$0xff]  ;;  %v11297_v22 = vpop.f32.mrf.mxu0  ;;  %v2277_v35 = vsel %vm1156_vm4, %v2275_v20, %v2276_v21 }
 0x109   : > { %v911_v15 = vadd.f32 %v900_v11, %v877_v0  ;;  %739 = vst.msk [vmem:[#allocation2 + $0x28] sm:$0xff] %vm599_vm6, %v728_v9 }
 0x10a   : > { %v1082_v16 = vld [vmem:[#allocation2 + $0x18] sm:$0xff] }
 0x10b   : > { %v1093_v17 = vadd.f32 %v1082_v16, %v11233_v13  ;;  %922 = vst.msk [vmem:[#allocation2 + $0x20] sm:$0xff] %vm599_vm6, %v911_v15  ;;  %v10609_v13 = vld [vmem:[%s11042_s14 + $0xc0] sm:$0xff] }
 0x10c   : > { %v1229_v18 = vld [vmem:[#allocation2 + $0x10] sm:$0xff]  ;;  %v879_v19 = vpop.f32.mrf.mxu2  ;;  %v2095_v46 = vshll.u32 %v10609_v13, 16  ;;  %v2093_v60 = vshrl.u32 %v10609_v13, 16 }
 0x10d   : > { %1104 = vst.msk [vmem:[#allocation2 + $0x18] sm:$0xff] %vm599_vm6, %v1093_v17  ;;  %v1240_v23 = vadd.f32 %v1229_v18, %v11215_v56  ;;  %v2830_v56 = vand.u32 %v9208_v30, %v11031_v36  ;;  %v2278_v18 = vrot.slane %v11351_v6, 1 }
 0x10e   : > { %v698_v26 = vpop.f32.mrf.mxu1  ;;  %v2097_v61 = vrot.slane %v2095_v46, 1  ;;  %v1921_v46 = vshrl.u32 %v11310_v34, 16 }
 0x10f   : > { %v11303_v28 = vpop.f32.mrf.mxu3  ;;  %1251 = vst.msk [vmem:[#allocation2 + $0x10] sm:$0xff] %vm599_vm6, %v1240_v23  ;;  %v729_v29 = vadd.f32 %v718_v27, %v698_v26  ;;  %2839 = vmatpush.bf16.msra.mxu2 %v2830_v56 }
 0x110   : > { %v901_v31 = vld [vmem:[#allocation2 + $0x28] sm:$0xff]  ;;  %v2098_v12 = vor.u32 %v2097_v61, %v2093_v60 }
 0x111   : > { %v912_v37 = vadd.f32 %v901_v31, %v879_v19  ;;  %740 = vst.msk [vmem:[#allocation2 + $0x30] sm:$0xff] %vm599_vm6, %v729_v29  ;;  %8885 = vmatmul.msk.bf16.gmra.mxu1 %vm535_vm2, %v11252_v40  ;;  %8916 = vmatmul.msk.bf16.gmra.mxu2 %vm535_vm2, %v11254_v41  ;;  %v11332_v41 = vpop.f32.mrf.mxu0  ;;  %v11375_v31 = vld [vmem:[%s11042_s14 + $0x90] sm:$0xff] }
 0x112   : > { %v1083_v43 = vld [vmem:[#allocation2 + $0x20] sm:$0xff] }
 0x113   : > { %v1094_v51 = vadd.f32 %v1083_v43, %v11247_v33  ;;  %923 = vst.msk [vmem:[#allocation2 + $0x28] sm:$0xff] %vm599_vm6, %v912_v37  ;;  %v1917_v33 = vshll.u32 %v11310_v34, 16  ;;  %9159 = vmatmul.msk.bf16.vlgmr.msrb.gmra.mxu0 %vm535_vm2, %v2424_v2  ;;  %v11381_v37 = vld [vmem:[%s11042_s14 + $0xd0] sm:$0xff]  ;;  %v9282_v34 = vld [vmem:[%s14280_s1 + $0x20] sm:$0x3] }
 0x114   : > { %9116 = vmatmul.msk.bf16.vlgmr.msrb.gmra.mxu3 %vm535_vm2, %v2277_v35  ;;  %v1230_v40 = vld [vmem:[#allocation2 + $0x18] sm:$0xff]  ;;  %v882_v52 = vpop.f32.mrf.mxu2  ;;  %v11378_v35 = vld [vmem:[%s11042_s14 + $0xd0] sm:$0xff]  ;;  %v2425_v42 = vrot.slane %v11381_v37, 1  ;;  %v3167_v57 = vand.u32 %v9282_v34, %v11031_v36 }
 0x115   : > { %1105 = vst.msk [vmem:[#allocation2 + $0x20] sm:$0xff] %vm599_vm6, %v1094_v51  ;;  %v1241_v55 = vadd.f32 %v1230_v40, %v11229_v7  ;;  %v1919_v11 = vrot.slane %v1917_v33, 1  ;;  %v721_v51 = vld [vmem:[#allocation2 + $0x48] sm:$0xff]  ;;  %v2104_v40 = vshrl.u32 %v11324_v45, 16 }
 0x116   : > { %v700_v32 = vpop.f32.mrf.mxu1  ;;  %3176 = vmatpush.bf16.msra.mxu0 %v3167_v57 }
 0x117   : > { %v11339_v0 = vpop.f32.mrf.mxu3  ;;  %1252 = vst.msk [vmem:[#allocation2 + $0x18] sm:$0xff] %vm599_vm6, %v1241_v55  ;;  %v730_v7 = vadd.f32 %v719_v59, %v700_v32  ;;  %v1920_v26 = vsel %vm789_vm3, %v1915_v10, %v1919_v11  ;;  %v2426_v55 = vsel %vm1156_vm4, %v2423_v54, %v2425_v42  ;;  %v1923_v32 = vor.u32 %v1921_v46, %v1919_v11 }
 0x118   : > { %v902_v4 = vld [vmem:[#allocation2 + $0x30] sm:$0xff]  ;;  %v2106_v59 = vor.u32 %v2104_v40, %v2102_v14 }
 0x119   : > { %v913_v8 = vadd.f32 %v902_v4, %v882_v52  ;;  %741 = vst.msk [vmem:[#allocation2 + $0x38] sm:$0xff] %vm599_vm6, %v730_v7  ;;  %v11357_v19 = vpop.f32.mrf.mxu0  ;;  %v2108_v52 = vshll.u32 %v11378_v35, 16  ;;  %v2280_v7 = vrot.slane %v11409_v58, 1 }
 0x11a   : > { %v1084_v9 = vld [vmem:[#allocation2 + $0x28] sm:$0xff] }
 0x11b   : > { %v1095_v15 = vadd.f32 %v1084_v9, %v11266_v53  ;;  %924 = vst.msk [vmem:[#allocation2 + $0x30] sm:$0xff] %vm599_vm6, %v913_v8  ;;  %v2103_v53 = vsel %vm789_vm3, %v2098_v12, %v2102_v14  ;;  %v2110_v60 = vrot.slane %v2108_v52, 1  ;;  %v722_v8 = vld [vmem:[#allocation2 + $0x50] sm:$0xff]  ;;  %v2281_v14 = vsel %vm1156_vm4, %v2278_v18, %v2280_v7 }
 0x11c   : > { %v1231_v16 = vld [vmem:[#allocation2 + $0x20] sm:$0xff]  ;;  %v884_v17 = vpop.f32.mrf.mxu2 }
 0x11d   : > { %1106 = vst.msk [vmem:[#allocation2 + $0x28] sm:$0xff] %vm599_vm6, %v1095_v15  ;;  %v1242_v20 = vadd.f32 %v1231_v16, %v11243_v25  ;;  %v2279_v25 = vsel %vm1156_vm4, %v2276_v21, %v2278_v18  ;;  %v11429_v15 = vld [vmem:[%s11042_s14 + $0x98] sm:$0xff] }
 0x11e   : > { %v703_v23 = vpop.f32.mrf.mxu1 }
 0x11f   : > { %v11363_v27 = vpop.f32.mrf.mxu3  ;;  %1253 = vst.msk [vmem:[#allocation2 + $0x20] sm:$0xff] %vm599_vm6, %v1242_v20  ;;  %v731_v13 = vadd.f32 %v720_v24, %v703_v23  ;;  %v11435_v20 = vld [vmem:[%s11042_s14 + $0xd8] sm:$0xff] }
 0x120   : > { %v903_v29 = vld [vmem:[#allocation2 + $0x38] sm:$0xff] }
 0x121   : > { %v914_v30 = vadd.f32 %v903_v29, %v884_v17  ;;  %742 = vst.msk [vmem:[#allocation2 + $0x40] sm:$0xff] %vm599_vm6, %v731_v13  ;;  %9030 = vmatmul.msk.bf16.vlgmr.msrb.gmra.mxu1 %vm535_vm2, %v1920_v26  ;;  %9073 = vmatmul.msk.bf16.vlgmr.msrb.gmra.mxu2 %vm535_vm2, %v2103_v53  ;;  %v11386_v39 = vpop.f32.mrf.mxu0  ;;  %v11432_v17 = vld [vmem:[%s11042_s14 + $0xd8] sm:$0xff]  ;;  %v2427_v26 = vrot.slane %v11435_v20, 1  ;;  %v1929_v13 = vshrl.u32 %v11375_v31, 16 }
 0x122   : > { %v1085_v56 = vld [vmem:[#allocation2 + $0x30] sm:$0xff] }
 0x123   : > { %v1096_v38 = vadd.f32 %v1085_v56, %v11282_v62  ;;  %925 = vst.msk [vmem:[#allocation2 + $0x38] sm:$0xff] %vm599_vm6, %v914_v30  ;;  %v1925_v62 = vshll.u32 %v11375_v31, 16  ;;  %9160 = vmatmul.msk.bf16.gmra.mxu0 %vm535_vm2, %v2426_v55  ;;  %v2116_v30 = vshll.u32 %v11432_v17, 16 }
 0x124   : > { %9117 = vmatmul.msk.bf16.gmra.mxu3 %vm535_vm2, %v2279_v25  ;;  %v1232_v44 = vld [vmem:[#allocation2 + $0x28] sm:$0xff]  ;;  %v887_v21 = vpop.f32.mrf.mxu2  ;;  %v2112_v25 = vshrl.u32 %v11378_v35, 16 }
 0x125   : > { %1107 = vst.msk [vmem:[#allocation2 + $0x30] sm:$0xff] %vm599_vm6, %v1096_v38  ;;  %v1243_v43 = vadd.f32 %v1232_v44, %v11258_v47  ;;  %v1927_v54 = vrot.slane %v1925_v62, 1  ;;  %v2428_v38 = vsel %vm1156_vm4, %v2425_v42, %v2427_v26  ;;  %v11457_v44 = vld [vmem:[%s11042_s14 + $0xa0] sm:$0xff] }
 0x126   : > { %v705_v50 = vpop.f32.mrf.mxu1  ;;  %v2114_v35 = vor.u32 %v2112_v25, %v2110_v60  ;;  %v2282_v42 = vrot.slane %v11457_v44, 1 }
 0x127   : > { %v11395_v49 = vpop.f32.mrf.mxu3  ;;  %1254 = vst.msk [vmem:[#allocation2 + $0x28] sm:$0xff] %vm599_vm6, %v1243_v43  ;;  %v732_v47 = vadd.f32 %v721_v51, %v705_v50  ;;  %v1928_v9 = vsel %vm789_vm3, %v1923_v32, %v1927_v54  ;;  %v1931_v43 = vor.u32 %v1929_v13, %v1927_v54  ;;  %v2118_v50 = vrot.slane %v2116_v30, 1  ;;  %v11483_v32 = vld [vmem:[%s11042_s14 + $0xe0] sm:$0xff]  ;;  %v9028_v30 = vld [vmem:[%s11042_s14 + $0xa8] sm:$0xf] }
 0x128   : > { %v904_v45 = vld [vmem:[#allocation2 + $0x40] sm:$0xff]  ;;  %v11486_v54 = vld [vmem:[%s11042_s14 + $0xe0] sm:$0xff] }
 0x129   : > { %v915_v33 = vadd.f32 %v904_v45, %v887_v21  ;;  %743 = vst.msk [vmem:[#allocation2 + $0x48] sm:$0xff] %vm599_vm6, %v732_v47  ;;  %v1225_v3 = vpop.f32.mrf.mxu0  ;;  %v1374_v47 = vld [vmem:[#allocation2] sm:$0xff] }
 0x12a   : > { %v1086_v48 = vld [vmem:[#allocation2 + $0x38] sm:$0xff]  ;;  %v9114_v3 = vld [vmem:[%s11042_s14 + $0xa8] sm:$0xf] }
 0x12b   : > { %v1097_v61 = vadd.f32 %v1086_v48, %v11303_v28  ;;  %926 = vst.msk [vmem:[#allocation2 + $0x40] sm:$0xff] %vm599_vm6, %v915_v33  ;;  %v2111_v28 = vsel %vm789_vm3, %v2106_v59, %v2110_v60  ;;  %v2283_v33 = vsel %vm1156_vm4, %v2280_v7, %v2282_v42  ;;  %v1937_v7 = vshrl.u32 %v11429_v15, 16 }
 0x12c   : > { %v1233_v63 = vld [vmem:[#allocation2 + $0x30] sm:$0xff]  ;;  %v889_v2 = vpop.f32.mrf.mxu2 }
 0x12d   : > { %1108 = vst.msk [vmem:[#allocation2 + $0x38] sm:$0xff] %vm599_vm6, %v1097_v61  ;;  %v1244_v4 = vadd.f32 %v1233_v63, %v11276_v1  ;;  %v2429_v63 = vrot.slane %v11486_v54, 1 }
 0x12e   : > { %v708_v5 = vpop.f32.mrf.mxu1 }
 0x12f   : > { %v1077_v10 = vpop.f32.mrf.mxu3  ;;  %1255 = vst.msk [vmem:[#allocation2 + $0x30] sm:$0xff] %vm599_vm6, %v1244_v4  ;;  %v733_v11 = vadd.f32 %v722_v8, %v708_v5  ;;  %v10620_v4 = vld [vmem:[%s11042_s14 + $0xa8] sm:$0x10]  ;;  %v1375_v8 = vld [vmem:[#allocation2 + $0x8] sm:$0xff] }
 0x130   : > { %v905_v12 = vld [vmem:[#allocation2 + $0x48] sm:$0xff] }
 0x131   : > { %v916_v1 = vadd.f32 %v905_v12, %v889_v2  ;;  %744 = vst.msk [vmem:[#allocation2 + $0x50] sm:$0xff] %vm599_vm6, %v733_v11  ;;  %9031 = vmatmul.msk.bf16.gmra.mxu1 %vm535_vm2, %v1928_v9  ;;  %9074 = vmatmul.msk.bf16.gmra.mxu2 %vm535_vm2, %v2111_v28  ;;  %v11440_v24 = vpop.f32.mrf.mxu0  ;;  %v2120_v9 = vshrl.u32 %v11432_v17, 16  ;;  %v2124_v28 = vshll.u32 %v11483_v32, 16  ;;  %v2430_v11 = vsel %vm1156_vm4, %v2427_v26, %v2429_v63 }
 0x132   : > { %v1087_v16 = vld [vmem:[#allocation2 + $0x40] sm:$0xff] }
 0x133   : > { %v1098_v23 = vadd.f32 %v1087_v16, %v11339_v0  ;;  %927 = vst.msk [vmem:[#allocation2 + $0x48] sm:$0xff] %vm599_vm6, %v916_v1  ;;  %v1933_v0 = vshll.u32 %v11429_v15, 16  ;;  %9161 = vmatmul.msk.bf16.gmra.mxu0 %vm535_vm2, %v2428_v38  ;;  %v2122_v17 = vor.u32 %v2120_v9, %v2118_v50  ;;  %v2126_v20 = vrot.slane %v2124_v28, 1  ;;  %v10608_v38 = vld [vmem:[%s11042_s14 + $0xa8] sm:$0x10] }
 0x134   : > { %9118 = vmatmul.msk.bf16.gmra.mxu3 %vm535_vm2, %v2281_v14  ;;  %v1234_v6 = vld [vmem:[#allocation2 + $0x38] sm:$0xff]  ;;  %v892_v18 = vpop.f32.mrf.mxu2  ;;  %v9115_v14 = vor.u32 %v10620_v4, %v9114_v3 }
 0x135   : > { %1109 = vst.msk [vmem:[#allocation2 + $0x40] sm:$0xff] %vm599_vm6, %v1098_v23  ;;  %v1245_v53 = vadd.f32 %v1234_v6, %v11297_v22  ;;  %v1935_v46 = vrot.slane %v1933_v0, 1  ;;  %v2127_v25 = vsel %vm789_vm3, %v2122_v17, %v2126_v20  ;;  %v10640_v17 = vld [vmem:[%s11042_s14 + $0x4c] sm:$0xff] }
 0x136   : > { %v710_v29 = vpop.f32.mrf.mxu1 }
 0x137   : > { %v11449_v56 = vpop.f32.mrf.mxu3  ;;  %1256 = vst.msk [vmem:[#allocation2 + $0x38] sm:$0xff] %vm599_vm6, %v1245_v53  ;;  %v1936_v34 = vsel %vm789_vm3, %v1931_v43, %v1935_v46  ;;  %v1939_v15 = vor.u32 %v1937_v7, %v1935_v46  ;;  %v1376_v29 = vld [vmem:[#allocation2 + $0x10] sm:$0xff]  ;;  %v10614_v43 = vld [vmem:[%s11042_s14 + $0xe8] sm:$0x10] }
 0x138   : > { %v906_v22 = vld [vmem:[#allocation2 + $0x50] sm:$0xff] }
 0x139   : > { %v917_v31 = vadd.f32 %v906_v22, %v892_v18  ;;  %v11462_v40 = vpop.f32.mrf.mxu0  ;;  %v11510_v18 = vrot.slane %v9115_v14, 1 }
 0x13a   : > { %v1088_v21 = vld [vmem:[#allocation2 + $0x48] sm:$0xff] }
 0x13b   : > { %v1099_v51 = vadd.f32 %v1088_v21, %v11363_v27  ;;  %928 = vst.msk [vmem:[#allocation2 + $0x50] sm:$0xff] %vm599_vm6, %v917_v31  ;;  %v2119_v27 = vsel %vm789_vm3, %v2114_v35, %v2118_v50  ;;  %v9071_v21 = vld [vmem:[%s11042_s14 + $0xe8] sm:$0xf] }
 0x13c   : > { %v1235_v37 = vld [vmem:[#allocation2 + $0x40] sm:$0xff]  ;;  %v894_v62 = vpop.f32.mrf.mxu2 }
 0x13d   : > { %1110 = vst.msk [vmem:[#allocation2 + $0x48] sm:$0xff] %vm599_vm6, %v1099_v51  ;;  %v1246_v52 = vadd.f32 %v1235_v37, %v11332_v41  ;;  %v11480_v41 = vld [vmem:[%s11042_s14 + $0xa0] sm:$0xff]  ;;  %v9157_v50 = vld [vmem:[%s11042_s14 + $0xe8] sm:$0xf]  ;;  %v10626_v51 = vld [vmem:[%s11042_s14 + $0xe8] sm:$0x10]  ;;  %v11533_v62 = vor.u32 %v10608_v38, %v9028_v30 }
 0x13e   : > { %v1345_v55 = vpop.f32.mrf.mxu1 }
 0x13f   : > { %v11468_v45 = vpop.f32.mrf.mxu3  ;;  %1257 = vst.msk [vmem:[#allocation2 + $0x40] sm:$0xff] %vm599_vm6, %v1246_v52  ;;  %v1385_v57 = vadd.f32 %v1374_v47, %v1345_v55  ;;  %v11535_v52 = vor.u32 %v10614_v43, %v9071_v21  ;;  %v9158_v55 = vor.u32 %v10626_v51, %v9157_v50  ;;  %v1379_v43 = vld [vmem:[#allocation2 + $0x28] sm:$0xff] }
 0x141   : > { %1396 = vst.msk [vmem:[#allocation2] sm:$0xff] %vm599_vm6, %v1385_v57  ;;  %9032 = vmatmul.msk.bf16.gmra.mxu1 %vm535_vm2, %v1936_v34  ;;  %9075 = vmatmul.msk.bf16.gmra.mxu2 %vm535_vm2, %v2119_v27  ;;  %v11490_v61 = vpop.f32.mrf.mxu0  ;;  %v11542_v34 = vrot.slane %v9158_v55, 1  ;;  %v1945_v27 = vshrl.u32 %v11480_v41, 16 }
 0x142   : > { %v1089_v48 = vld [vmem:[#allocation2 + $0x50] sm:$0xff] }
 0x143   : > { %v1100_v59 = vadd.f32 %v1089_v48, %v11395_v49  ;;  %v1941_v49 = vshll.u32 %v11480_v41, 16  ;;  %9162 = vmatmul.msk.bf16.gmra.mxu0 %vm535_vm2, %v2430_v11  ;;  %v1949_v48 = vshll.u32 %v11533_v62, 16  ;;  %v9254_v11 = vld [vmem:[%s11042_s14 + $0x44] sm:$0xe] }
 0x144   : > { %9119 = vmatmul.msk.bf16.gmra.mxu3 %vm535_vm2, %v2283_v33  ;;  %v1236_v58 = vld [vmem:[#allocation2 + $0x48] sm:$0xff]  ;;  %v1535_v60 = vpop.f32.mrf.mxu2  ;;  %v1377_v33 = vld [vmem:[#allocation2 + $0x18] sm:$0xff] }
 0x145   : > { %1111 = vst.msk [vmem:[#allocation2 + $0x50] sm:$0xff] %vm599_vm6, %v1100_v59  ;;  %v1247_v2 = vadd.f32 %v1236_v58, %v11357_v19  ;;  %v1943_v16 = vrot.slane %v1941_v49, 1  ;;  %v2128_v59 = vshrl.u32 %v11483_v32, 16  ;;  %v11557_v32 = vrot.slane %v1949_v48, 1 }
 0x146   : > { %v1347_v5 = vpop.f32.mrf.mxu1 }
 0x147   : > { %v11501_v10 = vpop.f32.mrf.mxu3  ;;  %1258 = vst.msk [vmem:[#allocation2 + $0x48] sm:$0xff] %vm599_vm6, %v1247_v2  ;;  %v1386_v19 = vadd.f32 %v1375_v8, %v1347_v5  ;;  %v1944_v0 = vsel %vm789_vm3, %v1939_v15, %v1943_v16  ;;  %v1947_v4 = vor.u32 %v1945_v27, %v1943_v16  ;;  %v2130_v5 = vor.u32 %v2128_v59, %v2126_v20  ;;  %v10639_v15 = vld [vmem:[%s11042_s14 + $0x44] sm:$0xf0]  ;;  %v9211_v59 = vld [vmem:[%s11042_s14 + $0x4] sm:$0xe] }
 0x148   : > { %v1564_v12 = vld [vmem:[#allocation2] sm:$0xff] }
 0x149   : > { %v1575_v1 = vadd.f32 %v1564_v12, %v1535_v60  ;;  %1397 = vst.msk [vmem:[#allocation2 + $0x8] sm:$0xff] %vm599_vm6, %v1386_v19  ;;  %v11512_v26 = vpop.f32.mrf.mxu0  ;;  %v2432_v60 = vsel %vm1156_vm4, %v2429_v63, %v11542_v34  ;;  %v1378_v12 = vld [vmem:[#allocation2 + $0x20] sm:$0xff]  ;;  %v1952_v14 = vsel %vm789_vm3, %v1947_v4, %v11557_v32 }
 0x14b   : > { %1586 = vst.msk [vmem:[#allocation2] sm:$0xff] %vm599_vm6, %v1575_v1 }
 0x14c   : > { %v1237_v23 = vld [vmem:[#allocation2 + $0x50] sm:$0xff]  ;;  %v1537_v6 = vpop.f32.mrf.mxu2 }
 0x14d   : > { %v1248_v53 = vadd.f32 %v1237_v23, %v11386_v39  ;;  %v2285_v39 = vsel %vm1156_vm4, %v2282_v42, %v11510_v18  ;;  %v9255_v23 = vor.u32 %v10639_v15, %v9254_v11 }
 0x14e   : > { %v1350_v13 = vpop.f32.mrf.mxu1 }
 0x14f   : > { %v11519_v22 = vpop.f32.mrf.mxu3  ;;  %1259 = vst.msk [vmem:[#allocation2 + $0x50] sm:$0xff] %vm599_vm6, %v1248_v53  ;;  %v1387_v31 = vadd.f32 %v1376_v29, %v1350_v13  ;;  %v2956_v13 = vshrl.u32 %v10640_v17, 16  ;;  %v2948_v30 = vshrl.u32 %v9255_v23, 16  ;;  %v2951_v38 = vshll.u32 %v9255_v23, 16 }
 0x150   : > { %v1565_v46 = vld [vmem:[#allocation2 + $0x8] sm:$0xff] }
 0x151   : > { %v1576_v35 = vadd.f32 %v1565_v46, %v1537_v6  ;;  %1398 = vst.msk [vmem:[#allocation2 + $0x10] sm:$0xff] %vm599_vm6, %v1387_v31  ;;  %9033 = vmatmul.msk.bf16.gmra.mxu1 %vm535_vm2, %v1944_v0  ;;  %9076 = vmatmul.msk.bf16.gmra.mxu2 %vm535_vm2, %v2127_v25  ;;  %v11540_v42 = vpop.f32.mrf.mxu0  ;;  %v2959_v31 = vshll.u32 %v10640_v17, 16  ;;  %v2958_v50 = vrot.slane %v2956_v13, 1  ;;  %v2950_v55 = vrot.slane %v2948_v30, 1  ;;  %v10641_v17 = vld [vmem:[%s11042_s14 + $0x54] sm:$0xff]  ;;  %v11632_v30 = vld [vmem:[%s11042_s14 + $0xc] sm:$0xff] }
 0x152   : > { %v1698_v37 = vld [vmem:[#allocation2] sm:$0xff] }
 0x153   : > { %v1709_v47 = vadd.f32 %v1698_v37, %v11449_v56  ;;  %1587 = vst.msk [vmem:[#allocation2 + $0x8] sm:$0xff] %vm599_vm6, %v1576_v35  ;;  %v2132_v56 = vshll.u32 %v11535_v52, 16  ;;  %9163 = vmatmul.msk.bf16.gmra.mxu0 %vm535_vm2, %v2432_v60  ;;  %v9325_v35 = vld [vmem:[%s14280_s1 + $0x22] sm:$0x3] }
 0x154   : > { %9120 = vmatmul.msk.bf16.gmra.mxu3 %vm535_vm2, %v2285_v39  ;;  %v1540_v44 = vpop.f32.mrf.mxu2  ;;  %v9180_v39 = vld [vmem:[%s11042_s14 + $0x80] sm:$0xe]  ;;  %v3314_v37 = vand.u32 %v9325_v35, %v11031_v36  ;;  %v10628_v60 = vld [vmem:[%s11042_s14 + $0x88] sm:$0xff] }
 0x155   : > { %1720 = vst.msk [vmem:[#allocation2] sm:$0xff] %vm599_vm6, %v1709_v47  ;;  %v11559_v8 = vrot.slane %v2132_v56, 1  ;;  %v2953_v47 = vrot.slane %v2951_v38, 2  ;;  %v10633_v56 = vld [vmem:[%s11042_s14 + $0x4] sm:$0xf0] }
 0x156   : > { %v1352_v57 = vpop.f32.mrf.mxu1  ;;  %3323 = vmatpush.bf16.msrb.mxu1 %v3314_v37  ;;  %v3138_v37 = vrot.slane %v11632_v30, 2 }
 0x157   : > { %v11549_v58 = vpop.f32.mrf.mxu3  ;;  %v1388_v2 = vadd.f32 %v1377_v33, %v1352_v57  ;;  %v1953_v57 = vshrl.u32 %v11533_v62, 16  ;;  %v2136_v33 = vshrl.u32 %v11535_v52, 16 }
 0x158   : > { %v1566_v41 = vld [vmem:[#allocation2 + $0x10] sm:$0xff] }
 0x159   : > { %v1577_v7 = vadd.f32 %v1566_v41, %v1540_v44  ;;  %1399 = vst.msk [vmem:[#allocation2 + $0x18] sm:$0xff] %vm599_vm6, %v1388_v2  ;;  %v11563_v9 = vpop.f32.mrf.mxu0  ;;  %v2961_v44 = vrot.slane %v2959_v31, 2  ;;  %v1955_v52 = vor.u32 %v1953_v57, %v11557_v32 }
 0x15a   : > { %v1699_v3 = vld [vmem:[#allocation2 + $0x8] sm:$0xff] }
 0x15b   : > { %v1710_v54 = vadd.f32 %v1699_v3, %v11468_v45  ;;  %1588 = vst.msk [vmem:[#allocation2 + $0x10] sm:$0xff] %vm599_vm6, %v1577_v7  ;;  %v2135_v45 = vsel %vm789_vm3, %v2130_v5, %v11559_v8  ;;  %v2954_v3 = vor.u32 %v2953_v47, %v2950_v55  ;;  %v11607_v4 = vor.u32 %v2961_v44, %v2958_v50 }
 0x15c   : > { %v1832_v63 = vld [vmem:[#allocation2] sm:$0xff]  ;;  %v1542_v49 = vpop.f32.mrf.mxu2  ;;  %v2965_v50 = vshrl.u32 %v10641_v17, 16 }
 0x15d   : > { %1721 = vst.msk [vmem:[#allocation2 + $0x8] sm:$0xff] %vm599_vm6, %v1710_v54  ;;  %v1843_v28 = vadd.f32 %v1832_v63, %v11440_v24  ;;  %v9212_v54 = vor.u32 %v10633_v56, %v9211_v59 }
 0x15e   : > { %v1355_v19 = vpop.f32.mrf.mxu1 }
 0x15f   : > { %v11572_v1 = vpop.f32.mrf.mxu3  ;;  %1854 = vst.msk [vmem:[#allocation2] sm:$0xff] %vm599_vm6, %v1843_v28  ;;  %v1389_v16 = vadd.f32 %v1378_v12, %v1355_v19  ;;  %v10634_v28 = vld [vmem:[%s11042_s14 + $0xc] sm:$0xff]  ;;  %v2759_v23 = vshrl.u32 %v9212_v54, 16  ;;  %v2762_v13 = vshll.u32 %v9212_v54, 16 }
 0x160   : > { %v1567_v20 = vld [vmem:[#allocation2 + $0x18] sm:$0xff] }
 0x161   : > { %v1578_v6 = vadd.f32 %v1567_v20, %v1542_v49  ;;  %1400 = vst.msk [vmem:[#allocation2 + $0x20] sm:$0xff] %vm599_vm6, %v1389_v16  ;;  %9034 = vmatmul.msk.bf16.gmra.mxu1 %vm535_vm2, %v1952_v14  ;;  %9077 = vmatmul.msk.bf16.gmra.mxu2 %vm535_vm2, %v2135_v45  ;;  %v11584_v25 = vpop.f32.mrf.mxu0  ;;  %v1380_v49 = vld [vmem:[#allocation2 + $0x30] sm:$0xff]  ;;  %v2578_v45 = vshrl.u32 %v10628_v60, 16  ;;  %v2963_v16 = vsel %vm1451_vm5, %v2954_v3, %v11607_v4  ;;  %v2761_v47 = vrot.slane %v2759_v23, 1 }
 0x162   : > { %v1700_v24 = vld [vmem:[#allocation2 + $0x10] sm:$0xff]  ;;  %v2764_v57 = vrot.slane %v2762_v13, 2 }
 0x163   : > { %v1711_v53 = vadd.f32 %v1700_v24, %v11501_v10  ;;  %1589 = vst.msk [vmem:[#allocation2 + $0x18] sm:$0xff] %vm599_vm6, %v1578_v6  ;;  %9164 = vmatmul.msk.bf16.gmra.mxu0 %vm535_vm2, %v11542_v34  ;;  %v9285_v6 = vld [vmem:[%s11042_s14 + $0x4] sm:$0xc]  ;;  %v10645_v24 = vld [vmem:[%s11042_s14 + $0x4] sm:$0xf0] }
 0x164   : > { %9121 = vmatmul.msk.bf16.gmra.mxu3 %vm535_vm2, %v11510_v18  ;;  %v1833_v29 = vld [vmem:[#allocation2 + $0x8] sm:$0xff]  ;;  %v1545_v0 = vpop.f32.mrf.mxu2  ;;  %v9286_v38 = vor.u32 %v10645_v24, %v9285_v6  ;;  %v2765_v54 = vor.u32 %v2764_v57, %v2761_v47  ;;  %v10642_v6 = vld [vmem:[%s11042_s14 + $0x5c] sm:$0xff] }
 0x165   : > { %1722 = vst.msk [vmem:[#allocation2 + $0x10] sm:$0xff] %vm599_vm6, %v1711_v53  ;;  %v1844_v21 = vadd.f32 %v1833_v29, %v11462_v40  ;;  %v10627_v40 = vld [vmem:[%s11042_s14 + $0x80] sm:$0xf0]  ;;  %v2767_v29 = vshrl.u32 %v10634_v28, 16 }
 0x166   : > { %v1357_v10 = vpop.f32.mrf.mxu1  ;;  %v9181_v2 = vor.u32 %v10627_v40, %v9180_v39  ;;  %v3137_v40 = vrot.slane %v9286_v38, 2 }
 0x167   : > { %v11588_v46 = vpop.f32.mrf.mxu3  ;;  %1855 = vst.msk [vmem:[#allocation2 + $0x8] sm:$0xff] %vm599_vm6, %v1844_v21  ;;  %v1390_v18 = vadd.f32 %v1379_v43, %v1357_v10  ;;  %v2580_v43 = vrot.slane %v2578_v45, 1 }
 0x168   : > { %v1568_v51 = vld [vmem:[#allocation2 + $0x20] sm:$0xff]  ;;  %v2570_v12 = vshrl.u32 %v9181_v2, 16  ;;  %v2573_v14 = vshll.u32 %v9181_v2, 16  ;;  %v3139_v56 = vsel %vm3136_vm7, %v3137_v40, %v3138_v37 }
 0x169   : > { %v1579_v27 = vadd.f32 %v1568_v51, %v1545_v0  ;;  %1401 = vst.msk [vmem:[#allocation2 + $0x28] sm:$0xff] %vm599_vm6, %v1390_v18  ;;  %v11609_v5 = vpop.f32.mrf.mxu0  ;;  %v2770_v0 = vshll.u32 %v10634_v28, 16  ;;  %v2968_v51 = vshll.u32 %v10641_v17, 16 }
 0x16a   : > { %v1701_v48 = vld [vmem:[#allocation2 + $0x18] sm:$0xff]  ;;  %v2572_v21 = vrot.slane %v2570_v12, 1  ;;  %v2575_v10 = vrot.slane %v2573_v14, 2 }
 0x16b   : > { %v1712_v34 = vadd.f32 %v1701_v48, %v11519_v22  ;;  %1590 = vst.msk [vmem:[#allocation2 + $0x20] sm:$0xff] %vm599_vm6, %v1579_v27  ;;  %v2138_v22 = vor.u32 %v2136_v33, %v11559_v8  ;;  %v2581_v8 = vshll.u32 %v10628_v60, 16  ;;  %v1381_v27 = vld [vmem:[#allocation2 + $0x38] sm:$0xff]  ;;  %v2769_v33 = vrot.slane %v2767_v29, 1 }
 0x16c   : > { %v1834_v41 = vld [vmem:[#allocation2 + $0x10] sm:$0xff]  ;;  %v1547_v7 = vpop.f32.mrf.mxu2  ;;  %v2772_v48 = vrot.slane %v2770_v0, 2 }
 0x16d   : > { %1723 = vst.msk [vmem:[#allocation2 + $0x18] sm:$0xff] %vm599_vm6, %v1712_v34  ;;  %v1845_v62 = vadd.f32 %v1834_v41, %v11490_v61  ;;  %v9356_v61 = vld [vmem:[%s14280_s1 + $0x24] sm:$0x3]  ;;  %v2583_v55 = vrot.slane %v2581_v8, 2  ;;  %v2967_v41 = vrot.slane %v2965_v50, 1 }
 0x16e   : > { %v1360_v63 = vpop.f32.mrf.mxu1  ;;  %v3504_v15 = vand.u32 %v9356_v61, %v11031_v36  ;;  %v10629_v61 = vld [vmem:[%s11042_s14 + $0x90] sm:$0xff]  ;;  %v1382_v8 = vld [vmem:[#allocation2 + $0x40] sm:$0xff] }
 0x16f   : > { %v11616_v11 = vpop.f32.mrf.mxu3  ;;  %1856 = vst.msk [vmem:[#allocation2 + $0x10] sm:$0xff] %vm599_vm6, %v1845_v62  ;;  %v1391_v19 = vadd.f32 %v1380_v49, %v1360_v63  ;;  %v11656_v63 = vor.u32 %v2772_v48, %v2769_v33  ;;  %v2590_v29 = vshll.u32 %v10629_v61, 16 }
 0x170   : > { %v1569_v32 = vld [vmem:[#allocation2 + $0x28] sm:$0xff]  ;;  %3513 = vmatpush.bf16.msrb.mxu2 %v3504_v15 }
 0x171   : > { %v1580_v20 = vadd.f32 %v1569_v32, %v1547_v7  ;;  %1402 = vst.msk [vmem:[#allocation2 + $0x30] sm:$0xff] %vm599_vm6, %v1391_v19  ;;  %9035 = vmatmul.msk.bf16.gmra.mxu1 %vm535_vm2, %v1955_v52  ;;  %9078 = vmatmul.msk.bf16.gmra.mxu2 %vm535_vm2, %v2138_v22  ;;  %v11637_v35 = vpop.f32.mrf.mxu0  ;;  %v2970_v7 = vrot.slane %v2968_v51, 2  ;;  %v2576_v52 = vor.u32 %v2575_v10, %v2572_v21 }
 0x172   : > { %v1702_v53 = vld [vmem:[#allocation2 + $0x20] sm:$0xff]  ;;  %v11654_v22 = vor.u32 %v2583_v55, %v2580_v43  ;;  %v1383_v55 = vld [vmem:[#allocation2 + $0x48] sm:$0xff] }
 0x173   : > { %v1713_v31 = vadd.f32 %v1702_v53, %v11549_v58  ;;  %1591 = vst.msk [vmem:[#allocation2 + $0x28] sm:$0xff] %vm599_vm6, %v1580_v20  ;;  %9307 = vmatmul.msk.bf16.vlgmr.msra.gmra.mxu0 %vm535_vm2, %v3139_v56  ;;  %v11660_v12 = vor.u32 %v2970_v7, %v2967_v41  ;;  %v2587_v53 = vshrl.u32 %v10629_v61, 16  ;;  %v10636_v61 = vld [vmem:[%s11042_s14 + $0x1c] sm:$0xff] }
 0x174   : > { %9276 = vmatmul.msk.bf16.vlgmr.msra.gmra.mxu3 %vm535_vm2, %v2963_v16  ;;  %v1835_v18 = vld [vmem:[#allocation2 + $0x18] sm:$0xff]  ;;  %v1550_v39 = vpop.f32.mrf.mxu2  ;;  %v2585_v15 = vsel %vm1451_vm5, %v2576_v52, %v11654_v22  ;;  %v10635_v16 = vld [vmem:[%s11042_s14 + $0x14] sm:$0xff] }
 0x175   : > { %1724 = vst.msk [vmem:[#allocation2 + $0x20] sm:$0xff] %vm599_vm6, %v1713_v31  ;;  %v1846_v58 = vadd.f32 %v1835_v18, %v11512_v26  ;;  %v9399_v26 = vld [vmem:[%s14280_s1 + $0x26] sm:$0x3]  ;;  %v2776_v0 = vshrl.u32 %v10635_v16, 16  ;;  %v2779_v38 = vshll.u32 %v10635_v16, 16  ;;  %v11683_v31 = vld [vmem:[%s11042_s14 + $0x14] sm:$0xff] }
 0x176   : > { %v1362_v44 = vpop.f32.mrf.mxu1  ;;  %v3693_v2 = vand.u32 %v9399_v26, %v11031_v36  ;;  %v2974_v18 = vshrl.u32 %v10642_v6, 16  ;;  %v3140_v50 = vrot.slane %v11683_v31, 2  ;;  %v2589_v40 = vrot.slane %v2587_v53, 1 }
 0x177   : > { %v11642_v59 = vpop.f32.mrf.mxu3  ;;  %1857 = vst.msk [vmem:[#allocation2 + $0x18] sm:$0xff] %vm599_vm6, %v1846_v58  ;;  %v1392_v34 = vadd.f32 %v1381_v27, %v1362_v44  ;;  %v2778_v47 = vrot.slane %v2776_v0, 1  ;;  %v2781_v44 = vrot.slane %v2779_v38, 2 }
 0x178   : > { %v1570_v60 = vld [vmem:[#allocation2 + $0x30] sm:$0xff]  ;;  %3702 = vmatpush.bf16.msrb.mxu3 %v3693_v2  ;;  %v3141_v57 = vsel %vm3136_vm7, %v3138_v37, %v3140_v50 }
 0x179   : > { %v1581_v3 = vadd.f32 %v1570_v60, %v1550_v39  ;;  %1403 = vst.msk [vmem:[#allocation2 + $0x38] sm:$0xff] %vm599_vm6, %v1392_v34  ;;  %v11662_v14 = vpop.f32.mrf.mxu0  ;;  %v2977_v39 = vshll.u32 %v10642_v6, 16  ;;  %v2976_v34 = vrot.slane %v2974_v18, 1  ;;  %v11709_v2 = vor.u32 %v2781_v44, %v2778_v47  ;;  %v11734_v6 = vld [vmem:[%s11042_s14 + $0x1c] sm:$0xff] }
 0x17a   : > { %v1703_v62 = vld [vmem:[#allocation2 + $0x28] sm:$0xff]  ;;  %v3142_v38 = vrot.slane %v11734_v6, 2  ;;  %v10632_v6 = vld [vmem:[%s11042_s14 + $0xa8] sm:$0x30] }
 0x17b   : > { %v1714_v49 = vadd.f32 %v1703_v62, %v11572_v1  ;;  %1592 = vst.msk [vmem:[#allocation2 + $0x30] sm:$0xff] %vm599_vm6, %v1581_v3  ;;  %v2774_v1 = vsel %vm1451_vm5, %v2765_v54, %v11656_v63  ;;  %v2979_v26 = vrot.slane %v2977_v39, 2 }
 0x17c   : > { %v1836_v28 = vld [vmem:[#allocation2 + $0x20] sm:$0xff]  ;;  %v1552_v19 = vpop.f32.mrf.mxu2 }
 0x17d   : > { %1725 = vst.msk [vmem:[#allocation2 + $0x28] sm:$0xff] %vm599_vm6, %v1714_v49  ;;  %v1847_v45 = vadd.f32 %v1836_v28, %v11540_v42  ;;  %v2972_v42 = vsel %vm1451_vm5, %v11607_v4, %v11660_v12  ;;  %v11713_v62 = vor.u32 %v2979_v26, %v2976_v34  ;;  %v10630_v49 = vld [vmem:[%s11042_s14 + $0x98] sm:$0xff]  ;;  %v10631_v34 = vld [vmem:[%s11042_s14 + $0xa0] sm:$0xff]  ;;  %v9274_v26 = vld [vmem:[%s11042_s14 + $0x6c] sm:$0xf] }
 0x17e   : > { %v1365_v32 = vpop.f32.mrf.mxu1 }
 0x17f   : > { %v11672_v17 = vpop.f32.mrf.mxu3  ;;  %1858 = vst.msk [vmem:[#allocation2 + $0x20] sm:$0xff] %vm599_vm6, %v1847_v45  ;;  %v1393_v20 = vadd.f32 %v1382_v8, %v1365_v32 }
 0x180   : > { %v1571_v23 = vld [vmem:[#allocation2 + $0x38] sm:$0xff] }
 0x181   : > { %v1582_v24 = vadd.f32 %v1571_v23, %v1552_v19  ;;  %1404 = vst.msk [vmem:[#allocation2 + $0x40] sm:$0xff] %vm599_vm6, %v1393_v20  ;;  %9202 = vmatmul.msk.bf16.vlgmr.msra.gmra.mxu1 %vm535_vm2, %v2585_v15  ;;  %9233 = vmatmul.msk.bf16.vlgmr.msra.gmra.mxu2 %vm535_vm2, %v2774_v1  ;;  %v11688_v43 = vpop.f32.mrf.mxu0  ;;  %v1384_v19 = vld [vmem:[#allocation2 + $0x50] sm:$0xff]  ;;  %v10643_v1 = vld [vmem:[%s11042_s14 + $0x64] sm:$0xff]  ;;  %v2599_v20 = vshll.u32 %v10630_v49, 16  ;;  %v2785_v23 = vshrl.u32 %v10636_v61, 16 }
 0x182   : > { %v1704_v13 = vld [vmem:[#allocation2 + $0x30] sm:$0xff]  ;;  %v2986_v0 = vshll.u32 %v10643_v1, 16 }
 0x183   : > { %v1715_v21 = vadd.f32 %v1704_v13, %v11588_v46  ;;  %1593 = vst.msk [vmem:[#allocation2 + $0x38] sm:$0xff] %vm599_vm6, %v1582_v24  ;;  %v2592_v46 = vrot.slane %v2590_v29, 2  ;;  %9308 = vmatmul.msk.bf16.gmra.mxu0 %vm535_vm2, %v3141_v57  ;;  %v2983_v29 = vshrl.u32 %v10643_v1, 16  ;;  %v2601_v18 = vrot.slane %v2599_v20, 2  ;;  %v2016_v20 = vld [vmem:[#allocation2 + $0x8] sm:$0xff] }
 0x184   : > { %9277 = vmatmul.msk.bf16.gmra.mxu3 %vm535_vm2, %v2972_v42  ;;  %v1837_v4 = vld [vmem:[#allocation2 + $0x28] sm:$0xff]  ;;  %v1555_v10 = vpop.f32.mrf.mxu2  ;;  %v2788_v42 = vshll.u32 %v10636_v61, 16 }
 0x185   : > { %1726 = vst.msk [vmem:[#allocation2 + $0x30] sm:$0xff] %vm599_vm6, %v1715_v21  ;;  %v1848_v51 = vadd.f32 %v1837_v4, %v11563_v9  ;;  %v9430_v9 = vld [vmem:[%s14280_s1 + $0x28] sm:$0x3]  ;;  %v11707_v37 = vor.u32 %v2592_v46, %v2589_v40  ;;  %v3143_v40 = vsel %vm3136_vm7, %v3140_v50, %v3142_v38 }
 0x186   : > { %v1367_v58 = vpop.f32.mrf.mxu1  ;;  %v3841_v56 = vand.u32 %v9430_v9, %v11031_v36  ;;  %v2790_v39 = vrot.slane %v2788_v42, 2 }
 0x187   : > { %v11693_v27 = vpop.f32.mrf.mxu3  ;;  %1859 = vst.msk [vmem:[#allocation2 + $0x28] sm:$0xff] %vm599_vm6, %v1848_v51  ;;  %v1394_v33 = vadd.f32 %v1383_v55, %v1367_v58  ;;  %v2594_v45 = vsel %vm1451_vm5, %v11654_v22, %v11707_v37  ;;  %v2596_v22 = vshrl.u32 %v10630_v49, 16  ;;  %v2988_v55 = vrot.slane %v2986_v0, 2 }
 0x188   : > { %v1572_v48 = vld [vmem:[#allocation2 + $0x40] sm:$0xff]  ;;  %3850 = vmatpush.bf16.msrb.mxu0 %v3841_v56 }
 0x189   : > { %v1583_v60 = vadd.f32 %v1572_v48, %v1555_v10  ;;  %1405 = vst.msk [vmem:[#allocation2 + $0x48] sm:$0xff] %vm599_vm6, %v1394_v33  ;;  %v1830_v52 = vpop.f32.mrf.mxu0  ;;  %v2598_v4 = vrot.slane %v2596_v22, 1 }
 0x18a   : > { %v1705_v30 = vld [vmem:[#allocation2 + $0x38] sm:$0xff]  ;;  %v10644_v52 = vld [vmem:[%s11042_s14 + $0x6c] sm:$0x30] }
 0x18b   : > { %v1716_v41 = vadd.f32 %v1705_v30, %v11616_v11  ;;  %1594 = vst.msk [vmem:[#allocation2 + $0x40] sm:$0xff] %vm599_vm6, %v1583_v60  ;;  %v2783_v11 = vsel %vm1451_vm5, %v11656_v63, %v11709_v2  ;;  %v11753_v44 = vor.u32 %v2601_v18, %v2598_v4  ;;  %v2015_v30 = vld [vmem:[#allocation2] sm:$0xff]  ;;  %v9275_v49 = vor.u32 %v10644_v52, %v9274_v26 }
 0x18c   : > { %v1838_v7 = vld [vmem:[#allocation2 + $0x30] sm:$0xff]  ;;  %v1557_v3 = vpop.f32.mrf.mxu2  ;;  %v9200_v18 = vld [vmem:[%s11042_s14 + $0xa8] sm:$0xf] }
 0x18d   : > { %1727 = vst.msk [vmem:[#allocation2 + $0x38] sm:$0xff] %vm599_vm6, %v1716_v41  ;;  %v1849_v54 = vadd.f32 %v1838_v7, %v11584_v25  ;;  %v2981_v25 = vsel %vm1451_vm5, %v11660_v12, %v11713_v62  ;;  %v10637_v7 = vld [vmem:[%s11042_s14 + $0x24] sm:$0xff] }
 0x18e   : > { %v1370_v28 = vpop.f32.mrf.mxu1 }
 0x18f   : > { %v1696_v32 = vpop.f32.mrf.mxu3  ;;  %1860 = vst.msk [vmem:[#allocation2 + $0x30] sm:$0xff] %vm599_vm6, %v1849_v54  ;;  %v1395_v8 = vadd.f32 %v1384_v19, %v1370_v28  ;;  %v2608_v28 = vshll.u32 %v10631_v34, 16  ;;  %v2794_v19 = vshrl.u32 %v10637_v7, 16 }
 0x190   : > { %v1573_v15 = vld [vmem:[#allocation2 + $0x48] sm:$0xff] }
 0x191   : > { %v1584_v16 = vadd.f32 %v1573_v15, %v1557_v3  ;;  %1406 = vst.msk [vmem:[#allocation2 + $0x50] sm:$0xff] %vm599_vm6, %v1395_v8  ;;  %9203 = vmatmul.msk.bf16.gmra.mxu1 %vm535_vm2, %v2594_v45  ;;  %9234 = vmatmul.msk.bf16.gmra.mxu2 %vm535_vm2, %v2783_v11  ;;  %v11739_v13 = vpop.f32.mrf.mxu0  ;;  %v2797_v45 = vshll.u32 %v10637_v7, 16  ;;  %v11785_v11 = vld [vmem:[%s11042_s14 + $0x24] sm:$0xff]  ;;  %v2992_v15 = vshrl.u32 %v9275_v49, 16 }
 0x192   : > { %v1706_v63 = vld [vmem:[#allocation2 + $0x40] sm:$0xff]  ;;  %v3144_v1 = vrot.slane %v11785_v11, 2 }
 0x193   : > { %v1717_v24 = vadd.f32 %v1706_v63, %v11642_v59  ;;  %1595 = vst.msk [vmem:[#allocation2 + $0x48] sm:$0xff] %vm599_vm6, %v1584_v16  ;;  %v2787_v59 = vrot.slane %v2785_v23, 1  ;;  %9309 = vmatmul.msk.bf16.gmra.mxu0 %vm535_vm2, %v3143_v40  ;;  %v2610_v23 = vrot.slane %v2608_v28, 2  ;;  %v2799_v42 = vrot.slane %v2797_v45, 2  ;;  %v2018_v45 = vld [vmem:[#allocation2 + $0x18] sm:$0xff] }
 0x194   : > { %9278 = vmatmul.msk.bf16.gmra.mxu3 %vm535_vm2, %v2981_v25  ;;  %v1839_v12 = vld [vmem:[#allocation2 + $0x38] sm:$0xff]  ;;  %v1560_v53 = vpop.f32.mrf.mxu2  ;;  %v2995_v25 = vshll.u32 %v9275_v49, 16 }
 0x195   : > { %1728 = vst.msk [vmem:[#allocation2 + $0x40] sm:$0xff] %vm599_vm6, %v1717_v24  ;;  %v1850_v21 = vadd.f32 %v1839_v12, %v11609_v5  ;;  %v2985_v5 = vrot.slane %v2983_v29, 1  ;;  %v11755_v57 = vor.u32 %v2790_v39, %v2787_v59  ;;  %v3145_v12 = vsel %vm3136_vm7, %v3142_v38, %v3144_v1  ;;  %v9231_v38 = vld [vmem:[%s11042_s14 + $0x2c] sm:$0xf]  ;;  %v10638_v59 = vld [vmem:[%s11042_s14 + $0x2c] sm:$0x30] }
 0x196   : > { %v1372_v10 = vpop.f32.mrf.mxu1  ;;  %v2994_v29 = vrot.slane %v2992_v15, 1  ;;  %v2997_v0 = vrot.slane %v2995_v25, 2 }
 0x197   : > { %v11744_v51 = vpop.f32.mrf.mxu3  ;;  %1861 = vst.msk [vmem:[#allocation2 + $0x38] sm:$0xff] %vm599_vm6, %v1850_v21  ;;  %v11759_v9 = vor.u32 %v2988_v55, %v2985_v5  ;;  %v2792_v41 = vsel %vm1451_vm5, %v11709_v2, %v11755_v57 }
 0x198   : > { %v1574_v58 = vld [vmem:[#allocation2 + $0x50] sm:$0xff] }
 0x199   : > { %v1585_v46 = vadd.f32 %v1574_v58, %v1560_v53  ;;  %v11761_v48 = vpop.f32.mrf.mxu0  ;;  %v2990_v54 = vsel %vm1451_vm5, %v11713_v62, %v11759_v9  ;;  %v11813_v58 = vor.u32 %v2997_v0, %v2994_v29  ;;  %v2019_v0 = vld [vmem:[#allocation2 + $0x20] sm:$0xff] }
 0x19a   : > { %v1707_v47 = vld [vmem:[#allocation2 + $0x48] sm:$0xff] }
 0x19b   : > { %v1718_v31 = vadd.f32 %v1707_v47, %v11672_v17  ;;  %1596 = vst.msk [vmem:[#allocation2 + $0x50] sm:$0xff] %vm599_vm6, %v1585_v46  ;;  %v2603_v17 = vsel %vm1451_vm5, %v11707_v37, %v11753_v44  ;;  %v2605_v37 = vshrl.u32 %v10631_v34, 16  ;;  %v9201_v46 = vor.u32 %v10632_v6, %v9200_v18 }
 0x19c   : > { %v1840_v50 = vld [vmem:[#allocation2 + $0x40] sm:$0xff]  ;;  %v1562_v33 = vpop.f32.mrf.mxu2 }
 0x19d   : > { %1729 = vst.msk [vmem:[#allocation2 + $0x48] sm:$0xff] %vm599_vm6, %v1718_v31  ;;  %v1851_v56 = vadd.f32 %v1840_v50, %v11637_v35  ;;  %v2607_v22 = vrot.slane %v2605_v37, 1  ;;  %v2017_v31 = vld [vmem:[#allocation2 + $0x10] sm:$0xff]  ;;  %v2617_v7 = vshll.u32 %v9201_v46, 16 }
 0x19e   : > { %v1986_v60 = vpop.f32.mrf.mxu1 }
 0x19f   : > { %v11774_v3 = vpop.f32.mrf.mxu3  ;;  %1862 = vst.msk [vmem:[#allocation2 + $0x40] sm:$0xff] %vm599_vm6, %v1851_v56  ;;  %v2026_v35 = vadd.f32 %v2015_v30, %v1986_v60  ;;  %v11804_v4 = vor.u32 %v2610_v23, %v2607_v22  ;;  %v9232_v56 = vor.u32 %v10638_v59, %v9231_v38  ;;  %v2999_v60 = vsel %vm1451_vm5, %v11759_v9, %v11813_v58 }
 0x1a1   : > { %2037 = vst.msk [vmem:[#allocation2] sm:$0xff] %vm599_vm6, %v2026_v35  ;;  %9204 = vmatmul.msk.bf16.gmra.mxu1 %vm535_vm2, %v2603_v17  ;;  %9235 = vmatmul.msk.bf16.gmra.mxu2 %vm535_vm2, %v2792_v41  ;;  %v11789_v8 = vpop.f32.mrf.mxu0  ;;  %v2612_v50 = vsel %vm1451_vm5, %v11753_v44, %v11804_v4  ;;  %v2614_v44 = vshrl.u32 %v9201_v46, 16  ;;  %v10650_v17 = vld [vmem:[%s11042_s14 + $0x2c] sm:$0x30]  ;;  %v2803_v52 = vshrl.u32 %v9232_v56, 16  ;;  %v2806_v35 = vshll.u32 %v9232_v56, 16 }
 0x1a2   : > { %v1708_v2 = vld [vmem:[#allocation2 + $0x50] sm:$0xff] }
 0x1a3   : > { %v1719_v61 = vadd.f32 %v1708_v2, %v11693_v27  ;;  %v2796_v27 = vrot.slane %v2794_v19, 1  ;;  %9310 = vmatmul.msk.bf16.gmra.mxu0 %vm535_vm2, %v3145_v12  ;;  %v2616_v28 = vrot.slane %v2614_v44, 1 }
 0x1a4   : > { %9279 = vmatmul.msk.bf16.gmra.mxu3 %vm535_vm2, %v2990_v54  ;;  %v1841_v32 = vld [vmem:[#allocation2 + $0x48] sm:$0xff]  ;;  %v2169_v62 = vpop.f32.mrf.mxu2 }
 0x1a5   : > { %1730 = vst.msk [vmem:[#allocation2 + $0x50] sm:$0xff] %vm599_vm6, %v1719_v61  ;;  %v1852_v16 = vadd.f32 %v1841_v32, %v11662_v14  ;;  %v11806_v10 = vor.u32 %v2799_v42, %v2796_v27  ;;  %v2619_v61 = vrot.slane %v2617_v7, 2  ;;  %v2805_v32 = vrot.slane %v2803_v52, 1  ;;  %v9359_v52 = vld [vmem:[%s11042_s14 + $0x4] sm:$0xc] }
 0x1a6   : > { %v1988_v63 = vpop.f32.mrf.mxu1 }
 0x1a7   : > { %v11794_v24 = vpop.f32.mrf.mxu3  ;;  %1863 = vst.msk [vmem:[#allocation2 + $0x48] sm:$0xff] %vm599_vm6, %v1852_v16  ;;  %v2027_v14 = vadd.f32 %v2016_v20, %v1988_v63  ;;  %v2801_v33 = vsel %vm1451_vm5, %v11755_v57, %v11806_v10  ;;  %v9305_v57 = vld [vmem:[%s11042_s14 + $0x2c] sm:$0xf]  ;;  %v11848_v20 = vor.u32 %v2619_v61, %v2616_v28 }
 0x1a8   : > { %v2198_v53 = vld [vmem:[#allocation2] sm:$0xff]  ;;  %v9306_v54 = vor.u32 %v10650_v17, %v9305_v57 }
 0x1a9   : > { %v2209_v21 = vadd.f32 %v2198_v53, %v2169_v62  ;;  %2038 = vst.msk [vmem:[#allocation2 + $0x8] sm:$0xff] %vm599_vm6, %v2027_v14  ;;  %v11815_v5 = vpop.f32.mrf.mxu0  ;;  %v2808_v62 = vrot.slane %v2806_v35, 2  ;;  %v9402_v14 = vld [vmem:[%s11042_s14 + $0x44] sm:$0xc]  ;;  %v10663_v53 = vld [vmem:[%s11042_s14 + $0x44] sm:$0xf0] }
 0x1aa   : > { %v3146_v2 = vrot.slane %v9306_v54, 2  ;;  %v9403_v38 = vor.u32 %v10663_v53, %v9402_v14  ;;  %v10657_v35 = vld [vmem:[%s11042_s14 + $0x4] sm:$0xf0] }
 0x1ab   : > { %2220 = vst.msk [vmem:[#allocation2] sm:$0xff] %vm599_vm6, %v2209_v21  ;;  %v11850_v23 = vor.u32 %v2808_v62, %v2805_v32  ;;  %v2621_v21 = vsel %vm1451_vm5, %v11804_v4, %v11848_v20  ;;  %v9360_v28 = vor.u32 %v10657_v35, %v9359_v52 }
 0x1ac   : > { %v1842_v39 = vld [vmem:[#allocation2 + $0x50] sm:$0xff]  ;;  %v2171_v40 = vpop.f32.mrf.mxu2 }
 0x1ad   : > { %v1853_v55 = vadd.f32 %v1842_v39, %v11688_v43  ;;  %v3436_v53 = vshll.u32 %v9360_v28, 16 }
 0x1ae   : > { %v1991_v47 = vpop.f32.mrf.mxu1 }
 0x1af   : > { %v11824_v34 = vpop.f32.mrf.mxu3  ;;  %1864 = vst.msk [vmem:[#allocation2 + $0x50] sm:$0xff] %vm599_vm6, %v1853_v55  ;;  %v2028_v26 = vadd.f32 %v2017_v31, %v1991_v47  ;;  %v3625_v31 = vshll.u32 %v9403_v38, 16 }
 0x1b0   : > { %v2199_v43 = vld [vmem:[#allocation2 + $0x8] sm:$0xff] }
 0x1b1   : > { %v2210_v30 = vadd.f32 %v2199_v43, %v2171_v40  ;;  %2039 = vst.msk [vmem:[#allocation2 + $0x10] sm:$0xff] %vm599_vm6, %v2028_v26  ;;  %9205 = vmatmul.msk.bf16.gmra.mxu1 %vm535_vm2, %v2612_v50  ;;  %9236 = vmatmul.msk.bf16.gmra.mxu2 %vm535_vm2, %v2801_v33  ;;  %v11838_v37 = vpop.f32.mrf.mxu0 }
 0x1b2   : > { %v2345_v41 = vld [vmem:[#allocation2] sm:$0xff] }
 0x1b3   : > { %v2356_v49 = vadd.f32 %v2345_v41, %v11744_v51  ;;  %2221 = vst.msk [vmem:[#allocation2 + $0x8] sm:$0xff] %vm599_vm6, %v2210_v30  ;;  %v3147_v51 = vsel %vm3136_vm7, %v3144_v1, %v3146_v2 }
 0x1b4   : > { %9280 = vmatmul.msk.bf16.gmra.mxu3 %vm535_vm2, %v2999_v60  ;;  %v2174_v9 = vpop.f32.mrf.mxu2  ;;  %9311 = vmatmul.msk.bf16.gmra.mxu0 %vm535_vm2, %v3147_v51  ;;  %v9473_v60 = vld [vmem:[%s14280_s1 + $0x2a] sm:$0x3]  ;;  %v2021_v51 = vld [vmem:[#allocation2 + $0x30] sm:$0xff] }
 0x1b5   : > { %2367 = vst.msk [vmem:[#allocation2] sm:$0xff] %vm599_vm6, %v2356_v49  ;;  %v4030_v57 = vand.u32 %v9473_v60, %v11031_v36 }
 0x1b6   : > { %v1993_v19 = vpop.f32.mrf.mxu1 }
 0x1b7   : > { %v11841_v15 = vpop.f32.mrf.mxu3  ;;  %v2029_v25 = vadd.f32 %v2018_v45, %v1993_v19  ;;  %4039 = vmatpush.bf16.msra.mxu1 %v4030_v57 }
 0x1b8   : > { %v2200_v16 = vld [vmem:[#allocation2 + $0x10] sm:$0xff] }
 0x1b9   : > { %v2211_v22 = vadd.f32 %v2200_v16, %v2174_v9  ;;  %2040 = vst.msk [vmem:[#allocation2 + $0x18] sm:$0xff] %vm599_vm6, %v2029_v25  ;;  %v11854_v42 = vpop.f32.mrf.mxu0  ;;  %v10658_v25 = vld [vmem:[%s11042_s14 + $0xc] sm:$0xff] }
 0x1ba   : > { %v2346_v63 = vld [vmem:[#allocation2 + $0x8] sm:$0xff] }
 0x1bb   : > { %v2357_v27 = vadd.f32 %v2346_v63, %v11774_v3  ;;  %2222 = vst.msk [vmem:[#allocation2 + $0x10] sm:$0xff] %vm599_vm6, %v2211_v22  ;;  %v2810_v3 = vsel %vm1451_vm5, %v11806_v10, %v11850_v23  ;;  %v3622_v10 = vshrl.u32 %v9403_v38, 16  ;;  %v9516_v22 = vld [vmem:[%s14280_s1 + $0x2c] sm:$0x3]  ;;  %v3444_v38 = vshll.u32 %v10658_v25, 16 }
 0x1bc   : > { %v2492_v11 = vld [vmem:[#allocation2] sm:$0xff]  ;;  %v2176_v1 = vpop.f32.mrf.mxu2 }
 0x1bd   : > { %2368 = vst.msk [vmem:[#allocation2 + $0x8] sm:$0xff] %vm599_vm6, %v2357_v27  ;;  %v2503_v12 = vadd.f32 %v2492_v11, %v11739_v13  ;;  %v10664_v13 = vld [vmem:[%s11042_s14 + $0x4c] sm:$0xff]  ;;  %v3624_v30 = vrot.slane %v3622_v10, 2  ;;  %v9328_v27 = vld [vmem:[%s11042_s14 + $0x44] sm:$0xc]  ;;  %v3433_v11 = vshrl.u32 %v9360_v28, 16 }
 0x1be   : > { %v1996_v29 = vpop.f32.mrf.mxu1  ;;  %v3630_v50 = vshrl.u32 %v10664_v13, 16  ;;  %v3633_v33 = vshll.u32 %v10664_v13, 16  ;;  %v3446_v60 = vrot.slane %v3444_v38, 3 }
 0x1bf   : > { %v11866_v18 = vpop.f32.mrf.mxu3  ;;  %2514 = vst.msk [vmem:[#allocation2] sm:$0xff] %vm599_vm6, %v2503_v12  ;;  %v2030_v6 = vadd.f32 %v2019_v0, %v1996_v29  ;;  %v10665_v12 = vld [vmem:[%s11042_s14 + $0x54] sm:$0xff]  ;;  %v9433_v29 = vld [vmem:[%s11042_s14 + $0x4] sm:$0x8]  ;;  %v10669_v0 = vld [vmem:[%s11042_s14 + $0x4] sm:$0xf0] }
 0x1c0   : > { %v2201_v59 = vld [vmem:[#allocation2 + $0x18] sm:$0xff]  ;;  %v3632_v17 = vrot.slane %v3630_v50, 2  ;;  %v3635_v41 = vrot.slane %v3633_v33, 3  ;;  %v9434_v13 = vor.u32 %v10669_v0, %v9433_v29  ;;  %v3642_v10 = vshll.u32 %v10665_v12, 16 }
 0x1c1   : > { %v2212_v39 = vadd.f32 %v2201_v59, %v2176_v1  ;;  %2041 = vst.msk [vmem:[#allocation2 + $0x20] sm:$0xff] %vm599_vm6, %v2030_v6  ;;  %9206 = vmatmul.msk.bf16.gmra.mxu1 %vm535_vm2, %v2621_v21  ;;  %9237 = vmatmul.msk.bf16.gmra.mxu2 %vm535_vm2, %v2810_v3  ;;  %v11877_v47 = vpop.f32.mrf.mxu0  ;;  %v10651_v3 = vld [vmem:[%s11042_s14 + $0x44] sm:$0xf0]  ;;  %v3441_v6 = vshrl.u32 %v10658_v25, 16  ;;  %v11921_v59 = vld [vmem:[%s11042_s14 + $0xc] sm:$0xff] }
 0x1c2   : > { %v2347_v4 = vld [vmem:[#allocation2 + $0x10] sm:$0xff]  ;;  %v11894_v45 = vor.u32 %v3635_v41, %v3632_v17  ;;  %v9329_v50 = vor.u32 %v10651_v3, %v9328_v27 }
 0x1c3   : > { %v2358_v40 = vadd.f32 %v2347_v4, %v11794_v24  ;;  %2223 = vst.msk [vmem:[#allocation2 + $0x18] sm:$0xff] %vm599_vm6, %v2212_v39  ;;  %v2020_v24 = vld [vmem:[#allocation2 + $0x28] sm:$0xff] }
 0x1c4   : > { %9281 = vmatmul.msk.bf16.gmra.mxu3 %vm535_vm2, %v11813_v58  ;;  %v2493_v55 = vld [vmem:[#allocation2 + $0x8] sm:$0xff]  ;;  %v2179_v46 = vpop.f32.mrf.mxu2  ;;  %9312 = vmatmul.msk.bf16.gmra.mxu0 %vm535_vm2, %v3146_v2 }
 0x1c5   : > { %2369 = vst.msk [vmem:[#allocation2 + $0x10] sm:$0xff] %vm599_vm6, %v2358_v40  ;;  %v2504_v56 = vadd.f32 %v2493_v55, %v11761_v48  ;;  %v3627_v48 = vrot.slane %v3625_v31, 3  ;;  %v3639_v40 = vshrl.u32 %v10665_v12, 16  ;;  %v3811_v55 = vrot.slane %v9434_v13, 3  ;;  %v10659_v27 = vld [vmem:[%s11042_s14 + $0x14] sm:$0xff]  ;;  %v10666_v12 = vld [vmem:[%s11042_s14 + $0x5c] sm:$0xff] }
 0x1c6   : > { %v1998_v26 = vpop.f32.mrf.mxu1  ;;  %v3450_v29 = vshrl.u32 %v10659_v27, 16  ;;  %v3453_v0 = vshll.u32 %v10659_v27, 16  ;;  %v3648_v13 = vshrl.u32 %v10666_v12, 16 }
 0x1c7   : > { %v11881_v43 = vpop.f32.mrf.mxu3  ;;  %2515 = vst.msk [vmem:[#allocation2 + $0x8] sm:$0xff] %vm599_vm6, %v2504_v56  ;;  %v2031_v58 = vadd.f32 %v2020_v24, %v1998_v26  ;;  %v3628_v19 = vor.u32 %v3627_v48, %v3624_v30  ;;  %v2022_v56 = vld [vmem:[#allocation2 + $0x38] sm:$0xff]  ;;  %v11932_v26 = vld [vmem:[%s11042_s14 + $0x4c] sm:$0xff]  ;;  %v3438_v24 = vrot.slane %v3436_v53, 3  ;;  %v3641_v41 = vrot.slane %v3639_v40, 2 }
 0x1c8   : > { %v2202_v44 = vld [vmem:[#allocation2 + $0x20] sm:$0xff] }
 0x1c9   : > { %v2213_v7 = vadd.f32 %v2202_v44, %v2179_v46  ;;  %2042 = vst.msk [vmem:[#allocation2 + $0x28] sm:$0xff] %vm599_vm6, %v2031_v58  ;;  %v11896_v61 = vpop.f32.mrf.mxu0  ;;  %v3637_v1 = vsel %vm3431_vm8, %v3628_v19, %v11894_v45  ;;  %v3812_v46 = vrot.slane %v11921_v59, 3  ;;  %v3443_v58 = vrot.slane %v3441_v6, 2 }
 0x1ca   : > { %v2348_v54 = vld [vmem:[#allocation2 + $0x18] sm:$0xff] }
 0x1cb   : > { %v2359_v49 = vadd.f32 %v2348_v54, %v11824_v34  ;;  %2224 = vst.msk [vmem:[#allocation2 + $0x20] sm:$0xff] %vm599_vm6, %v2213_v7  ;;  %v3813_v44 = vsel %vm3810_vm9, %v3811_v55, %v3812_v46  ;;  %v3644_v7 = vrot.slane %v3642_v10, 3  ;;  %v3284_v54 = vrot.slane %v9329_v50, 2  ;;  %v2024_v10 = vld [vmem:[#allocation2 + $0x48] sm:$0xff] }
 0x1cc   : > { %v2494_v9 = vld [vmem:[#allocation2 + $0x10] sm:$0xff]  ;;  %v2181_v2 = vpop.f32.mrf.mxu2 }
 0x1cd   : > { %2370 = vst.msk [vmem:[#allocation2 + $0x18] sm:$0xff] %vm599_vm6, %v2359_v49  ;;  %v2505_v32 = vadd.f32 %v2494_v9, %v11789_v8  ;;  %v4219_v8 = vand.u32 %v9516_v22, %v11031_v36  ;;  %v3285_v49 = vrot.slane %v11932_v26, 2  ;;  %v2023_v22 = vld [vmem:[#allocation2 + $0x40] sm:$0xff]  ;;  %v11985_v55 = vld [vmem:[%s11042_s14 + $0x54] sm:$0xff] }
 0x1ce   : > { %v2001_v62 = vpop.f32.mrf.mxu1 }
 0x1cf   : > { %v11901_v34 = vpop.f32.mrf.mxu3  ;;  %2516 = vst.msk [vmem:[#allocation2 + $0x10] sm:$0xff] %vm599_vm6, %v2505_v32  ;;  %v2032_v16 = vadd.f32 %v2021_v51, %v2001_v62  ;;  %4228 = vmatpush.bf16.msra.mxu2 %v4219_v8  ;;  %v11951_v62 = vor.u32 %v3644_v7, %v3641_v41 }
 0x1d0   : > { %v2203_v63 = vld [vmem:[#allocation2 + $0x28] sm:$0xff] }
 0x1d1   : > { %v2214_v14 = vadd.f32 %v2203_v63, %v2181_v2  ;;  %2043 = vst.msk [vmem:[#allocation2 + $0x30] sm:$0xff] %vm599_vm6, %v2032_v16  ;;  %9207 = vmatmul.msk.bf16.gmra.mxu1 %vm535_vm2, %v11848_v20  ;;  %9238 = vmatmul.msk.bf16.gmra.mxu2 %vm535_vm2, %v11850_v23  ;;  %v11926_v4 = vpop.f32.mrf.mxu0  ;;  %v11947_v2 = vor.u32 %v3446_v60, %v3443_v58  ;;  %v3650_v58 = vrot.slane %v3648_v13, 2 }
 0x1d2   : > { %v2349_v21 = vld [vmem:[#allocation2 + $0x20] sm:$0xff]  ;;  %v3286_v63 = vsel %vm3136_vm7, %v3284_v54, %v3285_v49  ;;  %v2025_v54 = vld [vmem:[#allocation2 + $0x50] sm:$0xff] }
 0x1d3   : > { %v2360_v39 = vadd.f32 %v2349_v21, %v11841_v15  ;;  %2225 = vst.msk [vmem:[#allocation2 + $0x28] sm:$0xff] %vm599_vm6, %v2214_v14  ;;  %v3435_v15 = vrot.slane %v3433_v11, 2  ;;  %v11974_v21 = vld [vmem:[%s11042_s14 + $0x14] sm:$0xff] }
 0x1d4   : > { %9424 = vmatmul.msk.bf16.vlgmr.msrb.gmra.mxu3 %vm535_vm2, %v3637_v1  ;;  %v2495_v20 = vld [vmem:[#allocation2 + $0x18] sm:$0xff]  ;;  %v2184_v23 = vpop.f32.mrf.mxu2  ;;  %9455 = vmatmul.msk.bf16.vlgmr.msrb.gmra.mxu0 %vm535_vm2, %v3813_v44 }
 0x1d5   : > { %2371 = vst.msk [vmem:[#allocation2 + $0x20] sm:$0xff] %vm599_vm6, %v2360_v39  ;;  %v2506_v31 = vadd.f32 %v2495_v20, %v11815_v5  ;;  %v9559_v5 = vld [vmem:[%s14280_s1 + $0x2e] sm:$0x3]  ;;  %v3439_v9 = vor.u32 %v3438_v24, %v3435_v15  ;;  %v3651_v39 = vshll.u32 %v10666_v12, 16  ;;  %v3814_v20 = vrot.slane %v11974_v21, 3 }
 0x1d6   : > { %v2003_v33 = vpop.f32.mrf.mxu1  ;;  %v4366_v17 = vand.u32 %v9559_v5, %v11031_v36 }
 0x1d7   : > { %v11934_v30 = vpop.f32.mrf.mxu3  ;;  %2517 = vst.msk [vmem:[#allocation2 + $0x18] sm:$0xff] %vm599_vm6, %v2506_v31  ;;  %v2033_v57 = vadd.f32 %v2022_v56, %v2003_v33  ;;  %v3455_v31 = vrot.slane %v3453_v0, 3  ;;  %v3815_v15 = vsel %vm3810_vm9, %v3812_v46, %v3814_v20  ;;  %v3653_v60 = vrot.slane %v3651_v39, 3 }
 0x1d8   : > { %v2204_v48 = vld [vmem:[#allocation2 + $0x30] sm:$0xff]  ;;  %4375 = vmatpush.bf16.msra.mxu3 %v4366_v17  ;;  %v3287_v46 = vrot.slane %v11985_v55, 2 }
 0x1d9   : > { %v2215_v52 = vadd.f32 %v2204_v48, %v2184_v23  ;;  %2044 = vst.msk [vmem:[#allocation2 + $0x38] sm:$0xff] %vm599_vm6, %v2033_v57  ;;  %v11953_v51 = vpop.f32.mrf.mxu0  ;;  %v12006_v41 = vor.u32 %v3653_v60, %v3650_v58  ;;  %v2681_v58 = vld [vmem:[#allocation2] sm:$0xff] }
 0x1da   : > { %v2350_v35 = vld [vmem:[#allocation2 + $0x28] sm:$0xff] }
 0x1db   : > { %v2361_v28 = vadd.f32 %v2350_v35, %v11866_v18  ;;  %2226 = vst.msk [vmem:[#allocation2 + $0x30] sm:$0xff] %vm599_vm6, %v2215_v52  ;;  %v3448_v18 = vsel %vm3431_vm8, %v3439_v9, %v11947_v2 }
 0x1dc   : > { %v2496_v19 = vld [vmem:[#allocation2 + $0x20] sm:$0xff]  ;;  %v2186_v32 = vpop.f32.mrf.mxu2 }
 0x1dd   : > { %2372 = vst.msk [vmem:[#allocation2 + $0x28] sm:$0xff] %vm599_vm6, %v2361_v28  ;;  %v2507_v25 = vadd.f32 %v2496_v19, %v11838_v37  ;;  %v3646_v37 = vsel %vm3431_vm8, %v11894_v45, %v11951_v62  ;;  %v10660_v28 = vld [vmem:[%s11042_s14 + $0x1c] sm:$0xff] }
 0x1de   : > { %v2006_v16 = vpop.f32.mrf.mxu1 }
 0x1df   : > { %v11963_v11 = vpop.f32.mrf.mxu3  ;;  %2518 = vst.msk [vmem:[#allocation2 + $0x20] sm:$0xff] %vm599_vm6, %v2507_v25  ;;  %v2034_v8 = vadd.f32 %v2023_v22, %v2006_v16  ;;  %v10667_v16 = vld [vmem:[%s11042_s14 + $0x64] sm:$0xff] }
 0x1e0   : > { %v2205_v1 = vld [vmem:[#allocation2 + $0x38] sm:$0xff] }
 0x1e1   : > { %v2216_v14 = vadd.f32 %v2205_v1, %v2186_v32  ;;  %2045 = vst.msk [vmem:[#allocation2 + $0x40] sm:$0xff] %vm599_vm6, %v2034_v8  ;;  %9350 = vmatmul.msk.bf16.vlgmr.msrb.gmra.mxu1 %vm535_vm2, %v3286_v63  ;;  %9381 = vmatmul.msk.bf16.vlgmr.msrb.gmra.mxu2 %vm535_vm2, %v3448_v18  ;;  %v11979_v38 = vpop.f32.mrf.mxu0  ;;  %v12028_v63 = vld [vmem:[%s11042_s14 + $0x1c] sm:$0xff]  ;;  %v3657_v1 = vshrl.u32 %v10667_v16, 16 }
 0x1e2   : > { %v2351_v53 = vld [vmem:[#allocation2 + $0x30] sm:$0xff]  ;;  %v3816_v12 = vrot.slane %v12028_v63, 3 }
 0x1e3   : > { %v2362_v3 = vadd.f32 %v2351_v53, %v11881_v43  ;;  %2227 = vst.msk [vmem:[#allocation2 + $0x38] sm:$0xff] %vm599_vm6, %v2216_v14  ;;  %v3452_v43 = vrot.slane %v3450_v29, 2  ;;  %v12039_v29 = vld [vmem:[%s11042_s14 + $0x5c] sm:$0xff]  ;;  %v3659_v13 = vrot.slane %v3657_v1, 2  ;;  %v10662_v1 = vld [vmem:[%s11042_s14 + $0x2c] sm:$0x70] }
 0x1e4   : > { %9425 = vmatmul.msk.bf16.gmra.mxu3 %vm535_vm2, %v3646_v37  ;;  %v2497_v45 = vld [vmem:[#allocation2 + $0x28] sm:$0xff]  ;;  %v2189_v6 = vpop.f32.mrf.mxu2  ;;  %9456 = vmatmul.msk.bf16.gmra.mxu0 %vm535_vm2, %v3815_v15  ;;  %v3660_v37 = vshll.u32 %v10667_v16, 16 }
 0x1e5   : > { %2373 = vst.msk [vmem:[#allocation2 + $0x30] sm:$0xff] %vm599_vm6, %v2362_v3  ;;  %v2508_v23 = vadd.f32 %v2497_v45, %v11854_v42  ;;  %v9602_v42 = vld [vmem:[%s14280_s1 + $0x30] sm:$0x3]  ;;  %v12002_v57 = vor.u32 %v3455_v31, %v3452_v43  ;;  %v3817_v45 = vsel %vm3810_vm9, %v3814_v20, %v3816_v12 }
 0x1e6   : > { %v2008_v40 = vpop.f32.mrf.mxu1  ;;  %v4513_v24 = vand.u32 %v9602_v42, %v11031_v36  ;;  %v9422_v42 = vld [vmem:[%s11042_s14 + $0x6c] sm:$0xf] }
 0x1e7   : > { %v11987_v50 = vpop.f32.mrf.mxu3  ;;  %2519 = vst.msk [vmem:[#allocation2 + $0x28] sm:$0xff] %vm599_vm6, %v2508_v23  ;;  %v2035_v33 = vadd.f32 %v2024_v10, %v2008_v40  ;;  %v3457_v9 = vsel %vm3431_vm8, %v11947_v2, %v12002_v57  ;;  %v3462_v2 = vshll.u32 %v10660_v28, 16  ;;  %v3289_v40 = vrot.slane %v12039_v29, 2 }
 0x1e8   : > { %v2206_v56 = vld [vmem:[#allocation2 + $0x40] sm:$0xff]  ;;  %4522 = vmatpush.bf16.msra.mxu0 %v4513_v24 }
 0x1e9   : > { %v2217_v44 = vadd.f32 %v2206_v56, %v2189_v6  ;;  %2046 = vst.msk [vmem:[#allocation2 + $0x48] sm:$0xff] %vm599_vm6, %v2035_v33  ;;  %v2490_v7 = vpop.f32.mrf.mxu0  ;;  %v3464_v0 = vrot.slane %v3462_v2, 3  ;;  %v10668_v56 = vld [vmem:[%s11042_s14 + $0x6c] sm:$0x70] }
 0x1ea   : > { %v2352_v59 = vld [vmem:[#allocation2 + $0x38] sm:$0xff] }
 0x1eb   : > { %v2363_v5 = vadd.f32 %v2352_v59, %v11901_v34  ;;  %2228 = vst.msk [vmem:[#allocation2 + $0x40] sm:$0xff] %vm599_vm6, %v2217_v44  ;;  %v3288_v34 = vsel %vm3136_vm7, %v3285_v49, %v3287_v46  ;;  %v3459_v49 = vshrl.u32 %v10660_v28, 16  ;;  %v10661_v44 = vld [vmem:[%s11042_s14 + $0x24] sm:$0xff] }
 0x1ec   : > { %v2498_v48 = vld [vmem:[#allocation2 + $0x30] sm:$0xff]  ;;  %v2191_v17 = vpop.f32.mrf.mxu2 }
 0x1ed   : > { %2374 = vst.msk [vmem:[#allocation2 + $0x38] sm:$0xff] %vm599_vm6, %v2363_v5  ;;  %v2509_v52 = vadd.f32 %v2498_v48, %v11877_v47  ;;  %v3655_v47 = vsel %vm3431_vm8, %v11951_v62, %v12006_v41  ;;  %v9423_v48 = vor.u32 %v10668_v56, %v9422_v42 }
 0x1ee   : > { %v2011_v35 = vpop.f32.mrf.mxu1 }
 0x1ef   : > { %v2343_v19 = vpop.f32.mrf.mxu3  ;;  %2520 = vst.msk [vmem:[#allocation2 + $0x30] sm:$0xff] %vm599_vm6, %v2509_v52  ;;  %v2036_v32 = vadd.f32 %v2025_v54, %v2011_v35  ;;  %v3666_v54 = vshrl.u32 %v9423_v48, 16 }
 0x1f0   : > { %v2207_v25 = vld [vmem:[#allocation2 + $0x48] sm:$0xff] }
 0x1f1   : > { %v2218_v22 = vadd.f32 %v2207_v25, %v2191_v17  ;;  %2047 = vst.msk [vmem:[#allocation2 + $0x50] sm:$0xff] %vm599_vm6, %v2036_v32  ;;  %9351 = vmatmul.msk.bf16.gmra.mxu1 %vm535_vm2, %v3288_v34  ;;  %9382 = vmatmul.msk.bf16.gmra.mxu2 %vm535_vm2, %v3457_v9  ;;  %v12033_v8 = vpop.f32.mrf.mxu0  ;;  %v12080_v17 = vld [vmem:[%s11042_s14 + $0x24] sm:$0xff]  ;;  %v3669_v34 = vshll.u32 %v9423_v48, 16  ;;  %v2682_v32 = vld [vmem:[#allocation2 + $0x8] sm:$0xff] }
 0x1f2   : > { %v2353_v26 = vld [vmem:[#allocation2 + $0x40] sm:$0xff]  ;;  %v3818_v9 = vrot.slane %v12080_v17, 3 }
 0x1f3   : > { %v2364_v18 = vadd.f32 %v2353_v26, %v11934_v30  ;;  %2229 = vst.msk [vmem:[#allocation2 + $0x48] sm:$0xff] %vm599_vm6, %v2218_v22  ;;  %v3461_v30 = vrot.slane %v3459_v49, 2  ;;  %v12090_v25 = vld [vmem:[%s11042_s14 + $0x64] sm:$0xff]  ;;  %v3668_v49 = vrot.slane %v3666_v54, 2  ;;  %v3671_v2 = vrot.slane %v3669_v34, 3 }
 0x1f4   : > { %9426 = vmatmul.msk.bf16.gmra.mxu3 %vm535_vm2, %v3655_v47  ;;  %v2499_v62 = vld [vmem:[#allocation2 + $0x38] sm:$0xff]  ;;  %v2194_v27 = vpop.f32.mrf.mxu2  ;;  %9457 = vmatmul.msk.bf16.gmra.mxu0 %vm535_vm2, %v3817_v45  ;;  %v3819_v22 = vsel %vm3810_vm9, %v3816_v12, %v3818_v9  ;;  %v2683_v45 = vld [vmem:[#allocation2 + $0x10] sm:$0xff] }
 0x1f5   : > { %2375 = vst.msk [vmem:[#allocation2 + $0x40] sm:$0xff] %vm599_vm6, %v2364_v18  ;;  %v2510_v14 = vadd.f32 %v2499_v62, %v11896_v61  ;;  %v3662_v61 = vrot.slane %v3660_v37, 3  ;;  %v12049_v10 = vor.u32 %v3464_v0, %v3461_v30  ;;  %v3291_v18 = vrot.slane %v12090_v25, 2 }
 0x1f6   : > { %v2013_v53 = vpop.f32.mrf.mxu1 }
 0x1f7   : > { %v12041_v3 = vpop.f32.mrf.mxu3  ;;  %2521 = vst.msk [vmem:[#allocation2 + $0x38] sm:$0xff] %vm599_vm6, %v2510_v14  ;;  %v12053_v31 = vor.u32 %v3662_v61, %v3659_v13  ;;  %v3466_v60 = vsel %vm3431_vm8, %v12002_v57, %v12049_v10  ;;  %v3471_v57 = vshll.u32 %v10661_v44, 16  ;;  %v12106_v14 = vor.u32 %v3671_v2, %v3668_v49 }
 0x1f8   : > { %v2208_v6 = vld [vmem:[#allocation2 + $0x50] sm:$0xff] }
 0x1f9   : > { %v2219_v39 = vadd.f32 %v2208_v6, %v2194_v27  ;;  %v12055_v15 = vpop.f32.mrf.mxu0  ;;  %v3664_v5 = vsel %vm3431_vm8, %v12006_v41, %v12053_v31  ;;  %v3473_v47 = vrot.slane %v3471_v57, 3  ;;  %v9379_v27 = vld [vmem:[%s11042_s14 + $0x2c] sm:$0xf]  ;;  %v3292_v6 = vsel %vm3136_vm7, %v3289_v40, %v3291_v18 }
 0x1fa   : > { %v2354_v23 = vld [vmem:[#allocation2 + $0x48] sm:$0xff]  ;;  %v9380_v61 = vor.u32 %v10662_v1, %v9379_v27  ;;  %v9562_v1 = vld [vmem:[%s11042_s14 + $0x84] sm:$0xc] }
 0x1fb   : > { %v2365_v21 = vadd.f32 %v2354_v23, %v11963_v11  ;;  %2230 = vst.msk [vmem:[#allocation2 + $0x50] sm:$0xff] %vm599_vm6, %v2219_v39  ;;  %v3290_v11 = vsel %vm3136_vm7, %v3287_v46, %v3289_v40  ;;  %v3468_v46 = vshrl.u32 %v10661_v44, 16  ;;  %v9453_v40 = vld [vmem:[%s11042_s14 + $0x2c] sm:$0xf] }
 0x1fc   : > { %v2500_v20 = vld [vmem:[#allocation2 + $0x40] sm:$0xff]  ;;  %v2196_v43 = vpop.f32.mrf.mxu2 }
 0x1fd   : > { %2376 = vst.msk [vmem:[#allocation2 + $0x48] sm:$0xff] %vm599_vm6, %v2365_v21  ;;  %v2511_v33 = vadd.f32 %v2500_v20, %v11926_v4  ;;  %v3673_v21 = vsel %vm3431_vm8, %v12053_v31, %v12106_v14  ;;  %v3477_v43 = vshrl.u32 %v9380_v61, 16 }
 0x1fe   : > { %v2652_v24 = vpop.f32.mrf.mxu1 }
 0x1ff   : > { %v12070_v59 = vpop.f32.mrf.mxu3  ;;  %2522 = vst.msk [vmem:[#allocation2 + $0x40] sm:$0xff] %vm599_vm6, %v2511_v33  ;;  %v2692_v4 = vadd.f32 %v2681_v58, %v2652_v24  ;;  %v3480_v33 = vshll.u32 %v9380_v61, 16  ;;  %v9348_v24 = vld [vmem:[%s11042_s14 + $0x6c] sm:$0xf]  ;;  %v10656_v58 = vld [vmem:[%s11042_s14 + $0x6c] sm:$0x30] }
 0x200   : > { %v3479_v48 = vrot.slane %v3477_v43, 2  ;;  %v12189_v61 = vld [vmem:[%s11042_s14 + $0x8c] sm:$0xff] }
 0x201   : > { %2703 = vst.msk [vmem:[#allocation2] sm:$0xff] %vm599_vm6, %v2692_v4  ;;  %9352 = vmatmul.msk.bf16.gmra.mxu1 %vm535_vm2, %v3290_v11  ;;  %9383 = vmatmul.msk.bf16.gmra.mxu2 %vm535_vm2, %v3466_v60  ;;  %v12084_v41 = vpop.f32.mrf.mxu0  ;;  %v2684_v4 = vld [vmem:[#allocation2 + $0x18] sm:$0xff] }
 0x202   : > { %v2355_v55 = vld [vmem:[#allocation2 + $0x50] sm:$0xff] }
 0x203   : > { %v2366_v7 = vadd.f32 %v2355_v55, %v11987_v50  ;;  %v3470_v50 = vrot.slane %v3468_v46, 2  ;;  %v3482_v55 = vrot.slane %v3480_v33, 3 }
 0x204   : > { %9427 = vmatmul.msk.bf16.gmra.mxu3 %vm535_vm2, %v3664_v5  ;;  %v2501_v52 = vld [vmem:[#allocation2 + $0x48] sm:$0xff]  ;;  %v2841_v35 = vpop.f32.mrf.mxu2  ;;  %9458 = vmatmul.msk.bf16.gmra.mxu0 %vm535_vm2, %v3819_v22  ;;  %v9349_v5 = vor.u32 %v10656_v58, %v9348_v24  ;;  %v4337_v24 = vrot.slane %v12189_v61, 2 }
 0x205   : > { %2377 = vst.msk [vmem:[#allocation2 + $0x50] sm:$0xff] %vm599_vm6, %v2366_v7  ;;  %v2512_v28 = vadd.f32 %v2501_v52, %v11953_v51  ;;  %v12101_v62 = vor.u32 %v3473_v47, %v3470_v50  ;;  %v12147_v34 = vor.u32 %v3482_v55, %v3479_v48  ;;  %v2685_v47 = vld [vmem:[#allocation2 + $0x20] sm:$0xff] }
 0x206   : > { %v2654_v19 = vpop.f32.mrf.mxu1  ;;  %v12145_v54 = vrot.slane %v9349_v5, 2  ;;  %v10682_v5 = vld [vmem:[%s11042_s14 + $0xcc] sm:$0xff] }
 0x207   : > { %v12092_v16 = vpop.f32.mrf.mxu3  ;;  %2523 = vst.msk [vmem:[#allocation2 + $0x48] sm:$0xff] %vm599_vm6, %v2512_v28  ;;  %v2693_v26 = vadd.f32 %v2682_v32, %v2654_v19  ;;  %v3475_v13 = vsel %vm3431_vm8, %v12049_v10, %v12101_v62  ;;  %v10674_v10 = vld [vmem:[%s11042_s14 + $0x2c] sm:$0x70] }
 0x208   : > { %v2870_v51 = vld [vmem:[#allocation2] sm:$0xff]  ;;  %v9454_v42 = vor.u32 %v10674_v10, %v9453_v40  ;;  %v3294_v22 = vsel %vm3136_vm7, %v3291_v18, %v12145_v54 }
 0x209   : > { %v2881_v63 = vadd.f32 %v2870_v51, %v2841_v35  ;;  %2704 = vst.msk [vmem:[#allocation2 + $0x8] sm:$0xff] %vm599_vm6, %v2693_v26  ;;  %v12108_v53 = vpop.f32.mrf.mxu0  ;;  %v10681_v40 = vld [vmem:[%s11042_s14 + $0xc4] sm:$0xf0] }
 0x20a   : > { %v3820_v60 = vrot.slane %v9454_v42, 3  ;;  %v10676_v42 = vld [vmem:[%s11042_s14 + $0x8c] sm:$0xff] }
 0x20b   : > { %2892 = vst.msk [vmem:[#allocation2] sm:$0xff] %vm599_vm6, %v2881_v63 }
 0x20c   : > { %v2502_v37 = vld [vmem:[#allocation2 + $0x50] sm:$0xff]  ;;  %v2843_v12 = vpop.f32.mrf.mxu2 }
 0x20d   : > { %v2513_v30 = vadd.f32 %v2502_v37, %v11979_v38  ;;  %v10687_v37 = vld [vmem:[%s11042_s14 + $0x84] sm:$0xf0] }
 0x20e   : > { %v2657_v0 = vpop.f32.mrf.mxu1 }
 0x20f   : > { %v12119_v39 = vpop.f32.mrf.mxu3  ;;  %2524 = vst.msk [vmem:[#allocation2 + $0x50] sm:$0xff] %vm599_vm6, %v2513_v30  ;;  %v2694_v38 = vadd.f32 %v2683_v45, %v2657_v0  ;;  %v9476_v0 = vld [vmem:[%s11042_s14 + $0x84] sm:$0xe]  ;;  %v9645_v45 = vld [vmem:[%s14280_s1 + $0x32] sm:$0x3] }
 0x210   : > { %v2871_v23 = vld [vmem:[#allocation2 + $0x8] sm:$0xff] }
 0x211   : > { %v2882_v29 = vadd.f32 %v2871_v23, %v2843_v12  ;;  %2705 = vst.msk [vmem:[#allocation2 + $0x10] sm:$0xff] %vm599_vm6, %v2694_v38  ;;  %9353 = vmatmul.msk.bf16.gmra.mxu1 %vm535_vm2, %v3292_v6  ;;  %9384 = vmatmul.msk.bf16.gmra.mxu2 %vm535_vm2, %v3475_v13  ;;  %v12135_v11 = vpop.f32.mrf.mxu0  ;;  %v4702_v13 = vand.u32 %v9645_v45, %v11031_v36 }
 0x212   : > { %v3059_v20 = vld [vmem:[#allocation2] sm:$0xff]  ;;  %v9563_v38 = vor.u32 %v10687_v37, %v9562_v1 }
 0x213   : > { %v3070_v56 = vadd.f32 %v3059_v20, %v12041_v3  ;;  %2893 = vst.msk [vmem:[#allocation2 + $0x8] sm:$0xff] %vm599_vm6, %v2882_v29  ;;  %v3821_v3 = vsel %vm3810_vm9, %v3818_v9, %v3820_v60  ;;  %v9519_v29 = vld [vmem:[%s11042_s14 + $0xc4] sm:$0xe]  ;;  %4711 = vmatpush.bf16.msrb.mxu1 %v4702_v13 }
 0x214   : > { %9428 = vmatmul.msk.bf16.gmra.mxu3 %vm535_vm2, %v3673_v21  ;;  %v2846_v31 = vpop.f32.mrf.mxu2  ;;  %9459 = vmatmul.msk.bf16.gmra.mxu0 %vm535_vm2, %v3821_v3 }
 0x215   : > { %3081 = vst.msk [vmem:[#allocation2] sm:$0xff] %vm599_vm6, %v3070_v56  ;;  %v4336_v56 = vrot.slane %v9563_v38, 2 }
 0x216   : > { %v2659_v44 = vpop.f32.mrf.mxu1 }
 0x217   : > { %v12138_v46 = vpop.f32.mrf.mxu3  ;;  %v2695_v57 = vadd.f32 %v2684_v4, %v2659_v44  ;;  %v2687_v4 = vld [vmem:[#allocation2 + $0x30] sm:$0xff] }
 0x218   : > { %v2872_v7 = vld [vmem:[#allocation2 + $0x10] sm:$0xff] }
 0x219   : > { %v2883_v52 = vadd.f32 %v2872_v7, %v2846_v31  ;;  %2706 = vst.msk [vmem:[#allocation2 + $0x18] sm:$0xff] %vm599_vm6, %v2695_v57  ;;  %v12151_v32 = vpop.f32.mrf.mxu0  ;;  %v9688_v57 = vld [vmem:[%s14280_s1 + $0x34] sm:$0x3] }
 0x21a   : > { %v3060_v35 = vld [vmem:[#allocation2 + $0x8] sm:$0xff] }
 0x21b   : > { %v3071_v28 = vadd.f32 %v3060_v35, %v12070_v59  ;;  %2894 = vst.msk [vmem:[#allocation2 + $0x10] sm:$0xff] %vm599_vm6, %v2883_v52  ;;  %v3484_v59 = vsel %vm3431_vm8, %v12101_v62, %v12147_v34  ;;  %v3967_v52 = vshrl.u32 %v10676_v42, 16  ;;  %v4891_v35 = vand.u32 %v9688_v57, %v11031_v36  ;;  %v2689_v57 = vld [vmem:[#allocation2 + $0x40] sm:$0xff] }
 0x21c   : > { %v3207_v19 = vld [vmem:[#allocation2] sm:$0xff]  ;;  %v2848_v17 = vpop.f32.mrf.mxu2 }
 0x21d   : > { %3082 = vst.msk [vmem:[#allocation2 + $0x8] sm:$0xff] %vm599_vm6, %v3071_v28  ;;  %v3218_v9 = vadd.f32 %v3207_v19, %v12033_v8  ;;  %v4338_v28 = vsel %vm3136_vm7, %v4336_v56, %v4337_v24  ;;  %4900 = vmatpush.bf16.msrb.mxu2 %v4891_v35 }
 0x21e   : > { %v2662_v50 = vpop.f32.mrf.mxu1 }
 0x21f   : > { %v12162_v26 = vpop.f32.mrf.mxu3  ;;  %3229 = vst.msk [vmem:[#allocation2] sm:$0xff] %vm599_vm6, %v3218_v9  ;;  %v2696_v51 = vadd.f32 %v2685_v47, %v2662_v50  ;;  %v9605_v9 = vld [vmem:[%s11042_s14 + $0xc4] sm:$0xc]  ;;  %v10693_v50 = vld [vmem:[%s11042_s14 + $0xc4] sm:$0xf0] }
 0x220   : > { %v2873_v49 = vld [vmem:[#allocation2 + $0x18] sm:$0xff] }
 0x221   : > { %v2884_v8 = vadd.f32 %v2873_v49, %v2848_v17  ;;  %2707 = vst.msk [vmem:[#allocation2 + $0x20] sm:$0xff] %vm599_vm6, %v2696_v51  ;;  %9354 = vmatmul.msk.bf16.gmra.mxu1 %vm535_vm2, %v3294_v22  ;;  %9385 = vmatmul.msk.bf16.gmra.mxu2 %vm535_vm2, %v3484_v59  ;;  %v12172_v62 = vpop.f32.mrf.mxu0  ;;  %v4156_v59 = vshrl.u32 %v10682_v5, 16  ;;  %v4159_v51 = vshll.u32 %v10682_v5, 16  ;;  %v12221_v49 = vld [vmem:[%s11042_s14 + $0xcc] sm:$0xff] }
 0x222   : > { %v3061_v25 = vld [vmem:[#allocation2 + $0x10] sm:$0xff]  ;;  %v4484_v1 = vrot.slane %v12221_v49, 2 }
 0x223   : > { %v3072_v2 = vadd.f32 %v3061_v25, %v12092_v16  ;;  %2895 = vst.msk [vmem:[#allocation2 + $0x18] sm:$0xff] %vm599_vm6, %v2884_v8  ;;  %v2686_v16 = vld [vmem:[#allocation2 + $0x28] sm:$0xff]  ;;  %v9606_v8 = vor.u32 %v10693_v50, %v9605_v9 }
 0x224   : > { %9429 = vmatmul.msk.bf16.gmra.mxu3 %vm535_vm2, %v12106_v14  ;;  %v3208_v63 = vld [vmem:[#allocation2 + $0x8] sm:$0xff]  ;;  %v2851_v18 = vpop.f32.mrf.mxu2  ;;  %9460 = vmatmul.msk.bf16.gmra.mxu0 %vm535_vm2, %v3820_v60  ;;  %v9520_v60 = vor.u32 %v10681_v40, %v9519_v29 }
 0x225   : > { %3083 = vst.msk [vmem:[#allocation2 + $0x10] sm:$0xff] %vm599_vm6, %v3072_v2  ;;  %v3219_v27 = vadd.f32 %v3208_v63, %v12055_v15  ;;  %v10675_v15 = vld [vmem:[%s11042_s14 + $0x84] sm:$0xf0]  ;;  %v12243_v40 = vld [vmem:[%s11042_s14 + $0x94] sm:$0xff] }
 0x226   : > { %v2664_v12 = vpop.f32.mrf.mxu1  ;;  %v9477_v20 = vor.u32 %v10675_v15, %v9476_v0  ;;  %v4148_v17 = vshrl.u32 %v9520_v60, 16  ;;  %v4151_v22 = vshll.u32 %v9520_v60, 16  ;;  %v2688_v0 = vld [vmem:[#allocation2 + $0x38] sm:$0xff]  ;;  %v4161_v15 = vrot.slane %v4159_v51, 2 }
 0x227   : > { %v12178_v30 = vpop.f32.mrf.mxu3  ;;  %3230 = vst.msk [vmem:[#allocation2 + $0x8] sm:$0xff] %vm599_vm6, %v3219_v27  ;;  %v2697_v14 = vadd.f32 %v2686_v16, %v2664_v12  ;;  %v4483_v27 = vrot.slane %v9606_v8, 2  ;;  %v3969_v12 = vrot.slane %v3967_v52, 1  ;;  %v10683_v52 = vld [vmem:[%s11042_s14 + $0xd4] sm:$0xff] }
 0x228   : > { %v2874_v6 = vld [vmem:[#allocation2 + $0x20] sm:$0xff]  ;;  %v3959_v55 = vshrl.u32 %v9477_v20, 16  ;;  %v3962_v3 = vshll.u32 %v9477_v20, 16  ;;  %v4150_v16 = vrot.slane %v4148_v17, 1  ;;  %v4153_v45 = vrot.slane %v4151_v22, 2 }
 0x229   : > { %v2885_v23 = vadd.f32 %v2874_v6, %v2851_v18  ;;  %2708 = vst.msk [vmem:[#allocation2 + $0x28] sm:$0xff] %vm599_vm6, %v2697_v14  ;;  %v12198_v58 = vpop.f32.mrf.mxu0  ;;  %v4158_v6 = vrot.slane %v4156_v59, 1  ;;  %v4485_v38 = vsel %vm3136_vm7, %v4483_v27, %v4484_v1  ;;  %v4168_v22 = vshll.u32 %v10683_v52, 16  ;;  %v12275_v59 = vld [vmem:[%s11042_s14 + $0xd4] sm:$0xff] }
 0x22a   : > { %v3062_v21 = vld [vmem:[#allocation2 + $0x18] sm:$0xff]  ;;  %v3964_v63 = vrot.slane %v3962_v3, 2 }
 0x22b   : > { %v3073_v10 = vadd.f32 %v3062_v21, %v12119_v39  ;;  %2896 = vst.msk [vmem:[#allocation2 + $0x20] sm:$0xff] %vm599_vm6, %v2885_v23  ;;  %v12248_v56 = vor.u32 %v4161_v15, %v4158_v6 }
 0x22c   : > { %v3209_v43 = vld [vmem:[#allocation2 + $0x10] sm:$0xff]  ;;  %v2853_v33 = vpop.f32.mrf.mxu2 }
 0x22d   : > { %3084 = vst.msk [vmem:[#allocation2 + $0x18] sm:$0xff] %vm599_vm6, %v3073_v10  ;;  %v3220_v31 = vadd.f32 %v3209_v43, %v12084_v41  ;;  %v3970_v41 = vshll.u32 %v10676_v42, 16  ;;  %v4154_v42 = vor.u32 %v4153_v45, %v4150_v16  ;;  %v12299_v45 = vld [vmem:[%s11042_s14 + $0x9c] sm:$0xff] }
 0x22e   : > { %v2667_v44 = vpop.f32.mrf.mxu1 }
 0x22f   : > { %v12203_v39 = vpop.f32.mrf.mxu3  ;;  %3231 = vst.msk [vmem:[#allocation2 + $0x10] sm:$0xff] %vm599_vm6, %v3220_v31  ;;  %v2698_v48 = vadd.f32 %v2687_v4, %v2667_v44  ;;  %v4339_v4 = vrot.slane %v12243_v40, 2 }
 0x230   : > { %v2875_v7 = vld [vmem:[#allocation2 + $0x28] sm:$0xff] }
 0x231   : > { %v2886_v19 = vadd.f32 %v2875_v7, %v2853_v33  ;;  %2709 = vst.msk [vmem:[#allocation2 + $0x30] sm:$0xff] %vm599_vm6, %v2698_v48  ;;  %9355 = vmatmul.msk.bf16.gmra.mxu1 %vm535_vm2, %v12145_v54  ;;  %9386 = vmatmul.msk.bf16.gmra.mxu2 %vm535_vm2, %v12147_v34  ;;  %v3961_v34 = vrot.slane %v3959_v55, 1  ;;  %v12226_v18 = vpop.f32.mrf.mxu0  ;;  %v10677_v55 = vld [vmem:[%s11042_s14 + $0x94] sm:$0xff] }
 0x232   : > { %v3063_v47 = vld [vmem:[#allocation2 + $0x20] sm:$0xff]  ;;  %v3976_v17 = vshrl.u32 %v10677_v55, 16  ;;  %v3979_v50 = vshll.u32 %v10677_v55, 16 }
 0x233   : > { %v3074_v25 = vadd.f32 %v3063_v47, %v12138_v46  ;;  %2897 = vst.msk [vmem:[#allocation2 + $0x28] sm:$0xff] %vm599_vm6, %v2886_v19  ;;  %v3972_v46 = vrot.slane %v3970_v41, 2  ;;  %v3965_v43 = vor.u32 %v3964_v63, %v3961_v34  ;;  %v4165_v47 = vshrl.u32 %v10683_v52, 16  ;;  %v2690_v63 = vld [vmem:[#allocation2 + $0x48] sm:$0xff]  ;;  %v12329_v52 = vld [vmem:[%s11042_s14 + $0xdc] sm:$0xff] }
 0x234   : > { %9584 = vmatmul.msk.bf16.vlgmr.msra.gmra.mxu3 %vm535_vm2, %v4338_v28  ;;  %v3210_v54 = vld [vmem:[#allocation2 + $0x18] sm:$0xff]  ;;  %v2856_v2 = vpop.f32.mrf.mxu2  ;;  %9627 = vmatmul.msk.bf16.vlgmr.msra.gmra.mxu0 %vm535_vm2, %v4485_v38  ;;  %v3981_v27 = vrot.slane %v3979_v50, 2 }
 0x235   : > { %3085 = vst.msk [vmem:[#allocation2 + $0x20] sm:$0xff] %vm599_vm6, %v3074_v25  ;;  %v3221_v37 = vadd.f32 %v3210_v54, %v12108_v53  ;;  %v9731_v53 = vld [vmem:[%s14280_s1 + $0x36] sm:$0x3]  ;;  %v12246_v33 = vor.u32 %v3972_v46, %v3969_v12  ;;  %v4486_v25 = vrot.slane %v12275_v59, 2 }
 0x236   : > { %v2669_v14 = vpop.f32.mrf.mxu1  ;;  %v5038_v29 = vand.u32 %v9731_v53, %v11031_v36 }
 0x237   : > { %v12231_v13 = vpop.f32.mrf.mxu3  ;;  %3232 = vst.msk [vmem:[#allocation2 + $0x18] sm:$0xff] %vm599_vm6, %v3221_v37  ;;  %v2699_v23 = vadd.f32 %v2688_v0, %v2669_v14  ;;  %v3974_v7 = vsel %vm1451_vm5, %v3965_v43, %v12246_v33  ;;  %v4170_v37 = vrot.slane %v4168_v22, 2  ;;  %v4487_v46 = vsel %vm3136_vm7, %v4484_v1, %v4486_v25 }
 0x238   : > { %v2876_v21 = vld [vmem:[#allocation2 + $0x30] sm:$0xff]  ;;  %5047 = vmatpush.bf16.msrb.mxu3 %v5038_v29 }
 0x239   : > { %v2887_v10 = vadd.f32 %v2876_v21, %v2856_v2  ;;  %2710 = vst.msk [vmem:[#allocation2 + $0x38] sm:$0xff] %vm599_vm6, %v2699_v23  ;;  %v12253_v5 = vpop.f32.mrf.mxu0  ;;  %v3978_v2 = vrot.slane %v3976_v17, 1  ;;  %v4341_v21 = vrot.slane %v12299_v45, 2 }
 0x23a   : > { %v3064_v20 = vld [vmem:[#allocation2 + $0x28] sm:$0xff] }
 0x23b   : > { %v3075_v31 = vadd.f32 %v3064_v20, %v12162_v26  ;;  %2898 = vst.msk [vmem:[#allocation2 + $0x30] sm:$0xff] %vm599_vm6, %v2887_v10  ;;  %v4163_v26 = vsel %vm1451_vm5, %v4154_v42, %v12248_v56  ;;  %v12302_v1 = vor.u32 %v3981_v27, %v3978_v2  ;;  %v10678_v20 = vld [vmem:[%s11042_s14 + $0x9c] sm:$0xff] }
 0x23c   : > { %v3211_v60 = vld [vmem:[#allocation2 + $0x20] sm:$0xff]  ;;  %v2858_v44 = vpop.f32.mrf.mxu2  ;;  %v2691_v42 = vld [vmem:[#allocation2 + $0x50] sm:$0xff] }
 0x23d   : > { %3086 = vst.msk [vmem:[#allocation2 + $0x28] sm:$0xff] %vm599_vm6, %v3075_v31  ;;  %v3222_v48 = vadd.f32 %v3211_v60, %v12135_v11  ;;  %v4340_v11 = vsel %vm3136_vm7, %v4337_v24, %v4339_v4  ;;  %v3983_v31 = vsel %vm1451_vm5, %v12246_v33, %v12302_v1  ;;  %v10684_v60 = vld [vmem:[%s11042_s14 + $0xdc] sm:$0xff]  ;;  %v3985_v33 = vshrl.u32 %v10678_v20, 16 }
 0x23e   : > { %v2672_v3 = vpop.f32.mrf.mxu1 }
 0x23f   : > { %v12263_v41 = vpop.f32.mrf.mxu3  ;;  %3233 = vst.msk [vmem:[#allocation2 + $0x20] sm:$0xff] %vm599_vm6, %v3222_v48  ;;  %v2700_v35 = vadd.f32 %v2689_v57, %v2672_v3  ;;  %v3988_v57 = vshll.u32 %v10678_v20, 16  ;;  %v3987_v17 = vrot.slane %v3985_v33, 1 }
 0x240   : > { %v2877_v28 = vld [vmem:[#allocation2 + $0x38] sm:$0xff] }
 0x241   : > { %v2888_v19 = vadd.f32 %v2877_v28, %v2858_v44  ;;  %2711 = vst.msk [vmem:[#allocation2 + $0x40] sm:$0xff] %vm599_vm6, %v2700_v35  ;;  %9498 = vmatmul.msk.bf16.vlgmr.msra.gmra.mxu1 %vm535_vm2, %v3974_v7  ;;  %9541 = vmatmul.msk.bf16.vlgmr.msra.gmra.mxu2 %vm535_vm2, %v4163_v26  ;;  %v12280_v8 = vpop.f32.mrf.mxu0  ;;  %v4174_v7 = vshrl.u32 %v10684_v60, 16  ;;  %v4177_v26 = vshll.u32 %v10684_v60, 16  ;;  %v3990_v50 = vrot.slane %v3988_v57, 2  ;;  %v10692_v60 = vld [vmem:[%s11042_s14 + $0xac] sm:$0x30] }
 0x242   : > { %v3065_v9 = vld [vmem:[#allocation2 + $0x30] sm:$0xff] }
 0x243   : > { %v3076_v51 = vadd.f32 %v3065_v9, %v12178_v30  ;;  %2899 = vst.msk [vmem:[#allocation2 + $0x38] sm:$0xff] %vm599_vm6, %v2888_v19  ;;  %v4167_v30 = vrot.slane %v4165_v47, 1  ;;  %v4176_v47 = vrot.slane %v4174_v7, 1  ;;  %v12351_v2 = vor.u32 %v3990_v50, %v3987_v17 }
 0x244   : > { %9585 = vmatmul.msk.bf16.gmra.mxu3 %vm535_vm2, %v4340_v11  ;;  %v3212_v61 = vld [vmem:[#allocation2 + $0x28] sm:$0xff]  ;;  %v2861_v24 = vpop.f32.mrf.mxu2  ;;  %9628 = vmatmul.msk.bf16.gmra.mxu0 %vm535_vm2, %v4487_v46  ;;  %v4488_v11 = vrot.slane %v12329_v52, 2  ;;  %v10679_v46 = vld [vmem:[%s11042_s14 + $0xa4] sm:$0xff]  ;;  %v9539_v52 = vld [vmem:[%s11042_s14 + $0xec] sm:$0xf] }
 0x245   : > { %3087 = vst.msk [vmem:[#allocation2 + $0x30] sm:$0xff] %vm599_vm6, %v3076_v51  ;;  %v3223_v54 = vadd.f32 %v3212_v61, %v12151_v32  ;;  %v9762_v32 = vld [vmem:[%s14280_s1 + $0x38] sm:$0x3]  ;;  %v12304_v15 = vor.u32 %v4170_v37, %v4167_v30 }
 0x246   : > { %v2674_v34 = vpop.f32.mrf.mxu1  ;;  %v5185_v0 = vand.u32 %v9762_v32, %v11031_v36  ;;  %v4489_v51 = vsel %vm3136_vm7, %v4486_v25, %v4488_v11  ;;  %v3354_v32 = vld [vmem:[#allocation2] sm:$0xff] }
 0x247   : > { %v12285_v12 = vpop.f32.mrf.mxu3  ;;  %3234 = vst.msk [vmem:[#allocation2 + $0x28] sm:$0xff] %vm599_vm6, %v3223_v54  ;;  %v2701_v16 = vadd.f32 %v2690_v63, %v2674_v34 }
 0x248   : > { %v2878_v14 = vld [vmem:[#allocation2 + $0x40] sm:$0xff]  ;;  %5194 = vmatpush.bf16.msrb.mxu0 %v5185_v0 }
 0x249   : > { %v2889_v6 = vadd.f32 %v2878_v14, %v2861_v24  ;;  %2712 = vst.msk [vmem:[#allocation2 + $0x48] sm:$0xff] %vm599_vm6, %v2701_v16  ;;  %v3205_v29 = vpop.f32.mrf.mxu0  ;;  %v10685_v0 = vld [vmem:[%s11042_s14 + $0xe4] sm:$0xff] }
 0x24a   : > { %v3066_v49 = vld [vmem:[#allocation2 + $0x38] sm:$0xff] }
 0x24b   : > { %v3077_v38 = vadd.f32 %v3066_v49, %v12203_v39  ;;  %2900 = vst.msk [vmem:[#allocation2 + $0x40] sm:$0xff] %vm599_vm6, %v2889_v6  ;;  %v4172_v39 = vsel %vm1451_vm5, %v12248_v56, %v12304_v15  ;;  %v12382_v29 = vld [vmem:[%s11042_s14 + $0xe4] sm:$0xff] }
 0x24c   : > { %v3213_v23 = vld [vmem:[#allocation2 + $0x30] sm:$0xff]  ;;  %v2863_v53 = vpop.f32.mrf.mxu2 }
 0x24d   : > { %3088 = vst.msk [vmem:[#allocation2 + $0x38] sm:$0xff] %vm599_vm6, %v3077_v38  ;;  %v3224_v10 = vadd.f32 %v3213_v23, %v12172_v62  ;;  %v4342_v62 = vsel %vm3136_vm7, %v4339_v4, %v4341_v21  ;;  %v3997_v38 = vshll.u32 %v10679_v46, 16  ;;  %v4183_v23 = vshrl.u32 %v10685_v0, 16 }
 0x24e   : > { %v2677_v43 = vpop.f32.mrf.mxu1 }
 0x24f   : > { %v3057_v44 = vpop.f32.mrf.mxu3  ;;  %3235 = vst.msk [vmem:[#allocation2 + $0x30] sm:$0xff] %vm599_vm6, %v3224_v10  ;;  %v2702_v48 = vadd.f32 %v2691_v42, %v2677_v43  ;;  %v4490_v43 = vrot.slane %v12382_v29, 2 }
 0x250   : > { %v2879_v55 = vld [vmem:[#allocation2 + $0x48] sm:$0xff] }
 0x251   : > { %v2890_v3 = vadd.f32 %v2879_v55, %v2863_v53  ;;  %2713 = vst.msk [vmem:[#allocation2 + $0x50] sm:$0xff] %vm599_vm6, %v2702_v48  ;;  %9499 = vmatmul.msk.bf16.gmra.mxu1 %vm535_vm2, %v3983_v31  ;;  %9542 = vmatmul.msk.bf16.gmra.mxu2 %vm535_vm2, %v4172_v39  ;;  %v12334_v28 = vpop.f32.mrf.mxu0  ;;  %v4186_v53 = vshll.u32 %v10685_v0, 16  ;;  %v9582_v39 = vld [vmem:[%s11042_s14 + $0xac] sm:$0xf]  ;;  %v3355_v48 = vld [vmem:[#allocation2 + $0x8] sm:$0xff]  ;;  %v4185_v55 = vrot.slane %v4183_v23, 1 }
 0x252   : > { %v3067_v56 = vld [vmem:[#allocation2 + $0x40] sm:$0xff]  ;;  %v9583_v57 = vor.u32 %v10692_v60, %v9582_v39  ;;  %v3357_v23 = vld [vmem:[#allocation2 + $0x18] sm:$0xff] }
 0x253   : > { %v3078_v35 = vadd.f32 %v3067_v56, %v12231_v13  ;;  %2901 = vst.msk [vmem:[#allocation2 + $0x48] sm:$0xff] %vm599_vm6, %v2890_v3  ;;  %v4179_v13 = vrot.slane %v4177_v26, 2 }
 0x254   : > { %9586 = vmatmul.msk.bf16.gmra.mxu3 %vm535_vm2, %v4342_v62  ;;  %v3214_v40 = vld [vmem:[#allocation2 + $0x38] sm:$0xff]  ;;  %v2866_v4 = vpop.f32.mrf.mxu2  ;;  %9629 = vmatmul.msk.bf16.gmra.mxu0 %vm535_vm2, %v4489_v51  ;;  %v4188_v62 = vrot.slane %v4186_v53, 2 }
 0x255   : > { %3089 = vst.msk [vmem:[#allocation2 + $0x40] sm:$0xff] %vm599_vm6, %v3078_v35  ;;  %v3225_v19 = vadd.f32 %v3214_v40, %v12198_v58  ;;  %v12349_v58 = vld [vmem:[%s11042_s14 + $0xa4] sm:$0xff]  ;;  %v12353_v34 = vor.u32 %v4179_v13, %v4176_v47  ;;  %v9496_v40 = vld [vmem:[%s11042_s14 + $0xac] sm:$0xf] }
 0x256   : > { %v2679_v9 = vpop.f32.mrf.mxu1  ;;  %v4343_v27 = vrot.slane %v12349_v58, 2  ;;  %v12405_v35 = vor.u32 %v4188_v62, %v4185_v55 }
 0x257   : > { %v12339_v22 = vpop.f32.mrf.mxu3  ;;  %3236 = vst.msk [vmem:[#allocation2 + $0x38] sm:$0xff] %vm599_vm6, %v3225_v19  ;;  %v4181_v14 = vsel %vm1451_vm5, %v12304_v15, %v12353_v34  ;;  %v12412_v9 = vrot.slane %v9583_v57, 2 }
 0x258   : > { %v2880_v61 = vld [vmem:[#allocation2 + $0x50] sm:$0xff] }
 0x259   : > { %v2891_v24 = vadd.f32 %v2880_v61, %v2866_v4  ;;  %v12358_v30 = vpop.f32.mrf.mxu0  ;;  %v10680_v4 = vld [vmem:[%s11042_s14 + $0xac] sm:$0x30]  ;;  %v3356_v61 = vld [vmem:[#allocation2 + $0x10] sm:$0xff] }
 0x25a   : > { %v3068_v54 = vld [vmem:[#allocation2 + $0x48] sm:$0xff]  ;;  %v9497_v13 = vor.u32 %v10680_v4, %v9496_v40 }
 0x25b   : > { %v3079_v63 = vadd.f32 %v3068_v54, %v12263_v41  ;;  %2902 = vst.msk [vmem:[#allocation2 + $0x50] sm:$0xff] %vm599_vm6, %v2891_v24  ;;  %v3992_v41 = vsel %vm1451_vm5, %v12302_v1, %v12351_v2  ;;  %v3994_v1 = vshrl.u32 %v10679_v46, 16  ;;  %v4190_v54 = vsel %vm1451_vm5, %v12353_v34, %v12405_v35  ;;  %v9625_v34 = vld [vmem:[%s11042_s14 + $0xec] sm:$0xf] }
 0x25c   : > { %v3215_v59 = vld [vmem:[#allocation2 + $0x40] sm:$0xff]  ;;  %v2868_v25 = vpop.f32.mrf.mxu2 }
 0x25d   : > { %3090 = vst.msk [vmem:[#allocation2 + $0x48] sm:$0xff] %vm599_vm6, %v3079_v63  ;;  %v3226_v37 = vadd.f32 %v3215_v59, %v12226_v18  ;;  %v4344_v18 = vsel %vm3136_vm7, %v4341_v21, %v4343_v27  ;;  %v3996_v31 = vrot.slane %v3994_v1, 1 }
 0x25e   : > { %v3325_v16 = vpop.f32.mrf.mxu1 }
 0x25f   : > { %v12370_v6 = vpop.f32.mrf.mxu3  ;;  %3237 = vst.msk [vmem:[#allocation2 + $0x40] sm:$0xff] %vm599_vm6, %v3226_v37  ;;  %v3365_v49 = vadd.f32 %v3354_v32, %v3325_v16  ;;  %v4346_v37 = vsel %vm3136_vm7, %v4343_v27, %v12412_v9  ;;  %v10698_v16 = vld [vmem:[%s11042_s14 + $0xec] sm:$0x30] }
 0x261   : > { %3376 = vst.msk [vmem:[#allocation2] sm:$0xff] %vm599_vm6, %v3365_v49  ;;  %9500 = vmatmul.msk.bf16.gmra.mxu1 %vm535_vm2, %v3992_v41  ;;  %9543 = vmatmul.msk.bf16.gmra.mxu2 %vm535_vm2, %v4181_v14  ;;  %v12386_v20 = vpop.f32.mrf.mxu0  ;;  %v4006_v41 = vshll.u32 %v9497_v13, 16  ;;  %v9626_v49 = vor.u32 %v10698_v16, %v9625_v34  ;;  %v10705_v34 = vld [vmem:[%s11042_s14 + $0xc4] sm:$0xf0] }
 0x262   : > { %v3069_v15 = vld [vmem:[#allocation2 + $0x50] sm:$0xff] }
 0x263   : > { %v3080_v10 = vadd.f32 %v3069_v15, %v12285_v12  ;;  %v3999_v12 = vrot.slane %v3997_v38, 2  ;;  %v4492_v1 = vrot.slane %v9626_v49, 2  ;;  %v4008_v53 = vrot.slane %v4006_v41, 2 }
 0x264   : > { %9587 = vmatmul.msk.bf16.gmra.mxu3 %vm535_vm2, %v4344_v18  ;;  %v3216_v45 = vld [vmem:[#allocation2 + $0x48] sm:$0xff]  ;;  %v3515_v21 = vpop.f32.mrf.mxu2 }
 0x265   : > { %3091 = vst.msk [vmem:[#allocation2 + $0x50] sm:$0xff] %vm599_vm6, %v3080_v10  ;;  %v3227_v42 = vadd.f32 %v3216_v45, %v12253_v5  ;;  %v4491_v5 = vsel %vm3136_vm7, %v4488_v11, %v4490_v43  ;;  %v12403_v26 = vor.u32 %v3999_v12, %v3996_v31  ;;  %v10686_v11 = vld [vmem:[%s11042_s14 + $0xec] sm:$0x30] }
 0x266   : > { %v3327_v44 = vpop.f32.mrf.mxu1  ;;  %9630 = vmatmul.msk.bf16.gmra.mxu0 %vm535_vm2, %v4491_v5  ;;  %v9540_v63 = vor.u32 %v10686_v11, %v9539_v52 }
 0x267   : > { %v12393_v3 = vpop.f32.mrf.mxu3  ;;  %3238 = vst.msk [vmem:[#allocation2 + $0x48] sm:$0xff] %vm599_vm6, %v3227_v42  ;;  %v3366_v33 = vadd.f32 %v3355_v48, %v3327_v44  ;;  %v4001_v24 = vsel %vm1451_vm5, %v12351_v2, %v12403_v26  ;;  %v4003_v2 = vshrl.u32 %v9497_v13, 16 }
 0x268   : > { %v3544_v56 = vld [vmem:[#allocation2] sm:$0xff]  ;;  %v4192_v14 = vshrl.u32 %v9540_v63, 16  ;;  %v4195_v0 = vshll.u32 %v9540_v63, 16 }
 0x269   : > { %v3555_v7 = vadd.f32 %v3544_v56, %v3515_v21  ;;  %3377 = vst.msk [vmem:[#allocation2 + $0x8] sm:$0xff] %vm599_vm6, %v3366_v33  ;;  %v12414_v50 = vpop.f32.mrf.mxu0  ;;  %v4005_v15 = vrot.slane %v4003_v2, 1  ;;  %v3358_v33 = vld [vmem:[#allocation2 + $0x20] sm:$0xff]  ;;  %v9691_v2 = vld [vmem:[%s11042_s14 + $0xc4] sm:$0xc] }
 0x26a   : > { %v4194_v10 = vrot.slane %v4192_v14, 1  ;;  %v4197_v45 = vrot.slane %v4195_v0, 2  ;;  %v10700_v0 = vld [vmem:[%s11042_s14 + $0x8c] sm:$0xff] }
 0x26b   : > { %3566 = vst.msk [vmem:[#allocation2] sm:$0xff] %vm599_vm6, %v3555_v7  ;;  %v12448_v44 = vor.u32 %v4008_v53, %v4005_v15  ;;  %v9692_v15 = vor.u32 %v10705_v34, %v9691_v2  ;;  %v10706_v53 = vld [vmem:[%s11042_s14 + $0xcc] sm:$0xff]  ;;  %v12545_v34 = vld [vmem:[%s11042_s14 + $0x94] sm:$0xff] }
 0x26c   : > { %v3217_v19 = vld [vmem:[#allocation2 + $0x50] sm:$0xff]  ;;  %v3517_v17 = vpop.f32.mrf.mxu2  ;;  %v12450_v48 = vor.u32 %v4197_v45, %v4194_v10 }
 0x26d   : > { %v3228_v47 = vadd.f32 %v3217_v19, %v12280_v8  ;;  %v4010_v56 = vsel %vm1451_vm5, %v12403_v26, %v12448_v44 }
 0x26e   : > { %v3330_v51 = vpop.f32.mrf.mxu1 }
 0x26f   : > { %v12423_v59 = vpop.f32.mrf.mxu3  ;;  %3239 = vst.msk [vmem:[#allocation2 + $0x50] sm:$0xff] %vm599_vm6, %v3228_v47  ;;  %v3367_v25 = vadd.f32 %v3356_v61, %v3330_v51  ;;  %v10711_v47 = vld [vmem:[%s11042_s14 + $0x84] sm:$0xf0]  ;;  %v9648_v61 = vld [vmem:[%s11042_s14 + $0x84] sm:$0xc] }
 0x270   : > { %v3545_v8 = vld [vmem:[#allocation2 + $0x8] sm:$0xff] }
 0x271   : > { %v3556_v46 = vadd.f32 %v3545_v8, %v3517_v17  ;;  %3378 = vst.msk [vmem:[#allocation2 + $0x10] sm:$0xff] %vm599_vm6, %v3367_v25  ;;  %9501 = vmatmul.msk.bf16.gmra.mxu1 %vm535_vm2, %v4001_v24  ;;  %9544 = vmatmul.msk.bf16.gmra.mxu2 %vm535_vm2, %v4190_v54  ;;  %v12438_v27 = vpop.f32.mrf.mxu0  ;;  %v9734_v17 = vld [vmem:[%s11042_s14 + $0x84] sm:$0x8]  ;;  %v9805_v24 = vld [vmem:[%s14280_s1 + $0x3a] sm:$0x3]  ;;  %v12491_v25 = vld [vmem:[%s11042_s14 + $0x8c] sm:$0xff] }
 0x272   : > { %v3733_v32 = vld [vmem:[#allocation2] sm:$0xff]  ;;  %v5332_v63 = vand.u32 %v9805_v24, %v11031_v36  ;;  %v9735_v8 = vor.u32 %v10711_v47, %v9734_v17 }
 0x273   : > { %v3744_v18 = vadd.f32 %v3733_v32, %v12339_v22  ;;  %3567 = vst.msk [vmem:[#allocation2 + $0x8] sm:$0xff] %vm599_vm6, %v3556_v46  ;;  %v4493_v22 = vsel %vm3136_vm7, %v4490_v43, %v4492_v1 }
 0x274   : > { %9588 = vmatmul.msk.bf16.gmra.mxu3 %vm535_vm2, %v4346_v37  ;;  %v3520_v58 = vpop.f32.mrf.mxu2  ;;  %5341 = vmatpush.bf16.msra.mxu1 %v5332_v63  ;;  %v5008_v49 = vrot.slane %v9735_v8, 3 }
 0x275   : > { %3755 = vst.msk [vmem:[#allocation2] sm:$0xff] %vm599_vm6, %v3744_v18  ;;  %v5009_v18 = vrot.slane %v12491_v25, 3 }
 0x276   : > { %v3332_v38 = vpop.f32.mrf.mxu1  ;;  %9631 = vmatmul.msk.bf16.gmra.mxu0 %vm535_vm2, %v4493_v22 }
 0x277   : > { %v12441_v21 = vpop.f32.mrf.mxu3  ;;  %v3368_v42 = vadd.f32 %v3357_v23, %v3332_v38  ;;  %v3360_v23 = vld [vmem:[#allocation2 + $0x30] sm:$0xff] }
 0x278   : > { %v3546_v31 = vld [vmem:[#allocation2 + $0x10] sm:$0xff] }
 0x279   : > { %v3557_v39 = vadd.f32 %v3546_v31, %v3520_v58  ;;  %3379 = vst.msk [vmem:[#allocation2 + $0x18] sm:$0xff] %vm599_vm6, %v3368_v42  ;;  %v12454_v62 = vpop.f32.mrf.mxu0  ;;  %v9836_v42 = vld [vmem:[%s14280_s1 + $0x3c] sm:$0x3] }
 0x27a   : > { %v3734_v60 = vld [vmem:[#allocation2 + $0x8] sm:$0xff] }
 0x27b   : > { %v3745_v12 = vadd.f32 %v3734_v60, %v12370_v6  ;;  %3568 = vst.msk [vmem:[#allocation2 + $0x10] sm:$0xff] %vm599_vm6, %v3557_v39  ;;  %v4199_v6 = vsel %vm1451_vm5, %v12405_v35, %v12450_v48  ;;  %v4639_v39 = vshrl.u32 %v10700_v0, 16  ;;  %v5522_v60 = vand.u32 %v9836_v42, %v11031_v36  ;;  %v3362_v42 = vld [vmem:[#allocation2 + $0x40] sm:$0xff] }
 0x27c   : > { %v3881_v55 = vld [vmem:[#allocation2] sm:$0xff]  ;;  %v3522_v29 = vpop.f32.mrf.mxu2 }
 0x27d   : > { %3756 = vst.msk [vmem:[#allocation2 + $0x8] sm:$0xff] %vm599_vm6, %v3745_v12  ;;  %v3892_v43 = vadd.f32 %v3881_v55, %v12334_v28  ;;  %v5010_v12 = vsel %vm3810_vm9, %v5008_v49, %v5009_v18  ;;  %5531 = vmatpush.bf16.msra.mxu2 %v5522_v60 }
 0x27e   : > { %v3335_v5 = vpop.f32.mrf.mxu1 }
 0x27f   : > { %v12464_v57 = vpop.f32.mrf.mxu3  ;;  %3903 = vst.msk [vmem:[#allocation2] sm:$0xff] %vm599_vm6, %v3892_v43  ;;  %v3369_v7 = vadd.f32 %v3358_v33, %v3335_v5  ;;  %v9765_v43 = vld [vmem:[%s11042_s14 + $0x8] sm:$0x8]  ;;  %v10717_v5 = vld [vmem:[%s11042_s14 + $0x8] sm:$0xf0] }
 0x280   : > { %v3547_v40 = vld [vmem:[#allocation2 + $0x18] sm:$0xff] }
 0x281   : > { %v3558_v4 = vadd.f32 %v3547_v40, %v3522_v29  ;;  %3380 = vst.msk [vmem:[#allocation2 + $0x20] sm:$0xff] %vm599_vm6, %v3369_v7  ;;  %9502 = vmatmul.msk.bf16.gmra.mxu1 %vm535_vm2, %v4010_v56  ;;  %9545 = vmatmul.msk.bf16.gmra.mxu2 %vm535_vm2, %v4199_v6  ;;  %v12474_v11 = vpop.f32.mrf.mxu0  ;;  %v4820_v29 = vshrl.u32 %v9692_v15, 16  ;;  %v4823_v56 = vshll.u32 %v9692_v15, 16  ;;  %v4828_v6 = vshrl.u32 %v10706_v53, 16  ;;  %v12523_v40 = vld [vmem:[%s11042_s14 + $0x10] sm:$0xff] }
 0x282   : > { %v3735_v28 = vld [vmem:[#allocation2 + $0x10] sm:$0xff]  ;;  %v4831_v7 = vshll.u32 %v10706_v53, 16  ;;  %v5156_v17 = vrot.slane %v12523_v40, 3 }
 0x283   : > { %v3746_v26 = vadd.f32 %v3735_v28, %v12393_v3  ;;  %3569 = vst.msk [vmem:[#allocation2 + $0x18] sm:$0xff] %vm599_vm6, %v3558_v4  ;;  %v3359_v3 = vld [vmem:[#allocation2 + $0x28] sm:$0xff]  ;;  %v9766_v4 = vor.u32 %v10717_v5, %v9765_v43  ;;  %v4825_v24 = vrot.slane %v4823_v56, 3 }
 0x284   : > { %9589 = vmatmul.msk.bf16.gmra.mxu3 %vm535_vm2, %v12412_v9  ;;  %v3882_v35 = vld [vmem:[#allocation2 + $0x8] sm:$0xff]  ;;  %v3525_v52 = vpop.f32.mrf.mxu2 }
 0x285   : > { %3757 = vst.msk [vmem:[#allocation2 + $0x10] sm:$0xff] %vm599_vm6, %v3746_v26  ;;  %v3893_v19 = vadd.f32 %v3882_v35, %v12358_v30  ;;  %v10699_v30 = vld [vmem:[%s11042_s14 + $0x84] sm:$0xf0] }
 0x286   : > { %v3337_v13 = vpop.f32.mrf.mxu1  ;;  %9632 = vmatmul.msk.bf16.gmra.mxu0 %vm535_vm2, %v4492_v1  ;;  %v9649_v32 = vor.u32 %v10699_v30, %v9648_v61  ;;  %v3361_v61 = vld [vmem:[#allocation2 + $0x38] sm:$0xff]  ;;  %v4833_v30 = vrot.slane %v4831_v7, 3 }
 0x287   : > { %v12480_v51 = vpop.f32.mrf.mxu3  ;;  %3904 = vst.msk [vmem:[#allocation2 + $0x8] sm:$0xff] %vm599_vm6, %v3893_v19  ;;  %v3370_v9 = vadd.f32 %v3359_v3, %v3337_v13  ;;  %v5155_v19 = vrot.slane %v9766_v4, 3  ;;  %v4641_v13 = vrot.slane %v4639_v39, 2  ;;  %v4822_v3 = vrot.slane %v4820_v29, 2  ;;  %v10707_v39 = vld [vmem:[%s11042_s14 + $0xd4] sm:$0xff] }
 0x288   : > { %v3548_v54 = vld [vmem:[#allocation2 + $0x20] sm:$0xff]  ;;  %v4631_v45 = vshrl.u32 %v9649_v32, 16  ;;  %v4634_v22 = vshll.u32 %v9649_v32, 16  ;;  %v4840_v56 = vshll.u32 %v10707_v39, 16 }
 0x289   : > { %v3559_v37 = vadd.f32 %v3548_v54, %v3525_v52  ;;  %3381 = vst.msk [vmem:[#allocation2 + $0x28] sm:$0xff] %vm599_vm6, %v3370_v9  ;;  %v12500_v58 = vpop.f32.mrf.mxu0  ;;  %v4830_v54 = vrot.slane %v4828_v6, 2  ;;  %v5157_v8 = vsel %vm3810_vm9, %v5155_v19, %v5156_v17  ;;  %v12577_v6 = vld [vmem:[%s11042_s14 + $0x18] sm:$0xff] }
 0x28a   : > { %v3736_v46 = vld [vmem:[#allocation2 + $0x18] sm:$0xff]  ;;  %v4636_v35 = vrot.slane %v4634_v22, 3 }
 0x28b   : > { %v3747_v16 = vadd.f32 %v3736_v46, %v12423_v59  ;;  %3570 = vst.msk [vmem:[#allocation2 + $0x20] sm:$0xff] %vm599_vm6, %v3559_v37  ;;  %v12550_v49 = vor.u32 %v4833_v30, %v4830_v54 }
 0x28c   : > { %v3883_v41 = vld [vmem:[#allocation2 + $0x10] sm:$0xff]  ;;  %v3527_v14 = vpop.f32.mrf.mxu2 }
 0x28d   : > { %3758 = vst.msk [vmem:[#allocation2 + $0x18] sm:$0xff] %vm599_vm6, %v3747_v16  ;;  %v3894_v1 = vadd.f32 %v3883_v41, %v12386_v20  ;;  %v4642_v20 = vshll.u32 %v10700_v0, 16  ;;  %v4826_v0 = vor.u32 %v4825_v24, %v4822_v3  ;;  %v12601_v24 = vld [vmem:[%s11042_s14 + $0x9c] sm:$0xff] }
 0x28e   : > { %v3340_v38 = vpop.f32.mrf.mxu1 }
 0x28f   : > { %v12505_v59 = vpop.f32.mrf.mxu3  ;;  %3905 = vst.msk [vmem:[#allocation2 + $0x10] sm:$0xff] %vm599_vm6, %v3894_v1  ;;  %v3371_v10 = vadd.f32 %v3360_v23, %v3340_v38  ;;  %v5011_v23 = vrot.slane %v12545_v34, 3 }
 0x290   : > { %v3549_v31 = vld [vmem:[#allocation2 + $0x28] sm:$0xff] }
 0x291   : > { %v3560_v55 = vadd.f32 %v3549_v31, %v3527_v14  ;;  %3382 = vst.msk [vmem:[#allocation2 + $0x30] sm:$0xff] %vm599_vm6, %v3371_v10  ;;  %9503 = vmatmul.msk.bf16.gmra.mxu1 %vm535_vm2, %v12448_v44  ;;  %9546 = vmatmul.msk.bf16.gmra.mxu2 %vm535_vm2, %v12450_v48  ;;  %v4633_v48 = vrot.slane %v4631_v45, 2  ;;  %v12528_v52 = vpop.f32.mrf.mxu0  ;;  %v10701_v45 = vld [vmem:[%s11042_s14 + $0x94] sm:$0xff] }
 0x292   : > { %v3737_v33 = vld [vmem:[#allocation2 + $0x20] sm:$0xff]  ;;  %v4648_v29 = vshrl.u32 %v10701_v45, 16  ;;  %v4651_v5 = vshll.u32 %v10701_v45, 16 }
 0x293   : > { %v3748_v28 = vadd.f32 %v3737_v33, %v12441_v21  ;;  %3571 = vst.msk [vmem:[#allocation2 + $0x28] sm:$0xff] %vm599_vm6, %v3560_v55  ;;  %v4644_v21 = vrot.slane %v4642_v20, 3  ;;  %v4637_v41 = vor.u32 %v4636_v35, %v4633_v48  ;;  %v4837_v33 = vshrl.u32 %v10707_v39, 16  ;;  %v3363_v35 = vld [vmem:[#allocation2 + $0x48] sm:$0xff]  ;;  %v12631_v39 = vld [vmem:[%s11042_s14 + $0x20] sm:$0xff] }
 0x294   : > { %9756 = vmatmul.msk.bf16.vlgmr.msrb.gmra.mxu3 %vm535_vm2, %v5010_v12  ;;  %v3884_v44 = vld [vmem:[#allocation2 + $0x18] sm:$0xff]  ;;  %v3530_v26 = vpop.f32.mrf.mxu2  ;;  %v4653_v19 = vrot.slane %v4651_v5, 3 }
 0x295   : > { %3759 = vst.msk [vmem:[#allocation2 + $0x20] sm:$0xff] %vm599_vm6, %v3748_v28  ;;  %v3895_v47 = vadd.f32 %v3884_v44, %v12414_v50  ;;  %v9879_v50 = vld [vmem:[%s14280_s1 + $0x3e] sm:$0x3]  ;;  %v12548_v14 = vor.u32 %v4644_v21, %v4641_v13  ;;  %v5158_v28 = vrot.slane %v12577_v6, 3 }
 0x296   : > { %v3342_v9 = vpop.f32.mrf.mxu1  ;;  %9787 = vmatmul.msk.bf16.vlgmr.msrb.gmra.mxu0 %vm535_vm2, %v5157_v8  ;;  %v5711_v2 = vand.u32 %v9879_v50, %v11031_v36 }
 0x297   : > { %v12533_v63 = vpop.f32.mrf.mxu3  ;;  %3906 = vst.msk [vmem:[#allocation2 + $0x18] sm:$0xff] %vm599_vm6, %v3895_v47  ;;  %v3372_v37 = vadd.f32 %v3361_v61, %v3342_v9  ;;  %v4646_v31 = vsel %vm3431_vm8, %v4637_v41, %v12548_v14  ;;  %v4842_v47 = vrot.slane %v4840_v56, 3  ;;  %v5159_v21 = vsel %vm3810_vm9, %v5156_v17, %v5158_v28 }
 0x298   : > { %v3550_v46 = vld [vmem:[#allocation2 + $0x30] sm:$0xff]  ;;  %5720 = vmatpush.bf16.msra.mxu3 %v5711_v2 }
 0x299   : > { %v3561_v16 = vadd.f32 %v3550_v46, %v3530_v26  ;;  %3383 = vst.msk [vmem:[#allocation2 + $0x38] sm:$0xff] %vm599_vm6, %v3372_v37  ;;  %v12555_v53 = vpop.f32.mrf.mxu0  ;;  %v4650_v26 = vrot.slane %v4648_v29, 2  ;;  %v5013_v46 = vrot.slane %v12601_v24, 3 }
 0x29a   : > { %v3738_v32 = vld [vmem:[#allocation2 + $0x28] sm:$0xff] }
 0x29b   : > { %v3749_v1 = vadd.f32 %v3738_v32, %v12464_v57  ;;  %3572 = vst.msk [vmem:[#allocation2 + $0x30] sm:$0xff] %vm599_vm6, %v3561_v16  ;;  %v4835_v57 = vsel %vm3431_vm8, %v4826_v0, %v12550_v49  ;;  %v12604_v17 = vor.u32 %v4653_v19, %v4650_v26  ;;  %v10702_v32 = vld [vmem:[%s11042_s14 + $0x9c] sm:$0xff] }
 0x29c   : > { %v3885_v15 = vld [vmem:[#allocation2 + $0x20] sm:$0xff]  ;;  %v3532_v38 = vpop.f32.mrf.mxu2  ;;  %v3364_v0 = vld [vmem:[#allocation2 + $0x50] sm:$0xff] }
 0x29d   : > { %3760 = vst.msk [vmem:[#allocation2 + $0x28] sm:$0xff] %vm599_vm6, %v3749_v1  ;;  %v3896_v10 = vadd.f32 %v3885_v15, %v12438_v27  ;;  %v5012_v27 = vsel %vm3810_vm9, %v5009_v18, %v5011_v23  ;;  %v4655_v1 = vsel %vm3431_vm8, %v12548_v14, %v12604_v17  ;;  %v10708_v15 = vld [vmem:[%s11042_s14 + $0xdc] sm:$0xff]  ;;  %v4657_v14 = vshrl.u32 %v10702_v32, 16 }
 0x29e   : > { %v3345_v22 = vpop.f32.mrf.mxu1 }
 0x29f   : > { %v12565_v20 = vpop.f32.mrf.mxu3  ;;  %3907 = vst.msk [vmem:[#allocation2 + $0x20] sm:$0xff] %vm599_vm6, %v3896_v10  ;;  %v3373_v60 = vadd.f32 %v3362_v42, %v3345_v22  ;;  %v4660_v42 = vshll.u32 %v10702_v32, 16  ;;  %v4659_v29 = vrot.slane %v4657_v14, 2 }
 0x2a0   : > { %v3551_v12 = vld [vmem:[#allocation2 + $0x38] sm:$0xff] }
 0x2a1   : > { %v3562_v55 = vadd.f32 %v3551_v12, %v3532_v38  ;;  %3384 = vst.msk [vmem:[#allocation2 + $0x40] sm:$0xff] %vm599_vm6, %v3373_v60  ;;  %9670 = vmatmul.msk.bf16.vlgmr.msrb.gmra.mxu1 %vm535_vm2, %v4646_v31  ;;  %9713 = vmatmul.msk.bf16.vlgmr.msrb.gmra.mxu2 %vm535_vm2, %v4835_v57  ;;  %v12582_v4 = vpop.f32.mrf.mxu0  ;;  %v4846_v31 = vshrl.u32 %v10708_v15, 16  ;;  %v4849_v57 = vshll.u32 %v10708_v15, 16  ;;  %v4662_v5 = vrot.slane %v4660_v42, 3  ;;  %v10716_v15 = vld [vmem:[%s11042_s14 + $0xac] sm:$0x70] }
 0x2a2   : > { %v3739_v43 = vld [vmem:[#allocation2 + $0x30] sm:$0xff] }
 0x2a3   : > { %v3750_v7 = vadd.f32 %v3739_v43, %v12480_v51  ;;  %3573 = vst.msk [vmem:[#allocation2 + $0x38] sm:$0xff] %vm599_vm6, %v3562_v55  ;;  %v4839_v51 = vrot.slane %v4837_v33, 2  ;;  %v4848_v33 = vrot.slane %v4846_v31, 2  ;;  %v12653_v26 = vor.u32 %v4662_v5, %v4659_v29 }
 0x2a4   : > { %9757 = vmatmul.msk.bf16.gmra.mxu3 %vm535_vm2, %v5012_v27  ;;  %v3886_v25 = vld [vmem:[#allocation2 + $0x28] sm:$0xff]  ;;  %v3535_v18 = vpop.f32.mrf.mxu2  ;;  %v5160_v27 = vrot.slane %v12631_v39, 3  ;;  %v9711_v39 = vld [vmem:[%s11042_s14 + $0xec] sm:$0xf] }
 0x2a5   : > { %3761 = vst.msk [vmem:[#allocation2 + $0x30] sm:$0xff] %vm599_vm6, %v3750_v7  ;;  %v3897_v44 = vadd.f32 %v3886_v25, %v12454_v62  ;;  %v9910_v62 = vld [vmem:[%s14280_s1 + $0x40] sm:$0x3]  ;;  %v12606_v30 = vor.u32 %v4842_v47, %v4839_v51 }
 0x2a6   : > { %v3347_v48 = vpop.f32.mrf.mxu1  ;;  %9788 = vmatmul.msk.bf16.gmra.mxu0 %vm535_vm2, %v5159_v21  ;;  %v5844_v61 = vand.u32 %v9910_v62, %v11031_v36  ;;  %v5161_v7 = vsel %vm3810_vm9, %v5158_v28, %v5160_v27  ;;  %v10703_v21 = vld [vmem:[%s11042_s14 + $0xa4] sm:$0xff] }
 0x2a7   : > { %v12587_v13 = vpop.f32.mrf.mxu3  ;;  %3908 = vst.msk [vmem:[#allocation2 + $0x28] sm:$0xff] %vm599_vm6, %v3897_v44  ;;  %v3374_v3 = vadd.f32 %v3363_v35, %v3347_v48  ;;  %v4070_v62 = vld [vmem:[#allocation2] sm:$0xff] }
 0x2a8   : > { %v3552_v9 = vld [vmem:[#allocation2 + $0x40] sm:$0xff]  ;;  %5853 = vmatpush.bf16.msra.mxu0 %v5844_v61 }
 0x2a9   : > { %v3563_v54 = vadd.f32 %v3552_v9, %v3535_v18  ;;  %3385 = vst.msk [vmem:[#allocation2 + $0x48] sm:$0xff] %vm599_vm6, %v3374_v3  ;;  %v3879_v2 = vpop.f32.mrf.mxu0  ;;  %v10709_v61 = vld [vmem:[%s11042_s14 + $0xe4] sm:$0xff] }
 0x2aa   : > { %v3740_v40 = vld [vmem:[#allocation2 + $0x38] sm:$0xff]  ;;  %v12684_v2 = vld [vmem:[%s11042_s14 + $0x28] sm:$0xff] }
 0x2ab   : > { %v3751_v8 = vadd.f32 %v3740_v40, %v12505_v59  ;;  %3574 = vst.msk [vmem:[#allocation2 + $0x40] sm:$0xff] %vm599_vm6, %v3563_v54  ;;  %v4844_v59 = vsel %vm3431_vm8, %v12550_v49, %v12606_v30 }
 0x2ac   : > { %v3887_v37 = vld [vmem:[#allocation2 + $0x30] sm:$0xff]  ;;  %v3537_v50 = vpop.f32.mrf.mxu2 }
 0x2ad   : > { %3762 = vst.msk [vmem:[#allocation2 + $0x38] sm:$0xff] %vm599_vm6, %v3751_v8  ;;  %v3898_v16 = vadd.f32 %v3887_v37, %v12474_v11  ;;  %v5014_v11 = vsel %vm3810_vm9, %v5011_v23, %v5013_v46  ;;  %v4669_v8 = vshll.u32 %v10703_v21, 16  ;;  %v4855_v37 = vshrl.u32 %v10709_v61, 16 }
 0x2ae   : > { %v3350_v41 = vpop.f32.mrf.mxu1 }
 0x2af   : > { %v3731_v38 = vpop.f32.mrf.mxu3  ;;  %3909 = vst.msk [vmem:[#allocation2 + $0x30] sm:$0xff] %vm599_vm6, %v3898_v16  ;;  %v3375_v10 = vadd.f32 %v3364_v0, %v3350_v41  ;;  %v5162_v41 = vrot.slane %v12684_v2, 3 }
 0x2b0   : > { %v3553_v45 = vld [vmem:[#allocation2 + $0x48] sm:$0xff] }
 0x2b1   : > { %v3564_v22 = vadd.f32 %v3553_v45, %v3537_v50  ;;  %3386 = vst.msk [vmem:[#allocation2 + $0x50] sm:$0xff] %vm599_vm6, %v3375_v10  ;;  %9671 = vmatmul.msk.bf16.gmra.mxu1 %vm535_vm2, %v4655_v1  ;;  %9714 = vmatmul.msk.bf16.gmra.mxu2 %vm535_vm2, %v4844_v59  ;;  %v12636_v12 = vpop.f32.mrf.mxu0  ;;  %v4858_v50 = vshll.u32 %v10709_v61, 16  ;;  %v9754_v59 = vld [vmem:[%s11042_s14 + $0xac] sm:$0xf]  ;;  %v4071_v10 = vld [vmem:[#allocation2 + $0x8] sm:$0xff]  ;;  %v4857_v45 = vrot.slane %v4855_v37, 2 }
 0x2b2   : > { %v3741_v49 = vld [vmem:[#allocation2 + $0x40] sm:$0xff]  ;;  %v9755_v42 = vor.u32 %v10716_v15, %v9754_v59  ;;  %v4073_v37 = vld [vmem:[#allocation2 + $0x18] sm:$0xff] }
 0x2b3   : > { %v3752_v60 = vadd.f32 %v3741_v49, %v12533_v63  ;;  %3575 = vst.msk [vmem:[#allocation2 + $0x48] sm:$0xff] %vm599_vm6, %v3564_v22  ;;  %v4851_v63 = vrot.slane %v4849_v57, 3 }
 0x2b4   : > { %9758 = vmatmul.msk.bf16.gmra.mxu3 %vm535_vm2, %v5014_v11  ;;  %v3888_v34 = vld [vmem:[#allocation2 + $0x38] sm:$0xff]  ;;  %v3540_v23 = vpop.f32.mrf.mxu2  ;;  %v4860_v11 = vrot.slane %v4858_v50, 3 }
 0x2b5   : > { %3763 = vst.msk [vmem:[#allocation2 + $0x40] sm:$0xff] %vm599_vm6, %v3752_v60  ;;  %v3899_v55 = vadd.f32 %v3888_v34, %v12500_v58  ;;  %v12651_v58 = vld [vmem:[%s11042_s14 + $0xa4] sm:$0xff]  ;;  %v12655_v48 = vor.u32 %v4851_v63, %v4848_v33  ;;  %v9668_v34 = vld [vmem:[%s11042_s14 + $0xac] sm:$0xf] }
 0x2b6   : > { %v3352_v43 = vpop.f32.mrf.mxu1  ;;  %9789 = vmatmul.msk.bf16.gmra.mxu0 %vm535_vm2, %v5161_v7  ;;  %v5015_v19 = vrot.slane %v12651_v58, 3  ;;  %v12707_v60 = vor.u32 %v4860_v11, %v4857_v45 }
 0x2b7   : > { %v12641_v56 = vpop.f32.mrf.mxu3  ;;  %3910 = vst.msk [vmem:[#allocation2 + $0x38] sm:$0xff] %vm599_vm6, %v3899_v55  ;;  %v4853_v9 = vsel %vm3431_vm8, %v12606_v30, %v12655_v48  ;;  %v12714_v43 = vrot.slane %v9755_v42, 3  ;;  %v4074_v42 = vld [vmem:[#allocation2 + $0x20] sm:$0xff] }
 0x2b8   : > { %v3554_v25 = vld [vmem:[#allocation2 + $0x50] sm:$0xff] }
 0x2b9   : > { %v3565_v18 = vadd.f32 %v3554_v25, %v3540_v23  ;;  %v12660_v51 = vpop.f32.mrf.mxu0  ;;  %v10704_v23 = vld [vmem:[%s11042_s14 + $0xac] sm:$0x70]  ;;  %v4072_v25 = vld [vmem:[#allocation2 + $0x10] sm:$0xff] }
 0x2ba   : > { %v3742_v44 = vld [vmem:[#allocation2 + $0x48] sm:$0xff]  ;;  %v9669_v63 = vor.u32 %v10704_v23, %v9668_v34 }
 0x2bb   : > { %v3753_v35 = vadd.f32 %v3742_v44, %v12565_v20  ;;  %3576 = vst.msk [vmem:[#allocation2 + $0x50] sm:$0xff] %vm599_vm6, %v3565_v18  ;;  %v4664_v20 = vsel %vm3431_vm8, %v12604_v17, %v12653_v26  ;;  %v4666_v17 = vshrl.u32 %v10703_v21, 16  ;;  %v4862_v44 = vsel %vm3431_vm8, %v12655_v48, %v12707_v60  ;;  %v9785_v48 = vld [vmem:[%s11042_s14 + $0x30] sm:$0xf] }
 0x2bc   : > { %v3889_v6 = vld [vmem:[#allocation2 + $0x40] sm:$0xff]  ;;  %v3542_v28 = vpop.f32.mrf.mxu2 }
 0x2bd   : > { %3764 = vst.msk [vmem:[#allocation2 + $0x48] sm:$0xff] %vm599_vm6, %v3753_v35  ;;  %v3900_v47 = vadd.f32 %v3889_v6, %v12528_v52  ;;  %v5016_v52 = vsel %vm3810_vm9, %v5013_v46, %v5015_v19  ;;  %v4668_v1 = vrot.slane %v4666_v17, 2 }
 0x2be   : > { %v4041_v3 = vpop.f32.mrf.mxu1 }
 0x2bf   : > { %v12672_v54 = vpop.f32.mrf.mxu3  ;;  %3911 = vst.msk [vmem:[#allocation2 + $0x40] sm:$0xff] %vm599_vm6, %v3900_v47  ;;  %v4081_v40 = vadd.f32 %v4070_v62, %v4041_v3  ;;  %v5018_v47 = vsel %vm3810_vm9, %v5015_v19, %v12714_v43  ;;  %v10722_v3 = vld [vmem:[%s11042_s14 + $0x30] sm:$0x70] }
 0x2c1   : > { %4092 = vst.msk [vmem:[#allocation2] sm:$0xff] %vm599_vm6, %v4081_v40  ;;  %9672 = vmatmul.msk.bf16.gmra.mxu1 %vm535_vm2, %v4664_v20  ;;  %9715 = vmatmul.msk.bf16.gmra.mxu2 %vm535_vm2, %v4853_v9  ;;  %v12688_v32 = vpop.f32.mrf.mxu0  ;;  %v4678_v20 = vshll.u32 %v9669_v63, 16  ;;  %v9786_v40 = vor.u32 %v10722_v3, %v9785_v48 }
 0x2c2   : > { %v3743_v30 = vld [vmem:[#allocation2 + $0x50] sm:$0xff] }
 0x2c3   : > { %v3754_v16 = vadd.f32 %v3743_v30, %v12587_v13  ;;  %v4671_v13 = vrot.slane %v4669_v8, 3  ;;  %v5164_v17 = vrot.slane %v9786_v40, 3  ;;  %v4680_v50 = vrot.slane %v4678_v20, 3  ;;  %v10729_v40 = vld [vmem:[%s11042_s14 + $0x8] sm:$0xf0] }
 0x2c4   : > { %9759 = vmatmul.msk.bf16.gmra.mxu3 %vm535_vm2, %v5016_v52  ;;  %v3890_v24 = vld [vmem:[#allocation2 + $0x48] sm:$0xff]  ;;  %v4230_v46 = vpop.f32.mrf.mxu2 }
 0x2c5   : > { %3765 = vst.msk [vmem:[#allocation2 + $0x50] sm:$0xff] %vm599_vm6, %v3754_v16  ;;  %v3901_v0 = vadd.f32 %v3890_v24, %v12555_v53  ;;  %v5163_v53 = vsel %vm3810_vm9, %v5160_v27, %v5162_v41  ;;  %v12705_v57 = vor.u32 %v4671_v13, %v4668_v1  ;;  %v10710_v27 = vld [vmem:[%s11042_s14 + $0xec] sm:$0x70] }
 0x2c6   : > { %v4043_v38 = vpop.f32.mrf.mxu1  ;;  %9790 = vmatmul.msk.bf16.gmra.mxu0 %vm535_vm2, %v5163_v53  ;;  %v9712_v35 = vor.u32 %v10710_v27, %v9711_v39  ;;  %v9882_v53 = vld [vmem:[%s11042_s14 + $0x48] sm:$0x8] }
 0x2c7   : > { %v12695_v22 = vpop.f32.mrf.mxu3  ;;  %3912 = vst.msk [vmem:[#allocation2 + $0x48] sm:$0xff] %vm599_vm6, %v3901_v0  ;;  %v4082_v14 = vadd.f32 %v4071_v10, %v4043_v38  ;;  %v4673_v18 = vsel %vm3431_vm8, %v12653_v26, %v12705_v57  ;;  %v4675_v26 = vshrl.u32 %v9669_v63, 16 }
 0x2c8   : > { %v4259_v49 = vld [vmem:[#allocation2] sm:$0xff]  ;;  %v4864_v9 = vshrl.u32 %v9712_v35, 16  ;;  %v4867_v61 = vshll.u32 %v9712_v35, 16 }
 0x2c9   : > { %v4270_v31 = vadd.f32 %v4259_v49, %v4230_v46  ;;  %4093 = vst.msk [vmem:[#allocation2 + $0x8] sm:$0xff] %vm599_vm6, %v4082_v14  ;;  %v12716_v5 = vpop.f32.mrf.mxu0  ;;  %v4677_v30 = vrot.slane %v4675_v26, 2  ;;  %v10735_v14 = vld [vmem:[%s11042_s14 + $0x48] sm:$0xf0] }
 0x2ca   : > { %v4866_v16 = vrot.slane %v4864_v9, 2  ;;  %v4869_v24 = vrot.slane %v4867_v61, 3  ;;  %v9883_v39 = vor.u32 %v10735_v14, %v9882_v53  ;;  %v9839_v61 = vld [vmem:[%s11042_s14 + $0x8] sm:$0x8] }
 0x2cb   : > { %4281 = vst.msk [vmem:[#allocation2] sm:$0xff] %vm599_vm6, %v4270_v31  ;;  %v12750_v38 = vor.u32 %v4680_v50, %v4677_v30 }
 0x2cc   : > { %v3891_v55 = vld [vmem:[#allocation2 + $0x50] sm:$0xff]  ;;  %v4232_v29 = vpop.f32.mrf.mxu2  ;;  %v12752_v10 = vor.u32 %v4869_v24, %v4866_v16  ;;  %v10730_v16 = vld [vmem:[%s11042_s14 + $0x10] sm:$0xff]  ;;  %v9840_v24 = vor.u32 %v10729_v40, %v9839_v61 }
 0x2cd   : > { %v3902_v33 = vadd.f32 %v3891_v55, %v12582_v4  ;;  %v4682_v31 = vsel %vm3431_vm8, %v12705_v57, %v12750_v38  ;;  %v5459_v14 = vshrl.u32 %v10730_v16, 16 }
 0x2ce   : > { %v4046_v7 = vpop.f32.mrf.mxu1  ;;  %v5454_v53 = vshll.u32 %v9840_v24, 16 }
 0x2cf   : > { %v12725_v6 = vpop.f32.mrf.mxu3  ;;  %3913 = vst.msk [vmem:[#allocation2 + $0x50] sm:$0xff] %vm599_vm6, %v3902_v33  ;;  %v4083_v28 = vadd.f32 %v4072_v25, %v4046_v7  ;;  %v5643_v25 = vshll.u32 %v9883_v39, 16 }
 0x2d0   : > { %v4260_v4 = vld [vmem:[#allocation2 + $0x8] sm:$0xff] }
 0x2d1   : > { %v4271_v21 = vadd.f32 %v4260_v4, %v4232_v29  ;;  %4094 = vst.msk [vmem:[#allocation2 + $0x10] sm:$0xff] %vm599_vm6, %v4083_v28  ;;  %9673 = vmatmul.msk.bf16.gmra.mxu1 %vm535_vm2, %v4673_v18  ;;  %9716 = vmatmul.msk.bf16.gmra.mxu2 %vm535_vm2, %v4862_v44  ;;  %v12740_v19 = vpop.f32.mrf.mxu0 }
 0x2d2   : > { %v4406_v62 = vld [vmem:[#allocation2] sm:$0xff] }
 0x2d3   : > { %v4417_v52 = vadd.f32 %v4406_v62, %v12641_v56  ;;  %4282 = vst.msk [vmem:[#allocation2 + $0x8] sm:$0xff] %vm599_vm6, %v4271_v21  ;;  %v5165_v56 = vsel %vm3810_vm9, %v5162_v41, %v5164_v17 }
 0x2d4   : > { %9760 = vmatmul.msk.bf16.gmra.mxu3 %vm535_vm2, %v5018_v47  ;;  %v4235_v58 = vpop.f32.mrf.mxu2  ;;  %v9948_v47 = vld [vmem:[%s14280_s1 + $0x42] sm:$0x3] }
 0x2d5   : > { %4428 = vst.msk [vmem:[#allocation2] sm:$0xff] %vm599_vm6, %v4417_v52  ;;  %v5977_v48 = vand.u32 %v9948_v47, %v11031_v36 }
 0x2d6   : > { %v4048_v8 = vpop.f32.mrf.mxu1  ;;  %9791 = vmatmul.msk.bf16.gmra.mxu0 %vm535_vm2, %v5165_v56 }
 0x2d7   : > { %v12743_v46 = vpop.f32.mrf.mxu3  ;;  %v4084_v0 = vadd.f32 %v4073_v37, %v4048_v8  ;;  %5986 = vmatpush.bf16.msrb.mxu1 %v5977_v48 }
 0x2d8   : > { %v4261_v1 = vld [vmem:[#allocation2 + $0x10] sm:$0xff] }
 0x2d9   : > { %v4272_v59 = vadd.f32 %v4261_v1, %v4235_v58  ;;  %4095 = vst.msk [vmem:[#allocation2 + $0x18] sm:$0xff] %vm599_vm6, %v4084_v0  ;;  %v12756_v45 = vpop.f32.mrf.mxu0  ;;  %v4076_v0 = vld [vmem:[#allocation2 + $0x30] sm:$0xff] }
 0x2da   : > { %v4407_v15 = vld [vmem:[#allocation2 + $0x8] sm:$0xff] }
 0x2db   : > { %v4418_v13 = vadd.f32 %v4407_v15, %v12672_v54  ;;  %4283 = vst.msk [vmem:[#allocation2 + $0x10] sm:$0xff] %vm599_vm6, %v4272_v59  ;;  %v4871_v54 = vsel %vm3431_vm8, %v12707_v60, %v12752_v10  ;;  %v5640_v60 = vshrl.u32 %v9883_v39, 16  ;;  %v9975_v59 = vld [vmem:[%s14280_s1 + $0x44] sm:$0x3] }
 0x2dc   : > { %v4553_v2 = vld [vmem:[#allocation2] sm:$0xff]  ;;  %v4237_v41 = vpop.f32.mrf.mxu2 }
 0x2dd   : > { %4429 = vst.msk [vmem:[#allocation2 + $0x8] sm:$0xff] %vm599_vm6, %v4418_v13  ;;  %v4564_v11 = vadd.f32 %v4553_v2, %v12636_v12  ;;  %v10736_v12 = vld [vmem:[%s11042_s14 + $0x50] sm:$0xff]  ;;  %v5642_v21 = vrot.slane %v5640_v60, 3  ;;  %v6160_v13 = vand.u32 %v9975_v59, %v11031_v36  ;;  %v10737_v2 = vld [vmem:[%s11042_s14 + $0x58] sm:$0xff]  ;;  %v10738_v59 = vld [vmem:[%s11042_s14 + $0x60] sm:$0xff] }
 0x2de   : > { %v4051_v49 = vpop.f32.mrf.mxu1  ;;  %v5648_v18 = vshrl.u32 %v10736_v12, 16  ;;  %v5651_v44 = vshll.u32 %v10736_v12, 16  ;;  %v5660_v12 = vshll.u32 %v10737_v2, 16 }
 0x2df   : > { %v12768_v34 = vpop.f32.mrf.mxu3  ;;  %4575 = vst.msk [vmem:[#allocation2] sm:$0xff] %vm599_vm6, %v4564_v11  ;;  %v4085_v23 = vadd.f32 %v4074_v42, %v4051_v49  ;;  %v5451_v11 = vshrl.u32 %v9840_v24, 16  ;;  %v9808_v42 = vld [vmem:[%s11042_s14 + $0x48] sm:$0x8]  ;;  %6169 = vmatpush.bf16.msrb.mxu2 %v6160_v13  ;;  %v10731_v24 = vld [vmem:[%s11042_s14 + $0x18] sm:$0xff] }
 0x2e0   : > { %v4262_v27 = vld [vmem:[#allocation2 + $0x18] sm:$0xff]  ;;  %v5650_v3 = vrot.slane %v5648_v18, 3  ;;  %v5653_v62 = vrot.slane %v5651_v44, 4  ;;  %v5461_v18 = vrot.slane %v5459_v14, 3  ;;  %v5666_v14 = vshrl.u32 %v10738_v59, 16 }
 0x2e1   : > { %v4273_v55 = vadd.f32 %v4262_v27, %v4237_v41  ;;  %4096 = vst.msk [vmem:[#allocation2 + $0x20] sm:$0xff] %vm599_vm6, %v4085_v23  ;;  %9674 = vmatmul.msk.bf16.gmra.mxu1 %vm535_vm2, %v4682_v31  ;;  %9717 = vmatmul.msk.bf16.gmra.mxu2 %vm535_vm2, %v4871_v54  ;;  %v10723_v31 = vld [vmem:[%s11042_s14 + $0x48] sm:$0xf0]  ;;  %v5462_v54 = vshll.u32 %v10730_v16, 16 }
 0x2e2   : > { %v4408_v57 = vld [vmem:[#allocation2 + $0x10] sm:$0xff]  ;;  %v12796_v8 = vor.u32 %v5653_v62, %v5650_v3 }
 0x2e3   : > { %v4419_v29 = vadd.f32 %v4408_v57, %v12695_v22  ;;  %4284 = vst.msk [vmem:[#allocation2 + $0x18] sm:$0xff] %vm599_vm6, %v4273_v55  ;;  %v12779_v7 = vpop.f32.mrf.mxu0  ;;  %v4075_v22 = vld [vmem:[#allocation2 + $0x28] sm:$0xff]  ;;  %v9809_v57 = vor.u32 %v10723_v31, %v9808_v42  ;;  %v5464_v44 = vrot.slane %v5462_v54, 4 }
 0x2e4   : > { %9761 = vmatmul.msk.bf16.gmra.mxu3 %vm535_vm2, %v12714_v43  ;;  %v4554_v33 = vld [vmem:[#allocation2 + $0x8] sm:$0xff]  ;;  %v4240_v63 = vpop.f32.mrf.mxu2 }
 0x2e5   : > { %4430 = vst.msk [vmem:[#allocation2 + $0x10] sm:$0xff] %vm599_vm6, %v4419_v29  ;;  %v4565_v35 = vadd.f32 %v4554_v33, %v12660_v51  ;;  %v5645_v51 = vrot.slane %v5643_v25, 4  ;;  %v10741_v29 = vld [vmem:[%s11042_s14 + $0xc] sm:$0xff]  ;;  %v4077_v33 = vld [vmem:[#allocation2 + $0x38] sm:$0xff]  ;;  %v5456_v25 = vrot.slane %v5454_v53, 4  ;;  %v10742_v31 = vld [vmem:[%s11042_s14 + $0x14] sm:$0xff] }
 0x2e6   : > { %v4053_v28 = vpop.f32.mrf.mxu1  ;;  %9792 = vmatmul.msk.bf16.gmra.mxu0 %vm535_vm2, %v5164_v17 }
 0x2e7   : > { %v12783_v4 = vpop.f32.mrf.mxu3  ;;  %4576 = vst.msk [vmem:[#allocation2 + $0x8] sm:$0xff] %vm599_vm6, %v4565_v35  ;;  %v4086_v43 = vadd.f32 %v4075_v22, %v4053_v28  ;;  %v5646_v30 = vor.u32 %v5645_v51, %v5642_v21  ;;  %v10018_v22 = vld [vmem:[%s14280_s1 + $0x46] sm:$0x3]  ;;  %v5662_v21 = vrot.slane %v5660_v12, 4  ;;  %v5302_v51 = vrot.slane %v9809_v57, 3 }
 0x2e8   : > { %v4263_v26 = vld [vmem:[#allocation2 + $0x20] sm:$0xff] }
 0x2e9   : > { %v4274_v20 = vadd.f32 %v4263_v26, %v4240_v63  ;;  %4097 = vst.msk [vmem:[#allocation2 + $0x28] sm:$0xff] %vm599_vm6, %v4086_v43  ;;  %v12829_v63 = vld [vmem:[%s11042_s14 + $0x50] sm:$0xff]  ;;  %v6307_v43 = vand.u32 %v10018_v22, %v11031_v36 }
 0x2ea   : > { %v4409_v9 = vld [vmem:[#allocation2 + $0x18] sm:$0xff]  ;;  %v5303_v3 = vrot.slane %v12829_v63, 3 }
 0x2eb   : > { %v4420_v52 = vadd.f32 %v4409_v9, %v12725_v6  ;;  %4285 = vst.msk [vmem:[#allocation2 + $0x20] sm:$0xff] %vm599_vm6, %v4274_v20  ;;  %v12798_v37 = vpop.f32.mrf.mxu0  ;;  %v12841_v20 = vor.u32 %v5464_v44, %v5461_v18  ;;  %6316 = vmatpush.bf16.msrb.mxu3 %v6307_v43 }
 0x2ec   : > { %v4555_v58 = vld [vmem:[#allocation2 + $0x10] sm:$0xff]  ;;  %v4242_v17 = vpop.f32.mrf.mxu2  ;;  %v5304_v16 = vsel %vm3810_vm9, %v5302_v51, %v5303_v3  ;;  %v10732_v51 = vld [vmem:[%s11042_s14 + $0x20] sm:$0xff] }
 0x2ed   : > { %4431 = vst.msk [vmem:[#allocation2 + $0x18] sm:$0xff] %vm599_vm6, %v4420_v52  ;;  %v4566_v50 = vadd.f32 %v4555_v58, %v12688_v32  ;;  %v5655_v32 = vsel %vm5449_vm10, %v5646_v30, %v12796_v8 }
 0x2ee   : > { %v4056_v56 = vpop.f32.mrf.mxu1 }
 0x2ef   : > { %v12803_v1 = vpop.f32.mrf.mxu3  ;;  %4577 = vst.msk [vmem:[#allocation2 + $0x10] sm:$0xff] %vm599_vm6, %v4566_v50  ;;  %v4087_v6 = vadd.f32 %v4076_v0, %v4056_v56  ;;  %v4078_v50 = vld [vmem:[#allocation2 + $0x40] sm:$0xff] }
 0x2f0   : > { %v4264_v15 = vld [vmem:[#allocation2 + $0x28] sm:$0xff] }
 0x2f1   : > { %v4275_v41 = vadd.f32 %v4264_v15, %v4242_v17  ;;  %4098 = vst.msk [vmem:[#allocation2 + $0x30] sm:$0xff] %vm599_vm6, %v4087_v6  ;;  %9675 = vmatmul.msk.bf16.gmra.mxu1 %vm535_vm2, %v12750_v38  ;;  %9718 = vmatmul.msk.bf16.gmra.mxu2 %vm535_vm2, %v12752_v10  ;;  %v5657_v10 = vshrl.u32 %v10737_v2, 16  ;;  %v5471_v2 = vshll.u32 %v10731_v24, 16 }
 0x2f2   : > { %v4410_v49 = vld [vmem:[#allocation2 + $0x20] sm:$0xff] }
 0x2f3   : > { %v4421_v23 = vadd.f32 %v4410_v49, %v12743_v46  ;;  %4286 = vst.msk [vmem:[#allocation2 + $0x28] sm:$0xff] %vm599_vm6, %v4275_v41  ;;  %v12823_v27 = vpop.f32.mrf.mxu0  ;;  %v5453_v46 = vrot.slane %v5451_v11, 3  ;;  %v5659_v47 = vrot.slane %v5657_v10, 3  ;;  %v5669_v49 = vshll.u32 %v10738_v59, 16  ;;  %v12922_v59 = vld [vmem:[%s11042_s14 + $0x60] sm:$0xff] }
 0x2f4   : > { %9904 = vmatmul.msk.bf16.vlgmr.msra.gmra.mxu3 %vm535_vm2, %v5655_v32  ;;  %v4556_v38 = vld [vmem:[#allocation2 + $0x18] sm:$0xff]  ;;  %v4245_v39 = vpop.f32.mrf.mxu2  ;;  %v5468_v32 = vshrl.u32 %v10731_v24, 16 }
 0x2f5   : > { %4432 = vst.msk [vmem:[#allocation2 + $0x20] sm:$0xff] %vm599_vm6, %v4421_v23  ;;  %v4567_v55 = vadd.f32 %v4556_v38, %v12716_v5  ;;  %v5457_v62 = vor.u32 %v5456_v25, %v5453_v46  ;;  %v12845_v52 = vor.u32 %v5662_v21, %v5659_v47  ;;  %v4079_v23 = vld [vmem:[#allocation2 + $0x48] sm:$0xff]  ;;  %v12876_v38 = vld [vmem:[%s11042_s14 + $0x58] sm:$0xff] }
 0x2f6   : > { %v4058_v60 = vpop.f32.mrf.mxu1  ;;  %9931 = vmatmul.msk.bf16.vlgmr.msra.gmra.mxu0 %vm535_vm2, %v10741_v29  ;;  %v5668_v29 = vrot.slane %v5666_v14, 3  ;;  %v5305_v25 = vrot.slane %v12876_v38, 3 }
 0x2f7   : > { %v12831_v35 = vpop.f32.mrf.mxu3  ;;  %4578 = vst.msk [vmem:[#allocation2 + $0x18] sm:$0xff] %vm599_vm6, %v4567_v55  ;;  %v4088_v28 = vadd.f32 %v4077_v33, %v4058_v60  ;;  %v10061_v55 = vld [vmem:[%s14280_s1 + $0x48] sm:$0x3]  ;;  %v5671_v60 = vrot.slane %v5669_v49, 4 }
 0x2f8   : > { %v4265_v5 = vld [vmem:[#allocation2 + $0x30] sm:$0xff] }
 0x2f9   : > { %v4276_v26 = vadd.f32 %v4265_v5, %v4245_v39  ;;  %4099 = vst.msk [vmem:[#allocation2 + $0x38] sm:$0xff] %vm599_vm6, %v4088_v28  ;;  %v5473_v39 = vrot.slane %v5471_v2, 4  ;;  %v12892_v5 = vor.u32 %v5671_v60, %v5668_v29 }
 0x2fa   : > { %v4411_v48 = vld [vmem:[#allocation2 + $0x28] sm:$0xff] }
 0x2fb   : > { %v4422_v9 = vadd.f32 %v4411_v48, %v12768_v34  ;;  %4287 = vst.msk [vmem:[#allocation2 + $0x30] sm:$0xff] %vm599_vm6, %v4276_v26  ;;  %v12847_v58 = vpop.f32.mrf.mxu0  ;;  %v5466_v34 = vsel %vm5449_vm10, %v5457_v62, %v12841_v20  ;;  %v4080_v26 = vld [vmem:[#allocation2 + $0x50] sm:$0xff] }
 0x2fc   : > { %v4557_v61 = vld [vmem:[#allocation2 + $0x20] sm:$0xff]  ;;  %v4247_v40 = vpop.f32.mrf.mxu2 }
 0x2fd   : > { %4433 = vst.msk [vmem:[#allocation2 + $0x28] sm:$0xff] %vm599_vm6, %v4422_v9  ;;  %v4568_v17 = vadd.f32 %v4557_v61, %v12740_v19  ;;  %v5664_v19 = vsel %vm5449_vm10, %v12796_v8, %v12845_v52 }
 0x2fe   : > { %v4061_v30 = vpop.f32.mrf.mxu1 }
 0x2ff   : > { %v12857_v56 = vpop.f32.mrf.mxu3  ;;  %4579 = vst.msk [vmem:[#allocation2 + $0x20] sm:$0xff] %vm599_vm6, %v4568_v17  ;;  %v4089_v0 = vadd.f32 %v4078_v50, %v4061_v30 }
 0x300   : > { %v4266_v6 = vld [vmem:[#allocation2 + $0x38] sm:$0xff] }
 0x301   : > { %v4277_v15 = vadd.f32 %v4266_v6, %v4247_v40  ;;  %4100 = vst.msk [vmem:[#allocation2 + $0x40] sm:$0xff] %vm599_vm6, %v4089_v0  ;;  %9830 = vmatmul.msk.bf16.vlgmr.msra.gmra.mxu1 %vm535_vm2, %v5304_v16  ;;  %9861 = vmatmul.msk.bf16.vlgmr.msra.gmra.mxu2 %vm535_vm2, %v5466_v34  ;;  %v10739_v40 = vld [vmem:[%s11042_s14 + $0x68] sm:$0xff]  ;;  %v10743_v6 = vld [vmem:[%s11042_s14 + $0x1c] sm:$0xff] }
 0x302   : > { %v4412_v13 = vld [vmem:[#allocation2 + $0x30] sm:$0xff]  ;;  %v5675_v34 = vshrl.u32 %v10739_v40, 16  ;;  %v5678_v24 = vshll.u32 %v10739_v40, 16 }
 0x303   : > { %v4423_v41 = vadd.f32 %v4412_v13, %v12783_v4  ;;  %4288 = vst.msk [vmem:[#allocation2 + $0x38] sm:$0xff] %vm599_vm6, %v4277_v15  ;;  %v12870_v53 = vpop.f32.mrf.mxu0  ;;  %v5470_v4 = vrot.slane %v5468_v32, 3 }
 0x304   : > { %9905 = vmatmul.msk.bf16.gmra.mxu3 %vm535_vm2, %v5664_v19  ;;  %v4558_v8 = vld [vmem:[#allocation2 + $0x28] sm:$0xff]  ;;  %v4250_v11 = vpop.f32.mrf.mxu2  ;;  %v5677_v2 = vrot.slane %v5675_v34, 3  ;;  %v4744_v34 = vld [vmem:[#allocation2 + $0x10] sm:$0xff] }
 0x305   : > { %4434 = vst.msk [vmem:[#allocation2 + $0x30] sm:$0xff] %vm599_vm6, %v4423_v41  ;;  %v4569_v42 = vadd.f32 %v4558_v8, %v12756_v45  ;;  %v6454_v45 = vand.u32 %v10061_v55, %v11031_v36  ;;  %v12888_v18 = vor.u32 %v5473_v39, %v5470_v4  ;;  %v5680_v41 = vrot.slane %v5678_v24, 4 }
 0x306   : > { %v4063_v54 = vpop.f32.mrf.mxu1  ;;  %9932 = vmatmul.msk.bf16.gmra.mxu0 %vm535_vm2, %v10742_v31 }
 0x307   : > { %v12878_v10 = vpop.f32.mrf.mxu3  ;;  %4580 = vst.msk [vmem:[#allocation2 + $0x28] sm:$0xff] %vm599_vm6, %v4569_v42  ;;  %v4090_v12 = vadd.f32 %v4079_v23, %v4063_v54  ;;  %6463 = vmatpush.bf16.msrb.mxu0 %v6454_v45  ;;  %v5475_v48 = vsel %vm5449_vm10, %v12841_v20, %v12888_v18  ;;  %v5480_v20 = vshll.u32 %v10732_v51, 16  ;;  %v5681_v54 = vor.u32 %v5680_v41, %v5677_v2 }
 0x308   : > { %v4267_v57 = vld [vmem:[#allocation2 + $0x40] sm:$0xff] }
 0x309   : > { %v4278_v33 = vadd.f32 %v4267_v57, %v4250_v11  ;;  %4101 = vst.msk [vmem:[#allocation2 + $0x48] sm:$0xff] %vm599_vm6, %v4090_v12  ;;  %v4742_v12 = vld [vmem:[#allocation2] sm:$0xff]  ;;  %v5682_v60 = vsel %vm5449_vm10, %v12892_v5, %v5681_v54 }
 0x30a   : > { %v4413_v46 = vld [vmem:[#allocation2 + $0x38] sm:$0xff]  ;;  %v10733_v57 = vld [vmem:[%s11042_s14 + $0x28] sm:$0xff] }
 0x30b   : > { %v4424_v44 = vadd.f32 %v4413_v46, %v12803_v1  ;;  %4289 = vst.msk [vmem:[#allocation2 + $0x40] sm:$0xff] %vm599_vm6, %v4278_v33  ;;  %v4551_v43 = vpop.f32.mrf.mxu0  ;;  %v5306_v1 = vsel %vm3810_vm9, %v5303_v3, %v5305_v25  ;;  %v5477_v3 = vshrl.u32 %v10732_v51, 16  ;;  %v10740_v33 = vld [vmem:[%s11042_s14 + $0x70] sm:$0xff]  ;;  %v5486_v38 = vshrl.u32 %v10733_v57, 16 }
 0x30c   : > { %v4559_v28 = vld [vmem:[#allocation2 + $0x30] sm:$0xff]  ;;  %v4252_v22 = vpop.f32.mrf.mxu2  ;;  %v5489_v46 = vshll.u32 %v10733_v57, 16 }
 0x30d   : > { %4435 = vst.msk [vmem:[#allocation2 + $0x38] sm:$0xff] %vm599_vm6, %v4424_v44  ;;  %v4570_v47 = vadd.f32 %v4559_v28, %v12779_v7  ;;  %v5673_v7 = vsel %vm5449_vm10, %v12845_v52, %v12892_v5  ;;  %v5479_v15 = vrot.slane %v5477_v3, 3  ;;  %v5687_v5 = vshll.u32 %v10740_v33, 16 }
 0x30e   : > { %v4066_v21 = vpop.f32.mrf.mxu1  ;;  %v5491_v51 = vrot.slane %v5489_v46, 4 }
 0x30f   : > { %v4404_v62 = vpop.f32.mrf.mxu3  ;;  %4581 = vst.msk [vmem:[#allocation2 + $0x30] sm:$0xff] %vm599_vm6, %v4570_v47  ;;  %v4091_v9 = vadd.f32 %v4080_v26, %v4066_v21  ;;  %v10744_v47 = vld [vmem:[%s11042_s14 + $0x24] sm:$0xff]  ;;  %v4743_v26 = vld [vmem:[#allocation2 + $0x8] sm:$0xff] }
 0x310   : > { %v4268_v61 = vld [vmem:[#allocation2 + $0x48] sm:$0xff] }
 0x311   : > { %v4279_v17 = vadd.f32 %v4268_v61, %v4252_v22  ;;  %4102 = vst.msk [vmem:[#allocation2 + $0x50] sm:$0xff] %vm599_vm6, %v4091_v9  ;;  %9831 = vmatmul.msk.bf16.gmra.mxu1 %vm535_vm2, %v5306_v1  ;;  %9862 = vmatmul.msk.bf16.gmra.mxu2 %vm535_vm2, %v5475_v48  ;;  %v5684_v22 = vshrl.u32 %v10740_v33, 16  ;;  %v12958_v1 = vld [vmem:[%s11042_s14 + $0x68] sm:$0xff]  ;;  %v5488_v48 = vrot.slane %v5486_v38, 3 }
 0x312   : > { %v4414_v63 = vld [vmem:[#allocation2 + $0x40] sm:$0xff] }
 0x313   : > { %v4425_v30 = vadd.f32 %v4414_v63, %v12831_v35  ;;  %4290 = vst.msk [vmem:[#allocation2 + $0x48] sm:$0xff] %vm599_vm6, %v4279_v17  ;;  %v12916_v16 = vpop.f32.mrf.mxu0  ;;  %v5482_v35 = vrot.slane %v5480_v20, 4  ;;  %v5686_v61 = vrot.slane %v5684_v22, 3  ;;  %v5492_v17 = vor.u32 %v5491_v51, %v5488_v48  ;;  %v4746_v22 = vld [vmem:[#allocation2 + $0x20] sm:$0xff] }
 0x314   : > { %9906 = vmatmul.msk.bf16.gmra.mxu3 %vm535_vm2, %v5673_v7  ;;  %v4560_v52 = vld [vmem:[#allocation2 + $0x38] sm:$0xff]  ;;  %v4255_v50 = vpop.f32.mrf.mxu2  ;;  %v5689_v7 = vrot.slane %v5687_v5, 4 }
 0x315   : > { %4436 = vst.msk [vmem:[#allocation2 + $0x40] sm:$0xff] %vm599_vm6, %v4425_v30  ;;  %v4571_v0 = vadd.f32 %v4560_v52, %v12798_v37  ;;  %v5307_v37 = vrot.slane %v12922_v59, 3  ;;  %v5483_v14 = vor.u32 %v5482_v35, %v5479_v15 }
 0x316   : > { %v4068_v19 = vpop.f32.mrf.mxu1  ;;  %9933 = vmatmul.msk.bf16.gmra.mxu0 %vm535_vm2, %v10743_v6  ;;  %v12967_v20 = vor.u32 %v5689_v7, %v5686_v61  ;;  %v10734_v6 = vld [vmem:[%s11042_s14 + $0x30] sm:$0xff] }
 0x317   : > { %v12924_v13 = vpop.f32.mrf.mxu3  ;;  %4582 = vst.msk [vmem:[#allocation2 + $0x38] sm:$0xff] %vm599_vm6, %v4571_v0  ;;  %v5308_v55 = vsel %vm3810_vm9, %v5305_v25, %v5307_v37  ;;  %v5493_v0 = vsel %vm5449_vm10, %v5483_v14, %v5492_v17  ;;  %v5495_v2 = vshrl.u32 %v10734_v6, 16  ;;  %v5498_v41 = vshll.u32 %v10734_v6, 16 }
 0x318   : > { %v4269_v32 = vld [vmem:[#allocation2 + $0x50] sm:$0xff]  ;;  %v5691_v35 = vsel %vm5449_vm10, %v5681_v54, %v12967_v20  ;;  %v4745_v54 = vld [vmem:[#allocation2 + $0x18] sm:$0xff] }
 0x319   : > { %v4280_v8 = vadd.f32 %v4269_v32, %v4255_v50 }
 0x31a   : > { %v4415_v11 = vld [vmem:[#allocation2 + $0x48] sm:$0xff] }
 0x31b   : > { %v4426_v49 = vadd.f32 %v4415_v11, %v12857_v56  ;;  %4291 = vst.msk [vmem:[#allocation2 + $0x50] sm:$0xff] %vm599_vm6, %v4280_v8  ;;  %v12931_v23 = vpop.f32.mrf.mxu0  ;;  %v5484_v56 = vsel %vm5449_vm10, %v12888_v18, %v5483_v14  ;;  %v9828_v11 = vld [vmem:[%s11042_s14 + $0x70] sm:$0xf] }
 0x31c   : > { %v4561_v42 = vld [vmem:[#allocation2 + $0x40] sm:$0xff]  ;;  %v4257_v31 = vpop.f32.mrf.mxu2 }
 0x31d   : > { %4437 = vst.msk [vmem:[#allocation2 + $0x48] sm:$0xff] %vm599_vm6, %v4426_v49  ;;  %v4572_v4 = vadd.f32 %v4561_v42, %v12823_v27  ;;  %v10745_v42 = vld [vmem:[%s11042_s14 + $0x2c] sm:$0xff] }
 0x31e   : > { %v4713_v39 = vpop.f32.mrf.mxu1 }
 0x31f   : > { %v12941_v45 = vpop.f32.mrf.mxu3  ;;  %4583 = vst.msk [vmem:[#allocation2 + $0x40] sm:$0xff] %vm599_vm6, %v4572_v4  ;;  %v4753_v29 = vadd.f32 %v4742_v12, %v4713_v39  ;;  %v5497_v39 = vrot.slane %v5495_v2, 3  ;;  %v5500_v12 = vrot.slane %v5498_v41, 4 }
 0x321   : > { %4764 = vst.msk [vmem:[#allocation2] sm:$0xff] %vm599_vm6, %v4753_v29  ;;  %9832 = vmatmul.msk.bf16.gmra.mxu1 %vm535_vm2, %v5308_v55  ;;  %9863 = vmatmul.msk.bf16.gmra.mxu2 %vm535_vm2, %v5484_v56  ;;  %v12998_v33 = vor.u32 %v5500_v12, %v5497_v39  ;;  %v10064_v39 = vld [vmem:[%s11042_s14 + $0xc8] sm:$0x8]  ;;  %v10763_v12 = vld [vmem:[%s11042_s14 + $0xc8] sm:$0xf0] }
 0x322   : > { %v4416_v27 = vld [vmem:[#allocation2 + $0x50] sm:$0xff] }
 0x323   : > { %v4427_v25 = vadd.f32 %v4416_v27, %v12878_v10  ;;  %v12952_v28 = vpop.f32.mrf.mxu0 }
 0x324   : > { %9907 = vmatmul.msk.bf16.gmra.mxu3 %vm535_vm2, %v5682_v60  ;;  %v4562_v18 = vld [vmem:[#allocation2 + $0x48] sm:$0xff]  ;;  %v4902_v44 = vpop.f32.mrf.mxu2 }
 0x325   : > { %4438 = vst.msk [vmem:[#allocation2 + $0x50] sm:$0xff] %vm599_vm6, %v4427_v25  ;;  %v4573_v43 = vadd.f32 %v4562_v18, %v12847_v58  ;;  %v5309_v58 = vrot.slane %v12958_v1, 3  ;;  %v5794_v1 = vld [vmem:[%s11042_s14 + $0x34] sm:$0xf] }
 0x326   : > { %v4715_v21 = vpop.f32.mrf.mxu1  ;;  %9934 = vmatmul.msk.bf16.gmra.mxu0 %vm535_vm2, %v10744_v47  ;;  %v5818_v51 = vunpack.c.l.b16 %v5794_v1 }
 0x327   : > { %v12960_v10 = vpop.f32.mrf.mxu3  ;;  %4584 = vst.msk [vmem:[#allocation2 + $0x48] sm:$0xff] %vm599_vm6, %v4573_v43  ;;  %v4754_v62 = vadd.f32 %v4743_v26, %v4715_v21  ;;  %v5310_v24 = vsel %vm3810_vm9, %v5307_v37, %v5309_v58  ;;  %v10728_v37 = vld [vmem:[%s11042_s14 + $0x70] sm:$0x70]  ;;  %v5502_v43 = vsel %vm5449_vm10, %v5492_v17, %v12998_v33  ;;  %v10757_v17 = vld [vmem:[%s11042_s14 + $0x88] sm:$0xf0] }
 0x328   : > { %v4931_v9 = vld [vmem:[#allocation2] sm:$0xff]  ;;  %v9829_v4 = vor.u32 %v10728_v37, %v9828_v11  ;;  %v4748_v11 = vld [vmem:[#allocation2 + $0x30] sm:$0xff] }
 0x329   : > { %v4942_v40 = vadd.f32 %v4931_v9, %v4902_v44  ;;  %4765 = vst.msk [vmem:[#allocation2 + $0x8] sm:$0xff] %vm599_vm6, %v4754_v62  ;;  %v10751_v37 = vld [vmem:[%s11042_s14 + $0xc] sm:$0xff] }
 0x32a   : > { %v12996_v60 = vrot.slane %v9829_v4, 3 }
 0x32b   : > { %4953 = vst.msk [vmem:[#allocation2] sm:$0xff] %vm599_vm6, %v4942_v40  ;;  %v12969_v30 = vpop.f32.mrf.mxu0  ;;  %v5824_v40 = vpack.c.b16 %v5818_v51, %v5818_v51 }
 0x32c   : > { %v4563_v63 = vld [vmem:[#allocation2 + $0x50] sm:$0xff]  ;;  %v4904_v3 = vpop.f32.mrf.mxu2  ;;  %v5312_v5 = vsel %vm3810_vm9, %v5309_v58, %v12996_v60  ;;  %v10021_v58 = vld [vmem:[%s11042_s14 + $0x88] sm:$0x8] }
 0x32d   : > { %v4574_v52 = vadd.f32 %v4563_v63, %v12870_v53 }
 0x32e   : > { %v4718_v50 = vpop.f32.mrf.mxu1 }
 0x32f   : > { %v12975_v19 = vpop.f32.mrf.mxu3  ;;  %4585 = vst.msk [vmem:[#allocation2 + $0x50] sm:$0xff] %vm599_vm6, %v4574_v52  ;;  %v4755_v59 = vadd.f32 %v4744_v34, %v4718_v50  ;;  %v10104_v52 = vld [vmem:[%s14280_s1 + $0x4a] sm:$0x3] }
 0x330   : > { %v4932_v15 = vld [vmem:[#allocation2 + $0x8] sm:$0xff]  ;;  %v6643_v34 = vand.u32 %v10104_v52, %v11031_v36 }
 0x331   : > { %v4943_v53 = vadd.f32 %v4932_v15, %v4904_v3  ;;  %4766 = vst.msk [vmem:[#allocation2 + $0x10] sm:$0xff] %vm599_vm6, %v4755_v59  ;;  %9833 = vmatmul.msk.bf16.gmra.mxu1 %vm535_vm2, %v5310_v24  ;;  %9864 = vmatmul.msk.bf16.gmra.mxu2 %vm535_vm2, %v5493_v0  ;;  %v10022_v24 = vor.u32 %v10757_v17, %v10021_v58 }
 0x332   : > { %v5078_v32 = vld [vmem:[#allocation2] sm:$0xff]  ;;  %6652 = vmatpush.bf16.msra.mxu1 %v6643_v34 }
 0x333   : > { %v5089_v8 = vadd.f32 %v5078_v32, %v12924_v13  ;;  %4954 = vst.msk [vmem:[#allocation2 + $0x8] sm:$0xff] %vm599_vm6, %v4943_v53  ;;  %v12988_v49 = vpop.f32.mrf.mxu0  ;;  %v6277_v53 = vrot.slane %v10022_v24, 3  ;;  %v10746_v34 = vld [vmem:[%s11042_s14 + $0x4c] sm:$0xff] }
 0x334   : > { %9908 = vmatmul.msk.bf16.gmra.mxu3 %vm535_vm2, %v5691_v35  ;;  %v4907_v14 = vpop.f32.mrf.mxu2 }
 0x335   : > { %5100 = vst.msk [vmem:[#allocation2] sm:$0xff] %vm599_vm6, %v5089_v8 }
 0x336   : > { %v4720_v31 = vpop.f32.mrf.mxu1  ;;  %9935 = vmatmul.msk.bf16.gmra.mxu0 %vm535_vm2, %v10745_v42  ;;  %v10147_v42 = vld [vmem:[%s14280_s1 + $0x4c] sm:$0x3] }
 0x337   : > { %v12992_v55 = vpop.f32.mrf.mxu3  ;;  %v4756_v13 = vadd.f32 %v4745_v54, %v4720_v31  ;;  %v6832_v54 = vand.u32 %v10147_v42, %v11031_v36 }
 0x338   : > { %v4933_v56 = vld [vmem:[#allocation2 + $0x10] sm:$0xff] }
 0x339   : > { %v4944_v57 = vadd.f32 %v4933_v56, %v4907_v14  ;;  %4767 = vst.msk [vmem:[#allocation2 + $0x18] sm:$0xff] %vm599_vm6, %v4756_v13  ;;  %v13065_v56 = vld [vmem:[%s11042_s14 + $0x14] sm:$0xff]  ;;  %6841 = vmatpush.bf16.msra.mxu2 %v6832_v54 }
 0x33a   : > { %v5079_v29 = vld [vmem:[#allocation2 + $0x8] sm:$0xff] }
 0x33b   : > { %v5090_v27 = vadd.f32 %v5079_v29, %v12941_v45  ;;  %4955 = vst.msk [vmem:[#allocation2 + $0x10] sm:$0xff] %vm599_vm6, %v4944_v57  ;;  %v13002_v25 = vpop.f32.mrf.mxu0  ;;  %v6097_v57 = vshll.u32 %v10751_v37, 16  ;;  %v13068_v29 = vld [vmem:[%s11042_s14 + $0xd0] sm:$0xff] }
 0x33c   : > { %v5225_v38 = vld [vmem:[#allocation2] sm:$0xff]  ;;  %v4909_v46 = vpop.f32.mrf.mxu2  ;;  %v4751_v54 = vld [vmem:[#allocation2 + $0x48] sm:$0xff] }
 0x33d   : > { %5101 = vst.msk [vmem:[#allocation2 + $0x8] sm:$0xff] %vm599_vm6, %v5090_v27  ;;  %v5236_v18 = vadd.f32 %v5225_v38, %v12916_v16  ;;  %v10065_v27 = vor.u32 %v10763_v12, %v10064_v39 }
 0x33e   : > { %v4723_v44 = vpop.f32.mrf.mxu1 }
 0x33f   : > { %v13010_v45 = vpop.f32.mrf.mxu3  ;;  %5247 = vst.msk [vmem:[#allocation2] sm:$0xff] %vm599_vm6, %v5236_v18  ;;  %v4757_v47 = vadd.f32 %v4746_v22, %v4723_v44  ;;  %v6425_v44 = vrot.slane %v13068_v29, 3 }
 0x340   : > { %v4934_v21 = vld [vmem:[#allocation2 + $0x18] sm:$0xff] }
 0x341   : > { %v4945_v26 = vadd.f32 %v4934_v21, %v4909_v46  ;;  %4768 = vst.msk [vmem:[#allocation2 + $0x20] sm:$0xff] %vm599_vm6, %v4757_v47  ;;  %9834 = vmatmul.msk.bf16.gmra.mxu1 %vm535_vm2, %v5312_v5  ;;  %9865 = vmatmul.msk.bf16.gmra.mxu2 %vm535_vm2, %v5502_v43  ;;  %v4749_v43 = vld [vmem:[#allocation2 + $0x38] sm:$0xff]  ;;  %v6095_v47 = vshrl.u32 %v10751_v37, 16  ;;  %v6102_v21 = vshll.u32 %v13065_v56, 16 }
 0x342   : > { %v5080_v16 = vld [vmem:[#allocation2 + $0x10] sm:$0xff] }
 0x343   : > { %v5091_v48 = vadd.f32 %v5080_v16, %v12960_v10  ;;  %4956 = vst.msk [vmem:[#allocation2 + $0x18] sm:$0xff] %vm599_vm6, %v4945_v26  ;;  %v13021_v61 = vpop.f32.mrf.mxu0  ;;  %v4747_v10 = vld [vmem:[#allocation2 + $0x28] sm:$0xff]  ;;  %v6104_v58 = vrot.slane %v6102_v21, 1  ;;  %v4752_v21 = vld [vmem:[#allocation2 + $0x50] sm:$0xff] }
 0x344   : > { %9909 = vmatmul.msk.bf16.gmra.mxu3 %vm535_vm2, %v12967_v20  ;;  %v5226_v62 = vld [vmem:[#allocation2 + $0x8] sm:$0xff]  ;;  %v4912_v9 = vpop.f32.mrf.mxu2 }
 0x345   : > { %5102 = vst.msk [vmem:[#allocation2 + $0x10] sm:$0xff] %vm599_vm6, %v5091_v48  ;;  %v5237_v7 = vadd.f32 %v5226_v62, %v12931_v23  ;;  %v13036_v23 = vld [vmem:[%s11042_s14 + $0x90] sm:$0xff]  ;;  %v13089_v62 = vld [vmem:[%s11042_s14 + $0x98] sm:$0xff] }
 0x346   : > { %v4725_v63 = vpop.f32.mrf.mxu1  ;;  %9936 = vmatmul.msk.bf16.gmra.mxu0 %vm535_vm2, %v5824_v40  ;;  %v6278_v32 = vrot.slane %v13036_v23, 3  ;;  %v10189_v48 = vld [vmem:[%s14280_s1 + $0x4e] sm:$0x3] }
 0x347   : > { %v13027_v3 = vpop.f32.mrf.mxu3  ;;  %5248 = vst.msk [vmem:[#allocation2 + $0x8] sm:$0xff] %vm599_vm6, %v5237_v7  ;;  %v4758_v20 = vadd.f32 %v4747_v10, %v4725_v63  ;;  %v6965_v51 = vand.u32 %v10189_v48, %v11031_v36 }
 0x348   : > { %v4935_v50 = vld [vmem:[#allocation2 + $0x20] sm:$0xff] }
 0x349   : > { %v4946_v0 = vadd.f32 %v4935_v50, %v4912_v9  ;;  %4769 = vst.msk [vmem:[#allocation2 + $0x28] sm:$0xff] %vm599_vm6, %v4758_v20  ;;  %6974 = vmatpush.bf16.msra.mxu3 %v6965_v51  ;;  %v6280_v20 = vrot.slane %v13089_v62, 3 }
 0x34a   : > { %v5081_v6 = vld [vmem:[#allocation2 + $0x18] sm:$0xff] }
 0x34b   : > { %v5092_v59 = vadd.f32 %v5081_v6, %v12975_v19  ;;  %4957 = vst.msk [vmem:[#allocation2 + $0x20] sm:$0xff] %vm599_vm6, %v4946_v0  ;;  %v13042_v2 = vpop.f32.mrf.mxu0  ;;  %v4750_v0 = vld [vmem:[#allocation2 + $0x40] sm:$0xff] }
 0x34c   : > { %v5227_v15 = vld [vmem:[#allocation2 + $0x10] sm:$0xff]  ;;  %v4914_v35 = vpop.f32.mrf.mxu2 }
 0x34d   : > { %5103 = vst.msk [vmem:[#allocation2 + $0x18] sm:$0xff] %vm599_vm6, %v5092_v59  ;;  %v5238_v41 = vadd.f32 %v5227_v15, %v12952_v28  ;;  %v6279_v28 = vsel %vm3810_vm9, %v6277_v53, %v6278_v32 }
 0x34e   : > { %v4728_v8 = vpop.f32.mrf.mxu1 }
 0x34f   : > { %v13047_v19 = vpop.f32.mrf.mxu3  ;;  %5249 = vst.msk [vmem:[#allocation2 + $0x10] sm:$0xff] %vm599_vm6, %v5238_v41  ;;  %v4759_v14 = vadd.f32 %v4748_v11, %v4728_v8  ;;  %v13113_v41 = vld [vmem:[%s11042_s14 + $0x1c] sm:$0xff] }
 0x350   : > { %v4936_v31 = vld [vmem:[#allocation2 + $0x28] sm:$0xff]  ;;  %v13116_v8 = vld [vmem:[%s11042_s14 + $0xd8] sm:$0xff] }
 0x351   : > { %v4947_v4 = vadd.f32 %v4936_v31, %v4914_v35  ;;  %4770 = vst.msk [vmem:[#allocation2 + $0x30] sm:$0xff] %vm599_vm6, %v4759_v14  ;;  %9835 = vmatmul.msk.bf16.gmra.mxu1 %vm535_vm2, %v12996_v60  ;;  %9866 = vmatmul.msk.bf16.gmra.mxu2 %vm535_vm2, %v12998_v33  ;;  %v6424_v33 = vrot.slane %v10065_v27, 3  ;;  %v6281_v35 = vsel %vm3810_vm9, %v6278_v32, %v6280_v20  ;;  %v6427_v14 = vrot.slane %v13116_v8, 3 }
 0x352   : > { %v5082_v13 = vld [vmem:[#allocation2 + $0x20] sm:$0xff] }
 0x353   : > { %v5093_v38 = vadd.f32 %v5082_v13, %v12992_v55  ;;  %4958 = vst.msk [vmem:[#allocation2 + $0x28] sm:$0xff] %vm599_vm6, %v4947_v4  ;;  %v13073_v18 = vpop.f32.mrf.mxu0  ;;  %v6099_v55 = vrot.slane %v6097_v57, 1  ;;  %v6426_v16 = vsel %vm3810_vm9, %v6424_v33, %v6425_v44  ;;  %v6428_v39 = vsel %vm3810_vm9, %v6425_v44, %v6427_v14  ;;  %v10227_v13 = vld [vmem:[%s14280_s1 + $0x50] sm:$0x3] }
 0x354   : > { %10043 = vmatmul.msk.bf16.vlgmr.msrb.gmra.mxu3 %vm535_vm2, %v6279_v28  ;;  %v5228_v60 = vld [vmem:[#allocation2 + $0x18] sm:$0xff]  ;;  %v4917_v46 = vpop.f32.mrf.mxu2  ;;  %v6106_v28 = vshrl.u32 %v13065_v56, 16  ;;  %v7098_v57 = vand.u32 %v10227_v13, %v11031_v36 }
 0x355   : > { %5104 = vst.msk [vmem:[#allocation2 + $0x20] sm:$0xff] %vm599_vm6, %v5093_v38  ;;  %v5239_v22 = vadd.f32 %v5228_v60, %v12969_v30  ;;  %v6100_v40 = vor.u32 %v6099_v55, %v6095_v47  ;;  %v13138_v56 = vld [vmem:[%s11042_s14 + $0xa0] sm:$0xff]  ;;  %v10747_v47 = vld [vmem:[%s11042_s14 + $0x54] sm:$0xff] }
 0x356   : > { %v4730_v5 = vpop.f32.mrf.mxu1  ;;  %10086 = vmatmul.msk.bf16.vlgmr.msrb.gmra.mxu0 %vm535_vm2, %v6426_v16  ;;  %v6108_v38 = vor.u32 %v6106_v28, %v6104_v58 }
 0x357   : > { %v13079_v26 = vpop.f32.mrf.mxu3  ;;  %5250 = vst.msk [vmem:[#allocation2 + $0x18] sm:$0xff] %vm599_vm6, %v5239_v22  ;;  %v4760_v1 = vadd.f32 %v4749_v43, %v4730_v5  ;;  %v6105_v6 = vsel %vm789_vm3, %v6100_v40, %v6104_v58  ;;  %7107 = vmatpush.bf16.msra.mxu0 %v7098_v57  ;;  %v6282_v22 = vrot.slane %v13138_v56, 3 }
 0x358   : > { %v4937_v30 = vld [vmem:[#allocation2 + $0x30] sm:$0xff] }
 0x359   : > { %v4948_v9 = vadd.f32 %v4937_v30, %v4917_v46  ;;  %4771 = vst.msk [vmem:[#allocation2 + $0x38] sm:$0xff] %vm599_vm6, %v4760_v1  ;;  %v6283_v30 = vsel %vm3810_vm9, %v6280_v20, %v6282_v22 }
 0x35a   : > { %v5083_v7 = vld [vmem:[#allocation2 + $0x28] sm:$0xff] }
 0x35b   : > { %v5094_v17 = vadd.f32 %v5083_v7, %v13010_v45  ;;  %4959 = vst.msk [vmem:[#allocation2 + $0x30] sm:$0xff] %vm599_vm6, %v4948_v9  ;;  %v13095_v52 = vpop.f32.mrf.mxu0  ;;  %v13156_v9 = vld [vmem:[%s11042_s14 + $0x24] sm:$0xff] }
 0x35c   : > { %v5229_v63 = vld [vmem:[#allocation2 + $0x20] sm:$0xff]  ;;  %v4919_v10 = vpop.f32.mrf.mxu2  ;;  %v10766_v7 = vld [vmem:[%s11042_s14 + $0xe0] sm:$0xff] }
 0x35d   : > { %5105 = vst.msk [vmem:[#allocation2 + $0x28] sm:$0xff] %vm599_vm6, %v5094_v17  ;;  %v5240_v50 = vadd.f32 %v5229_v63, %v12988_v49  ;;  %v6429_v63 = vrot.slane %v10766_v7, 3 }
 0x35e   : > { %v4733_v24 = vpop.f32.mrf.mxu1 }
 0x35f   : > { %v13101_v45 = vpop.f32.mrf.mxu3  ;;  %5251 = vst.msk [vmem:[#allocation2 + $0x20] sm:$0xff] %vm599_vm6, %v5240_v50  ;;  %v4761_v59 = vadd.f32 %v4750_v0, %v4733_v24  ;;  %v6114_v50 = vshrl.u32 %v13113_v41, 16  ;;  %v6430_v24 = vsel %vm3810_vm9, %v6427_v14, %v6429_v63 }
 0x360   : > { %v4938_v15 = vld [vmem:[#allocation2 + $0x38] sm:$0xff] }
 0x361   : > { %v4949_v53 = vadd.f32 %v4938_v15, %v4919_v10  ;;  %4772 = vst.msk [vmem:[#allocation2 + $0x40] sm:$0xff] %vm599_vm6, %v4761_v59  ;;  %9969 = vmatmul.msk.bf16.vlgmr.msrb.gmra.mxu1 %vm535_vm2, %v10746_v34  ;;  %10000 = vmatmul.msk.bf16.vlgmr.msrb.gmra.mxu2 %vm535_vm2, %v6105_v6  ;;  %v6118_v34 = vshll.u32 %v13156_v9, 16  ;;  %v13174_v6 = vld [vmem:[%s11042_s14 + $0xa8] sm:$0xff] }
 0x362   : > { %v5084_v49 = vld [vmem:[#allocation2 + $0x30] sm:$0xff]  ;;  %v6284_v8 = vrot.slane %v13174_v6, 3 }
 0x363   : > { %v5095_v11 = vadd.f32 %v5084_v49, %v13027_v3  ;;  %4960 = vst.msk [vmem:[#allocation2 + $0x38] sm:$0xff] %vm599_vm6, %v4949_v53  ;;  %v13121_v37 = vpop.f32.mrf.mxu0  ;;  %v6110_v3 = vshll.u32 %v13113_v41, 16 }
 0x364   : > { %10044 = vmatmul.msk.bf16.gmra.mxu3 %vm535_vm2, %v6281_v35  ;;  %v5230_v23 = vld [vmem:[#allocation2 + $0x28] sm:$0xff]  ;;  %v4922_v32 = vpop.f32.mrf.mxu2  ;;  %v6120_v35 = vrot.slane %v6118_v34, 1  ;;  %v6285_v28 = vsel %vm3810_vm9, %v6282_v22, %v6284_v8 }
 0x365   : > { %5106 = vst.msk [vmem:[#allocation2 + $0x30] sm:$0xff] %vm599_vm6, %v5095_v11  ;;  %v5241_v42 = vadd.f32 %v5230_v23, %v13002_v25  ;;  %v6112_v60 = vrot.slane %v6110_v3, 1  ;;  %v13193_v3 = vld [vmem:[%s11042_s14 + $0x2c] sm:$0xff]  ;;  %v10768_v34 = vld [vmem:[%s11042_s14 + $0xf0] sm:$0x70] }
 0x366   : > { %v4735_v31 = vpop.f32.mrf.mxu1  ;;  %10087 = vmatmul.msk.bf16.gmra.mxu0 %vm535_vm2, %v6428_v39  ;;  %v13196_v39 = vld [vmem:[%s11042_s14 + $0xe8] sm:$0xff] }
 0x367   : > { %v13128_v4 = vpop.f32.mrf.mxu3  ;;  %5252 = vst.msk [vmem:[#allocation2 + $0x28] sm:$0xff] %vm599_vm6, %v5241_v42  ;;  %v4762_v12 = vadd.f32 %v4751_v54, %v4735_v31  ;;  %v6113_v16 = vsel %vm789_vm3, %v6108_v38, %v6112_v60  ;;  %v5372_v42 = vld [vmem:[#allocation2] sm:$0xff]  ;;  %v6431_v56 = vrot.slane %v13196_v39, 3  ;;  %v10762_v38 = vld [vmem:[%s11042_s14 + $0xb0] sm:$0x70] }
 0x368   : > { %v4939_v25 = vld [vmem:[#allocation2 + $0x40] sm:$0xff] }
 0x369   : > { %v4950_v29 = vadd.f32 %v4939_v25, %v4922_v32  ;;  %4773 = vst.msk [vmem:[#allocation2 + $0x48] sm:$0xff] %vm599_vm6, %v4762_v12  ;;  %v10748_v32 = vld [vmem:[%s11042_s14 + $0x5c] sm:$0xff]  ;;  %v6432_v22 = vsel %vm3810_vm9, %v6429_v63, %v6431_v56  ;;  %v10756_v63 = vld [vmem:[%s11042_s14 + $0x34] sm:$0x10] }
 0x36a   : > { %v5085_v27 = vld [vmem:[#allocation2 + $0x38] sm:$0xff] }
 0x36b   : > { %v5096_v46 = vadd.f32 %v5085_v27, %v13047_v19  ;;  %4961 = vst.msk [vmem:[#allocation2 + $0x40] sm:$0xff] %vm599_vm6, %v4950_v29  ;;  %v5223_v5 = vpop.f32.mrf.mxu0  ;;  %v10041_v27 = vld [vmem:[%s11042_s14 + $0xb0] sm:$0xf] }
 0x36c   : > { %v5231_v33 = vld [vmem:[#allocation2 + $0x30] sm:$0xff]  ;;  %v4924_v44 = vpop.f32.mrf.mxu2 }
 0x36d   : > { %5107 = vst.msk [vmem:[#allocation2 + $0x38] sm:$0xff] %vm599_vm6, %v5096_v46  ;;  %v5242_v43 = vadd.f32 %v5231_v33, %v13021_v61  ;;  %v5373_v46 = vld [vmem:[#allocation2 + $0x8] sm:$0xff]  ;;  %v6122_v33 = vshrl.u32 %v13156_v9, 16  ;;  %v5374_v9 = vld [vmem:[#allocation2 + $0x10] sm:$0xff] }
 0x36e   : > { %v4738_v55 = vpop.f32.mrf.mxu1 }
 0x36f   : > { %v5076_v1 = vpop.f32.mrf.mxu3  ;;  %5253 = vst.msk [vmem:[#allocation2 + $0x30] sm:$0xff] %vm599_vm6, %v5242_v43  ;;  %v4763_v19 = vadd.f32 %v4752_v21, %v4738_v55  ;;  %v6124_v55 = vor.u32 %v6122_v33, %v6120_v35 }
 0x370   : > { %v4940_v48 = vld [vmem:[#allocation2 + $0x48] sm:$0xff] }
 0x371   : > { %v4951_v51 = vadd.f32 %v4940_v48, %v4924_v44  ;;  %4774 = vst.msk [vmem:[#allocation2 + $0x50] sm:$0xff] %vm599_vm6, %v4763_v19  ;;  %9970 = vmatmul.msk.bf16.gmra.mxu1 %vm535_vm2, %v10747_v47  ;;  %10001 = vmatmul.msk.bf16.gmra.mxu2 %vm535_vm2, %v6113_v16 }
 0x372   : > { %v5086_v61 = vld [vmem:[#allocation2 + $0x40] sm:$0xff] }
 0x373   : > { %v5097_v40 = vadd.f32 %v5086_v61, %v13079_v26  ;;  %4962 = vst.msk [vmem:[#allocation2 + $0x48] sm:$0xff] %vm599_vm6, %v4951_v51  ;;  %v13162_v17 = vpop.f32.mrf.mxu0  ;;  %v10749_v51 = vld [vmem:[%s11042_s14 + $0x64] sm:$0xff] }
 0x374   : > { %10045 = vmatmul.msk.bf16.gmra.mxu3 %vm535_vm2, %v6283_v30  ;;  %v5232_v62 = vld [vmem:[#allocation2 + $0x38] sm:$0xff]  ;;  %v4927_v58 = vpop.f32.mrf.mxu2 }
 0x375   : > { %5108 = vst.msk [vmem:[#allocation2 + $0x40] sm:$0xff] %vm599_vm6, %v5097_v40  ;;  %v5243_v10 = vadd.f32 %v5232_v62, %v13042_v2  ;;  %v6116_v2 = vor.u32 %v6114_v50, %v6112_v60 }
 0x376   : > { %v4740_v20 = vpop.f32.mrf.mxu1  ;;  %10088 = vmatmul.msk.bf16.gmra.mxu0 %vm535_vm2, %v6430_v24 }
 0x377   : > { %v13168_v26 = vpop.f32.mrf.mxu3  ;;  %5254 = vst.msk [vmem:[#allocation2 + $0x38] sm:$0xff] %vm599_vm6, %v5243_v10  ;;  %v6121_v31 = vsel %vm789_vm3, %v6116_v2, %v6120_v35 }
 0x378   : > { %v4941_v0 = vld [vmem:[#allocation2 + $0x50] sm:$0xff] }
 0x379   : > { %v4952_v59 = vadd.f32 %v4941_v0, %v4927_v58  ;;  %v9998_v58 = vld [vmem:[%s11042_s14 + $0x34] sm:$0xf] }
 0x37a   : > { %v5087_v15 = vld [vmem:[#allocation2 + $0x48] sm:$0xff]  ;;  %v13235_v0 = vor.u32 %v10756_v63, %v9998_v58  ;;  %v10150_v58 = vld [vmem:[%s11042_s14 + $0xc8] sm:$0x8]  ;;  %v10775_v63 = vld [vmem:[%s11042_s14 + $0xc8] sm:$0xf0] }
 0x37b   : > { %v5098_v53 = vadd.f32 %v5087_v15, %v13101_v45  ;;  %4963 = vst.msk [vmem:[#allocation2 + $0x50] sm:$0xff] %vm599_vm6, %v4952_v59  ;;  %v13179_v11 = vpop.f32.mrf.mxu0 }
 0x37c   : > { %v5233_v49 = vld [vmem:[#allocation2 + $0x40] sm:$0xff]  ;;  %v4929_v41 = vpop.f32.mrf.mxu2 }
 0x37d   : > { %5109 = vst.msk [vmem:[#allocation2 + $0x48] sm:$0xff] %vm599_vm6, %v5098_v53  ;;  %v5244_v23 = vadd.f32 %v5233_v49, %v13073_v18  ;;  %v5375_v49 = vld [vmem:[#allocation2 + $0x18] sm:$0xff]  ;;  %v6130_v41 = vshrl.u32 %v13193_v3, 16 }
 0x37e   : > { %v5343_v14 = vpop.f32.mrf.mxu1 }
 0x37f   : > { %v13185_v45 = vpop.f32.mrf.mxu3  ;;  %5255 = vst.msk [vmem:[#allocation2 + $0x40] sm:$0xff] %vm599_vm6, %v5244_v23  ;;  %v5383_v54 = vadd.f32 %v5372_v42, %v5343_v14 }
 0x381   : > { %5394 = vst.msk [vmem:[#allocation2] sm:$0xff] %vm599_vm6, %v5383_v54  ;;  %9971 = vmatmul.msk.bf16.gmra.mxu1 %vm535_vm2, %v10748_v32  ;;  %10002 = vmatmul.msk.bf16.gmra.mxu2 %vm535_vm2, %v6121_v31 }
 0x382   : > { %v5088_v18 = vld [vmem:[#allocation2 + $0x50] sm:$0xff] }
 0x383   : > { %v5099_v12 = vadd.f32 %v5088_v18, %v13128_v4  ;;  %v13200_v57 = vpop.f32.mrf.mxu0  ;;  %v6126_v4 = vshll.u32 %v13193_v3, 16 }
 0x384   : > { %10046 = vmatmul.msk.bf16.gmra.mxu3 %vm535_vm2, %v6285_v28  ;;  %v5234_v13 = vld [vmem:[#allocation2 + $0x48] sm:$0xff]  ;;  %v5533_v25 = vpop.f32.mrf.mxu2 }
 0x385   : > { %5110 = vst.msk [vmem:[#allocation2 + $0x50] sm:$0xff] %vm599_vm6, %v5099_v12  ;;  %v5245_v29 = vadd.f32 %v5234_v13, %v13095_v52  ;;  %v10042_v52 = vor.u32 %v10762_v38, %v10041_v27  ;;  %v6128_v21 = vrot.slane %v6126_v4, 1 }
 0x386   : > { %v5345_v60 = vpop.f32.mrf.mxu1  ;;  %10089 = vmatmul.msk.bf16.gmra.mxu0 %vm535_vm2, %v6432_v22 }
 0x387   : > { %v13209_v44 = vpop.f32.mrf.mxu3  ;;  %5256 = vst.msk [vmem:[#allocation2 + $0x48] sm:$0xff] %vm599_vm6, %v5245_v29  ;;  %v5384_v5 = vadd.f32 %v5373_v46, %v5345_v60  ;;  %v13216_v19 = vrot.slane %v10042_v52, 3  ;;  %v6129_v7 = vsel %vm789_vm3, %v6124_v55, %v6128_v21  ;;  %v6132_v54 = vor.u32 %v6130_v41, %v6128_v21  ;;  %v5376_v29 = vld [vmem:[#allocation2 + $0x20] sm:$0xff]  ;;  %v9947_v55 = vld [vmem:[%s11042_s14 + $0x74] sm:$0xf] }
 0x388   : > { %v5562_v43 = vld [vmem:[#allocation2] sm:$0xff]  ;;  %v10297_v41 = vld [vmem:[%s14280_s1 + $0x54] sm:$0x3] }
 0x389   : > { %v5573_v47 = vadd.f32 %v5562_v43, %v5533_v25  ;;  %5395 = vst.msk [vmem:[#allocation2 + $0x8] sm:$0xff] %vm599_vm6, %v5384_v5  ;;  %v6287_v20 = vsel %vm3810_vm9, %v6284_v8, %v13216_v19  ;;  %v6134_v8 = vshll.u32 %v13235_v0, 16  ;;  %v10750_v25 = vld [vmem:[%s11042_s14 + $0x6c] sm:$0xff] }
 0x38b   : > { %5584 = vst.msk [vmem:[#allocation2] sm:$0xff] %vm599_vm6, %v5573_v47  ;;  %v13218_v48 = vpop.f32.mrf.mxu0  ;;  %v6136_v28 = vrot.slane %v6134_v8, 1  ;;  %v5377_v47 = vld [vmem:[#allocation2 + $0x28] sm:$0xff] }
 0x38c   : > { %v5235_v16 = vld [vmem:[#allocation2 + $0x50] sm:$0xff]  ;;  %v5535_v1 = vpop.f32.mrf.mxu2  ;;  %v10781_v8 = vld [vmem:[%s11042_s14 + $0x8c] sm:$0xff] }
 0x38d   : > { %v5246_v30 = vadd.f32 %v5235_v16, %v13121_v37  ;;  %v10084_v37 = vld [vmem:[%s11042_s14 + $0xf0] sm:$0xf]  ;;  %v6137_v27 = vsel %vm789_vm3, %v6132_v54, %v6136_v28  ;;  %v10266_v16 = vld [vmem:[%s14280_s1 + $0x52] sm:$0x3] }
 0x38e   : > { %v5348_v61 = vpop.f32.mrf.mxu1  ;;  %v10085_v6 = vor.u32 %v10768_v34, %v10084_v37 }
 0x38f   : > { %v13223_v40 = vpop.f32.mrf.mxu3  ;;  %5257 = vst.msk [vmem:[#allocation2 + $0x50] sm:$0xff] %vm599_vm6, %v5246_v30  ;;  %v5385_v62 = vadd.f32 %v5374_v9, %v5348_v61  ;;  %v5951_v30 = vunpack.c.l.b16 %v9947_v55  ;;  %v10107_v61 = vld [vmem:[%s11042_s14 + $0x88] sm:$0x8]  ;;  %v10769_v9 = vld [vmem:[%s11042_s14 + $0x88] sm:$0xf0] }
 0x390   : > { %v5563_v10 = vld [vmem:[#allocation2 + $0x8] sm:$0xff]  ;;  %v6433_v35 = vrot.slane %v10085_v6, 3 }
 0x391   : > { %v5574_v50 = vadd.f32 %v5563_v10, %v5535_v1  ;;  %5396 = vst.msk [vmem:[#allocation2 + $0x10] sm:$0xff] %vm599_vm6, %v5385_v62  ;;  %9972 = vmatmul.msk.bf16.gmra.mxu1 %vm535_vm2, %v10749_v51  ;;  %10003 = vmatmul.msk.bf16.gmra.mxu2 %vm535_vm2, %v6129_v7  ;;  %v6138_v51 = vshrl.u32 %v13235_v0, 16  ;;  %v10770_v6 = vld [vmem:[%s11042_s14 + $0x90] sm:$0xff] }
 0x392   : > { %v5751_v24 = vld [vmem:[#allocation2] sm:$0xff]  ;;  %v6583_v54 = vshll.u32 %v10770_v6, 16 }
 0x393   : > { %v5762_v59 = vadd.f32 %v5751_v24, %v13168_v26  ;;  %5585 = vst.msk [vmem:[#allocation2 + $0x8] sm:$0xff] %vm599_vm6, %v5574_v50  ;;  %v13240_v2 = vpop.f32.mrf.mxu0  ;;  %v6434_v26 = vsel %vm3810_vm9, %v6431_v56, %v6433_v35  ;;  %v10108_v50 = vor.u32 %v10769_v9, %v10107_v61  ;;  %v5957_v24 = vpack.c.b16 %v5951_v30, %v5951_v30 }
 0x394   : > { %10047 = vmatmul.msk.bf16.gmra.mxu3 %vm535_vm2, %v6287_v20  ;;  %v5538_v15 = vpop.f32.mrf.mxu2  ;;  %v6140_v0 = vor.u32 %v6138_v51, %v6136_v28 }
 0x395   : > { %5773 = vst.msk [vmem:[#allocation2] sm:$0xff] %vm599_vm6, %v5762_v59 }
 0x396   : > { %v5350_v53 = vpop.f32.mrf.mxu1  ;;  %10090 = vmatmul.msk.bf16.gmra.mxu0 %vm535_vm2, %v6434_v26 }
 0x397   : > { %v13245_v23 = vpop.f32.mrf.mxu3  ;;  %v5386_v32 = vadd.f32 %v5375_v49, %v5350_v53 }
 0x398   : > { %v5564_v14 = vld [vmem:[#allocation2 + $0x10] sm:$0xff] }
 0x399   : > { %v5575_v42 = vadd.f32 %v5564_v14, %v5538_v15  ;;  %5397 = vst.msk [vmem:[#allocation2 + $0x18] sm:$0xff] %vm599_vm6, %v5386_v32  ;;  %v5378_v15 = vld [vmem:[#allocation2 + $0x30] sm:$0xff]  ;;  %v6572_v32 = vshrl.u32 %v10108_v50, 16 }
 0x39a   : > { %v5752_v31 = vld [vmem:[#allocation2 + $0x8] sm:$0xff] }
 0x39b   : > { %v5763_v18 = vadd.f32 %v5752_v31, %v13185_v45  ;;  %5586 = vst.msk [vmem:[#allocation2 + $0x10] sm:$0xff] %vm599_vm6, %v5575_v42  ;;  %v13252_v12 = vpop.f32.mrf.mxu0  ;;  %v6575_v42 = vshll.u32 %v10108_v50, 16  ;;  %v6580_v31 = vshrl.u32 %v10770_v6, 16  ;;  %v10777_v6 = vld [vmem:[%s11042_s14 + $0xd8] sm:$0xff] }
 0x39c   : > { %v5884_v3 = vld [vmem:[#allocation2] sm:$0xff]  ;;  %v5540_v39 = vpop.f32.mrf.mxu2 }
 0x39d   : > { %5774 = vst.msk [vmem:[#allocation2 + $0x8] sm:$0xff] %vm599_vm6, %v5763_v18  ;;  %v5895_v13 = vadd.f32 %v5884_v3, %v13162_v17 }
 0x39e   : > { %v5353_v56 = vpop.f32.mrf.mxu1 }
 0x39f   : > { %v13258_v38 = vpop.f32.mrf.mxu3  ;;  %5906 = vst.msk [vmem:[#allocation2] sm:$0xff] %vm599_vm6, %v5895_v13  ;;  %v5387_v45 = vadd.f32 %v5376_v29, %v5353_v56 }
 0x3a0   : > { %v5565_v60 = vld [vmem:[#allocation2 + $0x18] sm:$0xff] }
 0x3a1   : > { %v5576_v46 = vadd.f32 %v5565_v60, %v5540_v39  ;;  %5398 = vst.msk [vmem:[#allocation2 + $0x20] sm:$0xff] %vm599_vm6, %v5387_v45  ;;  %9973 = vmatmul.msk.bf16.gmra.mxu1 %vm535_vm2, %v10750_v25  ;;  %10004 = vmatmul.msk.bf16.gmra.mxu2 %vm535_vm2, %v6137_v27  ;;  %v6574_v27 = vrot.slane %v6572_v32, 3  ;;  %v6781_v32 = vshll.u32 %v10777_v6, 16 }
 0x3a2   : > { %v5753_v17 = vld [vmem:[#allocation2 + $0x10] sm:$0xff] }
 0x3a3   : > { %v5764_v33 = vadd.f32 %v5753_v17, %v13209_v44  ;;  %5587 = vst.msk [vmem:[#allocation2 + $0x18] sm:$0xff] %vm599_vm6, %v5576_v46  ;;  %v13268_v5 = vpop.f32.mrf.mxu0  ;;  %v6577_v46 = vrot.slane %v6575_v42, 4  ;;  %v6582_v17 = vrot.slane %v6580_v31, 3 }
 0x3a4   : > { %10048 = vmatmul.msk.bf16.gmra.mxu3 %vm535_vm2, %v13216_v19  ;;  %v5885_v4 = vld [vmem:[#allocation2 + $0x8] sm:$0xff]  ;;  %v5543_v22 = vpop.f32.mrf.mxu2 }
 0x3a5   : > { %5775 = vst.msk [vmem:[#allocation2 + $0x10] sm:$0xff] %vm599_vm6, %v5764_v33  ;;  %v5896_v43 = vadd.f32 %v5885_v4, %v13179_v11  ;;  %v7281_v11 = vand.u32 %v10266_v16, %v11031_v36  ;;  %v6585_v33 = vrot.slane %v6583_v54, 4  ;;  %v10786_v4 = vld [vmem:[%s11042_s14 + $0xcc] sm:$0xff]  ;;  %v6578_v51 = vor.u32 %v6577_v46, %v6574_v27  ;;  %v10371_v27 = vld [vmem:[%s14280_s1 + $0x58] sm:$0x3] }
 0x3a6   : > { %v5355_v52 = vpop.f32.mrf.mxu1  ;;  %10091 = vmatmul.msk.bf16.gmra.mxu0 %vm535_vm2, %v6433_v35  ;;  %v10151_v35 = vor.u32 %v10775_v63, %v10150_v58 }
 0x3a7   : > { %v13273_v21 = vpop.f32.mrf.mxu3  ;;  %5907 = vst.msk [vmem:[#allocation2 + $0x8] sm:$0xff] %vm599_vm6, %v5896_v43  ;;  %v5388_v44 = vadd.f32 %v5377_v47, %v5355_v52  ;;  %7290 = vmatpush.bf16.msrb.mxu1 %v7281_v11  ;;  %v5379_v43 = vld [vmem:[#allocation2 + $0x38] sm:$0xff]  ;;  %v13323_v61 = vor.u32 %v6585_v33, %v6582_v17 }
 0x3a8   : > { %v5566_v1 = vld [vmem:[#allocation2 + $0x20] sm:$0xff]  ;;  %v6761_v18 = vshrl.u32 %v10151_v35, 16  ;;  %v6764_v3 = vshll.u32 %v10151_v35, 16 }
 0x3a9   : > { %v5577_v19 = vadd.f32 %v5566_v1, %v5543_v22  ;;  %5399 = vst.msk [vmem:[#allocation2 + $0x28] sm:$0xff] %vm599_vm6, %v5388_v44  ;;  %v10340_v1 = vld [vmem:[%s14280_s1 + $0x56] sm:$0x3] }
 0x3aa   : > { %v5754_v7 = vld [vmem:[#allocation2 + $0x18] sm:$0xff]  ;;  %v6766_v52 = vrot.slane %v6764_v3, 4  ;;  %v7647_v11 = vand.u32 %v10340_v1, %v11031_v36  ;;  %v5381_v3 = vld [vmem:[#allocation2 + $0x48] sm:$0xff] }
 0x3ab   : > { %v5765_v62 = vadd.f32 %v5754_v7, %v13223_v40  ;;  %5588 = vst.msk [vmem:[#allocation2 + $0x20] sm:$0xff] %vm599_vm6, %v5577_v19  ;;  %v13289_v37 = vpop.f32.mrf.mxu0  ;;  %v10776_v40 = vld [vmem:[%s11042_s14 + $0xd0] sm:$0xff] }
 0x3ac   : > { %v5886_v10 = vld [vmem:[#allocation2 + $0x10] sm:$0xff]  ;;  %v5545_v20 = vpop.f32.mrf.mxu2  ;;  %v6769_v39 = vshrl.u32 %v10776_v40, 16  ;;  %v6772_v13 = vshll.u32 %v10776_v40, 16  ;;  %7656 = vmatpush.bf16.msrb.mxu3 %v7647_v11  ;;  %v10772_v11 = vld [vmem:[%s11042_s14 + $0xa0] sm:$0xff] }
 0x3ad   : > { %5776 = vst.msk [vmem:[#allocation2 + $0x18] sm:$0xff] %vm599_vm6, %v5765_v62  ;;  %v5897_v34 = vadd.f32 %v5886_v10, %v13200_v57  ;;  %v7464_v57 = vand.u32 %v10297_v41, %v11031_v36  ;;  %v10782_v40 = vld [vmem:[%s11042_s14 + $0x94] sm:$0xff] }
 0x3ae   : > { %v5358_v59 = vpop.f32.mrf.mxu1  ;;  %v6771_v47 = vrot.slane %v6769_v39, 3  ;;  %v6774_v55 = vrot.slane %v6772_v13, 4 }
 0x3af   : > { %v13295_v53 = vpop.f32.mrf.mxu3  ;;  %5908 = vst.msk [vmem:[#allocation2 + $0x10] sm:$0xff] %vm599_vm6, %v5897_v34  ;;  %v5389_v49 = vadd.f32 %v5378_v15, %v5358_v59  ;;  %7473 = vmatpush.bf16.msrb.mxu2 %v7464_v57  ;;  %v5380_v34 = vld [vmem:[#allocation2 + $0x40] sm:$0xff] }
 0x3b0   : > { %v5567_v26 = vld [vmem:[#allocation2 + $0x28] sm:$0xff]  ;;  %v13325_v7 = vor.u32 %v6774_v55, %v6771_v47 }
 0x3b1   : > { %v5578_v14 = vadd.f32 %v5567_v26, %v5545_v20  ;;  %5400 = vst.msk [vmem:[#allocation2 + $0x30] sm:$0xff] %vm599_vm6, %v5389_v49  ;;  %9974 = vmatmul.msk.bf16.gmra.mxu1 %vm535_vm2, %v5957_v24  ;;  %10005 = vmatmul.msk.bf16.gmra.mxu2 %vm535_vm2, %v6140_v0  ;;  %v6587_v24 = vsel %vm5449_vm10, %v6578_v51, %v13323_v61  ;;  %v6778_v26 = vshrl.u32 %v10777_v6, 16  ;;  %v10783_v51 = vld [vmem:[%s11042_s14 + $0x9c] sm:$0xff] }
 0x3b2   : > { %v5755_v28 = vld [vmem:[#allocation2 + $0x20] sm:$0xff] }
 0x3b3   : > { %v5766_v25 = vadd.f32 %v5755_v28, %v13245_v23  ;;  %5589 = vst.msk [vmem:[#allocation2 + $0x28] sm:$0xff] %vm599_vm6, %v5578_v14  ;;  %v13309_v45 = vpop.f32.mrf.mxu0  ;;  %v6763_v23 = vrot.slane %v6761_v18, 3  ;;  %v10787_v28 = vld [vmem:[%s11042_s14 + $0xd4] sm:$0xff] }
 0x3b4   : > { %10210 = vmatmul.msk.bf16.vlgmr.msra.gmra.mxu3 %vm535_vm2, %v10781_v8  ;;  %v5887_v56 = vld [vmem:[#allocation2 + $0x18] sm:$0xff]  ;;  %v5548_v29 = vpop.f32.mrf.mxu2 }
 0x3b5   : > { %5777 = vst.msk [vmem:[#allocation2 + $0x20] sm:$0xff] %vm599_vm6, %v5766_v25  ;;  %v5898_v60 = vadd.f32 %v5887_v56, %v13218_v48  ;;  %v6767_v9 = vor.u32 %v6766_v52, %v6763_v23  ;;  %v6780_v25 = vrot.slane %v6778_v26, 3  ;;  %v6783_v56 = vrot.slane %v6781_v32, 4 }
 0x3b6   : > { %v5360_v22 = vpop.f32.mrf.mxu1  ;;  %10248 = vmatmul.msk.bf16.vlgmr.msra.gmra.mxu0 %vm535_vm2, %v10786_v4 }
 0x3b7   : > { %v13314_v44 = vpop.f32.mrf.mxu3  ;;  %5909 = vst.msk [vmem:[#allocation2 + $0x18] sm:$0xff] %vm599_vm6, %v5898_v60  ;;  %v5390_v16 = vadd.f32 %v5379_v43, %v5360_v22  ;;  %v6776_v0 = vsel %vm5449_vm10, %v6767_v9, %v13325_v7  ;;  %v6784_v4 = vor.u32 %v6783_v56, %v6780_v25  ;;  %v10779_v25 = vld [vmem:[%s11042_s14 + $0xe8] sm:$0xff] }
 0x3b8   : > { %v5568_v48 = vld [vmem:[#allocation2 + $0x30] sm:$0xff] }
 0x3b9   : > { %v5579_v19 = vadd.f32 %v5568_v48, %v5548_v29  ;;  %5401 = vst.msk [vmem:[#allocation2 + $0x38] sm:$0xff] %vm599_vm6, %v5390_v16  ;;  %v5382_v16 = vld [vmem:[#allocation2 + $0x50] sm:$0xff]  ;;  %v6785_v48 = vsel %vm5449_vm10, %v13325_v7, %v6784_v4 }
 0x3ba   : > { %v5756_v30 = vld [vmem:[#allocation2 + $0x28] sm:$0xff] }
 0x3bb   : > { %v5767_v62 = vadd.f32 %v5756_v30, %v13258_v38  ;;  %5590 = vst.msk [vmem:[#allocation2 + $0x30] sm:$0xff] %vm599_vm6, %v5579_v19  ;;  %v13329_v10 = vpop.f32.mrf.mxu0  ;;  %v10771_v38 = vld [vmem:[%s11042_s14 + $0x98] sm:$0xff] }
 0x3bc   : > { %v5888_v58 = vld [vmem:[#allocation2 + $0x20] sm:$0xff]  ;;  %v5550_v63 = vpop.f32.mrf.mxu2  ;;  %v6589_v41 = vshrl.u32 %v10771_v38, 16  ;;  %v6592_v8 = vshll.u32 %v10771_v38, 16  ;;  %v10788_v38 = vld [vmem:[%s11042_s14 + $0xdc] sm:$0xff] }
 0x3bd   : > { %5778 = vst.msk [vmem:[#allocation2 + $0x28] sm:$0xff] %vm599_vm6, %v5767_v62  ;;  %v5899_v20 = vadd.f32 %v5888_v58, %v13240_v2  ;;  %v6601_v58 = vshll.u32 %v10772_v11, 16 }
 0x3be   : > { %v5363_v50 = vpop.f32.mrf.mxu1  ;;  %v6591_v39 = vrot.slane %v6589_v41, 3  ;;  %v6594_v13 = vrot.slane %v6592_v8, 4 }
 0x3bf   : > { %v13339_v59 = vpop.f32.mrf.mxu3  ;;  %5910 = vst.msk [vmem:[#allocation2 + $0x20] sm:$0xff] %vm599_vm6, %v5899_v20  ;;  %v5391_v15 = vadd.f32 %v5380_v34, %v5363_v50 }
 0x3c0   : > { %v5569_v35 = vld [vmem:[#allocation2 + $0x38] sm:$0xff]  ;;  %v6595_v33 = vor.u32 %v6594_v13, %v6591_v39  ;;  %v10773_v13 = vld [vmem:[%s11042_s14 + $0xa8] sm:$0xff] }
 0x3c1   : > { %v5580_v49 = vadd.f32 %v5569_v35, %v5550_v63  ;;  %5402 = vst.msk [vmem:[#allocation2 + $0x40] sm:$0xff] %vm599_vm6, %v5391_v15  ;;  %10129 = vmatmul.msk.bf16.vlgmr.msra.gmra.mxu1 %vm535_vm2, %v6587_v24  ;;  %10172 = vmatmul.msk.bf16.vlgmr.msra.gmra.mxu2 %vm535_vm2, %v6776_v0 }
 0x3c2   : > { %v5757_v2 = vld [vmem:[#allocation2 + $0x30] sm:$0xff]  ;;  %v6596_v1 = vsel %vm5449_vm10, %v13323_v61, %v6595_v33  ;;  %v6598_v61 = vshrl.u32 %v10772_v11, 16 }
 0x3c3   : > { %v5768_v57 = vadd.f32 %v5757_v2, %v13273_v21  ;;  %5591 = vst.msk [vmem:[#allocation2 + $0x38] sm:$0xff] %vm599_vm6, %v5580_v49  ;;  %v13349_v31 = vpop.f32.mrf.mxu0 }
 0x3c4   : > { %10211 = vmatmul.msk.bf16.gmra.mxu3 %vm535_vm2, %v10782_v40  ;;  %v5889_v14 = vld [vmem:[#allocation2 + $0x28] sm:$0xff]  ;;  %v5553_v42 = vpop.f32.mrf.mxu2  ;;  %v6600_v15 = vrot.slane %v6598_v61, 3  ;;  %v6603_v40 = vrot.slane %v6601_v58, 4  ;;  %v6019_v58 = vld [vmem:[#allocation2 + $0x10] sm:$0xff] }
 0x3c5   : > { %5779 = vst.msk [vmem:[#allocation2 + $0x30] sm:$0xff] %vm599_vm6, %v5768_v57  ;;  %v5900_v54 = vadd.f32 %v5889_v14, %v13252_v12  ;;  %v7794_v12 = vand.u32 %v10371_v27, %v11031_v36  ;;  %v6607_v27 = vshrl.u32 %v10773_v13, 16 }
 0x3c6   : > { %v5365_v18 = vpop.f32.mrf.mxu1  ;;  %10249 = vmatmul.msk.bf16.gmra.mxu0 %vm535_vm2, %v10787_v28  ;;  %v6604_v26 = vor.u32 %v6603_v40, %v6600_v15 }
 0x3c7   : > { %v13354_v21 = vpop.f32.mrf.mxu3  ;;  %5911 = vst.msk [vmem:[#allocation2 + $0x28] sm:$0xff] %vm599_vm6, %v5900_v54  ;;  %v5392_v29 = vadd.f32 %v5381_v3, %v5365_v18  ;;  %7803 = vmatpush.bf16.msrb.mxu0 %v7794_v12  ;;  %v6017_v18 = vld [vmem:[#allocation2] sm:$0xff]  ;;  %v6796_v12 = vshrl.u32 %v10779_v25, 16 }
 0x3c8   : > { %v5570_v60 = vld [vmem:[#allocation2 + $0x40] sm:$0xff]  ;;  %v6605_v3 = vsel %vm5449_vm10, %v6595_v33, %v6604_v26 }
 0x3c9   : > { %v5581_v46 = vadd.f32 %v5570_v60, %v5553_v42  ;;  %5403 = vst.msk [vmem:[#allocation2 + $0x48] sm:$0xff] %vm599_vm6, %v5392_v29  ;;  %v10784_v29 = vld [vmem:[%s11042_s14 + $0xa4] sm:$0xff]  ;;  %v6610_v60 = vshll.u32 %v10773_v13, 16  ;;  %v10188_v13 = vld [vmem:[%s11042_s14 + $0xb4] sm:$0xf] }
 0x3ca   : > { %v5758_v17 = vld [vmem:[#allocation2 + $0x38] sm:$0xff] }
 0x3cb   : > { %v5769_v22 = vadd.f32 %v5758_v17, %v13295_v53  ;;  %5592 = vst.msk [vmem:[#allocation2 + $0x40] sm:$0xff] %vm599_vm6, %v5581_v46  ;;  %v5882_v52 = vpop.f32.mrf.mxu0  ;;  %v10778_v53 = vld [vmem:[%s11042_s14 + $0xe0] sm:$0xff]  ;;  %v6799_v46 = vshll.u32 %v10779_v25, 16 }
 0x3cc   : > { %v5890_v43 = vld [vmem:[#allocation2 + $0x30] sm:$0xff]  ;;  %v5555_v23 = vpop.f32.mrf.mxu2  ;;  %v6787_v7 = vshrl.u32 %v10778_v53, 16  ;;  %v6790_v63 = vshll.u32 %v10778_v53, 16 }
 0x3cd   : > { %5780 = vst.msk [vmem:[#allocation2 + $0x38] sm:$0xff] %vm599_vm6, %v5769_v22  ;;  %v5901_v47 = vadd.f32 %v5890_v43, %v13268_v5 }
 0x3ce   : > { %v5368_v55 = vpop.f32.mrf.mxu1  ;;  %v6789_v35 = vrot.slane %v6787_v7, 3  ;;  %v6792_v49 = vrot.slane %v6790_v63, 4 }
 0x3cf   : > { %v5749_v19 = vpop.f32.mrf.mxu3  ;;  %5912 = vst.msk [vmem:[#allocation2 + $0x30] sm:$0xff] %vm599_vm6, %v5901_v47  ;;  %v5393_v30 = vadd.f32 %v5382_v16, %v5368_v55  ;;  %v6018_v47 = vld [vmem:[#allocation2 + $0x8] sm:$0xff]  ;;  %v6609_v55 = vrot.slane %v6607_v27, 3  ;;  %v6612_v16 = vrot.slane %v6610_v60, 4  ;;  %v6939_v60 = vunpack.c.l.b16 %v10188_v13 }
 0x3d0   : > { %v5571_v9 = vld [vmem:[#allocation2 + $0x48] sm:$0xff]  ;;  %v6793_v32 = vor.u32 %v6792_v49, %v6789_v35 }
 0x3d1   : > { %v5582_v62 = vadd.f32 %v5571_v9, %v5555_v23  ;;  %5404 = vst.msk [vmem:[#allocation2 + $0x50] sm:$0xff] %vm599_vm6, %v5393_v30  ;;  %10130 = vmatmul.msk.bf16.gmra.mxu1 %vm535_vm2, %v6596_v1  ;;  %10173 = vmatmul.msk.bf16.gmra.mxu2 %vm535_vm2, %v6785_v48  ;;  %v10789_v23 = vld [vmem:[%s11042_s14 + $0xe4] sm:$0xff]  ;;  %v6798_v1 = vrot.slane %v6796_v12, 3  ;;  %v6801_v48 = vrot.slane %v6799_v46, 4  ;;  %v13505_v13 = vld [vmem:[%s11042_s14 + $0x94] sm:$0xff] }
 0x3d2   : > { %v5759_v5 = vld [vmem:[#allocation2 + $0x40] sm:$0xff]  ;;  %v6794_v39 = vsel %vm5449_vm10, %v6784_v4, %v6793_v32 }
 0x3d3   : > { %v5770_v20 = vadd.f32 %v5759_v5, %v13314_v44  ;;  %5593 = vst.msk [vmem:[#allocation2 + $0x48] sm:$0xff] %vm599_vm6, %v5582_v62  ;;  %v13381_v24 = vpop.f32.mrf.mxu0  ;;  %v6802_v30 = vor.u32 %v6801_v48, %v6798_v1  ;;  %v10803_v1 = vld [vmem:[%s11042_s14 + $0x50] sm:$0xff] }
 0x3d4   : > { %10212 = vmatmul.msk.bf16.gmra.mxu3 %vm535_vm2, %v10783_v51  ;;  %v5891_v50 = vld [vmem:[#allocation2 + $0x38] sm:$0xff]  ;;  %v5558_v34 = vpop.f32.mrf.mxu2 }
 0x3d5   : > { %5781 = vst.msk [vmem:[#allocation2 + $0x40] sm:$0xff] %vm599_vm6, %v5770_v20  ;;  %v5902_v0 = vadd.f32 %v5891_v50, %v13289_v37  ;;  %v6803_v63 = vsel %vm5449_vm10, %v6793_v32, %v6802_v30  ;;  %v10774_v20 = vld [vmem:[%s11042_s14 + $0xb0] sm:$0xff] }
 0x3d6   : > { %v5370_v6 = vpop.f32.mrf.mxu1  ;;  %10250 = vmatmul.msk.bf16.gmra.mxu0 %vm535_vm2, %v10788_v38  ;;  %v10780_v50 = vld [vmem:[%s11042_s14 + $0xf0] sm:$0xff]  ;;  %v6616_v40 = vshrl.u32 %v10774_v20, 16  ;;  %v6619_v35 = vshll.u32 %v10774_v20, 16 }
 0x3d7   : > { %v13386_v2 = vpop.f32.mrf.mxu3  ;;  %5913 = vst.msk [vmem:[#allocation2 + $0x38] sm:$0xff] %vm599_vm6, %v5902_v0  ;;  %v10785_v38 = vld [vmem:[%s11042_s14 + $0xac] sm:$0xff]  ;;  %v6805_v49 = vshrl.u32 %v10780_v50, 16 }
 0x3d8   : > { %v5572_v44 = vld [vmem:[#allocation2 + $0x50] sm:$0xff]  ;;  %v10790_v32 = vld [vmem:[%s11042_s14 + $0xec] sm:$0xff] }
 0x3d9   : > { %v5583_v41 = vadd.f32 %v5572_v44, %v5558_v34  ;;  %v6808_v44 = vshll.u32 %v10780_v50, 16  ;;  %v10414_v50 = vld [vmem:[%s14280_s1 + $0x5a] sm:$0x3] }
 0x3da   : > { %v5760_v8 = vld [vmem:[#allocation2 + $0x48] sm:$0xff] }
 0x3db   : > { %v5771_v37 = vadd.f32 %v5760_v8, %v13339_v59  ;;  %5594 = vst.msk [vmem:[#allocation2 + $0x50] sm:$0xff] %vm599_vm6, %v5583_v41  ;;  %v13392_v42 = vpop.f32.mrf.mxu0 }
 0x3dc   : > { %v5892_v57 = vld [vmem:[#allocation2 + $0x40] sm:$0xff]  ;;  %v5560_v14 = vpop.f32.mrf.mxu2 }
 0x3dd   : > { %5782 = vst.msk [vmem:[#allocation2 + $0x48] sm:$0xff] %vm599_vm6, %v5771_v37  ;;  %v5903_v54 = vadd.f32 %v5892_v57, %v13309_v45  ;;  %v6020_v57 = vld [vmem:[#allocation2 + $0x18] sm:$0xff]  ;;  %v6618_v14 = vrot.slane %v6616_v40, 3 }
 0x3de   : > { %v5988_v28 = vpop.f32.mrf.mxu1 }
 0x3df   : > { %v13400_v59 = vpop.f32.mrf.mxu3  ;;  %5914 = vst.msk [vmem:[#allocation2 + $0x40] sm:$0xff] %vm599_vm6, %v5903_v54  ;;  %v6028_v56 = vadd.f32 %v6017_v18, %v5988_v28  ;;  %v6621_v54 = vrot.slane %v6619_v35, 4  ;;  %v6807_v28 = vrot.slane %v6805_v49, 3  ;;  %v6810_v18 = vrot.slane %v6808_v44, 4 }
 0x3e1   : > { %6039 = vst.msk [vmem:[#allocation2] sm:$0xff] %vm599_vm6, %v6028_v56  ;;  %10131 = vmatmul.msk.bf16.gmra.mxu1 %vm535_vm2, %v6605_v3  ;;  %10174 = vmatmul.msk.bf16.gmra.mxu2 %vm535_vm2, %v6794_v39 }
 0x3e2   : > { %v5761_v45 = vld [vmem:[#allocation2 + $0x50] sm:$0xff] }
 0x3e3   : > { %v5772_v17 = vadd.f32 %v5761_v45, %v13354_v21  ;;  %v13409_v22 = vpop.f32.mrf.mxu0  ;;  %v13448_v45 = vor.u32 %v6810_v18, %v6807_v28 }
 0x3e4   : > { %10213 = vmatmul.msk.bf16.gmra.mxu3 %vm535_vm2, %v10784_v29  ;;  %v5893_v33 = vld [vmem:[#allocation2 + $0x48] sm:$0xff]  ;;  %v6171_v4 = vpop.f32.mrf.mxu2  ;;  %v13446_v29 = vor.u32 %v6621_v54, %v6618_v14  ;;  %v6023_v54 = vld [vmem:[#allocation2 + $0x30] sm:$0xff] }
 0x3e5   : > { %5783 = vst.msk [vmem:[#allocation2 + $0x50] sm:$0xff] %vm599_vm6, %v5772_v17  ;;  %v5904_v43 = vadd.f32 %v5893_v33, %v13329_v10  ;;  %v6613_v10 = vor.u32 %v6612_v16, %v6609_v55  ;;  %v6945_v55 = vpack.c.b16 %v6939_v60, %v6939_v60  ;;  %v10374_v60 = vld [vmem:[%s11042_s14 + $0x10] sm:$0xe] }
 0x3e6   : > { %v5990_v52 = vpop.f32.mrf.mxu1  ;;  %10251 = vmatmul.msk.bf16.gmra.mxu0 %vm535_vm2, %v10789_v23 }
 0x3e7   : > { %v13414_v11 = vpop.f32.mrf.mxu3  ;;  %5915 = vst.msk [vmem:[#allocation2 + $0x48] sm:$0xff] %vm599_vm6, %v5904_v43  ;;  %v6029_v21 = vadd.f32 %v6018_v47, %v5990_v52  ;;  %v6614_v7 = vsel %vm5449_vm10, %v6604_v26, %v6613_v10  ;;  %v6021_v43 = vld [vmem:[#allocation2 + $0x20] sm:$0xff]  ;;  %v6623_v23 = vsel %vm5449_vm10, %v6613_v10, %v13446_v29 }
 0x3e8   : > { %v6200_v53 = vld [vmem:[#allocation2] sm:$0xff] }
 0x3e9   : > { %v6211_v19 = vadd.f32 %v6200_v53, %v6171_v4  ;;  %6040 = vst.msk [vmem:[#allocation2 + $0x8] sm:$0xff] %vm599_vm6, %v6029_v21  ;;  %v10226_v21 = vld [vmem:[%s11042_s14 + $0xf4] sm:$0xf] }
 0x3eb   : > { %6222 = vst.msk [vmem:[#allocation2] sm:$0xff] %vm599_vm6, %v6211_v19  ;;  %v13420_v62 = vpop.f32.mrf.mxu0  ;;  %v7072_v19 = vunpack.c.l.b16 %v10226_v21 }
 0x3ec   : > { %v5894_v51 = vld [vmem:[#allocation2 + $0x50] sm:$0xff]  ;;  %v6173_v9 = vpop.f32.mrf.mxu2 }
 0x3ed   : > { %v5905_v5 = vadd.f32 %v5894_v51, %v13349_v31 }
 0x3ee   : > { %v5993_v61 = vpop.f32.mrf.mxu1 }
 0x3ef   : > { %v13427_v34 = vpop.f32.mrf.mxu3  ;;  %5916 = vst.msk [vmem:[#allocation2 + $0x50] sm:$0xff] %vm599_vm6, %v5905_v5  ;;  %v6030_v0 = vadd.f32 %v6019_v58, %v5993_v61  ;;  %v7584_v5 = vshll.u32 %v10803_v1, 16  ;;  %v7078_v58 = vpack.c.b16 %v7072_v19, %v7072_v19  ;;  %v6024_v19 = vld [vmem:[#allocation2 + $0x38] sm:$0xff] }
 0x3f0   : > { %v6201_v6 = vld [vmem:[#allocation2 + $0x8] sm:$0xff] }
 0x3f1   : > { %v6212_v15 = vadd.f32 %v6201_v6, %v6173_v9  ;;  %6041 = vst.msk [vmem:[#allocation2 + $0x10] sm:$0xff] %vm599_vm6, %v6030_v0  ;;  %10132 = vmatmul.msk.bf16.gmra.mxu1 %vm535_vm2, %v6614_v7  ;;  %10175 = vmatmul.msk.bf16.gmra.mxu2 %vm535_vm2, %v6803_v63  ;;  %v13474_v9 = vld [vmem:[%s11042_s14 + $0x58] sm:$0xff]  ;;  %v6022_v63 = vld [vmem:[#allocation2 + $0x28] sm:$0xff]  ;;  %v7582_v6 = vshrl.u32 %v10803_v1, 16 }
 0x3f2   : > { %v6347_v31 = vld [vmem:[#allocation2] sm:$0xff] }
 0x3f3   : > { %v6358_v41 = vadd.f32 %v6347_v31, %v13386_v2  ;;  %6223 = vst.msk [vmem:[#allocation2 + $0x8] sm:$0xff] %vm599_vm6, %v6212_v15  ;;  %v13437_v26 = vpop.f32.mrf.mxu0  ;;  %v7589_v15 = vshll.u32 %v13474_v9, 16 }
 0x3f4   : > { %10214 = vmatmul.msk.bf16.gmra.mxu3 %vm535_vm2, %v10785_v38  ;;  %v6176_v8 = vpop.f32.mrf.mxu2  ;;  %v7941_v38 = vand.u32 %v10414_v50, %v11031_v36  ;;  %v7593_v50 = vshrl.u32 %v13474_v9, 16 }
 0x3f5   : > { %6369 = vst.msk [vmem:[#allocation2] sm:$0xff] %vm599_vm6, %v6358_v41 }
 0x3f6   : > { %v5995_v37 = vpop.f32.mrf.mxu1  ;;  %10252 = vmatmul.msk.bf16.gmra.mxu0 %vm535_vm2, %v10790_v32  ;;  %7950 = vmatpush.bf16.msra.mxu1 %v7941_v38 }
 0x3f7   : > { %v13441_v3 = vpop.f32.mrf.mxu3  ;;  %v6031_v2 = vadd.f32 %v6020_v57, %v5995_v37  ;;  %v10791_v57 = vld [vmem:[%s11042_s14 + $0x8c] sm:$0xff] }
 0x3f8   : > { %v6202_v39 = vld [vmem:[#allocation2 + $0x10] sm:$0xff] }
 0x3f9   : > { %v6213_v25 = vadd.f32 %v6202_v39, %v6176_v8  ;;  %6042 = vst.msk [vmem:[#allocation2 + $0x18] sm:$0xff] %vm599_vm6, %v6031_v2  ;;  %v13490_v8 = vrot.slane %v7589_v15, 1  ;;  %v10445_v2 = vld [vmem:[%s14280_s1 + $0x5c] sm:$0x3] }
 0x3fa   : > { %v6348_v56 = vld [vmem:[#allocation2 + $0x8] sm:$0xff] }
 0x3fb   : > { %v6359_v27 = vadd.f32 %v6348_v56, %v13400_v59  ;;  %6224 = vst.msk [vmem:[#allocation2 + $0x10] sm:$0xff] %vm599_vm6, %v6213_v25  ;;  %v13452_v17 = vpop.f32.mrf.mxu0  ;;  %v6812_v59 = vsel %vm5449_vm10, %v6802_v30, %v13448_v45 }
 0x3fc   : > { %v6494_v12 = vld [vmem:[#allocation2] sm:$0xff]  ;;  %v6178_v46 = vpop.f32.mrf.mxu2 }
 0x3fd   : > { %6370 = vst.msk [vmem:[#allocation2 + $0x8] sm:$0xff] %vm599_vm6, %v6359_v27  ;;  %v6505_v33 = vadd.f32 %v6494_v12, %v13381_v24  ;;  %v7218_v27 = vshll.u32 %v10791_v57, 16  ;;  %v10809_v12 = vld [vmem:[%s11042_s14 + $0x10] sm:$0xf0] }
 0x3fe   : > { %v5998_v4 = vpop.f32.mrf.mxu1 }
 0x3ff   : > { %v13460_v52 = vpop.f32.mrf.mxu3  ;;  %6516 = vst.msk [vmem:[#allocation2] sm:$0xff] %vm599_vm6, %v6505_v33  ;;  %v6032_v47 = vadd.f32 %v6021_v43, %v5998_v4  ;;  %v13518_v33 = vld [vmem:[%s11042_s14 + $0x18] sm:$0xff]  ;;  %v7220_v21 = vrot.slane %v7218_v27, 1  ;;  %v13573_v27 = vld [vmem:[%s11042_s14 + $0x20] sm:$0xff] }
 0x400   : > { %v6203_v16 = vld [vmem:[#allocation2 + $0x18] sm:$0xff]  ;;  %v13521_v43 = vld [vmem:[%s11042_s14 + $0x18] sm:$0xff] }
 0x401   : > { %v6214_v48 = vadd.f32 %v6203_v16, %v6178_v46  ;;  %6043 = vst.msk [vmem:[#allocation2 + $0x20] sm:$0xff] %vm599_vm6, %v6032_v47  ;;  %10133 = vmatmul.msk.bf16.gmra.mxu1 %vm535_vm2, %v6623_v23  ;;  %10176 = vmatmul.msk.bf16.gmra.mxu2 %vm535_vm2, %v6812_v59  ;;  %v10375_v23 = vor.u32 %v10809_v12, %v10374_v60  ;;  %v7765_v1 = vrot.slane %v13521_v43, 1 }
 0x402   : > { %v6349_v24 = vld [vmem:[#allocation2 + $0x10] sm:$0xff] }
 0x403   : > { %v6360_v53 = vadd.f32 %v6349_v24, %v13414_v11  ;;  %6225 = vst.msk [vmem:[#allocation2 + $0x18] sm:$0xff] %vm599_vm6, %v6214_v48  ;;  %v13471_v51 = vpop.f32.mrf.mxu0  ;;  %v7764_v16 = vrot.slane %v10375_v23, 1  ;;  %v7216_v24 = vshrl.u32 %v10791_v57, 16  ;;  %v13581_v23 = vld [vmem:[%s11042_s14 + $0x68] sm:$0xff] }
 0x404   : > { %10215 = vmatmul.msk.bf16.gmra.mxu3 %vm535_vm2, %v6945_v55  ;;  %v6495_v10 = vld [vmem:[#allocation2 + $0x8] sm:$0xff]  ;;  %v6181_v30 = vpop.f32.mrf.mxu2  ;;  %v13529_v55 = vld [vmem:[%s11042_s14 + $0x60] sm:$0xff] }
 0x405   : > { %6371 = vst.msk [vmem:[#allocation2 + $0x10] sm:$0xff] %vm599_vm6, %v6360_v53  ;;  %v6506_v61 = vadd.f32 %v6495_v10, %v13392_v42  ;;  %v7586_v42 = vrot.slane %v7584_v5, 1  ;;  %v7406_v5 = vshll.u32 %v13518_v33, 16 }
 0x406   : > { %v6000_v7 = vpop.f32.mrf.mxu1  ;;  %10253 = vmatmul.msk.bf16.gmra.mxu0 %vm535_vm2, %v7078_v58  ;;  %v7766_v58 = vsel %vm1156_vm4, %v7764_v16, %v7765_v1 }
 0x407   : > { %v13478_v11 = vpop.f32.mrf.mxu3  ;;  %6517 = vst.msk [vmem:[#allocation2 + $0x8] sm:$0xff] %vm599_vm6, %v6506_v61  ;;  %v6033_v20 = vadd.f32 %v6022_v63, %v6000_v7  ;;  %v7587_v41 = vor.u32 %v7586_v42, %v7582_v6  ;;  %v7221_v42 = vor.u32 %v7220_v21, %v7216_v24  ;;  %v7410_v24 = vshrl.u32 %v13518_v33, 16 }
 0x408   : > { %v6204_v0 = vld [vmem:[#allocation2 + $0x20] sm:$0xff] }
 0x409   : > { %v6215_v31 = vadd.f32 %v6204_v0, %v6181_v30  ;;  %6044 = vst.msk [vmem:[#allocation2 + $0x28] sm:$0xff] %vm599_vm6, %v6033_v20  ;;  %v7592_v25 = vsel %vm789_vm3, %v7587_v41, %v13490_v8  ;;  %v7597_v0 = vshll.u32 %v13529_v55, 16  ;;  %v7595_v41 = vor.u32 %v7593_v50, %v13490_v8 }
 0x40a   : > { %v6350_v40 = vld [vmem:[#allocation2 + $0x18] sm:$0xff] }
 0x40b   : > { %v6361_v35 = vadd.f32 %v6350_v40, %v13427_v34  ;;  %6226 = vst.msk [vmem:[#allocation2 + $0x20] sm:$0xff] %vm599_vm6, %v6215_v31  ;;  %v13492_v32 = vpop.f32.mrf.mxu0  ;;  %v10797_v34 = vld [vmem:[%s11042_s14 + $0x10] sm:$0xff]  ;;  %v7408_v40 = vrot.slane %v7406_v5, 1  ;;  %v7599_v9 = vrot.slane %v7597_v0, 1 }
 0x40c   : > { %v6496_v49 = vld [vmem:[#allocation2 + $0x10] sm:$0xff]  ;;  %v6183_v44 = vpop.f32.mrf.mxu2  ;;  %v7401_v4 = vshll.u32 %v10797_v34, 16  ;;  %v7399_v10 = vshrl.u32 %v10797_v34, 16 }
 0x40d   : > { %6372 = vst.msk [vmem:[#allocation2 + $0x18] sm:$0xff] %vm599_vm6, %v6361_v35  ;;  %v6507_v37 = vadd.f32 %v6496_v49, %v13409_v22  ;;  %v8130_v22 = vand.u32 %v10445_v2, %v11031_v36 }
 0x40e   : > { %v6003_v14 = vpop.f32.mrf.mxu1  ;;  %v7403_v30 = vrot.slane %v7401_v4, 1 }
 0x40f   : > { %v13498_v28 = vpop.f32.mrf.mxu3  ;;  %6518 = vst.msk [vmem:[#allocation2 + $0x10] sm:$0xff] %vm599_vm6, %v6507_v37  ;;  %v6034_v18 = vadd.f32 %v6023_v54, %v6003_v14  ;;  %8139 = vmatpush.bf16.msra.mxu2 %v8130_v22  ;;  %v6025_v54 = vld [vmem:[#allocation2 + $0x40] sm:$0xff] }
 0x410   : > { %v6205_v39 = vld [vmem:[#allocation2 + $0x28] sm:$0xff]  ;;  %v7404_v31 = vor.u32 %v7403_v30, %v7399_v10  ;;  %v7601_v10 = vshrl.u32 %v13529_v55, 16  ;;  %v7605_v30 = vshll.u32 %v13581_v23, 16 }
 0x411   : > { %v6216_v56 = vadd.f32 %v6205_v39, %v6183_v44  ;;  %6045 = vst.msk [vmem:[#allocation2 + $0x30] sm:$0xff] %vm599_vm6, %v6034_v18  ;;  %10134 = vmatmul.msk.bf16.gmra.mxu1 %vm535_vm2, %v13446_v29  ;;  %10177 = vmatmul.msk.bf16.gmra.mxu2 %vm535_vm2, %v13448_v45  ;;  %v7600_v39 = vsel %vm789_vm3, %v7595_v41, %v7599_v9 }
 0x412   : > { %v6351_v46 = vld [vmem:[#allocation2 + $0x20] sm:$0xff]  ;;  %v7409_v34 = vsel %vm789_vm3, %v7404_v31, %v7408_v40  ;;  %v7607_v0 = vrot.slane %v7605_v30, 1 }
 0x413   : > { %v6362_v59 = vadd.f32 %v6351_v46, %v13441_v3  ;;  %6227 = vst.msk [vmem:[#allocation2 + $0x28] sm:$0xff] %vm599_vm6, %v6216_v56  ;;  %v13526_v47 = vpop.f32.mrf.mxu0  ;;  %v7223_v3 = vshll.u32 %v13505_v13, 16  ;;  %v13570_v56 = vld [vmem:[%s11042_s14 + $0x20] sm:$0xff] }
 0x414   : > { %10365 = vmatmul.msk.bf16.vlgmr.msrb.gmra.mxu3 %vm535_vm2, %v7592_v25  ;;  %v6497_v29 = vld [vmem:[#allocation2 + $0x18] sm:$0xff]  ;;  %v6186_v45 = vpop.f32.mrf.mxu2  ;;  %v7414_v21 = vshll.u32 %v13570_v56, 16 }
 0x415   : > { %6373 = vst.msk [vmem:[#allocation2 + $0x20] sm:$0xff] %vm599_vm6, %v6362_v59  ;;  %v6508_v48 = vadd.f32 %v6497_v29, %v13420_v62  ;;  %v10488_v62 = vld [vmem:[%s14280_s1 + $0x5e] sm:$0x3]  ;;  %v7225_v15 = vrot.slane %v7223_v3, 1  ;;  %v7767_v59 = vrot.slane %v13573_v27, 1 }
 0x416   : > { %v6005_v53 = vpop.f32.mrf.mxu1  ;;  %10396 = vmatmul.msk.bf16.vlgmr.msrb.gmra.mxu0 %vm535_vm2, %v7766_v58  ;;  %v8319_v20 = vand.u32 %v10488_v62, %v11031_v36  ;;  %v7416_v62 = vrot.slane %v7414_v21, 1 }
 0x417   : > { %v13536_v61 = vpop.f32.mrf.mxu3  ;;  %6519 = vst.msk [vmem:[#allocation2 + $0x18] sm:$0xff] %vm599_vm6, %v6508_v48  ;;  %v6035_v7 = vadd.f32 %v6024_v19, %v6005_v53  ;;  %v7768_v53 = vsel %vm1156_vm4, %v7765_v1, %v7767_v59 }
 0x418   : > { %v6206_v63 = vld [vmem:[#allocation2 + $0x30] sm:$0xff]  ;;  %8328 = vmatpush.bf16.msra.mxu3 %v8319_v20 }
 0x419   : > { %v6217_v38 = vadd.f32 %v6206_v63, %v6186_v45  ;;  %6046 = vst.msk [vmem:[#allocation2 + $0x38] sm:$0xff] %vm599_vm6, %v6035_v7  ;;  %v7227_v45 = vshrl.u32 %v13505_v13, 16  ;;  %v10519_v13 = vld [vmem:[%s14280_s1 + $0x60] sm:$0x3]  ;;  %v7412_v7 = vor.u32 %v7410_v24, %v7408_v40 }
 0x41a   : > { %v6352_v6 = vld [vmem:[#allocation2 + $0x28] sm:$0xff]  ;;  %v8466_v19 = vand.u32 %v10519_v13, %v11031_v36  ;;  %v7603_v36 = vor.u32 %v7601_v10, %v7599_v9  ;;  %v13621_v9 = vld [vmem:[%s11042_s14 + $0x28] sm:$0xff] }
 0x41b   : > { %v6363_v35 = vadd.f32 %v6352_v6, %v13460_v52  ;;  %6228 = vst.msk [vmem:[#allocation2 + $0x30] sm:$0xff] %vm599_vm6, %v6217_v38  ;;  %v13553_v37 = vpop.f32.mrf.mxu0  ;;  %v7226_v52 = vsel %vm789_vm3, %v7221_v42, %v7225_v15  ;;  %v7229_v1 = vor.u32 %v7227_v45, %v7225_v15  ;;  %v6027_v42 = vld [vmem:[#allocation2 + $0x50] sm:$0xff]  ;;  %v6683_v10 = vld [vmem:[#allocation2] sm:$0xff] }
 0x41c   : > { %v6498_v49 = vld [vmem:[#allocation2 + $0x20] sm:$0xff]  ;;  %v6188_v44 = vpop.f32.mrf.mxu2  ;;  %8475 = vmatpush.bf16.msra.mxu0 %v8466_v19 }
 0x41d   : > { %6374 = vst.msk [vmem:[#allocation2 + $0x28] sm:$0xff] %vm599_vm6, %v6363_v35  ;;  %v6509_v57 = vadd.f32 %v6498_v49, %v13437_v26  ;;  %v13567_v26 = vld [vmem:[%s11042_s14 + $0x9c] sm:$0xff]  ;;  %v7608_v49 = vsel %vm789_vm3, %v7603_v36, %v7607_v0 }
 0x41e   : > { %v6008_v14 = vpop.f32.mrf.mxu1  ;;  %v7231_v48 = vshll.u32 %v13567_v26, 16 }
 0x41f   : > { %v13559_v18 = vpop.f32.mrf.mxu3  ;;  %6520 = vst.msk [vmem:[#allocation2 + $0x20] sm:$0xff] %vm599_vm6, %v6509_v57  ;;  %v6036_v8 = vadd.f32 %v6025_v54, %v6008_v14  ;;  %v13624_v57 = vld [vmem:[%s11042_s14 + $0x28] sm:$0xff] }
 0x420   : > { %v6207_v2 = vld [vmem:[#allocation2 + $0x38] sm:$0xff]  ;;  %v7233_v58 = vrot.slane %v7231_v48, 1 }
 0x421   : > { %v6218_v22 = vadd.f32 %v6207_v2, %v6188_v44  ;;  %6047 = vst.msk [vmem:[#allocation2 + $0x40] sm:$0xff] %vm599_vm6, %v6036_v8  ;;  %10291 = vmatmul.msk.bf16.vlgmr.msrb.gmra.mxu1 %vm535_vm2, %v7226_v52  ;;  %10322 = vmatmul.msk.bf16.vlgmr.msrb.gmra.mxu2 %vm535_vm2, %v7409_v34  ;;  %v13632_v8 = vld [vmem:[%s11042_s14 + $0x70] sm:$0xff]  ;;  %v7769_v2 = vrot.slane %v13624_v57, 1 }
 0x422   : > { %v6353_v25 = vld [vmem:[#allocation2 + $0x30] sm:$0xff]  ;;  %v7234_v15 = vsel %vm789_vm3, %v7229_v1, %v7233_v58  ;;  %v7613_v45 = vshll.u32 %v13632_v8, 16 }
 0x423   : > { %v6364_v60 = vadd.f32 %v6353_v25, %v13478_v11  ;;  %6229 = vst.msk [vmem:[#allocation2 + $0x38] sm:$0xff] %vm599_vm6, %v6218_v22  ;;  %v13578_v4 = vpop.f32.mrf.mxu0  ;;  %v6026_v11 = vld [vmem:[#allocation2 + $0x48] sm:$0xff]  ;;  %v7235_v22 = vshrl.u32 %v13567_v26, 16  ;;  %v7609_v26 = vshrl.u32 %v13581_v23, 16 }
 0x424   : > { %10366 = vmatmul.msk.bf16.gmra.mxu3 %vm535_vm2, %v7600_v39  ;;  %v6499_v12 = vld [vmem:[#allocation2 + $0x28] sm:$0xff]  ;;  %v6191_v46 = vpop.f32.mrf.mxu2  ;;  %v7615_v13 = vrot.slane %v7613_v45, 1 }
 0x425   : > { %6375 = vst.msk [vmem:[#allocation2 + $0x30] sm:$0xff] %vm599_vm6, %v6364_v60  ;;  %v6510_v29 = vadd.f32 %v6499_v12, %v13452_v17  ;;  %v7418_v60 = vshrl.u32 %v13570_v56, 16  ;;  %v7422_v12 = vshll.u32 %v13621_v9, 16  ;;  %v10289_v45 = vld [vmem:[%s11042_s14 + $0xb4] sm:$0xf] }
 0x426   : > { %v6010_v16 = vpop.f32.mrf.mxu1  ;;  %10397 = vmatmul.msk.bf16.gmra.mxu0 %vm535_vm2, %v7768_v53 }
 0x427   : > { %v13590_v3 = vpop.f32.mrf.mxu3  ;;  %6521 = vst.msk [vmem:[#allocation2 + $0x28] sm:$0xff] %vm599_vm6, %v6510_v29  ;;  %v6037_v17 = vadd.f32 %v6026_v11, %v6010_v16  ;;  %v7770_v29 = vsel %vm1156_vm4, %v7767_v59, %v7769_v2  ;;  %v7237_v11 = vor.u32 %v7235_v22, %v7233_v58  ;;  %v7420_v24 = vor.u32 %v7418_v60, %v7416_v62  ;;  %v10363_v58 = vld [vmem:[%s11042_s14 + $0x78] sm:$0xf] }
 0x428   : > { %v6208_v33 = vld [vmem:[#allocation2 + $0x40] sm:$0xff]  ;;  %v7424_v21 = vrot.slane %v7422_v12, 1 }
 0x429   : > { %v6219_v5 = vadd.f32 %v6208_v33, %v6191_v46  ;;  %6048 = vst.msk [vmem:[#allocation2 + $0x48] sm:$0xff] %vm599_vm6, %v6037_v17  ;;  %v7611_v17 = vor.u32 %v7609_v26, %v7607_v0 }
 0x42a   : > { %v6354_v43 = vld [vmem:[#allocation2 + $0x38] sm:$0xff]  ;;  %v7425_v30 = vsel %vm789_vm3, %v7420_v24, %v7424_v21  ;;  %v10802_v24 = vld [vmem:[%s11042_s14 + $0x38] sm:$0x10] }
 0x42b   : > { %v6365_v63 = vadd.f32 %v6354_v43, %v13498_v28  ;;  %6230 = vst.msk [vmem:[#allocation2 + $0x40] sm:$0xff] %vm599_vm6, %v6219_v5  ;;  %v6492_v55 = vpop.f32.mrf.mxu0  ;;  %v7417_v28 = vsel %vm789_vm3, %v7412_v7, %v7416_v62  ;;  %v7616_v1 = vsel %vm789_vm3, %v7611_v17, %v7615_v13  ;;  %v10808_v7 = vld [vmem:[%s11042_s14 + $0x78] sm:$0x10] }
 0x42c   : > { %v6500_v20 = vld [vmem:[#allocation2 + $0x30] sm:$0xff]  ;;  %v6193_v50 = vpop.f32.mrf.mxu2 }
 0x42d   : > { %6376 = vst.msk [vmem:[#allocation2 + $0x38] sm:$0xff] %vm599_vm6, %v6365_v63  ;;  %v6511_v38 = vadd.f32 %v6500_v20, %v13471_v51  ;;  %v13618_v51 = vld [vmem:[%s11042_s14 + $0xa4] sm:$0xff]  ;;  %v13673_v63 = vld [vmem:[%s11042_s14 + $0x30] sm:$0xff] }
 0x42e   : > { %v6013_v6 = vpop.f32.mrf.mxu1  ;;  %v13676_v20 = vld [vmem:[%s11042_s14 + $0x30] sm:$0xff] }
 0x42f   : > { %v6345_v31 = vpop.f32.mrf.mxu3  ;;  %6522 = vst.msk [vmem:[#allocation2 + $0x30] sm:$0xff] %vm599_vm6, %v6511_v38  ;;  %v6038_v40 = vadd.f32 %v6027_v42, %v6013_v6  ;;  %v13682_v38 = vor.u32 %v10808_v7, %v10363_v58  ;;  %v7771_v6 = vrot.slane %v13676_v20, 1  ;;  %v6686_v7 = vld [vmem:[#allocation2 + $0x18] sm:$0xff] }
 0x430   : > { %v6209_v35 = vld [vmem:[#allocation2 + $0x48] sm:$0xff] }
 0x431   : > { %v6220_v44 = vadd.f32 %v6209_v35, %v6193_v50  ;;  %6049 = vst.msk [vmem:[#allocation2 + $0x50] sm:$0xff] %vm599_vm6, %v6038_v40  ;;  %10292 = vmatmul.msk.bf16.gmra.mxu1 %vm535_vm2, %v7234_v15  ;;  %10323 = vmatmul.msk.bf16.gmra.mxu2 %vm535_vm2, %v7417_v28  ;;  %v7243_v15 = vshrl.u32 %v13618_v51, 16  ;;  %v6684_v31 = vld [vmem:[#allocation2 + $0x8] sm:$0xff]  ;;  %v7426_v40 = vshrl.u32 %v13621_v9, 16  ;;  %v7430_v35 = vshll.u32 %v13673_v63, 16 }
 0x432   : > { %v6355_v41 = vld [vmem:[#allocation2 + $0x40] sm:$0xff]  ;;  %v7621_v9 = vshll.u32 %v13682_v38, 16 }
 0x433   : > { %v6366_v14 = vadd.f32 %v6355_v41, %v13536_v61  ;;  %6231 = vst.msk [vmem:[#allocation2 + $0x48] sm:$0xff] %vm599_vm6, %v6220_v44  ;;  %v13629_v34 = vpop.f32.mrf.mxu0  ;;  %v7239_v61 = vshll.u32 %v13618_v51, 16  ;;  %v7772_v44 = vsel %vm1156_vm4, %v7769_v2, %v7771_v6  ;;  %v7617_v41 = vshrl.u32 %v13632_v8, 16 }
 0x434   : > { %10367 = vmatmul.msk.bf16.gmra.mxu3 %vm535_vm2, %v7608_v49  ;;  %v6501_v54 = vld [vmem:[#allocation2 + $0x38] sm:$0xff]  ;;  %v6196_v52 = vpop.f32.mrf.mxu2  ;;  %v7428_v57 = vor.u32 %v7426_v40, %v7424_v21 }
 0x435   : > { %6377 = vst.msk [vmem:[#allocation2 + $0x40] sm:$0xff] %vm599_vm6, %v6366_v14  ;;  %v6512_v39 = vadd.f32 %v6501_v54, %v13492_v32  ;;  %v7241_v48 = vrot.slane %v7239_v61, 1  ;;  %v13704_v61 = vrot.slane %v7621_v9, 1  ;;  %v10827_v9 = vld [vmem:[%s11042_s14 + $0x50] sm:$0xf0] }
 0x436   : > { %v6015_v25 = vpop.f32.mrf.mxu1  ;;  %10398 = vmatmul.msk.bf16.gmra.mxu0 %vm535_vm2, %v7770_v29  ;;  %v6685_v29 = vld [vmem:[#allocation2 + $0x10] sm:$0xff] }
 0x437   : > { %v13641_v46 = vpop.f32.mrf.mxu3  ;;  %6523 = vst.msk [vmem:[#allocation2 + $0x38] sm:$0xff] %vm599_vm6, %v6512_v39  ;;  %v7245_v54 = vor.u32 %v7243_v15, %v7241_v48  ;;  %v7432_v39 = vrot.slane %v7430_v35, 1  ;;  %v7619_v25 = vor.u32 %v7617_v41, %v7615_v13  ;;  %v10491_v41 = vld [vmem:[%s11042_s14 + $0x50] sm:$0xe] }
 0x438   : > { %v6210_v32 = vld [vmem:[#allocation2 + $0x50] sm:$0xff] }
 0x439   : > { %v6221_v56 = vadd.f32 %v6210_v32, %v6196_v52  ;;  %v7433_v26 = vsel %vm789_vm3, %v7428_v57, %v7432_v39 }
 0x43a   : > { %v6356_v16 = vld [vmem:[#allocation2 + $0x48] sm:$0xff] }
 0x43b   : > { %v6367_v53 = vadd.f32 %v6356_v16, %v13559_v18  ;;  %6232 = vst.msk [vmem:[#allocation2 + $0x50] sm:$0xff] %vm599_vm6, %v6221_v56  ;;  %v13654_v33 = vpop.f32.mrf.mxu0  ;;  %v7242_v18 = vsel %vm789_vm3, %v7237_v11, %v7241_v48  ;;  %v10796_v56 = vld [vmem:[%s11042_s14 + $0xb4] sm:$0x10] }
 0x43c   : > { %v6502_v27 = vld [vmem:[#allocation2 + $0x40] sm:$0xff]  ;;  %v6198_v59 = vpop.f32.mrf.mxu2  ;;  %v10320_v48 = vld [vmem:[%s11042_s14 + $0x38] sm:$0xf]  ;;  %v13725_v13 = vor.u32 %v10796_v56, %v10289_v45 }
 0x43d   : > { %6378 = vst.msk [vmem:[#allocation2 + $0x48] sm:$0xff] %vm599_vm6, %v6367_v53  ;;  %v6513_v23 = vadd.f32 %v6502_v27, %v13526_v47  ;;  %v13668_v47 = vld [vmem:[%s11042_s14 + $0xac] sm:$0xff]  ;;  %v10394_v27 = vld [vmem:[%s11042_s14 + $0x38] sm:$0xf]  ;;  %v10814_v59 = vld [vmem:[%s11042_s14 + $0x38] sm:$0x10] }
 0x43e   : > { %v6654_v19 = vpop.f32.mrf.mxu1 }
 0x43f   : > { %v13660_v5 = vpop.f32.mrf.mxu3  ;;  %6524 = vst.msk [vmem:[#allocation2 + $0x40] sm:$0xff] %vm599_vm6, %v6513_v23  ;;  %v6694_v43 = vadd.f32 %v6683_v10, %v6654_v19  ;;  %v13727_v23 = vor.u32 %v10802_v24, %v10320_v48  ;;  %v10395_v19 = vor.u32 %v10814_v59, %v10394_v27 }
 0x441   : > { %6705 = vst.msk [vmem:[#allocation2] sm:$0xff] %vm599_vm6, %v6694_v43  ;;  %10293 = vmatmul.msk.bf16.gmra.mxu1 %vm535_vm2, %v7242_v18  ;;  %10324 = vmatmul.msk.bf16.gmra.mxu2 %vm535_vm2, %v7425_v30  ;;  %v13734_v43 = vrot.slane %v10395_v19, 1 }
 0x442   : > { %v6357_v62 = vld [vmem:[#allocation2 + $0x50] sm:$0xff] }
 0x443   : > { %v6368_v50 = vadd.f32 %v6357_v62, %v13590_v3  ;;  %v13680_v55 = vpop.f32.mrf.mxu0  ;;  %v7247_v3 = vshll.u32 %v13668_v47, 16  ;;  %v7255_v62 = vshll.u32 %v13725_v13, 16 }
 0x444   : > { %10368 = vmatmul.msk.bf16.gmra.mxu3 %vm535_vm2, %v7616_v1  ;;  %v6503_v36 = vld [vmem:[#allocation2 + $0x48] sm:$0xff]  ;;  %v6843_v0 = vpop.f32.mrf.mxu2  ;;  %v7251_v1 = vshrl.u32 %v13668_v47, 16 }
 0x445   : > { %6379 = vst.msk [vmem:[#allocation2 + $0x50] sm:$0xff] %vm599_vm6, %v6368_v50  ;;  %v6514_v42 = vadd.f32 %v6503_v36, %v13553_v37  ;;  %v7249_v52 = vrot.slane %v7247_v3, 1  ;;  %v7434_v50 = vshrl.u32 %v13673_v63, 16 }
 0x446   : > { %v6656_v28 = vpop.f32.mrf.mxu1  ;;  %10399 = vmatmul.msk.bf16.gmra.mxu0 %vm535_vm2, %v7772_v44 }
 0x447   : > { %v13691_v49 = vpop.f32.mrf.mxu3  ;;  %6525 = vst.msk [vmem:[#allocation2 + $0x48] sm:$0xff] %vm599_vm6, %v6514_v42  ;;  %v6695_v37 = vadd.f32 %v6684_v31, %v6656_v28  ;;  %v7250_v32 = vsel %vm789_vm3, %v7245_v54, %v7249_v52  ;;  %v7253_v63 = vor.u32 %v7251_v1, %v7249_v52  ;;  %v13749_v31 = vrot.slane %v7255_v62, 1  ;;  %v6687_v54 = vld [vmem:[#allocation2 + $0x20] sm:$0xff]  ;;  %v10448_v1 = vld [vmem:[%s11042_s14 + $0x10] sm:$0xe] }
 0x448   : > { %v6872_v51 = vld [vmem:[#allocation2] sm:$0xff]  ;;  %v7436_v3 = vor.u32 %v7434_v50, %v7432_v39 }
 0x449   : > { %v6883_v14 = vadd.f32 %v6872_v51, %v6843_v0  ;;  %6706 = vst.msk [vmem:[#allocation2 + $0x8] sm:$0xff] %vm599_vm6, %v6695_v37  ;;  %v7774_v0 = vsel %vm1156_vm4, %v7771_v6, %v13734_v43  ;;  %v7625_v6 = vshrl.u32 %v13682_v38, 16 }
 0x44b   : > { %6894 = vst.msk [vmem:[#allocation2] sm:$0xff] %vm599_vm6, %v6883_v14  ;;  %v13706_v8 = vpop.f32.mrf.mxu0  ;;  %v7627_v39 = vor.u32 %v7625_v6, %v13704_v61 }
 0x44c   : > { %v6504_v2 = vld [vmem:[#allocation2 + $0x50] sm:$0xff]  ;;  %v6845_v22 = vpop.f32.mrf.mxu2 }
 0x44d   : > { %v6515_v60 = vadd.f32 %v6504_v2, %v13578_v4  ;;  %v7624_v4 = vsel %vm789_vm3, %v7619_v25, %v13704_v61 }
 0x44e   : > { %v6659_v12 = vpop.f32.mrf.mxu1 }
 0x44f   : > { %v13713_v16 = vpop.f32.mrf.mxu3  ;;  %6526 = vst.msk [vmem:[#allocation2 + $0x50] sm:$0xff] %vm599_vm6, %v6515_v60  ;;  %v6696_v11 = vadd.f32 %v6685_v29, %v6659_v12 }
 0x450   : > { %v6873_v21 = vld [vmem:[#allocation2 + $0x8] sm:$0xff] }
 0x451   : > { %v6884_v53 = vadd.f32 %v6873_v21, %v6845_v22  ;;  %6707 = vst.msk [vmem:[#allocation2 + $0x10] sm:$0xff] %vm599_vm6, %v6696_v11  ;;  %10294 = vmatmul.msk.bf16.gmra.mxu1 %vm535_vm2, %v7250_v32  ;;  %10325 = vmatmul.msk.bf16.gmra.mxu2 %vm535_vm2, %v7433_v26  ;;  %v10828_v22 = vld [vmem:[%s11042_s14 + $0x58] sm:$0xff] }
 0x452   : > { %v7005_v17 = vld [vmem:[#allocation2] sm:$0xff]  ;;  %v8256_v56 = vshrl.u32 %v10828_v22, 16  ;;  %v8259_v11 = vshll.u32 %v10828_v22, 16 }
 0x453   : > { %v7016_v10 = vadd.f32 %v7005_v17, %v13641_v46  ;;  %6895 = vst.msk [vmem:[#allocation2 + $0x8] sm:$0xff] %vm599_vm6, %v6884_v53  ;;  %v13732_v30 = vpop.f32.mrf.mxu0  ;;  %v7438_v46 = vshll.u32 %v13727_v23, 16  ;;  %v7259_v53 = vshrl.u32 %v13725_v13, 16 }
 0x454   : > { %10369 = vmatmul.msk.bf16.gmra.mxu3 %vm535_vm2, %v7624_v4  ;;  %v6848_v18 = vpop.f32.mrf.mxu2  ;;  %v8258_v19 = vrot.slane %v8256_v56, 1 }
 0x455   : > { %7027 = vst.msk [vmem:[#allocation2] sm:$0xff] %vm599_vm6, %v7016_v10  ;;  %v13751_v40 = vrot.slane %v7438_v46, 1  ;;  %v8261_v10 = vrot.slane %v8259_v11, 2  ;;  %v6690_v11 = vld [vmem:[#allocation2 + $0x38] sm:$0xff] }
 0x456   : > { %v6661_v58 = vpop.f32.mrf.mxu1  ;;  %10400 = vmatmul.msk.bf16.gmra.mxu0 %vm535_vm2, %v7774_v0 }
 0x457   : > { %v13741_v36 = vpop.f32.mrf.mxu3  ;;  %v6697_v42 = vadd.f32 %v6686_v7, %v6661_v58  ;;  %v7441_v52 = vsel %vm789_vm3, %v7436_v3, %v13751_v40  ;;  %v10821_v58 = vld [vmem:[%s11042_s14 + $0x10] sm:$0xf0]  ;;  %v13793_v0 = vor.u32 %v8261_v10, %v8258_v19 }
 0x458   : > { %v6874_v15 = vld [vmem:[#allocation2 + $0x10] sm:$0xff]  ;;  %v10449_v50 = vor.u32 %v10821_v58, %v10448_v1 }
 0x459   : > { %v6885_v47 = vadd.f32 %v6874_v15, %v6848_v18  ;;  %6708 = vst.msk [vmem:[#allocation2 + $0x18] sm:$0xff] %vm599_vm6, %v6697_v42  ;;  %v7442_v18 = vshrl.u32 %v13727_v23, 16  ;;  %v7261_v15 = vor.u32 %v7259_v53, %v13749_v31 }
 0x45a   : > { %v7006_v28 = vld [vmem:[#allocation2 + $0x8] sm:$0xff] }
 0x45b   : > { %v7017_v20 = vadd.f32 %v7006_v28, %v13660_v5  ;;  %6896 = vst.msk [vmem:[#allocation2 + $0x10] sm:$0xff] %vm599_vm6, %v6885_v47  ;;  %v13756_v37 = vpop.f32.mrf.mxu0  ;;  %v7258_v5 = vsel %vm789_vm3, %v7253_v63, %v13749_v31  ;;  %v6689_v28 = vld [vmem:[#allocation2 + $0x30] sm:$0xff]  ;;  %v10829_v31 = vld [vmem:[%s11042_s14 + $0x60] sm:$0xff] }
 0x45c   : > { %v7138_v35 = vld [vmem:[#allocation2] sm:$0xff]  ;;  %v6850_v44 = vpop.f32.mrf.mxu2  ;;  %v10822_v63 = vld [vmem:[%s11042_s14 + $0x18] sm:$0xff] }
 0x45d   : > { %7028 = vst.msk [vmem:[#allocation2 + $0x8] sm:$0xff] %vm599_vm6, %v7017_v20  ;;  %v7149_v51 = vadd.f32 %v7138_v35, %v13629_v34  ;;  %v10492_v34 = vor.u32 %v10827_v9, %v10491_v41  ;;  %v10417_v35 = vld [vmem:[%s11042_s14 + $0x50] sm:$0xe]  ;;  %v10833_v9 = vld [vmem:[%s11042_s14 + $0x10] sm:$0xf0] }
 0x45e   : > { %v6664_v14 = vpop.f32.mrf.mxu1  ;;  %v10522_v41 = vld [vmem:[%s11042_s14 + $0x10] sm:$0xc] }
 0x45f   : > { %v13766_v38 = vpop.f32.mrf.mxu3  ;;  %7160 = vst.msk [vmem:[#allocation2] sm:$0xff] %vm599_vm6, %v7149_v51  ;;  %v6698_v57 = vadd.f32 %v6687_v54, %v6664_v14  ;;  %v8248_v26 = vshrl.u32 %v10492_v34, 16  ;;  %v8251_v45 = vshll.u32 %v10492_v34, 16  ;;  %v8062_v51 = vshll.u32 %v10449_v50, 16  ;;  %v10815_v54 = vld [vmem:[%s11042_s14 + $0x50] sm:$0xf0] }
 0x460   : > { %v6875_v2 = vld [vmem:[#allocation2 + $0x18] sm:$0xff] }
 0x461   : > { %v6886_v25 = vadd.f32 %v6875_v2, %v6850_v44  ;;  %6709 = vst.msk [vmem:[#allocation2 + $0x20] sm:$0xff] %vm599_vm6, %v6698_v57  ;;  %10295 = vmatmul.msk.bf16.gmra.mxu1 %vm535_vm2, %v7258_v5  ;;  %10326 = vmatmul.msk.bf16.gmra.mxu2 %vm535_vm2, %v7441_v52  ;;  %v8250_v59 = vrot.slane %v8248_v26, 1  ;;  %v8253_v17 = vrot.slane %v8251_v45, 2  ;;  %v8059_v44 = vshrl.u32 %v10449_v50, 16  ;;  %v13816_v57 = vld [vmem:[%s11042_s14 + $0x18] sm:$0xff] }
 0x462   : > { %v7007_v60 = vld [vmem:[#allocation2 + $0x10] sm:$0xff]  ;;  %v8067_v5 = vshrl.u32 %v10822_v63, 16  ;;  %v8070_v52 = vshll.u32 %v10822_v63, 16  ;;  %v10418_v45 = vor.u32 %v10815_v54, %v10417_v35  ;;  %v10830_v35 = vld [vmem:[%s11042_s14 + $0x68] sm:$0xff] }
 0x463   : > { %v7018_v12 = vadd.f32 %v7007_v60, %v13691_v49  ;;  %6897 = vst.msk [vmem:[#allocation2 + $0x18] sm:$0xff] %vm599_vm6, %v6886_v25  ;;  %v13777_v61 = vpop.f32.mrf.mxu0  ;;  %v6688_v49 = vld [vmem:[#allocation2 + $0x28] sm:$0xff]  ;;  %v8254_v46 = vor.u32 %v8253_v17, %v8250_v59  ;;  %v8265_v60 = vshrl.u32 %v10829_v31, 16  ;;  %v8274_v54 = vshrl.u32 %v10830_v35, 16 }
 0x464   : > { %10370 = vmatmul.msk.bf16.gmra.mxu3 %vm535_vm2, %v7627_v39  ;;  %v7139_v29 = vld [vmem:[#allocation2 + $0x8] sm:$0xff]  ;;  %v6853_v32 = vpop.f32.mrf.mxu2  ;;  %v10523_v39 = vor.u32 %v10833_v9, %v10522_v41 }
 0x465   : > { %7029 = vst.msk [vmem:[#allocation2 + $0x10] sm:$0xff] %vm599_vm6, %v7018_v12  ;;  %v7150_v48 = vadd.f32 %v7139_v29, %v13654_v33  ;;  %v8268_v12 = vshll.u32 %v10829_v31, 16  ;;  %v8267_v17 = vrot.slane %v8265_v60, 1 }
 0x466   : > { %v6666_v24 = vpop.f32.mrf.mxu1  ;;  %10401 = vmatmul.msk.bf16.gmra.mxu0 %vm535_vm2, %v13734_v43  ;;  %v8436_v29 = vrot.slane %v10523_v39, 2 }
 0x467   : > { %v13781_v21 = vpop.f32.mrf.mxu3  ;;  %7161 = vst.msk [vmem:[#allocation2 + $0x8] sm:$0xff] %vm599_vm6, %v7150_v48  ;;  %v6699_v4 = vadd.f32 %v6688_v49, %v6666_v24  ;;  %v13827_v48 = vld [vmem:[%s11042_s14 + $0x58] sm:$0xff]  ;;  %v8064_v24 = vrot.slane %v8062_v51, 2  ;;  %v8069_v49 = vrot.slane %v8067_v5, 1  ;;  %v8270_v19 = vrot.slane %v8268_v12, 2  ;;  %v13865_v51 = vld [vmem:[%s11042_s14 + $0x20] sm:$0xff] }
 0x468   : > { %v6876_v27 = vld [vmem:[#allocation2 + $0x20] sm:$0xff]  ;;  %v7912_v1 = vrot.slane %v13827_v48, 1  ;;  %v8277_v5 = vshll.u32 %v10830_v35, 16 }
 0x469   : > { %v6887_v33 = vadd.f32 %v6876_v27, %v6853_v32  ;;  %6710 = vst.msk [vmem:[#allocation2 + $0x28] sm:$0xff] %vm599_vm6, %v6699_v4  ;;  %v8437_v32 = vrot.slane %v13816_v57, 2  ;;  %v8072_v4 = vrot.slane %v8070_v52, 2  ;;  %v13842_v50 = vor.u32 %v8270_v19, %v8267_v17  ;;  %v6693_v19 = vld [vmem:[#allocation2 + $0x50] sm:$0xff]  ;;  %v13926_v35 = vld [vmem:[%s11042_s14 + $0x68] sm:$0xff] }
 0x46a   : > { %v7008_v7 = vld [vmem:[#allocation2 + $0x18] sm:$0xff]  ;;  %v8439_v52 = vrot.slane %v13865_v51, 2 }
 0x46b   : > { %v7019_v62 = vadd.f32 %v7008_v7, %v13713_v16  ;;  %6898 = vst.msk [vmem:[#allocation2 + $0x20] sm:$0xff] %vm599_vm6, %v6887_v33  ;;  %v13795_v42 = vpop.f32.mrf.mxu0  ;;  %v7444_v16 = vor.u32 %v7442_v18, %v13751_v40  ;;  %v8438_v27 = vsel %vm3136_vm7, %v8436_v29, %v8437_v32  ;;  %v7911_v18 = vrot.slane %v10418_v45, 1 }
 0x46c   : > { %v7140_v13 = vld [vmem:[#allocation2 + $0x10] sm:$0xff]  ;;  %v6855_v43 = vpop.f32.mrf.mxu2  ;;  %v13838_v7 = vor.u32 %v8072_v4, %v8069_v49  ;;  %v8440_v29 = vsel %vm3136_vm7, %v8437_v32, %v8439_v52  ;;  %v8276_v45 = vrot.slane %v8274_v54, 1  ;;  %v7916_v54 = vrot.slane %v13926_v35, 1 }
 0x46d   : > { %7030 = vst.msk [vmem:[#allocation2 + $0x18] sm:$0xff] %vm599_vm6, %v7019_v62  ;;  %v7151_v23 = vadd.f32 %v7140_v13, %v13680_v55  ;;  %v8263_v55 = vsel %vm1451_vm5, %v8254_v46, %v13793_v0 }
 0x46e   : > { %v6669_v47 = vpop.f32.mrf.mxu1 }
 0x46f   : > { %v13802_v3 = vpop.f32.mrf.mxu3  ;;  %7162 = vst.msk [vmem:[#allocation2 + $0x10] sm:$0xff] %vm599_vm6, %v7151_v23  ;;  %v6700_v20 = vadd.f32 %v6689_v28, %v6669_v47  ;;  %v7913_v47 = vsel %vm1156_vm4, %v7911_v18, %v7912_v1  ;;  %v10823_v28 = vld [vmem:[%s11042_s14 + $0x20] sm:$0xff] }
 0x470   : > { %v6877_v6 = vld [vmem:[#allocation2 + $0x28] sm:$0xff]  ;;  %v8076_v31 = vshrl.u32 %v10823_v28, 16 }
 0x471   : > { %v6888_v40 = vadd.f32 %v6877_v6, %v6855_v43  ;;  %6711 = vst.msk [vmem:[#allocation2 + $0x30] sm:$0xff] %vm599_vm6, %v6700_v20  ;;  %10296 = vmatmul.msk.bf16.gmra.mxu1 %vm535_vm2, %v7261_v15  ;;  %10327 = vmatmul.msk.bf16.gmra.mxu2 %vm535_vm2, %v7444_v16  ;;  %v6691_v16 = vld [vmem:[#allocation2 + $0x40] sm:$0xff] }
 0x472   : > { %v7009_v14 = vld [vmem:[#allocation2 + $0x20] sm:$0xff] }
 0x473   : > { %v7020_v2 = vadd.f32 %v7009_v14, %v13741_v36  ;;  %6899 = vst.msk [vmem:[#allocation2 + $0x28] sm:$0xff] %vm599_vm6, %v6888_v40  ;;  %v13821_v25 = vpop.f32.mrf.mxu0  ;;  %v8061_v36 = vrot.slane %v8059_v44, 1  ;;  %v8079_v40 = vshll.u32 %v10823_v28, 16 }
 0x474   : > { %10513 = vmatmul.msk.bf16.vlgmr.msra.gmra.mxu3 %vm535_vm2, %v8263_v55  ;;  %v7141_v22 = vld [vmem:[#allocation2 + $0x18] sm:$0xff]  ;;  %v6858_v34 = vpop.f32.mrf.mxu2 }
 0x475   : > { %7031 = vst.msk [vmem:[#allocation2 + $0x20] sm:$0xff] %vm599_vm6, %v7020_v2  ;;  %v7152_v26 = vadd.f32 %v7141_v22, %v13706_v8  ;;  %v8065_v58 = vor.u32 %v8064_v24, %v8061_v36  ;;  %v6692_v22 = vld [vmem:[#allocation2 + $0x48] sm:$0xff]  ;;  %v8081_v60 = vrot.slane %v8079_v40, 2  ;;  %v8279_v36 = vrot.slane %v8277_v5, 2 }
 0x476   : > { %v6671_v56 = vpop.f32.mrf.mxu1  ;;  %10544 = vmatmul.msk.bf16.vlgmr.msra.gmra.mxu0 %vm535_vm2, %v8438_v27 }
 0x477   : > { %v13829_v53 = vpop.f32.mrf.mxu3  ;;  %7163 = vst.msk [vmem:[#allocation2 + $0x18] sm:$0xff] %vm599_vm6, %v7152_v26  ;;  %v6701_v59 = vadd.f32 %v6690_v11, %v6671_v56  ;;  %v13893_v27 = vor.u32 %v8279_v36, %v8276_v45  ;;  %v10825_v36 = vld [vmem:[%s11042_s14 + $0x30] sm:$0xff] }
 0x478   : > { %v6878_v8 = vld [vmem:[#allocation2 + $0x30] sm:$0xff] }
 0x479   : > { %v6889_v10 = vadd.f32 %v6878_v8, %v6858_v34  ;;  %6712 = vst.msk [vmem:[#allocation2 + $0x38] sm:$0xff] %vm599_vm6, %v6701_v59  ;;  %v13876_v34 = vld [vmem:[%s11042_s14 + $0x60] sm:$0xff] }
 0x47a   : > { %v7010_v33 = vld [vmem:[#allocation2 + $0x28] sm:$0xff]  ;;  %v7914_v24 = vrot.slane %v13876_v34, 1 }
 0x47b   : > { %v7021_v62 = vadd.f32 %v7010_v33, %v13766_v38  ;;  %6900 = vst.msk [vmem:[#allocation2 + $0x30] sm:$0xff] %vm599_vm6, %v6889_v10  ;;  %v13844_v46 = vpop.f32.mrf.mxu0  ;;  %v8074_v38 = vsel %vm1451_vm5, %v8065_v58, %v13838_v7  ;;  %v10824_v33 = vld [vmem:[%s11042_s14 + $0x28] sm:$0xff] }
 0x47c   : > { %v7142_v13 = vld [vmem:[#allocation2 + $0x20] sm:$0xff]  ;;  %v6860_v43 = vpop.f32.mrf.mxu2 }
 0x47d   : > { %7032 = vst.msk [vmem:[#allocation2 + $0x28] sm:$0xff] %vm599_vm6, %v7021_v62  ;;  %v7153_v23 = vadd.f32 %v7142_v13, %v13732_v30  ;;  %v8272_v30 = vsel %vm1451_vm5, %v13793_v0, %v13842_v50  ;;  %v10831_v13 = vld [vmem:[%s11042_s14 + $0x70] sm:$0xff] }
 0x47e   : > { %v6674_v15 = vpop.f32.mrf.mxu1  ;;  %v8286_v28 = vshll.u32 %v10831_v13, 16 }
 0x47f   : > { %v13854_v63 = vpop.f32.mrf.mxu3  ;;  %7164 = vst.msk [vmem:[#allocation2 + $0x20] sm:$0xff] %vm599_vm6, %v7153_v23  ;;  %v6702_v20 = vadd.f32 %v6691_v16, %v6674_v15  ;;  %v13915_v23 = vld [vmem:[%s11042_s14 + $0x28] sm:$0xff] }
 0x480   : > { %v6879_v6 = vld [vmem:[#allocation2 + $0x38] sm:$0xff] }
 0x481   : > { %v6890_v44 = vadd.f32 %v6879_v6, %v6860_v43  ;;  %6713 = vst.msk [vmem:[#allocation2 + $0x40] sm:$0xff] %vm599_vm6, %v6702_v20  ;;  %10439 = vmatmul.msk.bf16.vlgmr.msra.gmra.mxu1 %vm535_vm2, %v7913_v47  ;;  %10470 = vmatmul.msk.bf16.vlgmr.msra.gmra.mxu2 %vm535_vm2, %v8074_v38  ;;  %v8283_v38 = vshrl.u32 %v10831_v13, 16  ;;  %v8441_v20 = vrot.slane %v13915_v23, 2 }
 0x482   : > { %v7011_v55 = vld [vmem:[#allocation2 + $0x30] sm:$0xff] }
 0x483   : > { %v7022_v41 = vadd.f32 %v7011_v55, %v13781_v21  ;;  %6901 = vst.msk [vmem:[#allocation2 + $0x38] sm:$0xff] %vm599_vm6, %v6890_v44  ;;  %v13870_v14 = vpop.f32.mrf.mxu0  ;;  %v8078_v21 = vrot.slane %v8076_v31, 1  ;;  %v8442_v31 = vsel %vm3136_vm7, %v8439_v52, %v8441_v20 }
 0x484   : > { %10514 = vmatmul.msk.bf16.gmra.mxu3 %vm535_vm2, %v8272_v30  ;;  %v7143_v0 = vld [vmem:[#allocation2 + $0x28] sm:$0xff]  ;;  %v6863_v9 = vpop.f32.mrf.mxu2 }
 0x485   : > { %7033 = vst.msk [vmem:[#allocation2 + $0x30] sm:$0xff] %vm599_vm6, %v7022_v41  ;;  %v7154_v39 = vadd.f32 %v7143_v0, %v13756_v37  ;;  %v13889_v49 = vor.u32 %v8081_v60, %v8078_v21  ;;  %v8285_v41 = vrot.slane %v8283_v38, 1  ;;  %v10511_v60 = vld [vmem:[%s11042_s14 + $0x78] sm:$0xf] }
 0x486   : > { %v6676_v2 = vpop.f32.mrf.mxu1  ;;  %10545 = vmatmul.msk.bf16.gmra.mxu0 %vm535_vm2, %v8440_v29  ;;  %v10832_v29 = vld [vmem:[%s11042_s14 + $0x78] sm:$0x30] }
 0x487   : > { %v13878_v12 = vpop.f32.mrf.mxu3  ;;  %7165 = vst.msk [vmem:[#allocation2 + $0x28] sm:$0xff] %vm599_vm6, %v7154_v39  ;;  %v6703_v26 = vadd.f32 %v6692_v22, %v6676_v2  ;;  %v8083_v10 = vsel %vm1451_vm5, %v13838_v7, %v13889_v49  ;;  %v8088_v7 = vshll.u32 %v10824_v33, 16 }
 0x488   : > { %v6880_v37 = vld [vmem:[#allocation2 + $0x40] sm:$0xff] }
 0x489   : > { %v6891_v56 = vadd.f32 %v6880_v37, %v6863_v9  ;;  %6714 = vst.msk [vmem:[#allocation2 + $0x48] sm:$0xff] %vm599_vm6, %v6703_v26  ;;  %v8090_v44 = vrot.slane %v8088_v7, 2  ;;  %v7321_v37 = vld [vmem:[#allocation2] sm:$0xff] }
 0x48a   : > { %v7012_v11 = vld [vmem:[#allocation2 + $0x38] sm:$0xff] }
 0x48b   : > { %v7023_v57 = vadd.f32 %v7012_v11, %v13802_v3  ;;  %6902 = vst.msk [vmem:[#allocation2 + $0x40] sm:$0xff] %vm599_vm6, %v6891_v56  ;;  %v7136_v59 = vpop.f32.mrf.mxu0  ;;  %v7915_v3 = vsel %vm1156_vm4, %v7912_v1, %v7914_v24  ;;  %v8085_v1 = vshrl.u32 %v10824_v33, 16 }
 0x48c   : > { %v7144_v32 = vld [vmem:[#allocation2 + $0x30] sm:$0xff]  ;;  %v6865_v4 = vpop.f32.mrf.mxu2 }
 0x48d   : > { %7034 = vst.msk [vmem:[#allocation2 + $0x38] sm:$0xff] %vm599_vm6, %v7023_v57  ;;  %v7155_v8 = vadd.f32 %v7144_v32, %v13777_v61  ;;  %v8281_v61 = vsel %vm1451_vm5, %v13842_v50, %v13893_v27  ;;  %v10512_v57 = vor.u32 %v10832_v29, %v10511_v60  ;;  %v13967_v32 = vld [vmem:[%s11042_s14 + $0x30] sm:$0xff]  ;;  %v10437_v29 = vld [vmem:[%s11042_s14 + $0x78] sm:$0xf] }
 0x48e   : > { %v6679_v17 = vpop.f32.mrf.mxu1 }
 0x48f   : > { %v7003_v18 = vpop.f32.mrf.mxu3  ;;  %7166 = vst.msk [vmem:[#allocation2 + $0x30] sm:$0xff] %vm599_vm6, %v7155_v8  ;;  %v6704_v58 = vadd.f32 %v6693_v19, %v6679_v17  ;;  %v8292_v17 = vshrl.u32 %v10512_v57, 16  ;;  %v8295_v19 = vshll.u32 %v10512_v57, 16 }
 0x490   : > { %v6881_v62 = vld [vmem:[#allocation2 + $0x48] sm:$0xff] }
 0x491   : > { %v6892_v43 = vadd.f32 %v6881_v62, %v6865_v4  ;;  %6715 = vst.msk [vmem:[#allocation2 + $0x50] sm:$0xff] %vm599_vm6, %v6704_v58  ;;  %10440 = vmatmul.msk.bf16.gmra.mxu1 %vm535_vm2, %v7915_v3  ;;  %10471 = vmatmul.msk.bf16.gmra.mxu2 %vm535_vm2, %v8083_v10  ;;  %v8443_v3 = vrot.slane %v13967_v32, 2  ;;  %v7322_v18 = vld [vmem:[#allocation2 + $0x8] sm:$0xff] }
 0x492   : > { %v7013_v48 = vld [vmem:[#allocation2 + $0x40] sm:$0xff]  ;;  %v13977_v58 = vld [vmem:[%s11042_s14 + $0x70] sm:$0xff] }
 0x493   : > { %v7024_v15 = vadd.f32 %v7013_v48, %v13829_v53  ;;  %6903 = vst.msk [vmem:[#allocation2 + $0x48] sm:$0xff] %vm599_vm6, %v6892_v43  ;;  %v13920_v47 = vpop.f32.mrf.mxu0  ;;  %v8087_v53 = vrot.slane %v8085_v1, 1  ;;  %v8444_v13 = vsel %vm3136_vm7, %v8441_v20, %v8443_v3  ;;  %v8294_v48 = vrot.slane %v8292_v17, 1 }
 0x494   : > { %10515 = vmatmul.msk.bf16.gmra.mxu3 %vm535_vm2, %v8281_v61  ;;  %v7145_v50 = vld [vmem:[#allocation2 + $0x38] sm:$0xff]  ;;  %v6868_v16 = vpop.f32.mrf.mxu2  ;;  %v8297_v1 = vrot.slane %v8295_v19, 2  ;;  %v7918_v23 = vrot.slane %v13977_v58, 1 }
 0x495   : > { %7035 = vst.msk [vmem:[#allocation2 + $0x40] sm:$0xff] %vm599_vm6, %v7024_v15  ;;  %v7156_v6 = vadd.f32 %v7145_v50, %v13795_v42  ;;  %v8288_v42 = vrot.slane %v8286_v28, 2  ;;  %v13936_v5 = vor.u32 %v8090_v44, %v8087_v53  ;;  %v10468_v50 = vld [vmem:[%s11042_s14 + $0x38] sm:$0xf] }
 0x496   : > { %v6681_v30 = vpop.f32.mrf.mxu1  ;;  %10546 = vmatmul.msk.bf16.gmra.mxu0 %vm535_vm2, %v8442_v31  ;;  %v13993_v20 = vor.u32 %v8297_v1, %v8294_v48  ;;  %v7323_v44 = vld [vmem:[#allocation2 + $0x10] sm:$0xff]  ;;  %v7919_v31 = vsel %vm1156_vm4, %v7916_v54, %v7918_v23 }
 0x497   : > { %v13928_v55 = vpop.f32.mrf.mxu3  ;;  %7167 = vst.msk [vmem:[#allocation2 + $0x38] sm:$0xff] %vm599_vm6, %v7156_v6  ;;  %v13940_v2 = vor.u32 %v8288_v42, %v8285_v41  ;;  %v8092_v45 = vsel %vm1451_vm5, %v13889_v49, %v13936_v5  ;;  %v8097_v49 = vshll.u32 %v10825_v36, 16 }
 0x498   : > { %v6882_v40 = vld [vmem:[#allocation2 + $0x50] sm:$0xff] }
 0x499   : > { %v6893_v0 = vadd.f32 %v6882_v40, %v6868_v16  ;;  %v8290_v11 = vsel %vm1451_vm5, %v13893_v27, %v13940_v2  ;;  %v8099_v62 = vrot.slane %v8097_v49, 2  ;;  %v10826_v16 = vld [vmem:[%s11042_s14 + $0x38] sm:$0x30] }
 0x49a   : > { %v7014_v9 = vld [vmem:[#allocation2 + $0x48] sm:$0xff]  ;;  %v10469_v41 = vor.u32 %v10826_v16, %v10468_v50 }
 0x49b   : > { %v7025_v51 = vadd.f32 %v7014_v9, %v13854_v63  ;;  %6904 = vst.msk [vmem:[#allocation2 + $0x50] sm:$0xff] %vm599_vm6, %v6893_v0  ;;  %v13942_v22 = vpop.f32.mrf.mxu0  ;;  %v7917_v63 = vsel %vm1156_vm4, %v7914_v24, %v7916_v54  ;;  %v8094_v24 = vshrl.u32 %v10825_v36, 16  ;;  %v8299_v9 = vsel %vm1451_vm5, %v13940_v2, %v13993_v20  ;;  %v10542_v54 = vld [vmem:[%s11042_s14 + $0x38] sm:$0xf]  ;;  %v7324_v36 = vld [vmem:[#allocation2 + $0x18] sm:$0xff]  ;;  %v7326_v16 = vld [vmem:[#allocation2 + $0x28] sm:$0xff] }
 0x49c   : > { %v7146_v52 = vld [vmem:[#allocation2 + $0x40] sm:$0xff]  ;;  %v6870_v39 = vpop.f32.mrf.mxu2 }
 0x49d   : > { %7036 = vst.msk [vmem:[#allocation2 + $0x48] sm:$0xff] %vm599_vm6, %v7025_v51  ;;  %v7157_v21 = vadd.f32 %v7146_v52, %v13821_v25  ;;  %v8103_v52 = vshrl.u32 %v10469_v41, 16  ;;  %v8106_v39 = vshll.u32 %v10469_v41, 16 }
 0x49e   : > { %v7292_v26 = vpop.f32.mrf.mxu1 }
 0x49f   : > { %v13957_v56 = vpop.f32.mrf.mxu3  ;;  %7168 = vst.msk [vmem:[#allocation2 + $0x40] sm:$0xff] %vm599_vm6, %v7157_v21  ;;  %v7332_v25 = vadd.f32 %v7321_v37, %v7292_v26  ;;  %v10820_v26 = vld [vmem:[%s11042_s14 + $0x78] sm:$0x10]  ;;  %v8108_v57 = vrot.slane %v8106_v39, 2 }
 0x4a1   : > { %7343 = vst.msk [vmem:[#allocation2] sm:$0xff] %vm599_vm6, %v7332_v25  ;;  %10441 = vmatmul.msk.bf16.gmra.mxu1 %vm535_vm2, %v7917_v63  ;;  %10472 = vmatmul.msk.bf16.gmra.mxu2 %vm535_vm2, %v8092_v45  ;;  %v10438_v25 = vor.u32 %v10820_v26, %v10437_v29 }
 0x4a2   : > { %v7015_v34 = vld [vmem:[#allocation2 + $0x50] sm:$0xff] }
 0x4a3   : > { %v7026_v4 = vadd.f32 %v7015_v34, %v13878_v12  ;;  %v13971_v27 = vpop.f32.mrf.mxu0  ;;  %v8096_v12 = vrot.slane %v8094_v24, 1 }
 0x4a4   : > { %10516 = vmatmul.msk.bf16.gmra.mxu3 %vm535_vm2, %v8290_v11  ;;  %v7147_v59 = vld [vmem:[#allocation2 + $0x48] sm:$0xff]  ;;  %v7475_v8 = vpop.f32.mrf.mxu2  ;;  %v8105_v11 = vrot.slane %v8103_v52, 1 }
 0x4a5   : > { %7037 = vst.msk [vmem:[#allocation2 + $0x50] sm:$0xff] %vm599_vm6, %v7026_v4  ;;  %v7158_v10 = vadd.f32 %v7147_v59, %v13844_v46  ;;  %v13988_v15 = vor.u32 %v8099_v62, %v8096_v12  ;;  %v7325_v12 = vld [vmem:[#allocation2 + $0x20] sm:$0xff] }
 0x4a6   : > { %v7294_v33 = vpop.f32.mrf.mxu1  ;;  %10547 = vmatmul.msk.bf16.gmra.mxu0 %vm535_vm2, %v8444_v13  ;;  %v8109_v17 = vor.u32 %v8108_v57, %v8105_v11 }
 0x4a7   : > { %v13979_v61 = vpop.f32.mrf.mxu3  ;;  %7169 = vst.msk [vmem:[#allocation2 + $0x48] sm:$0xff] %vm599_vm6, %v7158_v10  ;;  %v7333_v43 = vadd.f32 %v7322_v18, %v7294_v33  ;;  %v8101_v40 = vsel %vm1451_vm5, %v13936_v5, %v13988_v15  ;;  %v10838_v5 = vld [vmem:[%s11042_s14 + $0x38] sm:$0x30] }
 0x4a8   : > { %v7504_v46 = vld [vmem:[#allocation2] sm:$0xff]  ;;  %v10543_v21 = vor.u32 %v10838_v5, %v10542_v54  ;;  %v8110_v13 = vsel %vm1451_vm5, %v13988_v15, %v8109_v17 }
 0x4a9   : > { %v7515_v7 = vadd.f32 %v7504_v46, %v7475_v8  ;;  %7344 = vst.msk [vmem:[#allocation2 + $0x8] sm:$0xff] %vm599_vm6, %v7333_v43  ;;  %v7920_v8 = vrot.slane %v10438_v25, 1 }
 0x4aa   : > { %v8445_v63 = vrot.slane %v10543_v21, 2 }
 0x4ab   : > { %7526 = vst.msk [vmem:[#allocation2] sm:$0xff] %vm599_vm6, %v7515_v7  ;;  %v13995_v6 = vpop.f32.mrf.mxu0  ;;  %v7921_v62 = vsel %vm1156_vm4, %v7918_v23, %v7920_v8 }
 0x4ac   : > { %v7148_v38 = vld [vmem:[#allocation2 + $0x50] sm:$0xff]  ;;  %v7477_v28 = vpop.f32.mrf.mxu2 }
 0x4ad   : > { %v7159_v30 = vadd.f32 %v7148_v38, %v13870_v14 }
 0x4ae   : > { %v7297_v53 = vpop.f32.mrf.mxu1 }
 0x4af   : > { %v14006_v42 = vpop.f32.mrf.mxu3  ;;  %7170 = vst.msk [vmem:[#allocation2 + $0x50] sm:$0xff] %vm599_vm6, %v7159_v30  ;;  %v7334_v14 = vadd.f32 %v7323_v44, %v7297_v53 }
 0x4b0   : > { %v7505_v0 = vld [vmem:[#allocation2 + $0x8] sm:$0xff] }
 0x4b1   : > { %v7516_v35 = vadd.f32 %v7505_v0, %v7477_v28  ;;  %7345 = vst.msk [vmem:[#allocation2 + $0x10] sm:$0xff] %vm599_vm6, %v7334_v14  ;;  %10442 = vmatmul.msk.bf16.gmra.mxu1 %vm535_vm2, %v7919_v31  ;;  %10473 = vmatmul.msk.bf16.gmra.mxu2 %vm535_vm2, %v8101_v40  ;;  %v7327_v14 = vld [vmem:[#allocation2 + $0x30] sm:$0xff] }
 0x4b2   : > { %v7687_v51 = vld [vmem:[#allocation2] sm:$0xff] }
 0x4b3   : > { %v7698_v60 = vadd.f32 %v7687_v51, %v13928_v55  ;;  %7527 = vst.msk [vmem:[#allocation2 + $0x8] sm:$0xff] %vm599_vm6, %v7516_v35  ;;  %v14022_v37 = vpop.f32.mrf.mxu0  ;;  %v8446_v55 = vsel %vm3136_vm7, %v8443_v3, %v8445_v63 }
 0x4b4   : > { %10517 = vmatmul.msk.bf16.gmra.mxu3 %vm535_vm2, %v8299_v9  ;;  %v7480_v2 = vpop.f32.mrf.mxu2 }
 0x4b5   : > { %7709 = vst.msk [vmem:[#allocation2] sm:$0xff] %vm599_vm6, %v7698_v60  ;;  %v7328_v60 = vld [vmem:[#allocation2 + $0x38] sm:$0xff] }
 0x4b6   : > { %v7299_v45 = vpop.f32.mrf.mxu1  ;;  %10548 = vmatmul.msk.bf16.gmra.mxu0 %vm535_vm2, %v8446_v55  ;;  %v7329_v55 = vld [vmem:[#allocation2 + $0x40] sm:$0xff] }
 0x4b7   : > { %v14025_v34 = vpop.f32.mrf.mxu3  ;;  %v7335_v24 = vadd.f32 %v7324_v36, %v7299_v45 }
 0x4b8   : > { %v7506_v49 = vld [vmem:[#allocation2 + $0x10] sm:$0xff] }
 0x4b9   : > { %v7517_v4 = vadd.f32 %v7506_v49, %v7480_v2  ;;  %7346 = vst.msk [vmem:[#allocation2 + $0x18] sm:$0xff] %vm599_vm6, %v7335_v24 }
 0x4ba   : > { %v7688_v59 = vld [vmem:[#allocation2 + $0x8] sm:$0xff] }
 0x4bb   : > { %v7699_v19 = vadd.f32 %v7688_v59, %v13957_v56  ;;  %7528 = vst.msk [vmem:[#allocation2 + $0x10] sm:$0xff] %vm599_vm6, %v7517_v4  ;;  %v14034_v18 = vpop.f32.mrf.mxu0 }
 0x4bc   : > { %v7834_v10 = vld [vmem:[#allocation2] sm:$0xff]  ;;  %v7482_v33 = vpop.f32.mrf.mxu2 }
 0x4bd   : > { %7710 = vst.msk [vmem:[#allocation2 + $0x8] sm:$0xff] %vm599_vm6, %v7699_v19  ;;  %v7845_v32 = vadd.f32 %v7834_v10, %v13920_v47 }
 0x4be   : > { %v7302_v3 = vpop.f32.mrf.mxu1 }
 0x4bf   : > { %v7670_v56 = vpop.f32.mrf.mxu3  ;;  %7856 = vst.msk [vmem:[#allocation2] sm:$0xff] %vm599_vm6, %v7845_v32  ;;  %v7336_v43 = vadd.f32 %v7325_v12, %v7302_v3  ;;  %v7330_v3 = vld [vmem:[#allocation2 + $0x48] sm:$0xff] }
 0x4c0   : > { %v7507_v46 = vld [vmem:[#allocation2 + $0x18] sm:$0xff] }
 0x4c1   : > { %v7518_v48 = vadd.f32 %v7507_v46, %v7482_v33  ;;  %7347 = vst.msk [vmem:[#allocation2 + $0x20] sm:$0xff] %vm599_vm6, %v7336_v43  ;;  %10443 = vmatmul.msk.bf16.gmra.mxu1 %vm535_vm2, %v7921_v62  ;;  %10474 = vmatmul.msk.bf16.gmra.mxu2 %vm535_vm2, %v8110_v13 }
 0x4c2   : > { %v7689_v47 = vld [vmem:[#allocation2 + $0x10] sm:$0xff] }
 0x4c3   : > { %v7700_v58 = vadd.f32 %v7689_v47, %v13979_v61  ;;  %7529 = vst.msk [vmem:[#allocation2 + $0x18] sm:$0xff] %vm599_vm6, %v7518_v48  ;;  %v14051_v23 = vpop.f32.mrf.mxu0 }
 0x4c4   : > { %10518 = vmatmul.msk.bf16.gmra.mxu3 %vm535_vm2, %v13993_v20  ;;  %v7835_v1 = vld [vmem:[#allocation2 + $0x8] sm:$0xff]  ;;  %v7485_v7 = vpop.f32.mrf.mxu2 }
 0x4c5   : > { %7711 = vst.msk [vmem:[#allocation2 + $0x10] sm:$0xff] %vm599_vm6, %v7700_v58  ;;  %v7846_v15 = vadd.f32 %v7835_v1, %v13942_v22 }
 0x4c6   : > { %v7304_v50 = vpop.f32.mrf.mxu1  ;;  %10549 = vmatmul.msk.bf16.gmra.mxu0 %vm535_vm2, %v8445_v63 }
 0x4c7   : > { %v7673_v38 = vpop.f32.mrf.mxu3  ;;  %7857 = vst.msk [vmem:[#allocation2 + $0x8] sm:$0xff] %vm599_vm6, %v7846_v15  ;;  %v7337_v28 = vadd.f32 %v7326_v16, %v7304_v50 }
 0x4c8   : > { %v7508_v61 = vld [vmem:[#allocation2 + $0x20] sm:$0xff] }
 0x4c9   : > { %v7519_v30 = vadd.f32 %v7508_v61, %v7485_v7  ;;  %7348 = vst.msk [vmem:[#allocation2 + $0x28] sm:$0xff] %vm599_vm6, %v7337_v28  ;;  %v7331_v7 = vld [vmem:[#allocation2 + $0x50] sm:$0xff] }
 0x4ca   : > { %v7690_v20 = vld [vmem:[#allocation2 + $0x18] sm:$0xff] }
 0x4cb   : > { %v7701_v53 = vadd.f32 %v7690_v20, %v14006_v42  ;;  %7530 = vst.msk [vmem:[#allocation2 + $0x20] sm:$0xff] %vm599_vm6, %v7519_v30  ;;  %v14060_v22 = vpop.f32.mrf.mxu0 }
 0x4cc   : > { %v7836_v44 = vld [vmem:[#allocation2 + $0x10] sm:$0xff]  ;;  %v7487_v31 = vpop.f32.mrf.mxu2 }
 0x4cd   : > { %7712 = vst.msk [vmem:[#allocation2 + $0x18] sm:$0xff] %vm599_vm6, %v7701_v53  ;;  %v7847_v40 = vadd.f32 %v7836_v44, %v13971_v27 }
 0x4ce   : > { %v7307_v41 = vpop.f32.mrf.mxu1 }
 0x4cf   : > { %v7675_v0 = vpop.f32.mrf.mxu3  ;;  %7858 = vst.msk [vmem:[#allocation2 + $0x10] sm:$0xff] %vm599_vm6, %v7847_v40  ;;  %v7338_v9 = vadd.f32 %v7327_v14, %v7307_v41 }
 0x4d0   : > { %v7509_v35 = vld [vmem:[#allocation2 + $0x28] sm:$0xff] }
 0x4d1   : > { %v7520_v54 = vadd.f32 %v7509_v35, %v7487_v31  ;;  %7349 = vst.msk [vmem:[#allocation2 + $0x30] sm:$0xff] %vm599_vm6, %v7338_v9  ;;  %10444 = vmatmul.msk.bf16.gmra.mxu1 %vm535_vm2, %v7920_v8  ;;  %10475 = vmatmul.msk.bf16.gmra.mxu2 %vm535_vm2, %v8109_v17 }
 0x4d2   : > { %v7691_v42 = vld [vmem:[#allocation2 + $0x20] sm:$0xff] }
 0x4d3   : > { %v7702_v5 = vadd.f32 %v7691_v42, %v14025_v34  ;;  %7531 = vst.msk [vmem:[#allocation2 + $0x28] sm:$0xff] %vm599_vm6, %v7520_v54  ;;  %v14070_v52 = vpop.f32.mrf.mxu0 }
 0x4d4   : > { %v7837_v27 = vld [vmem:[#allocation2 + $0x18] sm:$0xff]  ;;  %v7490_v51 = vpop.f32.mrf.mxu2 }
 0x4d5   : > { %7713 = vst.msk [vmem:[#allocation2 + $0x20] sm:$0xff] %vm599_vm6, %v7702_v5  ;;  %v7848_v39 = vadd.f32 %v7837_v27, %v13995_v6 }
 0x4d6   : > { %v7309_v21 = vpop.f32.mrf.mxu1 }
 0x4d7   : > { %v7678_v29 = vpop.f32.mrf.mxu3  ;;  %7859 = vst.msk [vmem:[#allocation2 + $0x18] sm:$0xff] %vm599_vm6, %v7848_v39  ;;  %v7339_v26 = vadd.f32 %v7328_v60, %v7309_v21 }
 0x4d8   : > { %v7510_v2 = vld [vmem:[#allocation2 + $0x30] sm:$0xff] }
 0x4d9   : > { %v7521_v63 = vadd.f32 %v7510_v2, %v7490_v51  ;;  %7350 = vst.msk [vmem:[#allocation2 + $0x38] sm:$0xff] %vm599_vm6, %v7339_v26 }
 0x4da   : > { %v7692_v45 = vld [vmem:[#allocation2 + $0x28] sm:$0xff] }
 0x4db   : > { %v7703_v36 = vadd.f32 %v7692_v45, %v7670_v56  ;;  %7532 = vst.msk [vmem:[#allocation2 + $0x30] sm:$0xff] %vm599_vm6, %v7521_v63  ;;  %v14077_v57 = vpop.f32.mrf.mxu0 }
 0x4dc   : > { %v7838_v25 = vld [vmem:[#allocation2 + $0x20] sm:$0xff]  ;;  %v7492_v11 = vpop.f32.mrf.mxu2 }
 0x4dd   : > { %7714 = vst.msk [vmem:[#allocation2 + $0x28] sm:$0xff] %vm599_vm6, %v7703_v36  ;;  %v7849_v6 = vadd.f32 %v7838_v25, %v14022_v37 }
 0x4de   : > { %v7312_v34 = vpop.f32.mrf.mxu1 }
 0x4df   : > { %v7680_v24 = vpop.f32.mrf.mxu3  ;;  %7860 = vst.msk [vmem:[#allocation2 + $0x20] sm:$0xff] %vm599_vm6, %v7849_v6  ;;  %v7340_v49 = vadd.f32 %v7329_v55, %v7312_v34 }
 0x4e0   : > { %v7511_v4 = vld [vmem:[#allocation2 + $0x38] sm:$0xff] }
 0x4e1   : > { %v7522_v59 = vadd.f32 %v7511_v4, %v7492_v11  ;;  %7351 = vst.msk [vmem:[#allocation2 + $0x40] sm:$0xff] %vm599_vm6, %v7340_v49  ;;  %v7983_v49 = vld [vmem:[#allocation2 + $0x10] sm:$0xff] }
 0x4e2   : > { %v7693_v8 = vld [vmem:[#allocation2 + $0x30] sm:$0xff] }
 0x4e3   : > { %v7704_v17 = vadd.f32 %v7693_v8, %v7673_v38  ;;  %7533 = vst.msk [vmem:[#allocation2 + $0x38] sm:$0xff] %vm599_vm6, %v7522_v59  ;;  %v14084_v33 = vpop.f32.mrf.mxu0 }
 0x4e4   : > { %v7839_v19 = vld [vmem:[#allocation2 + $0x28] sm:$0xff]  ;;  %v7495_v10 = vpop.f32.mrf.mxu2 }
 0x4e5   : > { %7715 = vst.msk [vmem:[#allocation2 + $0x30] sm:$0xff] %vm599_vm6, %v7704_v17  ;;  %v7850_v37 = vadd.f32 %v7839_v19, %v14034_v18 }
 0x4e6   : > { %v7314_v32 = vpop.f32.mrf.mxu1 }
 0x4e7   : > { %v7683_v12 = vpop.f32.mrf.mxu3  ;;  %7861 = vst.msk [vmem:[#allocation2 + $0x28] sm:$0xff] %vm599_vm6, %v7850_v37  ;;  %v7341_v62 = vadd.f32 %v7330_v3, %v7314_v32  ;;  %v7984_v3 = vld [vmem:[#allocation2 + $0x18] sm:$0xff] }
 0x4e8   : > { %v7512_v13 = vld [vmem:[#allocation2 + $0x40] sm:$0xff] }
 0x4e9   : > { %v7523_v56 = vadd.f32 %v7512_v13, %v7495_v10  ;;  %7352 = vst.msk [vmem:[#allocation2 + $0x48] sm:$0xff] %vm599_vm6, %v7341_v62 }
 0x4ea   : > { %v7694_v43 = vld [vmem:[#allocation2 + $0x38] sm:$0xff] }
 0x4eb   : > { %v7705_v46 = vadd.f32 %v7694_v43, %v7675_v0  ;;  %7534 = vst.msk [vmem:[#allocation2 + $0x40] sm:$0xff] %vm599_vm6, %v7523_v56  ;;  %v7832_v58 = vpop.f32.mrf.mxu0 }
 0x4ec   : > { %v7840_v48 = vld [vmem:[#allocation2 + $0x30] sm:$0xff]  ;;  %v7497_v47 = vpop.f32.mrf.mxu2 }
 0x4ed   : > { %7716 = vst.msk [vmem:[#allocation2 + $0x38] sm:$0xff] %vm599_vm6, %v7705_v46  ;;  %v7851_v18 = vadd.f32 %v7840_v48, %v14051_v23 }
 0x4ee   : > { %v7317_v1 = vpop.f32.mrf.mxu1 }
 0x4ef   : > { %v7685_v15 = vpop.f32.mrf.mxu3  ;;  %7862 = vst.msk [vmem:[#allocation2 + $0x30] sm:$0xff] %vm599_vm6, %v7851_v18  ;;  %v7342_v50 = vadd.f32 %v7331_v7, %v7317_v1  ;;  %v7985_v7 = vld [vmem:[#allocation2 + $0x20] sm:$0xff] }
 0x4f0   : > { %v7513_v16 = vld [vmem:[#allocation2 + $0x48] sm:$0xff] }
 0x4f1   : > { %v7524_v38 = vadd.f32 %v7513_v16, %v7497_v47  ;;  %7353 = vst.msk [vmem:[#allocation2 + $0x50] sm:$0xff] %vm599_vm6, %v7342_v50 }
 0x4f2   : > { %v7695_v28 = vld [vmem:[#allocation2 + $0x40] sm:$0xff] }
 0x4f3   : > { %v7706_v61 = vadd.f32 %v7695_v28, %v7678_v29  ;;  %7535 = vst.msk [vmem:[#allocation2 + $0x48] sm:$0xff] %vm599_vm6, %v7524_v38  ;;  %v14096_v53 = vpop.f32.mrf.mxu0 }
 0x4f4   : > { %v7841_v30 = vld [vmem:[#allocation2 + $0x38] sm:$0xff]  ;;  %v7500_v20 = vpop.f32.mrf.mxu2 }
 0x4f5   : > { %7717 = vst.msk [vmem:[#allocation2 + $0x40] sm:$0xff] %vm599_vm6, %v7706_v61  ;;  %v7852_v23 = vadd.f32 %v7841_v30, %v14060_v22  ;;  %v7981_v22 = vld [vmem:[#allocation2] sm:$0xff] }
 0x4f6   : > { %v7319_v44 = vpop.f32.mrf.mxu1  ;;  %v14145_v61 = vld [vmem:[%s14281_s2] ss:$0 sm:$0xff] }
 0x4f7   : > { %v8330_v31 = vpop.f32.mrf.mxu3  ;;  %7863 = vst.msk [vmem:[#allocation2 + $0x38] sm:$0xff] %vm599_vm6, %v7852_v23  ;;  %v14151_v23 = vld [vmem:[%s14282_s3] ss:$0 sm:$0xff] }
 0x4f8   : > { %v7514_v40 = vld [vmem:[#allocation2 + $0x50] sm:$0xff] }
 0x4f9   : > { %v7525_v41 = vadd.f32 %v7514_v40, %v7500_v20 }
 0x4fa   : > { %v7696_v14 = vld [vmem:[#allocation2 + $0x48] sm:$0xff] }
 0x4fb   : > { %v7707_v0 = vadd.f32 %v7696_v14, %v7680_v24  ;;  %7536 = vst.msk [vmem:[#allocation2 + $0x50] sm:$0xff] %vm599_vm6, %v7525_v41  ;;  %v14102_v54 = vpop.f32.mrf.mxu0  ;;  %v7986_v14 = vld [vmem:[#allocation2 + $0x28] sm:$0xff] }
 0x4fc   : > { %v7842_v9 = vld [vmem:[#allocation2 + $0x40] sm:$0xff]  ;;  %v7502_v35 = vpop.f32.mrf.mxu2 }
 0x4fd   : > { %7718 = vst.msk [vmem:[#allocation2 + $0x48] sm:$0xff] %vm599_vm6, %v7707_v0  ;;  %v7853_v42 = vadd.f32 %v7842_v9, %v14070_v52  ;;  %v7982_v52 = vld [vmem:[#allocation2 + $0x8] sm:$0xff] }
 0x4fe   : > { %v7952_v5 = vpop.f32.mrf.mxu1 }
 0x4ff   : > { %v8332_v27 = vpop.f32.mrf.mxu3  ;;  %7864 = vst.msk [vmem:[#allocation2 + $0x40] sm:$0xff] %vm599_vm6, %v7853_v42  ;;  %v7992_v51 = vadd.f32 %v7981_v22, %v7952_v5 }
 0x501   : > { %8003 = vst.msk [vmem:[#allocation2] sm:$0xff] %vm599_vm6, %v7992_v51 }
 0x502   : > { %v7697_v39 = vld [vmem:[#allocation2 + $0x50] sm:$0xff] }
 0x503   : > { %v7708_v21 = vadd.f32 %v7697_v39, %v7683_v12  ;;  %v14110_v2 = vpop.f32.mrf.mxu0 }
 0x504   : > { %v7843_v60 = vld [vmem:[#allocation2 + $0x48] sm:$0xff]  ;;  %v8141_v29 = vpop.f32.mrf.mxu2 }
 0x505   : > { %7719 = vst.msk [vmem:[#allocation2 + $0x50] sm:$0xff] %vm599_vm6, %v7708_v21  ;;  %v7854_v26 = vadd.f32 %v7843_v60, %v14077_v57 }
 0x506   : > { %v7954_v63 = vpop.f32.mrf.mxu1 }
 0x507   : > { %v8335_v45 = vpop.f32.mrf.mxu3  ;;  %7865 = vst.msk [vmem:[#allocation2 + $0x48] sm:$0xff] %vm599_vm6, %v7854_v26  ;;  %v7993_v36 = vadd.f32 %v7982_v52, %v7954_v63  ;;  %v7987_v52 = vld [vmem:[#allocation2 + $0x30] sm:$0xff] }
 0x508   : > { %v8170_v25 = vld [vmem:[#allocation2] sm:$0xff] }
 0x509   : > { %v8181_v11 = vadd.f32 %v8170_v25, %v8141_v29  ;;  %8004 = vst.msk [vmem:[#allocation2 + $0x8] sm:$0xff] %vm599_vm6, %v7993_v36 }
 0x50b   : > { %8192 = vst.msk [vmem:[#allocation2] sm:$0xff] %vm599_vm6, %v8181_v11  ;;  %v14116_v24 = vpop.f32.mrf.mxu0 }
 0x50c   : > { %v7844_v6 = vld [vmem:[#allocation2 + $0x50] sm:$0xff]  ;;  %v8143_v34 = vpop.f32.mrf.mxu2 }
 0x50d   : > { %v7855_v55 = vadd.f32 %v7844_v6, %v14084_v33 }
 0x50e   : > { %v7957_v57 = vpop.f32.mrf.mxu1 }
 0x50f   : > { %v14118_v4 = vpop.f32.mrf.mxu3  ;;  %7866 = vst.msk [vmem:[#allocation2 + $0x50] sm:$0xff] %vm599_vm6, %v7855_v55  ;;  %v7994_v59 = vadd.f32 %v7983_v49, %v7957_v57 }
 0x510   : > { %v8171_v8 = vld [vmem:[#allocation2 + $0x8] sm:$0xff] }
 0x511   : > { %v8182_v17 = vadd.f32 %v8171_v8, %v8143_v34  ;;  %8005 = vst.msk [vmem:[#allocation2 + $0x10] sm:$0xff] %vm599_vm6, %v7994_v59 }
 0x512   : > { %v8359_v19 = vld [vmem:[#allocation2] sm:$0xff] }
 0x513   : > { %v8370_v10 = vadd.f32 %v8359_v19, %v8330_v31  ;;  %8193 = vst.msk [vmem:[#allocation2 + $0x8] sm:$0xff] %vm599_vm6, %v8182_v17  ;;  %v14124_v33 = vpop.f32.mrf.mxu0 }
 0x514   : > { %v8146_v37 = vpop.f32.mrf.mxu2 }
 0x515   : > { %8381 = vst.msk [vmem:[#allocation2] sm:$0xff] %vm599_vm6, %v8370_v10  ;;  %v7988_v10 = vld [vmem:[#allocation2 + $0x38] sm:$0xff] }
 0x516   : > { %v7959_v32 = vpop.f32.mrf.mxu1 }
 0x517   : > { %v14126_v12 = vpop.f32.mrf.mxu3  ;;  %v7995_v62 = vadd.f32 %v7984_v3, %v7959_v32 }
 0x518   : > { %v8172_v13 = vld [vmem:[#allocation2 + $0x10] sm:$0xff] }
 0x519   : > { %v8183_v56 = vadd.f32 %v8172_v13, %v8146_v37  ;;  %8006 = vst.msk [vmem:[#allocation2 + $0x18] sm:$0xff] %vm599_vm6, %v7995_v62 }
 0x51a   : > { %v8360_v43 = vld [vmem:[#allocation2 + $0x8] sm:$0xff] }
 0x51b   : > { %v8371_v46 = vadd.f32 %v8360_v43, %v8332_v27  ;;  %8194 = vst.msk [vmem:[#allocation2 + $0x10] sm:$0xff] %vm599_vm6, %v8183_v56  ;;  %v14132_v18 = vpop.f32.mrf.mxu0 }
 0x51c   : > { %v8506_v48 = vld [vmem:[#allocation2] sm:$0xff]  ;;  %v8148_v47 = vpop.f32.mrf.mxu2 }
 0x51d   : > { %8382 = vst.msk [vmem:[#allocation2 + $0x8] sm:$0xff] %vm599_vm6, %v8371_v46  ;;  %v8517_v58 = vadd.f32 %v8506_v48, %v14096_v53 }
 0x51e   : > { %v7962_v1 = vpop.f32.mrf.mxu1 }
 0x51f   : > { %v14136_v15 = vpop.f32.mrf.mxu3  ;;  %8528 = vst.msk [vmem:[#allocation2] sm:$0xff] %vm599_vm6, %v8517_v58  ;;  %v7996_v50 = vadd.f32 %v7985_v7, %v7962_v1  ;;  %v7989_v7 = vld [vmem:[#allocation2 + $0x40] sm:$0xff] }
 0x520   : > { %v8173_v16 = vld [vmem:[#allocation2 + $0x18] sm:$0xff] }
 0x521   : > { %v8184_v38 = vadd.f32 %v8173_v16, %v8148_v47  ;;  %8007 = vst.msk [vmem:[#allocation2 + $0x20] sm:$0xff] %vm599_vm6, %v7996_v50 }
 0x522   : > { %v8361_v28 = vld [vmem:[#allocation2 + $0x10] sm:$0xff] }
 0x523   : > { %v8372_v30 = vadd.f32 %v8361_v28, %v8335_v45  ;;  %8195 = vst.msk [vmem:[#allocation2 + $0x18] sm:$0xff] %vm599_vm6, %v8184_v38  ;;  %v14155_v31 = vpop.f32.mrf.mxu0 }
 0x524   : > { %v8507_v20 = vld [vmem:[#allocation2 + $0x8] sm:$0xff]  ;;  %v8151_v53 = vpop.f32.mrf.mxu2 }
 0x525   : > { %8383 = vst.msk [vmem:[#allocation2 + $0x10] sm:$0xff] %vm599_vm6, %v8372_v30  ;;  %v8518_v44 = vadd.f32 %v8507_v20, %v14102_v54 }
 0x526   : > { %v8539_v40 = vld [vmem:[#allocation2] sm:$0xff]  ;;  %v7964_v41 = vpop.f32.mrf.mxu1 }
 0x527   : > { %v14157_v0 = vpop.f32.mrf.mxu3  ;;  %v8554_v9 = vmul.f32 %v14145_v61, %v8539_v40  ;;  %8529 = vst.msk [vmem:[#allocation2 + $0x8] sm:$0xff] %vm599_vm6, %v8518_v44  ;;  %v7997_v35 = vadd.f32 %v7986_v14, %v7964_v41 }
 0x528   : > { %v8174_v42 = vld [vmem:[#allocation2 + $0x20] sm:$0xff] }
 0x529   : > { %v8569_v5 = vadd.f32 %v14151_v23, %v8554_v9  ;;  %v8185_v22 = vadd.f32 %v8174_v42, %v8151_v53  ;;  %8008 = vst.msk [vmem:[#allocation2 + $0x28] sm:$0xff] %vm599_vm6, %v7997_v35  ;;  %v7990_v42 = vld [vmem:[#allocation2 + $0x48] sm:$0xff] }
 0x52a   : > { %v8362_v54 = vld [vmem:[#allocation2 + $0x18] sm:$0xff] }
 0x52b   : > { %v8580_v27 = vpack.c.bf16 %v8569_v5, %v8569_v5  ;;  %v8373_v51 = vadd.f32 %v8362_v54, %v14118_v4  ;;  %8196 = vst.msk [vmem:[#allocation2 + $0x20] sm:$0xff] %vm599_vm6, %v8185_v22  ;;  %v14173_v29 = vpop.f32.mrf.mxu0 }
 0x52c   : > { %v8508_v39 = vld [vmem:[#allocation2 + $0x10] sm:$0xff]  ;;  %v8153_v21 = vpop.f32.mrf.mxu2 }
 0x52d   : > { %8592 = vst.msk [vmem:[%s14166_s18] sm:$0xf] %vm8591_vm11, %v8580_v27  ;;  %v8519_v60 = vadd.f32 %v8508_v39, %v14110_v2 }
 0x52e   : > { %v8540_v26 = vld [vmem:[#allocation2 + $0x8] sm:$0xff]  ;;  %8384 = vst.msk [vmem:[#allocation2 + $0x18] sm:$0xff] %vm599_vm6, %v8373_v51  ;;  %v7967_v63 = vpop.f32.mrf.mxu1 }
 0x52f   : > { %v14176_v45 = vpop.f32.mrf.mxu3  ;;  %v8555_v36 = vmul.f32 %v14145_v61, %v8540_v26  ;;  %8530 = vst.msk [vmem:[#allocation2 + $0x10] sm:$0xff] %vm599_vm6, %v8519_v60  ;;  %v7998_v25 = vadd.f32 %v7987_v52, %v7967_v63 }
 0x530   : > { %v8175_v11 = vld [vmem:[#allocation2 + $0x28] sm:$0xff] }
 0x531   : > { %v8570_v6 = vadd.f32 %v14151_v23, %v8555_v36  ;;  %v8186_v34 = vadd.f32 %v8175_v11, %v8153_v21  ;;  %8009 = vst.msk [vmem:[#allocation2 + $0x30] sm:$0xff] %vm599_vm6, %v7998_v25  ;;  %v7991_v11 = vld [vmem:[#allocation2 + $0x50] sm:$0xff] }
 0x532   : > { %v8363_v2 = vld [vmem:[#allocation2 + $0x20] sm:$0xff] }
 0x533   : > { %v8581_v55 = vpack.c.bf16 %v8570_v6, %v8570_v6  ;;  %v8374_v57 = vadd.f32 %v8363_v2, %v14126_v12  ;;  %8197 = vst.msk [vmem:[#allocation2 + $0x28] sm:$0xff] %vm599_vm6, %v8186_v34  ;;  %v14186_v59 = vpop.f32.mrf.mxu0 }
 0x534   : > { %v8156_v49 = vpop.f32.mrf.mxu2 }
 0x535   : > { %8593 = vst.msk [vmem:[%s14166_s18 + $0x4] sm:$0xf] %vm8591_vm11, %v8581_v55  ;;  %v8509_v4 = vld [vmem:[#allocation2 + $0x18] sm:$0xff] }
 0x536   : > { %v8541_v8 = vld [vmem:[#allocation2 + $0x10] sm:$0xff]  ;;  %8385 = vst.msk [vmem:[#allocation2 + $0x20] sm:$0xff] %vm599_vm6, %v8374_v57  ;;  %v8520_v17 = vadd.f32 %v8509_v4, %v14116_v24  ;;  %v7969_v19 = vpop.f32.mrf.mxu1 }
 0x537   : > { %v14190_v37 = vpop.f32.mrf.mxu3  ;;  %v8556_v32 = vmul.f32 %v14145_v61, %v8541_v8  ;;  %v7999_v3 = vadd.f32 %v7988_v10, %v7969_v19 }
 0x538   : > { %8531 = vst.msk [vmem:[#allocation2 + $0x18] sm:$0xff] %vm599_vm6, %v8520_v17  ;;  %v8176_v12 = vld [vmem:[#allocation2 + $0x30] sm:$0xff] }
 0x539   : > { %v8571_v62 = vadd.f32 %v14151_v23, %v8556_v32  ;;  %v8187_v13 = vadd.f32 %v8176_v12, %v8156_v49  ;;  %8010 = vst.msk [vmem:[#allocation2 + $0x38] sm:$0xff] %vm599_vm6, %v7999_v3 }
 0x53a   : > { %v8364_v56 = vld [vmem:[#allocation2 + $0x28] sm:$0xff] }
 0x53b   : > { %v8582_v43 = vpack.c.bf16 %v8571_v62, %v8571_v62  ;;  %v8375_v24 = vadd.f32 %v8364_v56, %v14136_v15  ;;  %8198 = vst.msk [vmem:[#allocation2 + $0x30] sm:$0xff] %vm599_vm6, %v8187_v13  ;;  %v14200_v47 = vpop.f32.mrf.mxu0 }
 0x53c   : > { %v8158_v46 = vpop.f32.mrf.mxu2 }
 0x53d   : > { %8594 = vst.msk [vmem:[%s14166_s18 + $0x8] sm:$0xf] %vm8591_vm11, %v8582_v43  ;;  %v8510_v48 = vld [vmem:[#allocation2 + $0x20] sm:$0xff] }
 0x53e   : > { %8386 = vst.msk [vmem:[#allocation2 + $0x28] sm:$0xff] %vm599_vm6, %v8375_v24  ;;  %v8521_v58 = vadd.f32 %v8510_v48, %v14124_v33  ;;  %v7972_v1 = vpop.f32.mrf.mxu1 }
 0x53f   : > { %v14204_v50 = vpop.f32.mrf.mxu3  ;;  %v8542_v16 = vld [vmem:[#allocation2 + $0x18] sm:$0xff]  ;;  %v8000_v38 = vadd.f32 %v7989_v7, %v7972_v1 }
 0x540   : > { %v8557_v15 = vmul.f32 %v14145_v61, %v8542_v16  ;;  %8532 = vst.msk [vmem:[#allocation2 + $0x20] sm:$0xff] %vm599_vm6, %v8521_v58  ;;  %v8177_v28 = vld [vmem:[#allocation2 + $0x38] sm:$0xff] }
 0x541   : > { %v8188_v30 = vadd.f32 %v8177_v28, %v8158_v46  ;;  %8011 = vst.msk [vmem:[#allocation2 + $0x40] sm:$0xff] %vm599_vm6, %v8000_v38 }
 0x542   : > { %v8572_v20 = vadd.f32 %v14151_v23, %v8557_v15  ;;  %v8365_v53 = vld [vmem:[#allocation2 + $0x30] sm:$0xff] }
 0x543   : > { %v8376_v33 = vadd.f32 %v8365_v53, %v14157_v0  ;;  %8199 = vst.msk [vmem:[#allocation2 + $0x38] sm:$0xff] %vm599_vm6, %v8188_v30  ;;  %v14213_v14 = vpop.f32.mrf.mxu0 }
 0x544   : > { %v8583_v44 = vpack.c.bf16 %v8572_v20, %v8572_v20  ;;  %v8161_v40 = vpop.f32.mrf.mxu2 }
 0x545   : > { %8387 = vst.msk [vmem:[#allocation2 + $0x30] sm:$0xff] %vm599_vm6, %v8376_v33  ;;  %v8511_v41 = vld [vmem:[#allocation2 + $0x28] sm:$0xff] }
 0x546   : > { %8595 = vst.msk [vmem:[%s14166_s18 + $0xc] sm:$0xf] %vm8591_vm11, %v8583_v44  ;;  %v8522_v9 = vadd.f32 %v8511_v41, %v14132_v18  ;;  %v7974_v35 = vpop.f32.mrf.mxu1 }
 0x547   : > { %v8355_v5 = vpop.f32.mrf.mxu3  ;;  %v8543_v22 = vld [vmem:[#allocation2 + $0x20] sm:$0xff]  ;;  %v8001_v54 = vadd.f32 %v7990_v42, %v7974_v35 }
 0x548   : > { %v8558_v0 = vmul.f32 %v14145_v61, %v8543_v22  ;;  %8533 = vst.msk [vmem:[#allocation2 + $0x28] sm:$0xff] %vm599_vm6, %v8522_v9  ;;  %v8178_v27 = vld [vmem:[#allocation2 + $0x40] sm:$0xff] }
 0x549   : > { %v8189_v51 = vadd.f32 %v8178_v27, %v8161_v40  ;;  %8012 = vst.msk [vmem:[#allocation2 + $0x48] sm:$0xff] %vm599_vm6, %v8001_v54 }
 0x54a   : > { %v8573_v39 = vadd.f32 %v14151_v23, %v8558_v0  ;;  %v8366_v21 = vld [vmem:[#allocation2 + $0x38] sm:$0xff] }
 0x54b   : > { %v8377_v60 = vadd.f32 %v8366_v21, %v14176_v45  ;;  %8200 = vst.msk [vmem:[#allocation2 + $0x40] sm:$0xff] %vm599_vm6, %v8189_v51  ;;  %v8504_v36 = vpop.f32.mrf.mxu0 }
 0x54c   : > { %v8584_v18 = vpack.c.bf16 %v8573_v39, %v8573_v39  ;;  %v8512_v26 = vld [vmem:[#allocation2 + $0x30] sm:$0xff]  ;;  %v8163_v63 = vpop.f32.mrf.mxu2 }
 0x54d   : > { %8388 = vst.msk [vmem:[#allocation2 + $0x38] sm:$0xff] %vm599_vm6, %v8377_v60  ;;  %v8523_v52 = vadd.f32 %v8512_v26, %v14155_v31 }
 0x54e   : > { %8596 = vst.msk [vmem:[%s14166_s18 + $0x10] sm:$0xf] %vm8591_vm11, %v8584_v18  ;;  %v7977_v25 = vpop.f32.mrf.mxu1 }
 0x54f   : > { %v8357_v6 = vpop.f32.mrf.mxu3  ;;  %v8544_v34 = vld [vmem:[#allocation2 + $0x28] sm:$0xff]  ;;  %8534 = vst.msk [vmem:[#allocation2 + $0x30] sm:$0xff] %vm599_vm6, %v8523_v52  ;;  %v8002_v45 = vadd.f32 %v7991_v11, %v7977_v25 }
 0x550   : > { %v8559_v2 = vmul.f32 %v14145_v61, %v8544_v34  ;;  %v8179_v55 = vld [vmem:[#allocation2 + $0x48] sm:$0xff] }
 0x551   : > { %v8190_v57 = vadd.f32 %v8179_v55, %v8163_v63  ;;  %8013 = vst.msk [vmem:[#allocation2 + $0x50] sm:$0xff] %vm599_vm6, %v8002_v45 }
 0x552   : > { %v8574_v49 = vadd.f32 %v14151_v23, %v8559_v2  ;;  %v8367_v31 = vld [vmem:[#allocation2 + $0x40] sm:$0xff] }
 0x553   : > { %v8378_v4 = vadd.f32 %v8367_v31, %v14190_v37  ;;  %8201 = vst.msk [vmem:[#allocation2 + $0x48] sm:$0xff] %vm599_vm6, %v8190_v57 }
 0x554   : > { %v8585_v8 = vpack.c.bf16 %v8574_v49, %v8574_v49  ;;  %v8513_v17 = vld [vmem:[#allocation2 + $0x38] sm:$0xff]  ;;  %v8166_v19 = vpop.f32.mrf.mxu2 }
 0x555   : > { %8389 = vst.msk [vmem:[#allocation2 + $0x40] sm:$0xff] %vm599_vm6, %v8378_v4  ;;  %v8524_v10 = vadd.f32 %v8513_v17, %v14173_v29 }
 0x556   : > { %8597 = vst.msk [vmem:[%s14166_s18 + $0x14] sm:$0xf] %vm8591_vm11, %v8585_v8  ;;  %v8545_v32 = vld [vmem:[#allocation2 + $0x30] sm:$0xff]  ;;  %v7979_v3 = vpop.f32.mrf.mxu1 }
 0x557   : > { %v8560_v12 = vmul.f32 %v14145_v61, %v8545_v32  ;;  %8535 = vst.msk [vmem:[#allocation2 + $0x38] sm:$0xff] %vm599_vm6, %v8524_v10 }
 0x558   : > { %v8180_v62 = vld [vmem:[#allocation2 + $0x50] sm:$0xff] }
 0x559   : > { %v8575_v37 = vadd.f32 %v14151_v23, %v8560_v12  ;;  %v8191_v13 = vadd.f32 %v8180_v62, %v8166_v19 }
 0x55a   : > { %v8368_v56 = vld [vmem:[#allocation2 + $0x48] sm:$0xff] }
 0x55b   : > { %v8586_v43 = vpack.c.bf16 %v8575_v37, %v8575_v37  ;;  %v8379_v24 = vadd.f32 %v8368_v56, %v14204_v50  ;;  %8202 = vst.msk [vmem:[#allocation2 + $0x50] sm:$0xff] %vm599_vm6, %v8191_v13 }
 0x55c   : > { %v8514_v29 = vld [vmem:[#allocation2 + $0x40] sm:$0xff]  ;;  %v8168_v46 = vpop.f32.mrf.mxu2 }
 0x55d   : > { %8598 = vst.msk [vmem:[%s14166_s18 + $0x18] sm:$0xf] %vm8591_vm11, %v8586_v43  ;;  %v8525_v48 = vadd.f32 %v8514_v29, %v14186_v59 }
 0x55e   : > { %v8546_v58 = vld [vmem:[#allocation2 + $0x38] sm:$0xff]  ;;  %8390 = vst.msk [vmem:[#allocation2 + $0x48] sm:$0xff] %vm599_vm6, %v8379_v24 }
 0x55f   : > { %v8561_v1 = vmul.f32 %v14145_v61, %v8546_v58  ;;  %8536 = vst.msk [vmem:[#allocation2 + $0x40] sm:$0xff] %vm599_vm6, %v8525_v48 }
 0x561   : > { %v8576_v7 = vadd.f32 %v14151_v23, %v8561_v1 }
 0x562   : > { %v8369_v16 = vld [vmem:[#allocation2 + $0x50] sm:$0xff] }
 0x563   : > { %v8587_v50 = vpack.c.bf16 %v8576_v7, %v8576_v7  ;;  %v8380_v38 = vadd.f32 %v8369_v16, %v8355_v5 }
 0x565   : > { %8599 = vst.msk [vmem:[%s14166_s18 + $0x1c] sm:$0xf] %vm8591_vm11, %v8587_v50  ;;  %v8515_v15 = vld [vmem:[#allocation2 + $0x48] sm:$0xff] }
 0x566   : > { %v8547_v28 = vld [vmem:[#allocation2 + $0x40] sm:$0xff]  ;;  %8391 = vst.msk [vmem:[#allocation2 + $0x50] sm:$0xff] %vm599_vm6, %v8380_v38  ;;  %v8526_v59 = vadd.f32 %v8515_v15, %v14200_v47 }
 0x567   : > { %v8562_v30 = vmul.f32 %v14145_v61, %v8547_v28 }
 0x568   : > { %8537 = vst.msk [vmem:[#allocation2 + $0x48] sm:$0xff] %vm599_vm6, %v8526_v59 }
 0x569   : > { %v8577_v20 = vadd.f32 %v14151_v23, %v8562_v30 }
 0x56b   : > { %v8588_v53 = vpack.c.bf16 %v8577_v20, %v8577_v20 }
 0x56d   : > { %8600 = vst.msk [vmem:[%s14166_s18 + $0x20] sm:$0xf] %vm8591_vm11, %v8588_v53  ;;  %v8516_v33 = vld [vmem:[#allocation2 + $0x50] sm:$0xff] }
 0x56e   : > { %v8527_v44 = vadd.f32 %v8516_v33, %v14213_v14 }
 0x56f   : > { %v8548_v40 = vld [vmem:[#allocation2 + $0x48] sm:$0xff] }
 0x570   : > { %v8563_v41 = vmul.f32 %v14145_v61, %v8548_v40  ;;  %8538 = vst.msk [vmem:[#allocation2 + $0x50] sm:$0xff] %vm599_vm6, %v8527_v44 }
 0x572   : > { %v8578_v47 = vadd.f32 %v14151_v23, %v8563_v41 }
 0x574   : > { %v8589_v9 = vpack.c.bf16 %v8578_v47, %v8578_v47 }
 0x576   : > { %8601 = vst.msk [vmem:[%s14166_s18 + $0x24] sm:$0xf] %vm8591_vm11, %v8589_v9 }
 0x577   : > { %v8549_v35 = vld [vmem:[#allocation2 + $0x50] sm:$0xff] }
 0x578   : > { %v8564_v42 = vmul.f32 %v14145_v61, %v8549_v35 }
 0x57a   : > { %v8579_v5 = vadd.f32 %v14151_v23, %v8564_v42 }
 0x57c   : > { %v8590_v22 = vpack.c.bf16 %v8579_v5, %v8579_v5 }
 0x57e   : > { %8602 = vst.msk [vmem:[%s14166_s18 + $0x28] sm:$0xf] %vm8591_vm11, %v8590_v22 }
 0x57f PF: > { %p11_p9 = scmp.ge.s32.totalorder %s10937_s19, 4   ;;  %s14284_s15 = smov %s10888_s16 }
 0x580   : > { %s14285_s16 = smov %s10946_s22  ;;  %s14286_s17 = smov %s10937_s19 }
 0x581   :  { %13 = sbr.rel (!%p11_p9) target bundleno = 2 (0x2), region = 163 }

</bundles_post_ra>
